<compile_context>
chip_gen: v6e
topology: v6e:2x2x1
jax: 0.10.0
libtpu: 0.0.40
codegen_flags: <defaults>
</compile_context>

<pallas_src>
import jax
import jax.numpy as jnp
import numpy as np
from jax.experimental import pallas as pl
from jax.experimental.pallas import tpu as pltpu

EPS = 1e-5          # PyTorch BatchNorm1d default eps
LANES = 128
SUBL_BF16 = 16      # bf16 sublane tile


def _round_up(x, m):
    return (x + m - 1) // m * m


def _ae_decoder_kernel(x_ref, w14_ref, w2_ref, w3_ref, slab_ref, o_ref):
    """Whole decoder forward in one kernel.

    x_ref    : (B, in_pad)           bf16
    w14_ref  : (in_pad + h3, wlast)  bf16  rows [0,in_pad) = W1, rest = W4 (lane-padded)
    w2_ref   : (h1, h2)              bf16
    w3_ref   : (h2, h3)              bf16
    slab_ref : (10, slab_w)          f32   rows 3i..3i+2 = (gamma_i, beta_i,
                                           alpha_i broadcast); row 9 = b4
    o_ref    : (B, out_pad)          f32   out_pad = multiple of 128 (dense vst)
    """
    batch = x_ref.shape[0]
    in_pad = x_ref.shape[1]
    h1 = w2_ref.shape[0]
    h3 = w3_ref.shape[1]
    out_pad = o_ref.shape[1]
    inv_b = 1.0 / batch

    # Ones operand for MXU-based batch (axis-0) reductions; hoisted once.
    ones_r = jnp.ones((8, batch), jnp.float32)

    def block(h_bf16, w, layer):
        # Linear. Bias omitted: exactly cancelled by train-mode BN mean sub.
        y = jnp.dot(h_bf16, w, preferred_element_type=jnp.float32)   # (B,h) f32
        hdim = y.shape[1]
        r = 3 * layer
        # Per-feature params read straight from the slab ref (static slices).
        g = slab_ref[r:r + 1, 0:hdim]          # gamma   (1,h)
        be = slab_ref[r + 1:r + 2, 0:hdim]     # beta    (1,h)
        al = slab_ref[r + 2:r + 3, 0:hdim]     # alpha broadcast over lanes
        # BatchNorm1d (training mode, biased var).  Batch sums ride the MXU
        # (ones @ y) so the cross-sublane reduction does not load the XLU;
        # centered two-pass variance avoids E[y^2]-mu^2 cancellation.
        mu = jnp.dot(ones_r, y, preferred_element_type=jnp.float32)[0:1, :] * inv_b
        c = y - mu
        var = jnp.dot(ones_r, c * c,
                      preferred_element_type=jnp.float32)[0:1, :] * inv_b
        yn = c * (g * jax.lax.rsqrt(var + EPS)) + be
        # PReLU (single shared alpha).
        z = jnp.where(yn >= 0.0, yn, al * yn)
        return z.astype(jnp.bfloat16)

    h = block(x_ref[...], w14_ref[0:in_pad, 0:h1], 0)
    h = block(h, w2_ref[...], 1)
    h = block(h, w3_ref[...], 2)
    # Final Linear (bias kept); output lane-padded -> unmasked lane-dense store.
    b4 = slab_ref[9:10, 0:out_pad]
    o_ref[...] = jnp.dot(h, w14_ref[in_pad:in_pad + h3, 0:out_pad],
                         preferred_element_type=jnp.float32) + b4


def pack_kernel_params(params, input_features, hidden_dims):
    """PyTorch-style params -> 4 consolidated kernel operands (+ x = 5 DMAs)."""
    assert len(hidden_dims) == 3, "kernel specialized for the default 3 hidden layers"
    idx = 0
    ws, gbas = [], []
    for _ in hidden_dims:
        w, _b, g, be, a = params[idx:idx + 5]   # _b cancelled by train-mode BN
        idx += 5
        ws.append(w)
        gbas.append((g, be, a))
    w_last, b_last = params[idx:idx + 2]

    out_features = w_last.shape[1]
    out_pad = _round_up(out_features, LANES)
    in_pad = _round_up(input_features, SUBL_BF16)
    w14_w = max(_round_up(hidden_dims[0], LANES), out_pad)
    slab_w = max(max(_round_up(h, LANES) for h in hidden_dims), out_pad)

    def pad2(a, rows, cols):
        return jnp.pad(a, ((0, rows - a.shape[0]), (0, cols - a.shape[1])))

    # W1 stacked on top of lane-padded W4: one bf16 operand, split in-kernel.
    w14 = jnp.concatenate([pad2(ws[0], in_pad, w14_w),
                           pad2(w_last, hidden_dims[-1], w14_w)],
                          axis=0).astype(jnp.bfloat16)
    w2 = ws[1].astype(jnp.bfloat16)
    w3 = ws[2].astype(jnp.bfloat16)

    # One f32 slab holding every small per-feature/scalar parameter.
    rows = []
    for (g, be, a) in gbas:
        rows.append(pad2(g, 1, slab_w))
        rows.append(pad2(be, 1, slab_w))
        rows.append(jnp.broadcast_to(a.reshape(1, 1), (1, slab_w)).astype(jnp.float32))
    rows.append(pad2(b_last, 1, slab_w))
    slab = jnp.concatenate(rows, axis=0).astype(jnp.float32)     # (10, slab_w)

    meta = dict(in_pad=in_pad, out_features=out_features, out_pad=out_pad)
    return (w14, w2, w3, slab), meta


def ae_decoder_forward(x, kparams, meta):
    w14, w2, w3, slab = kparams
    n, in_f = x.shape
    in_pad, out_features, out_pad = meta["in_pad"], meta["out_features"], meta["out_pad"]
    # Pre-cast to bf16 (halves the x DMA); zero-pad the contraction dim to the
    # bf16 sublane tile -- matching W1 rows are zero, so the result is exact.
    if in_pad != in_f:
        x = jnp.pad(x, ((0, 0), (0, in_pad - in_f)))
    x = x.astype(jnp.bfloat16)

    vmem = pl.BlockSpec(memory_space=pltpu.MemorySpace.VMEM)
    out_full = pl.pallas_call(
        _ae_decoder_kernel,
        out_shape=jax.ShapeDtypeStruct((n, out_pad), jnp.float32),
        in_specs=[vmem] * 5,
        out_specs=vmem,
    )(x, w14, w2, w3, slab)
    return out_full[:, :out_features]


def init_params(key, input_features, output_features, hidden_dims):
    """Deterministic synthetic params (shapes mirror the PyTorch module)."""
    params = []
    in_f = input_features
    for h_dim in hidden_dims:
        key, k_w, k_b, k_g, k_be = jax.random.split(key, 5)
        # Linear weight stored as (in, out) == PyTorch (out, in) transposed.
        w = jax.random.normal(k_w, (in_f, h_dim), jnp.float32) * 0.05
        b = jax.random.normal(k_b, (1, h_dim), jnp.float32) * 0.05
        g = 1.0 + jax.random.normal(k_g, (1, h_dim), jnp.float32) * 0.05
        be = jax.random.normal(k_be, (1, h_dim), jnp.float32) * 0.05
        a = jnp.full((1, 1), 0.25, jnp.float32)     # PReLU default init
        params += [w, b, g, be, a]
        in_f = h_dim
    key, k_w, k_b = jax.random.split(key, 3)
    w_last = jax.random.normal(k_w, (in_f, output_features), jnp.float32) * 0.05
    b_last = jax.random.normal(k_b, (1, output_features), jnp.float32) * 0.05
    params += [w_last, b_last]
    return params


def reference_forward(x, params, hidden_dims):
    """Pure-JAX f32 reference mirroring PyTorch training-mode forward
    (including the linear biases that the kernel provably cancels)."""
    h = x
    idx = 0
    for _ in hidden_dims:
        w, b, g, be, a = params[idx:idx + 5]
        idx += 5
        y = h @ w + b
        mu = jnp.mean(y, axis=0, keepdims=True)
        var = jnp.mean((y - mu) ** 2, axis=0, keepdims=True)
        y = (y - mu) / jnp.sqrt(var + EPS) * g + be
        h = jnp.where(y >= 0, y, a * y)
    w, b = params[idx:idx + 2]
    return h @ w + b


if __name__ == "__main__":
    batch = 256                 # >=256 rows -> full MXU row use on v6e/v7x
    input_features = 32
    output_features = 16
    hidden_dims = [128, 256, 512]   # module default

    key = jax.random.PRNGKey(0)
    key, kx = jax.random.split(key)
    x = jax.random.normal(kx, (batch, input_features), jnp.float32)
    params = init_params(key, input_features, output_features, hidden_dims)

    kparams, meta = pack_kernel_params(params, input_features, hidden_dims)
    out = ae_decoder_forward(x, kparams, meta)
    out = jax.block_until_ready(out)

    ref = reference_forward(x, params, hidden_dims)
    # bf16 MXU operands -> looser tolerance vs the full-f32 reference.
    np.testing.assert_allclose(np.asarray(out), np.asarray(ref),
                               rtol=5e-2, atol=5e-2)
    print("KERNEL_OK")
</pallas_src>

<mosaic_0001>
module attributes {stable_mosaic.version = 11 : i64} {
  func.func @_ae_decoder_kernel(%arg0: memref<256x32xbf16, #tpu.memory_space<vmem>>, %arg1: memref<544x128xbf16, #tpu.memory_space<vmem>>, %arg2: memref<128x256xbf16, #tpu.memory_space<vmem>>, %arg3: memref<256x512xbf16, #tpu.memory_space<vmem>>, %arg4: memref<10x512xf32, #tpu.memory_space<vmem>>, %arg5: memref<256x128xf32, #tpu.memory_space<vmem>>) attributes {dimension_semantics = [], scalar_prefetch = 0 : i64, scratch_operands = 0 : i64, tpu.core_type = #tpu.core_type<tc>} {
    %cst = arith.constant 1.000000e+00 : f32
    %0 = vector.broadcast %cst : f32 to vector<8x256xf32>
    %c0 = arith.constant 0 : index
    %c0_0 = arith.constant 0 : index
    %1 = vector.load %arg0[%c0, %c0_0] : memref<256x32xbf16, #tpu.memory_space<vmem>>, vector<256x32xbf16>
    %c0_1 = arith.constant 0 : index
    %c0_2 = arith.constant 0 : index
    %2 = vector.load %arg1[%c0_1, %c0_2] : memref<544x128xbf16, #tpu.memory_space<vmem>>, vector<32x128xbf16>
    %cst_3 = arith.constant dense<0.000000e+00> : vector<256x128xf32>
    %3 = tpu.matmul %1, %2, %cst_3 {dimension_numbers = #tpu.dot_dimension_numbers<[1], [0], [0], [1], [0, 0, 1, 1], [], []>} : vector<256x32xbf16>, vector<32x128xbf16>, vector<256x128xf32> -> vector<256x128xf32>
    %c0_4 = arith.constant 0 : index
    %c0_5 = arith.constant 0 : index
    %4 = vector.load %arg4[%c0_4, %c0_5] : memref<10x512xf32, #tpu.memory_space<vmem>>, vector<1x128xf32>
    %c1 = arith.constant 1 : index
    %c0_6 = arith.constant 0 : index
    %5 = vector.load %arg4[%c1, %c0_6] : memref<10x512xf32, #tpu.memory_space<vmem>>, vector<1x128xf32>
    %c2 = arith.constant 2 : index
    %c0_7 = arith.constant 0 : index
    %6 = vector.load %arg4[%c2, %c0_7] : memref<10x512xf32, #tpu.memory_space<vmem>>, vector<1x128xf32>
    %cst_8 = arith.constant dense<0.000000e+00> : vector<8x128xf32>
    %7 = tpu.matmul %0, %3, %cst_8 {dimension_numbers = #tpu.dot_dimension_numbers<[1], [0], [0], [1], [0, 0, 1, 1], [], []>} : vector<8x256xf32>, vector<256x128xf32>, vector<8x128xf32> -> vector<8x128xf32>
    %8 = vector.extract_strided_slice %7 {offsets = [0, 0], sizes = [1, 128], strides = [1, 1]} : vector<8x128xf32> to vector<1x128xf32>
    %cst_9 = arith.constant 3.906250e-03 : f32
    %9 = vector.broadcast %cst_9 : f32 to vector<1x128xf32>
    %10 = arith.mulf %8, %9 : vector<1x128xf32>
    %11 = vector.broadcast %10 : vector<1x128xf32> to vector<256x128xf32>
    %12 = arith.subf %3, %11 : vector<256x128xf32>
    %13 = arith.mulf %12, %12 : vector<256x128xf32>
    %cst_10 = arith.constant dense<0.000000e+00> : vector<8x128xf32>
    %14 = tpu.matmul %0, %13, %cst_10 {dimension_numbers = #tpu.dot_dimension_numbers<[1], [0], [0], [1], [0, 0, 1, 1], [], []>} : vector<8x256xf32>, vector<256x128xf32>, vector<8x128xf32> -> vector<8x128xf32>
    %15 = vector.extract_strided_slice %14 {offsets = [0, 0], sizes = [1, 128], strides = [1, 1]} : vector<8x128xf32> to vector<1x128xf32>
    %cst_11 = arith.constant 3.906250e-03 : f32
    %16 = vector.broadcast %cst_11 : f32 to vector<1x128xf32>
    %17 = arith.mulf %15, %16 : vector<1x128xf32>
    %cst_12 = arith.constant 9.99999974E-6 : f32
    %18 = vector.broadcast %cst_12 : f32 to vector<1x128xf32>
    %19 = arith.addf %17, %18 : vector<1x128xf32>
    %20 = math.rsqrt %19 : vector<1x128xf32>
    %21 = arith.mulf %4, %20 : vector<1x128xf32>
    %22 = vector.broadcast %21 : vector<1x128xf32> to vector<256x128xf32>
    %23 = arith.mulf %12, %22 : vector<256x128xf32>
    %24 = vector.broadcast %5 : vector<1x128xf32> to vector<256x128xf32>
    %25 = arith.addf %23, %24 : vector<256x128xf32>
    %cst_13 = arith.constant 0.000000e+00 : f32
    %26 = vector.broadcast %cst_13 : f32 to vector<256x128xf32>
    %27 = arith.cmpf oge, %25, %26 : vector<256x128xf32>
    %28 = vector.broadcast %6 : vector<1x128xf32> to vector<256x128xf32>
    %29 = arith.mulf %28, %25 : vector<256x128xf32>
    %30 = arith.select %27, %25, %29 : vector<256x128xi1>, vector<256x128xf32>
    %31 = arith.truncf %30 : vector<256x128xf32> to vector<256x128xbf16>
    %c0_14 = arith.constant 0 : index
    %c0_15 = arith.constant 0 : index
    %32 = vector.load %arg2[%c0_14, %c0_15] : memref<128x256xbf16, #tpu.memory_space<vmem>>, vector<128x256xbf16>
    %cst_16 = arith.constant dense<0.000000e+00> : vector<256x256xf32>
    %33 = tpu.matmul %31, %32, %cst_16 {dimension_numbers = #tpu.dot_dimension_numbers<[1], [0], [0], [1], [0, 0, 1, 1], [], []>} : vector<256x128xbf16>, vector<128x256xbf16>, vector<256x256xf32> -> vector<256x256xf32>
    %c3 = arith.constant 3 : index
    %c0_17 = arith.constant 0 : index
    %34 = vector.load %arg4[%c3, %c0_17] : memref<10x512xf32, #tpu.memory_space<vmem>>, vector<1x256xf32>
    %c4 = arith.constant 4 : index
    %c0_18 = arith.constant 0 : index
    %35 = vector.load %arg4[%c4, %c0_18] : memref<10x512xf32, #tpu.memory_space<vmem>>, vector<1x256xf32>
    %c5 = arith.constant 5 : index
    %c0_19 = arith.constant 0 : index
    %36 = vector.load %arg4[%c5, %c0_19] : memref<10x512xf32, #tpu.memory_space<vmem>>, vector<1x256xf32>
    %cst_20 = arith.constant dense<0.000000e+00> : vector<8x256xf32>
    %37 = tpu.matmul %0, %33, %cst_20 {dimension_numbers = #tpu.dot_dimension_numbers<[1], [0], [0], [1], [0, 0, 1, 1], [], []>} : vector<8x256xf32>, vector<256x256xf32>, vector<8x256xf32> -> vector<8x256xf32>
    %38 = vector.extract_strided_slice %37 {offsets = [0, 0], sizes = [1, 256], strides = [1, 1]} : vector<8x256xf32> to vector<1x256xf32>
    %cst_21 = arith.constant 3.906250e-03 : f32
    %39 = vector.broadcast %cst_21 : f32 to vector<1x256xf32>
    %40 = arith.mulf %38, %39 : vector<1x256xf32>
    %41 = vector.broadcast %40 : vector<1x256xf32> to vector<256x256xf32>
    %42 = arith.subf %33, %41 : vector<256x256xf32>
    %43 = arith.mulf %42, %42 : vector<256x256xf32>
    %cst_22 = arith.constant dense<0.000000e+00> : vector<8x256xf32>
    %44 = tpu.matmul %0, %43, %cst_22 {dimension_numbers = #tpu.dot_dimension_numbers<[1], [0], [0], [1], [0, 0, 1, 1], [], []>} : vector<8x256xf32>, vector<256x256xf32>, vector<8x256xf32> -> vector<8x256xf32>
    %45 = vector.extract_strided_slice %44 {offsets = [0, 0], sizes = [1, 256], strides = [1, 1]} : vector<8x256xf32> to vector<1x256xf32>
    %cst_23 = arith.constant 3.906250e-03 : f32
    %46 = vector.broadcast %cst_23 : f32 to vector<1x256xf32>
    %47 = arith.mulf %45, %46 : vector<1x256xf32>
    %cst_24 = arith.constant 9.99999974E-6 : f32
    %48 = vector.broadcast %cst_24 : f32 to vector<1x256xf32>
    %49 = arith.addf %47, %48 : vector<1x256xf32>
    %50 = math.rsqrt %49 : vector<1x256xf32>
    %51 = arith.mulf %34, %50 : vector<1x256xf32>
    %52 = vector.broadcast %51 : vector<1x256xf32> to vector<256x256xf32>
    %53 = arith.mulf %42, %52 : vector<256x256xf32>
    %54 = vector.broadcast %35 : vector<1x256xf32> to vector<256x256xf32>
    %55 = arith.addf %53, %54 : vector<256x256xf32>
    %cst_25 = arith.constant 0.000000e+00 : f32
    %56 = vector.broadcast %cst_25 : f32 to vector<256x256xf32>
    %57 = arith.cmpf oge, %55, %56 : vector<256x256xf32>
    %58 = vector.broadcast %36 : vector<1x256xf32> to vector<256x256xf32>
    %59 = arith.mulf %58, %55 : vector<256x256xf32>
    %60 = arith.select %57, %55, %59 : vector<256x256xi1>, vector<256x256xf32>
    %61 = arith.truncf %60 : vector<256x256xf32> to vector<256x256xbf16>
    %c0_26 = arith.constant 0 : index
    %c0_27 = arith.constant 0 : index
    %62 = vector.load %arg3[%c0_26, %c0_27] : memref<256x512xbf16, #tpu.memory_space<vmem>>, vector<256x512xbf16>
    %cst_28 = arith.constant dense<0.000000e+00> : vector<256x512xf32>
    %63 = tpu.matmul %61, %62, %cst_28 {dimension_numbers = #tpu.dot_dimension_numbers<[1], [0], [0], [1], [0, 0, 1, 1], [], []>} : vector<256x256xbf16>, vector<256x512xbf16>, vector<256x512xf32> -> vector<256x512xf32>
    %c6 = arith.constant 6 : index
    %c0_29 = arith.constant 0 : index
    %64 = vector.load %arg4[%c6, %c0_29] : memref<10x512xf32, #tpu.memory_space<vmem>>, vector<1x512xf32>
    %c7 = arith.constant 7 : index
    %c0_30 = arith.constant 0 : index
    %65 = vector.load %arg4[%c7, %c0_30] : memref<10x512xf32, #tpu.memory_space<vmem>>, vector<1x512xf32>
    %c8 = arith.constant 8 : index
    %c0_31 = arith.constant 0 : index
    %66 = vector.load %arg4[%c8, %c0_31] : memref<10x512xf32, #tpu.memory_space<vmem>>, vector<1x512xf32>
    %cst_32 = arith.constant dense<0.000000e+00> : vector<8x512xf32>
    %67 = tpu.matmul %0, %63, %cst_32 {dimension_numbers = #tpu.dot_dimension_numbers<[1], [0], [0], [1], [0, 0, 1, 1], [], []>} : vector<8x256xf32>, vector<256x512xf32>, vector<8x512xf32> -> vector<8x512xf32>
    %68 = vector.extract_strided_slice %67 {offsets = [0, 0], sizes = [1, 512], strides = [1, 1]} : vector<8x512xf32> to vector<1x512xf32>
    %cst_33 = arith.constant 3.906250e-03 : f32
    %69 = vector.broadcast %cst_33 : f32 to vector<1x512xf32>
    %70 = arith.mulf %68, %69 : vector<1x512xf32>
    %71 = vector.broadcast %70 : vector<1x512xf32> to vector<256x512xf32>
    %72 = arith.subf %63, %71 : vector<256x512xf32>
    %73 = arith.mulf %72, %72 : vector<256x512xf32>
    %cst_34 = arith.constant dense<0.000000e+00> : vector<8x512xf32>
    %74 = tpu.matmul %0, %73, %cst_34 {dimension_numbers = #tpu.dot_dimension_numbers<[1], [0], [0], [1], [0, 0, 1, 1], [], []>} : vector<8x256xf32>, vector<256x512xf32>, vector<8x512xf32> -> vector<8x512xf32>
    %75 = vector.extract_strided_slice %74 {offsets = [0, 0], sizes = [1, 512], strides = [1, 1]} : vector<8x512xf32> to vector<1x512xf32>
    %cst_35 = arith.constant 3.906250e-03 : f32
    %76 = vector.broadcast %cst_35 : f32 to vector<1x512xf32>
    %77 = arith.mulf %75, %76 : vector<1x512xf32>
    %cst_36 = arith.constant 9.99999974E-6 : f32
    %78 = vector.broadcast %cst_36 : f32 to vector<1x512xf32>
    %79 = arith.addf %77, %78 : vector<1x512xf32>
    %80 = math.rsqrt %79 : vector<1x512xf32>
    %81 = arith.mulf %64, %80 : vector<1x512xf32>
    %82 = vector.broadcast %81 : vector<1x512xf32> to vector<256x512xf32>
    %83 = arith.mulf %72, %82 : vector<256x512xf32>
    %84 = vector.broadcast %65 : vector<1x512xf32> to vector<256x512xf32>
    %85 = arith.addf %83, %84 : vector<256x512xf32>
    %cst_37 = arith.constant 0.000000e+00 : f32
    %86 = vector.broadcast %cst_37 : f32 to vector<256x512xf32>
    %87 = arith.cmpf oge, %85, %86 : vector<256x512xf32>
    %88 = vector.broadcast %66 : vector<1x512xf32> to vector<256x512xf32>
    %89 = arith.mulf %88, %85 : vector<256x512xf32>
    %90 = arith.select %87, %85, %89 : vector<256x512xi1>, vector<256x512xf32>
    %91 = arith.truncf %90 : vector<256x512xf32> to vector<256x512xbf16>
    %c9 = arith.constant 9 : index
    %c0_38 = arith.constant 0 : index
    %92 = vector.load %arg4[%c9, %c0_38] : memref<10x512xf32, #tpu.memory_space<vmem>>, vector<1x128xf32>
    %c32 = arith.constant 32 : index
    %c0_39 = arith.constant 0 : index
    %93 = vector.load %arg1[%c32, %c0_39] : memref<544x128xbf16, #tpu.memory_space<vmem>>, vector<512x128xbf16>
    %cst_40 = arith.constant dense<0.000000e+00> : vector<256x128xf32>
    %94 = tpu.matmul %91, %93, %cst_40 {dimension_numbers = #tpu.dot_dimension_numbers<[1], [0], [0], [1], [0, 0, 1, 1], [], []>} : vector<256x512xbf16>, vector<512x128xbf16>, vector<256x128xf32> -> vector<256x128xf32>
    %95 = vector.broadcast %92 : vector<1x128xf32> to vector<256x128xf32>
    %96 = arith.addf %94, %95 : vector<256x128xf32>
    %c0_41 = arith.constant 0 : index
    %c0_42 = arith.constant 0 : index
    %97 = vector.load %arg5[%c0_41, %c0_42] : memref<256x128xf32, #tpu.memory_space<vmem>>, vector<256x128xf32>
    tpu.vector_store %arg5[%c0_41, %c0_42], %96 {strides = array<i32>} : memref<256x128xf32, #tpu.memory_space<vmem>>, vector<256x128xf32>,
    return
  }
}

</mosaic_0001>

<bundles_post_ra>
// kernel: tpu_custom_call.1
= control target key start
LH: loop header
LB: loop body
LE: loop exit
PB: predicated region body
PF: predicated region fallthrough
CT: control target
= control target key end

     0   :  { %10 = vsyncpa [#allocation3], 0  ;;  %s10727_s0 = inlined_call_operand.vmem [shape: bf16[256,32], index: 0, kind: input, shape index: {}]   ;;  %s10728_s1 = inlined_call_operand.hbm [shape: bf16[544,128], index: 1, kind: input, shape index: {}]   ;;  %s10729_s2 = inlined_call_operand.vmem [shape: bf16[128,256], index: 2, kind: input, shape index: {}]   ;;  %s10730_s3 = inlined_call_operand.hbm [shape: bf16[256,512], index: 3, kind: input, shape index: {}]   ;;  %s10731_s4 = inlined_call_operand.hbm [shape: f32[10,512], index: 4, kind: input, shape index: {}]   ;;  %s10732_s5 = inlined_call_operand.hbm [shape: f32[256,128], index: 5, kind: output, shape index: {}]  }
   0x1   :  { %11 = vsyncpa [#allocation6], 0 }
   0x2   :  { %12 = vsyncpa [#allocation4], 0  ;;  %s5335_s18 = smov [#allocation5]  }
   0x3   :  { %s34_s19 = sshll.u32 %s5335_s18, 4  ;;  %s35_s19 = int_to_ptr.vmem [resolvable:$true] %s34_s19 }
   0x4   :  { %s5257_s20 = scalar_lea.vmem %s35_s19, 8192  ;;  %p5262_p1 = scmp.lt.s32.totalorder %s35_s19, %s35_s19 }
   0x5   :  { %p5258_p0 = scmp.ne.s32.totalorder %s35_s19, %s5257_s20  ;;  %p5263_p2 = scmp.lt.s32.totalorder %s5257_s20, %s5257_s20 }
   0x7   :  { %p5264_p3 = por %p5263_p2, %p5262_p1 }
   0x9   :  { %p5265_p4 = pnand %p5264_p3, %p5258_p0 }
   0xb   :  { %5268 = shalt.err (!%p5265_p4)
}
   0xc   :  { %s5336_s21 = smov 256   ;;  %s5337_s22 = smov 16  }
   0xd   :  { %40 = dma.hbm_to_vmem [thread:$0]  %s10730_s3, 8192, %s35_s19, [#allocation6], %s5336_s21, %s5336_s21, %s5337_s22  }
   0xe   :  { %s5338_s25 = smov [#allocation2]  }
   0xf   :  { %s20_s26 = sshll.u32 %s5338_s25, 4  ;;  %s21_s26 = int_to_ptr.vmem [resolvable:$true] %s20_s26 }
  0x10   :  { %s5277_s27 = scalar_lea.vmem %s21_s26, 4352  ;;  %p5282_p6 = scmp.lt.s32.totalorder %s21_s26, %s21_s26 }
  0x11   :  { %p5278_p5 = scmp.ne.s32.totalorder %s21_s26, %s5277_s27  ;;  %p5283_p7 = scmp.lt.s32.totalorder %s5277_s27, %s5277_s27 }
  0x13   :  { %p5284_p8 = por %p5283_p7, %p5282_p6 }
  0x15   :  { %p5285_p9 = pnand %p5284_p8, %p5278_p5 }
  0x17   :  { %5288 = shalt.err (!%p5285_p9)
}
  0x18   :  { %s5339_s28 = smov 64   ;;  %s5340_s29 = smov 4  }
  0x19   :  { %26 = dma.hbm_to_vmem [thread:$0]  %s10728_s1, 4352, %s21_s26, [#allocation3], %s5339_s28, %s5339_s28, %s5340_s29  }
  0x1a   :  { %s5341_s7 = smov [#allocation7]  }
  0x1b   :  { %s46_s8 = sshll.u32 %s5341_s7, 4  ;;  %s47_s8 = int_to_ptr.vmem [resolvable:$true] %s46_s8 }
  0x1c   :  { %s5297_s3 = scalar_lea.vmem %s47_s8, 1024  ;;  %p5302_p11 = scmp.lt.s32.totalorder %s47_s8, %s47_s8 }
  0x1d   :  { %p5298_p10 = scmp.ne.s32.totalorder %s47_s8, %s5297_s3  ;;  %p5303_p12 = scmp.lt.s32.totalorder %s5297_s3, %s5297_s3 }
  0x1f   :  { %p5304_p13 = por %p5303_p12, %p5302_p11 }
  0x21   :  { %p5305_p0 = pnand %p5304_p13, %p5298_p10 }
  0x23   :  { %5308 = shalt.err (!%p5305_p0)
}
  0x24   :  { %s5342_s9 = smov 512   ;;  %s5343_s10 = smov 32  }
  0x25   :  { %52 = dma.hbm_to_vmem [thread:$0]  %s10731_s4, 1024, %s47_s8, [#allocation6], %s5342_s9, %s5342_s9, %s5343_s10  }
  0x26   :  { %5329 = dma.done.wait [#allocation3], 4352  }
  0x27   :  { %5330 = vsyncadd [#allocation3], 4294962944 }
  0x28   :  { %5331 = dma.done.wait [#allocation6], 9216  }
  0x29   :  { %5332 = vsyncadd [#allocation6], 4294958080  ;;  %v5065_v0 = vld [vmem:[#allocation2 + $0x8] sm:$0xff]   ;;  %v5066_v1 = vld [vmem:[#allocation2] sm:$0xff]   ;;  %vm191_vm0 = vcmask 261120   ;;  %v10733_v18 = vmov 1.0   ;;  %v475_v52 = vlaneseq }
  0x2a   :  { %5014 = vmatprep.subr.bf16.mxu0 %v5065_v0  ;;  %v5067_v2 = vld [vmem:[%s10727_s0] sm:$0xff]   ;;  %v5068_v3 = vld [vmem:[%s10727_s0 + $0x8] sm:$0xff]   ;;  %v5069_v4 = vld [vmem:[%s10727_s0 + $0x10] sm:$0xff]   ;;  %607 = vmatprep.mubr.f32.mxu1 %v10733_v18 }
  0x2b   :  { %5015 = vmatpush3.bf16.msra.mxu0 %v5065_v0  ;;  %5018 = vmatprep.mubr.msk.bf16.mxu0 %vm191_vm0, %v5067_v2  ;;  %v5070_v5 = vld [vmem:[%s10727_s0 + $0x18] sm:$0xff]   ;;  %v5071_v6 = vld [vmem:[%s10727_s0 + $0x20] sm:$0xff]   ;;  %v5072_v7 = vld [vmem:[%s10727_s0 + $0x28] sm:$0xff]   ;;  %v5534_v55 = vshrl.u32 %v475_v52, 7 }
  0x2c   :  { %5016 = vmatprep.subr.bf16.mxu0 %v5066_v1  ;;  %v5073_v8 = vld [vmem:[%s10727_s0 + $0x30] sm:$0xff]   ;;  %v5074_v9 = vld [vmem:[%s10727_s0 + $0x38] sm:$0xff]   ;;  %v5075_v10 = vld [vmem:[%s10727_s0 + $0x40] sm:$0xff]  }
  0x2d   :  { %v5076_v11 = vld [vmem:[%s10727_s0 + $0x48] sm:$0xff]   ;;  %v5077_v12 = vld [vmem:[%s10727_s0 + $0x50] sm:$0xff]   ;;  %v5078_v13 = vld [vmem:[%s10727_s0 + $0x58] sm:$0xff]   ;;  %11091 = vst [vmem:[#allocation12_spill] sm:$0xff] %v5534_v55  ;;  %v5537_v57 = vsub.s32 0, %v5534_v55 }
  0x2e   :  { %v5079_v14 = vld [vmem:[%s10727_s0 + $0x60] sm:$0xff]   ;;  %v5080_v15 = vld [vmem:[%s10727_s0 + $0x68] sm:$0xff]   ;;  %v5081_v16 = vld [vmem:[%s10727_s0 + $0x70] sm:$0xff]  }
  0x2f   :  { %5017 = vmatpush3.bf16.msra.mxu0 %v5066_v1  ;;  %v5082_v17 = vld [vmem:[%s10727_s0 + $0x78] sm:$0xff]   ;;  %11092 = vst [vmem:[#allocation13_spill] sm:$0xff] %v5537_v57 }
  0x32   :  { %5019 = vmatmul.mubr.msk.bf16.vlgmr.msra.gmra.mxu0 %vm191_vm0, %v5068_v3 }
  0x33   :  { %5022 = vmatprep.mubr.msk.bf16.mxu0 %vm191_vm0, %v5069_v4 }
  0x3a   :  { %5023 = vmatmul.mubr.msk.bf16.gmra.mxu0 %vm191_vm0, %v5070_v5 }
  0x3b   :  { %5026 = vmatprep.mubr.msk.bf16.mxu0 %vm191_vm0, %v5071_v6 }
  0x42   :  { %5027 = vmatmul.mubr.msk.bf16.gmra.mxu0 %vm191_vm0, %v5072_v7 }
  0x43   :  { %5030 = vmatprep.mubr.msk.bf16.mxu0 %vm191_vm0, %v5073_v8 }
  0x4a   :  { %5031 = vmatmul.mubr.msk.bf16.gmra.mxu0 %vm191_vm0, %v5074_v9 }
  0x4b   :  { %5034 = vmatprep.mubr.msk.bf16.mxu0 %vm191_vm0, %v5075_v10 }
  0x52   :  { %5035 = vmatmul.mubr.msk.bf16.gmra.mxu0 %vm191_vm0, %v5076_v11 }
  0x53   :  { %5038 = vmatprep.mubr.msk.bf16.mxu0 %vm191_vm0, %v5077_v12 }
  0x5a   :  { %5039 = vmatmul.mubr.msk.bf16.gmra.mxu0 %vm191_vm0, %v5078_v13 }
  0x5b   :  { %5042 = vmatprep.mubr.msk.bf16.mxu0 %vm191_vm0, %v5079_v14 }
  0x62   :  { %5043 = vmatmul.mubr.msk.bf16.gmra.mxu0 %vm191_vm0, %v5080_v15 }
  0x63   :  { %5046 = vmatprep.mubr.msk.bf16.mxu0 %vm191_vm0, %v5081_v16 }
  0x6a   :  { %5047 = vmatmul.mubr.msk.bf16.gmra.mxu0 %vm191_vm0, %v5082_v17 }
  0x6b   :  { %468 = vmatprep.mubr.f32.mxu0 %v10733_v18 }
  0xf2   :  { %v5455_v19 = vpop.f32.mrf.mxu0 }
  0xf4   :  { %v5457_v20 = vpop.f32.mrf.mxu0 }
  0xf6   :  { %v5459_v21 = vpop.f32.mrf.mxu0 }
  0xf8   :  { %v5461_v22 = vpop.f32.mrf.mxu0 }
  0xfa   :  { %v5463_v23 = vpop.f32.mrf.mxu0 }
  0xfc   :  { %v5465_v24 = vpop.f32.mrf.mxu0 }
  0xfe   :  { %v5467_v25 = vpop.f32.mrf.mxu0 }
 0x100   :  { %v5469_v26 = vpop.f32.mrf.mxu0 }
 0x102   :  { %v5471_v27 = vpop.f32.mrf.mxu0 }
 0x104   :  { %v5473_v28 = vpop.f32.mrf.mxu0 }
 0x106   :  { %v5475_v29 = vpop.f32.mrf.mxu0 }
 0x108   :  { %v5477_v30 = vpop.f32.mrf.mxu0 }
 0x10a   :  { %v5479_v31 = vpop.f32.mrf.mxu0 }
 0x10c   :  { %v5481_v32 = vpop.f32.mrf.mxu0 }
 0x10e   :  { %v5033_v33 = vpop.f32.mrf.mxu0 }
 0x110   :  { %v5483_v34 = vpop.f32.mrf.mxu0 }
 0x112   :  { %v5485_v35 = vpop.f32.mrf.mxu0 }
 0x114   :  { %v5487_v36 = vpop.f32.mrf.mxu0 }
 0x116   :  { %v5489_v37 = vpop.f32.mrf.mxu0 }
 0x118   :  { %v5491_v38 = vpop.f32.mrf.mxu0 }
 0x11a   :  { %v5493_v39 = vpop.f32.mrf.mxu0 }
 0x11c   :  { %v5495_v40 = vpop.f32.mrf.mxu0 }
 0x11e   :  { %v5497_v41 = vpop.f32.mrf.mxu0 }
 0x120   :  { %v5499_v42 = vpop.f32.mrf.mxu0 }
 0x122   :  { %v5501_v43 = vpop.f32.mrf.mxu0 }
 0x124   :  { %v5503_v44 = vpop.f32.mrf.mxu0 }
 0x126   :  { %v5045_v45 = vpop.f32.mrf.mxu0 }
 0x128   :  { %v5505_v46 = vpop.f32.mrf.mxu0 }
 0x12a   :  { %v5048_v47 = vpop.f32.mrf.mxu0 }
 0x12c   :  { %v386_v48 = vpop.f32.mrf.mxu0 }
 0x12e   :  { %v5049_v49 = vpop.f32.mrf.mxu0 }
 0x12f   :  { %4720 = vmatprep.subr.mxu0 %v5049_v49 }
 0x130   :  { %4721 = vmatpush3.msra.mxu0 %v5033_v33  ;;  %v389_v50 = vpop.f32.mrf.mxu0 }
 0x131   :  { %4722 = vmatprep.subr.mxu0 %v5048_v47 }
 0x132   :  { %4723 = vmatpush3.msra.mxu0 %v5479_v31 }
 0x133   :  { %4724 = vmatprep.subr.mxu0 %v389_v50 }
 0x134   :  { %4725 = vmatpush3.msra.mxu0 %v5483_v34 }
 0x135   :  { %4726 = vmatprep.subr.mxu0 %v386_v48 }
 0x136   :  { %4727 = vmatpush3.msra.mxu0 %v5481_v32 }
 0x137   :  { %4728 = vmatprep.subr.mxu0 %v5045_v45 }
 0x138   :  { %4729 = vmatpush3.msra.mxu0 %v5475_v29 }
 0x139   :  { %4730 = vmatprep.subr.mxu0 %v5501_v43 }
 0x13a   :  { %4731 = vmatpush3.msra.mxu0 %v5471_v27 }
 0x13b   :  { %4732 = vmatprep.subr.mxu0 %v5505_v46 }
 0x13c   :  { %4733 = vmatpush3.msra.mxu0 %v5477_v30 }
 0x13d   :  { %4734 = vmatprep.subr.mxu0 %v5503_v44 }
 0x13e   :  { %4735 = vmatpush3.msra.mxu0 %v5473_v28 }
 0x13f   :  { %4736 = vmatprep.subr.mxu0 %v5497_v41 }
 0x140   :  { %4737 = vmatpush3.msra.mxu0 %v5467_v25 }
 0x141   :  { %4738 = vmatprep.subr.mxu0 %v5493_v39 }
 0x142   :  { %4739 = vmatpush3.msra.mxu0 %v5463_v23 }
 0x143   :  { %4740 = vmatprep.subr.mxu0 %v5499_v42 }
 0x144   :  { %4741 = vmatpush3.msra.mxu0 %v5469_v26 }
 0x145   :  { %4742 = vmatprep.subr.mxu0 %v5495_v40 }
 0x146   :  { %4743 = vmatpush3.msra.mxu0 %v5465_v24 }
 0x147   :  { %4744 = vmatprep.subr.mxu0 %v5489_v37 }
 0x148   :  { %4745 = vmatpush3.msra.mxu0 %v5459_v21 }
 0x149   :  { %4746 = vmatprep.subr.mxu0 %v5485_v35 }
 0x14a   :  { %4747 = vmatpush3.msra.mxu0 %v5455_v19 }
 0x14b   :  { %4748 = vmatprep.subr.mxu0 %v5491_v38 }
 0x14c   :  { %4749 = vmatpush3.msra.mxu0 %v5461_v22 }
 0x14d   :  { %4750 = vmatprep.subr.mxu0 %v5487_v36 }
 0x14e   :  { %4751 = vmatpush3.msra.mxu0 %v5457_v20 }
 0x14f   :  { %469 = vmatmul.mubr.f32.vlgmr.msra.gmra.mxu0 %v10733_v18 }
 0x20f   :  { %v4752_v51 = vpop.f32.mrf.mxu0 }
 0x211   :  { %v4753_v53 = vpop.f32.mrf.mxu0 }
 0x212   :  { %v4754_v54 = vadd.f32 %v4753_v53, %v4752_v51 }
 0x214   :  { %v474_v56 = vmul.f32 0.00390625, %v4754_v54 }
 0x216   :  { %v5540_v58 = vrot.slane %v474_v56, %v5537_v57 }
 0x218   :  { %v5543_v59 = vsub.f32 %v5033_v33, %v5540_v58  ;;  %v5546_v60 = vsub.f32 %v5049_v49, %v5540_v58  ;;  %v5549_v61 = vsub.f32 %v5048_v47, %v5540_v58  ;;  %v5553_v62 = vsub.f32 %v5479_v31, %v5540_v58 }
 0x219   :  { %v5556_v63 = vsub.f32 %v389_v50, %v5540_v58  ;;  %v5564_v2 = vsub.f32 %v5483_v34, %v5540_v58  ;;  %v5567_v3 = vsub.f32 %v386_v48, %v5540_v58  ;;  %v5573_v5 = vsub.f32 %v5481_v32, %v5540_v58 }
 0x21a   :  { %v542_v0 = vmul.f32 %v5546_v60, %v5546_v60  ;;  %v526_v1 = vmul.f32 %v5543_v59, %v5543_v59  ;;  %v541_v4 = vmul.f32 %v5549_v61, %v5549_v61  ;;  %v525_v6 = vmul.f32 %v5553_v62, %v5553_v62 }
 0x21b   :  { %v5578_v7 = vsub.f32 %v5045_v45, %v5540_v58  ;;  %v540_v8 = vmul.f32 %v5556_v63, %v5556_v63  ;;  %v5584_v9 = vsub.f32 %v5475_v29, %v5540_v58  ;;  %v524_v10 = vmul.f32 %v5564_v2, %v5564_v2 }
 0x21c   :  { %4755 = vmatprep.subr.mxu1 %v542_v0  ;;  %v5590_v11 = vsub.f32 %v5501_v43, %v5540_v58  ;;  %v539_v12 = vmul.f32 %v5567_v3, %v5567_v3  ;;  %v5596_v13 = vsub.f32 %v5471_v27, %v5540_v58  ;;  %v523_v14 = vmul.f32 %v5573_v5, %v5573_v5 }
 0x21d   :  { %4756 = vmatpush3.msra.mxu1 %v526_v1  ;;  %v5602_v15 = vsub.f32 %v5505_v46, %v5540_v58  ;;  %v538_v16 = vmul.f32 %v5578_v7, %v5578_v7  ;;  %v5608_v17 = vsub.f32 %v5477_v30, %v5540_v58  ;;  %v522_v27 = vmul.f32 %v5584_v9, %v5584_v9 }
 0x21e   :  { %4757 = vmatprep.subr.mxu1 %v541_v4  ;;  %v5614_v29 = vsub.f32 %v5503_v44, %v5540_v58  ;;  %v537_v31 = vmul.f32 %v5590_v11, %v5590_v11  ;;  %v5620_v32 = vsub.f32 %v5473_v28, %v5540_v58  ;;  %v521_v30 = vmul.f32 %v5596_v13, %v5596_v13 }
 0x21f   :  { %4758 = vmatpush3.msra.mxu1 %v525_v6  ;;  %v5626_v33 = vsub.f32 %v5497_v41, %v5540_v58  ;;  %v536_v34 = vmul.f32 %v5602_v15, %v5602_v15  ;;  %v5632_v43 = vsub.f32 %v5467_v25, %v5540_v58  ;;  %v520_v28 = vmul.f32 %v5608_v17, %v5608_v17 }
 0x220   :  { %4759 = vmatprep.subr.mxu1 %v540_v8  ;;  %v5638_v44 = vsub.f32 %v5493_v39, %v5540_v58  ;;  %v535_v41 = vmul.f32 %v5614_v29, %v5614_v29  ;;  %v5644_v45 = vsub.f32 %v5463_v23, %v5540_v58  ;;  %v519_v25 = vmul.f32 %v5620_v32, %v5620_v32 }
 0x221   :  { %4760 = vmatpush3.msra.mxu1 %v524_v10  ;;  %v5650_v46 = vsub.f32 %v5499_v42, %v5540_v58  ;;  %v534_v39 = vmul.f32 %v5626_v33, %v5626_v33  ;;  %v5656_v47 = vsub.f32 %v5469_v26, %v5540_v58  ;;  %v518_v23 = vmul.f32 %v5632_v43, %v5632_v43  ;;  %v5088_v10 = vld [vmem:[%s10729_s2 + $0x64] ss:$8 sps:$4 sm:$0xff]  }
 0x222   :  { %4761 = vmatprep.subr.mxu1 %v539_v12  ;;  %v5662_v48 = vsub.f32 %v5495_v40, %v5540_v58  ;;  %v533_v42 = vmul.f32 %v5638_v44, %v5638_v44  ;;  %v5668_v49 = vsub.f32 %v5465_v24, %v5540_v58  ;;  %v517_v26 = vmul.f32 %v5644_v45, %v5644_v45  ;;  %v5086_v12 = vld [vmem:[%s10729_s2 + $0x60] ss:$8 sps:$4 sm:$0xff]  }
 0x223   :  { %4762 = vmatpush3.msra.mxu1 %v523_v14  ;;  %v5674_v50 = vsub.f32 %v5489_v37, %v5540_v58  ;;  %v532_v40 = vmul.f32 %v5650_v46, %v5650_v46  ;;  %v5680_v51 = vsub.f32 %v5459_v21, %v5540_v58  ;;  %v516_v24 = vmul.f32 %v5656_v47, %v5656_v47  ;;  %v5091_v14 = vld [vmem:[%s10729_s2 + $0x54] ss:$8 sps:$4 sm:$0xff]  }
 0x224   :  { %4763 = vmatprep.subr.mxu1 %v538_v16  ;;  %v5686_v52 = vsub.f32 %v5485_v35, %v5540_v58  ;;  %v531_v37 = vmul.f32 %v5662_v48, %v5662_v48  ;;  %v5692_v53 = vsub.f32 %v5455_v19, %v5540_v58  ;;  %v515_v21 = vmul.f32 %v5668_v49, %v5668_v49  ;;  %v5089_v16 = vld [vmem:[%s10729_s2 + $0x50] ss:$8 sps:$4 sm:$0xff]  }
 0x225   :  { %4764 = vmatpush3.msra.mxu1 %v522_v27  ;;  %v5698_v54 = vsub.f32 %v5491_v38, %v5540_v58  ;;  %v530_v35 = vmul.f32 %v5674_v50, %v5674_v50  ;;  %v5704_v56 = vsub.f32 %v5461_v22, %v5540_v58  ;;  %v514_v19 = vmul.f32 %v5680_v51, %v5680_v51  ;;  %v5094_v27 = vld [vmem:[%s10729_s2 + $0x44] ss:$8 sps:$4 sm:$0xff]  }
 0x226   :  { %4765 = vmatprep.subr.mxu1 %v537_v31  ;;  %v5710_v0 = vsub.f32 %v5487_v36, %v5540_v58  ;;  %v529_v38 = vmul.f32 %v5686_v52, %v5686_v52  ;;  %v479_v1 = vsub.f32 %v5457_v20, %v5540_v58  ;;  %v513_v4 = vmul.f32 %v5692_v53, %v5692_v53  ;;  %v5085_v20 = vld [vmem:[%s10729_s2 + $0x74] ss:$8 sps:$4 sm:$0xff]   ;;  %v5083_v58 = vld [vmem:[%s10729_s2 + $0x70] ss:$8 sps:$4 sm:$0xff]   ;;  %v5092_v31 = vld [vmem:[%s10729_s2 + $0x40] ss:$8 sps:$4 sm:$0xff]  }
 0x227   :  { %4766 = vmatpush3.msra.mxu1 %v521_v30  ;;  %v528_v22 = vmul.f32 %v5698_v54, %v5698_v54  ;;  %v512_v6 = vmul.f32 %v5704_v56, %v5704_v56  ;;  %893 = vmatprep.subr.bf16.mxu0 %v5085_v20  ;;  %v5097_v30 = vld [vmem:[%s10729_s2 + $0x34] ss:$8 sps:$4 sm:$0xff]  }
 0x228   :  { %4767 = vmatprep.subr.mxu1 %v536_v34  ;;  %v527_v36 = vmul.f32 %v5710_v0, %v5710_v0  ;;  %v511_v8 = vmul.f32 %v479_v1, %v479_v1  ;;  %894 = vmatpush1.bf16.msra.mxu0 %v5083_v58  ;;  %v5095_v34 = vld [vmem:[%s10729_s2 + $0x30] ss:$8 sps:$4 sm:$0xff]  }
 0x229   :  { %4768 = vmatpush3.msra.mxu1 %v520_v28  ;;  %895 = vmatprep.subr.bf16.mxu0 %v5088_v10  ;;  %v5100_v28 = vld [vmem:[%s10729_s2 + $0x24] ss:$8 sps:$4 sm:$0xff]  }
 0x22a   :  { %4769 = vmatprep.subr.mxu1 %v535_v41  ;;  %v5098_v41 = vld [vmem:[%s10729_s2 + $0x20] ss:$8 sps:$4 sm:$0xff]  }
 0x22b   :  { %4770 = vmatpush3.msra.mxu1 %v519_v25  ;;  %v5103_v25 = vld [vmem:[%s10729_s2 + $0x14] ss:$8 sps:$4 sm:$0xff]  }
 0x22c   :  { %4771 = vmatprep.subr.mxu1 %v534_v39  ;;  %896 = vmatpush1.bf16.msra.mxu0 %v5086_v12  ;;  %v5101_v39 = vld [vmem:[%s10729_s2 + $0x10] ss:$8 sps:$4 sm:$0xff]  }
 0x22d   :  { %4772 = vmatpush3.msra.mxu1 %v518_v23  ;;  %897 = vmatprep.subr.bf16.mxu0 %v5091_v14  ;;  %v5104_v23 = vld [vmem:[%s10729_s2] ss:$8 sps:$4 sm:$0xff]   ;;  %v5797_v14 = vld [vmem:[#allocation7 + $0x1] ss:$0 sm:$0xff] }
 0x22e   :  { %4773 = vmatprep.subr.mxu1 %v533_v42  ;;  %v5106_v42 = vld [vmem:[%s10729_s2 + $0x4] ss:$8 sps:$4 sm:$0xff]   ;;  %s5347_s2 = smov [#allocation8]  }
 0x22f   :  { %4774 = vmatpush3.msra.mxu1 %v517_v26  ;;  %v5345_v26 = vmov 0   ;;  %s4543_s17 = sshll.u32 %s5347_s2, 4  ;;  %s4544_s17 = int_to_ptr.vmem [resolvable:$true] %s4543_s17 }
 0x230   :  { %4775 = vmatprep.subr.mxu1 %v532_v40  ;;  %898 = vmatpush1.bf16.msra.mxu0 %v5089_v16  ;;  %s5309_s18 = scalar_lea.vmem %s4544_s17, 4096  ;;  %p5314_p2 = scmp.lt.s32.totalorder %s4544_s17, %s4544_s17 }
 0x231   :  { %4776 = vmatpush3.msra.mxu1 %v516_v24  ;;  %899 = vmatprep.subr.bf16.mxu0 %v5094_v27  ;;  %p5310_p1 = scmp.ne.s32.totalorder %s4544_s17, %s5309_s18  ;;  %p5315_p3 = scmp.lt.s32.totalorder %s5309_s18, %s5309_s18 }
 0x232   :  { %4777 = vmatprep.subr.mxu1 %v531_v37  ;;  %925 = vmatprep.mubr.bf16.mxu0 %v5345_v26 }
 0x233   :  { %4778 = vmatpush3.msra.mxu1 %v515_v21  ;;  %p5316_p4 = por %p5315_p3, %p5314_p2 }
 0x234   :  { %4779 = vmatprep.subr.mxu1 %v530_v35  ;;  %900 = vmatpush1.bf16.msra.mxu0 %v5092_v31 }
 0x235   :  { %4780 = vmatpush3.msra.mxu1 %v514_v19  ;;  %901 = vmatprep.subr.bf16.mxu0 %v5097_v30  ;;  %v401_v19 = vld [vmem:[#allocation7] ss:$0 sm:$0xff]  ;;  %p5317_p5 = pnand %p5316_p4, %p5310_p1 }
 0x236   :  { %4781 = vmatprep.subr.mxu1 %v529_v38 }
 0x237   :  { %4782 = vmatpush3.msra.mxu1 %v513_v4 }
 0x238   :  { %4783 = vmatprep.subr.mxu1 %v528_v22  ;;  %902 = vmatpush1.bf16.msra.mxu0 %v5095_v34 }
 0x239   :  { %4784 = vmatpush3.msra.mxu1 %v512_v6  ;;  %903 = vmatprep.subr.bf16.mxu0 %v5100_v28 }
 0x23a   :  { %4785 = vmatprep.subr.mxu1 %v527_v36 }
 0x23b   :  { %4786 = vmatpush3.msra.mxu1 %v511_v8 }
 0x23c   :  { %608 = vmatmul.mubr.f32.vlgmr.msra.gmra.mxu1 %v10733_v18  ;;  %904 = vmatpush1.bf16.msra.mxu0 %v5098_v41 }
 0x23d   :  { %1156 = vmatprep.mubr.f32.mxu1 %v10733_v18  ;;  %905 = vmatprep.subr.bf16.mxu0 %v5103_v25 }
 0x240   :  { %906 = vmatpush1.bf16.msra.mxu0 %v5101_v39 }
 0x241   :  { %907 = vmatprep.subr.bf16.mxu0 %v5106_v42 }
 0x244   :  { %908 = vmatpush1.bf16.msra.mxu0 %v5104_v23 }
 0x2fc   :  { %v4787_v40 = vpop.f32.mrf.mxu1 }
 0x2fe   :  { %v4788_v24 = vpop.f32.mrf.mxu1 }
 0x2ff   :  { %v4789_v37 = vadd.f32 %v4788_v24, %v4787_v40 }
 0x301   :  { %v613_v21 = vmul.f32 0.00390625, %v4789_v37 }
 0x303   :  { %v614_v35 = vadd.f32 1e-05, %v613_v21 }
 0x305   :  { %5235 = vrsqrt.f32 %v614_v35 }
 0x312   :  { %v5236_v38 = vpop.eup %5235 }
 0x313   :  { %v616_v4 = vmul.f32 %v5236_v38, %v401_v19 }
 0x315   :  { %v5776_v22 = vrot.slane %v616_v4, %v5537_v57 }
 0x317   :  { %v621_v6 = vmul.f32 %v5776_v22, %v479_v1  ;;  %v622_v36 = vmul.f32 %v5776_v22, %v5704_v56  ;;  %v623_v8 = vmul.f32 %v5776_v22, %v5692_v53  ;;  %v624_v20 = vmul.f32 %v5776_v22, %v5680_v51 }
 0x318   :  { %v625_v58 = vmul.f32 %v5776_v22, %v5668_v49  ;;  %v626_v10 = vmul.f32 %v5776_v22, %v5656_v47  ;;  %v637_v12 = vmul.f32 %v5776_v22, %v5710_v0  ;;  %v638_v1 = vmul.f32 %v5776_v22, %v5698_v54 }
 0x319   :  { %v639_v56 = vmul.f32 %v5776_v22, %v5686_v52  ;;  %v640_v53 = vmul.f32 %v5776_v22, %v5674_v50  ;;  %v641_v49 = vmul.f32 %v5776_v22, %v5662_v48  ;;  %v642_v47 = vmul.f32 %v5776_v22, %v5650_v46 }
 0x31a   :  { %v643_v51 = vmul.f32 %v5776_v22, %v5638_v44  ;;  %v644_v54 = vmul.f32 %v5776_v22, %v5626_v33  ;;  %v645_v52 = vmul.f32 %v5776_v22, %v5614_v29  ;;  %v646_v50 = vmul.f32 %v5776_v22, %v5602_v15 }
 0x31b   :  { %v647_v0 = vmul.f32 %v5776_v22, %v5590_v11  ;;  %v648_v48 = vmul.f32 %v5776_v22, %v5578_v7  ;;  %v649_v46 = vmul.f32 %v5776_v22, %v5567_v3  ;;  %v650_v44 = vmul.f32 %v5776_v22, %v5556_v63 }
 0x31c   :  { %v651_v33 = vmul.f32 %v5776_v22, %v5549_v61  ;;  %v652_v29 = vmul.f32 %v5776_v22, %v5546_v60  ;;  %v653_v15 = vadd.f32 %v621_v6, %v5797_v14  ;;  %v654_v16 = vadd.f32 %v622_v36, %v5797_v14  ;;  %v5839_v60 = vld [vmem:[#allocation7 + $0x2] ss:$0 sm:$0xff] }
 0x31d   :  { %v655_v11 = vadd.f32 %v623_v8, %v5797_v14  ;;  %v656_v7 = vadd.f32 %v624_v20, %v5797_v14  ;;  %v5828_v27 = vadd.f32 %v637_v12, %v5797_v14  ;;  %v5831_v3 = vadd.f32 %v638_v1, %v5797_v14 }
 0x31e   :  { %v5834_v63 = vadd.f32 %v639_v56, %v5797_v14  ;;  %v5837_v61 = vadd.f32 %v640_v53, %v5797_v14  ;;  %v5842_v31 = vadd.f32 %v641_v49, %v5797_v14  ;;  %v5845_v30 = vadd.f32 %v642_v47, %v5797_v14 }
 0x31f   :  { %v5848_v34 = vadd.f32 %v643_v51, %v5797_v14  ;;  %v5851_v28 = vadd.f32 %v644_v54, %v5797_v14  ;;  %v5854_v41 = vadd.f32 %v645_v52, %v5797_v14  ;;  %v5857_v25 = vadd.f32 %v646_v50, %v5797_v14 }
 0x320   :  { %v5860_v39 = vadd.f32 %v647_v0, %v5797_v14  ;;  %v5863_v23 = vadd.f32 %v648_v48, %v5797_v14  ;;  %v5866_v42 = vadd.f32 %v649_v46, %v5797_v14  ;;  %v5869_v40 = vadd.f32 %v650_v44, %v5797_v14 }
 0x321   :  { %v5872_v24 = vadd.f32 %v651_v33, %v5797_v14  ;;  %v5875_v37 = vadd.f32 %v652_v29, %v5797_v14  ;;  %vm686_vm1 = vcmp.ge.f32.partialorder %v654_v16, 0.0  ;;  %v717_v21 = vmul.f32 %v653_v15, %v5839_v60 }
 0x322   :  { %v718_v35 = vmul.f32 %v654_v16, %v5839_v60  ;;  %vm685_vm2 = vcmp.ge.f32.partialorder %v653_v15, 0.0  ;;  %v627_v19 = vmul.f32 %v5776_v22, %v5644_v45  ;;  %v657_v38 = vadd.f32 %v625_v58, %v5797_v14 }
 0x323   :  { %v658_v4 = vadd.f32 %v626_v10, %v5797_v14  ;;  %v749_v6 = vsel %vm685_vm2, %v653_v15, %v717_v21  ;;  %v628_v8 = vmul.f32 %v5776_v22, %v5632_v43  ;;  %v719_v12 = vmul.f32 %v655_v11, %v5839_v60 }
 0x324   :  { %v750_v36 = vsel %vm686_vm1, %v654_v16, %v718_v35  ;;  %v720_v1 = vmul.f32 %v656_v7, %v5839_v60  ;;  %vm687_vm3 = vcmp.ge.f32.partialorder %v655_v11, 0.0  ;;  %vm688_vm4 = vcmp.ge.f32.partialorder %v656_v7, 0.0 }
 0x325   :  { %v781_v20 = vpack.c.bf16 %v750_v36, %v749_v6  ;;  %v659_v56 = vadd.f32 %v627_v19, %v5797_v14  ;;  %v721_v45 = vmul.f32 %v657_v38, %v5839_v60  ;;  %v722_v58 = vmul.f32 %v658_v4, %v5839_v60 }
 0x326   :  { %v660_v10 = vadd.f32 %v628_v8, %v5797_v14  ;;  %vm689_vm5 = vcmp.ge.f32.partialorder %v657_v38, 0.0  ;;  %vm690_vm6 = vcmp.ge.f32.partialorder %v658_v4, 0.0  ;;  %v629_v43 = vmul.f32 %v5776_v22, %v5620_v32 }
 0x327   :  { %926 = vmatmul.mubr.bf16.vlgmr.msra.gmra.mxu0 %v781_v20  ;;  %v751_v53 = vsel %vm687_vm3, %v655_v11, %v719_v12  ;;  %v752_v49 = vsel %vm688_vm4, %v656_v7, %v720_v1  ;;  %v630_v47 = vmul.f32 %v5776_v22, %v5608_v17  ;;  %v753_v51 = vsel %vm689_vm5, %v657_v38, %v721_v45 }
 0x328   :  { %935 = vmatprep.mubr.bf16.mxu0 %v5345_v26  ;;  %v754_v54 = vsel %vm690_vm6, %v658_v4, %v722_v58  ;;  %v723_v52 = vmul.f32 %v659_v56, %v5839_v60  ;;  %v782_v50 = vpack.c.bf16 %v752_v49, %v751_v53  ;;  %vm691_vm7 = vcmp.ge.f32.partialorder %v659_v56, 0.0 }
 0x329   :  { %v724_v0 = vmul.f32 %v660_v10, %v5839_v60  ;;  %v5899_v48 = vadd.f32 %v629_v43, %v5797_v14  ;;  %vm692_vm8 = vcmp.ge.f32.partialorder %v660_v10, 0.0  ;;  %v5902_v46 = vadd.f32 %v630_v47, %v5797_v14 }
 0x32a   :  { %v783_v32 = vpack.c.bf16 %v754_v54, %v753_v51  ;;  %vm701_vm9 = vcmp.ge.f32.partialorder %v5828_v27, 0.0  ;;  %vm702_vm10 = vcmp.ge.f32.partialorder %v5831_v3, 0.0  ;;  %v5907_v17 = vsel %vm691_vm7, %v659_v56, %v723_v52 }
 0x32b   :  { %v733_v44 = vmul.f32 %v5828_v27, %v5839_v60  ;;  %v734_v33 = vmul.f32 %v5831_v3, %v5839_v60  ;;  %vm703_vm11 = vcmp.ge.f32.partialorder %v5834_v63, 0.0  ;;  %v756_v29 = vsel %vm692_vm8, %v660_v10, %v724_v0 }
 0x32c   :  { %vm704_vm12 = vcmp.ge.f32.partialorder %v5837_v61, 0.0  ;;  %v735_v15 = vmul.f32 %v5834_v63, %v5839_v60  ;;  %v736_v16 = vmul.f32 %v5837_v61, %v5839_v60  ;;  %vm705_vm13 = vcmp.ge.f32.partialorder %v5842_v31, 0.0 }
 0x32d   :  { %v5920_v11 = vsel %vm701_vm9, %v5828_v27, %v733_v44  ;;  %v5923_v7 = vsel %vm702_vm10, %v5831_v3, %v734_v33  ;;  %vm706_vm14 = vcmp.ge.f32.partialorder %v5845_v30, 0.0  ;;  %v737_v27 = vmul.f32 %v5842_v31, %v5839_v60 }
 0x32e   :  { %v789_v21 = vpack.c.bf16 %v5923_v7, %v5920_v11  ;;  %v5930_v35 = vsel %vm703_vm11, %v5834_v63, %v735_v15  ;;  %v5933_v19 = vsel %vm704_vm12, %v5837_v61, %v736_v16  ;;  %v738_v38 = vmul.f32 %v5845_v30, %v5839_v60 }
 0x32f   :  { %936 = vmatmul.mubr.bf16.gmra.mxu0 %v782_v50  ;;  %v790_v3 = vpack.c.bf16 %v5933_v19, %v5930_v35  ;;  %vm707_vm15 = vcmp.ge.f32.partialorder %v5848_v34, 0.0  ;;  %vm708_vm0 = vcmp.ge.f32.partialorder %v5851_v28, 0.0  ;;  %v5944_v4 = vsel %vm705_vm13, %v5842_v31, %v737_v27 }
 0x330   :  { %945 = vmatprep.mubr.bf16.mxu0 %v5345_v26  ;;  %v739_v63 = vmul.f32 %v5848_v34, %v5839_v60  ;;  %v740_v61 = vmul.f32 %v5851_v28, %v5839_v60  ;;  %vm709_vm1 = vcmp.ge.f32.partialorder %v5854_v41, 0.0  ;;  %v5952_v6 = vsel %vm706_vm14, %v5845_v30, %v738_v38 }
 0x331   :  { %vm710_vm2 = vcmp.ge.f32.partialorder %v5857_v25, 0.0  ;;  %v741_v36 = vmul.f32 %v5854_v41, %v5839_v60  ;;  %v742_v31 = vmul.f32 %v5857_v25, %v5839_v60  ;;  %v791_v8 = vpack.c.bf16 %v5952_v6, %v5944_v4 }
 0x332   :  { %v5962_v20 = vsel %vm707_vm15, %v5848_v34, %v739_v63  ;;  %v5965_v12 = vsel %vm708_vm0, %v5851_v28, %v740_v61  ;;  %vm711_vm3 = vcmp.ge.f32.partialorder %v5860_v39, 0.0  ;;  %vm712_vm4 = vcmp.ge.f32.partialorder %v5863_v23, 0.0 }
 0x333   :  { %v792_v30 = vpack.c.bf16 %v5965_v12, %v5962_v20  ;;  %v5972_v1 = vsel %vm709_vm1, %v5854_v41, %v741_v36  ;;  %v5975_v56 = vsel %vm710_vm2, %v5857_v25, %v742_v31  ;;  %v743_v28 = vmul.f32 %v5860_v39, %v5839_v60 }
 0x334   :  { %v793_v34 = vpack.c.bf16 %v5975_v56, %v5972_v1  ;;  %v744_v45 = vmul.f32 %v5863_v23, %v5839_v60  ;;  %vm713_vm5 = vcmp.ge.f32.partialorder %v5866_v42, 0.0  ;;  %vm714_vm6 = vcmp.ge.f32.partialorder %v5869_v40, 0.0 }
 0x335   :  { %v745_v41 = vmul.f32 %v5866_v42, %v5839_v60  ;;  %v746_v25 = vmul.f32 %v5869_v40, %v5839_v60  ;;  %vm715_vm7 = vcmp.ge.f32.partialorder %v5872_v24, 0.0  ;;  %v5992_v58 = vsel %vm711_vm3, %v5860_v39, %v743_v28 }
 0x336   :  { %v5995_v10 = vsel %vm712_vm4, %v5863_v23, %v744_v45  ;;  %vm716_vm8 = vcmp.ge.f32.partialorder %v5875_v37, 0.0  ;;  %v747_v43 = vmul.f32 %v5872_v24, %v5839_v60  ;;  %v748_v39 = vmul.f32 %v5875_v37, %v5839_v60 }
 0x337   :  { %946 = vmatmul.mubr.bf16.gmra.mxu0 %v783_v32  ;;  %v794_v53 = vpack.c.bf16 %v5995_v10, %v5992_v58  ;;  %v6003_v49 = vsel %vm713_vm5, %v5866_v42, %v745_v41  ;;  %v6006_v47 = vsel %vm714_vm6, %v5869_v40, %v746_v25  ;;  %v631_v23 = vmul.f32 %v5776_v22, %v5596_v13 }
 0x338   :  { %955 = vmatprep.mubr.bf16.mxu0 %v5345_v26  ;;  %v784_v51 = vpack.c.bf16 %v756_v29, %v5907_v17  ;;  %v795_v54 = vpack.c.bf16 %v6006_v47, %v6003_v49  ;;  %v6016_v52 = vsel %vm715_vm7, %v5872_v24, %v747_v43  ;;  %v632_v42 = vmul.f32 %v5776_v22, %v5584_v9 }
 0x339   :  { %v725_v40 = vmul.f32 %v5899_v48, %v5839_v60  ;;  %v726_v50 = vmul.f32 %v5902_v46, %v5839_v60  ;;  %v780_v0 = vsel %vm716_vm8, %v5875_v37, %v748_v39  ;;  %vm693_vm9 = vcmp.ge.f32.partialorder %v5899_v48, 0.0 }
 0x33a   :  { %vm694_vm10 = vcmp.ge.f32.partialorder %v5902_v46, 0.0  ;;  %v796_v13 = vpack.c.bf16 %v780_v0, %v6016_v52  ;;  %v663_v24 = vadd.f32 %v631_v23, %v5797_v14  ;;  %v664_v9 = vadd.f32 %v632_v42, %v5797_v14 }
 0x33b   :  { %v757_v32 = vsel %vm693_vm9, %v5899_v48, %v725_v40  ;;  %v758_v17 = vsel %vm694_vm10, %v5902_v46, %v726_v50  ;;  %v633_v37 = vmul.f32 %v5776_v22, %v5573_v5  ;;  %v634_v33 = vmul.f32 %v5776_v22, %v5564_v2 }
 0x33c   :  { %v785_v44 = vpack.c.bf16 %v758_v17, %v757_v32  ;;  %v727_v29 = vmul.f32 %v663_v24, %v5839_v60  ;;  %v728_v15 = vmul.f32 %v664_v9, %v5839_v60  ;;  %vm695_vm11 = vcmp.ge.f32.partialorder %v663_v24, 0.0 }
 0x33d   :  { %vm696_vm12 = vcmp.ge.f32.partialorder %v664_v9, 0.0  ;;  %v665_v48 = vadd.f32 %v633_v37, %v5797_v14  ;;  %v666_v46 = vadd.f32 %v634_v33, %v5797_v14  ;;  %v635_v5 = vmul.f32 %v5776_v22, %v5553_v62 }
 0x33e   :  { %v759_v16 = vsel %vm695_vm11, %v663_v24, %v727_v29  ;;  %v760_v27 = vsel %vm696_vm12, %v664_v9, %v728_v15  ;;  %v636_v2 = vmul.f32 %v5776_v22, %v5543_v59 }
 0x33f   :  { %956 = vmatmul.mubr.bf16.gmra.mxu0 %v784_v51  ;;  %v786_v38 = vpack.c.bf16 %v760_v27, %v759_v16  ;;  %v729_v63 = vmul.f32 %v665_v48, %v5839_v60  ;;  %v730_v61 = vmul.f32 %v666_v46, %v5839_v60  ;;  %vm697_vm13 = vcmp.ge.f32.partialorder %v665_v48, 0.0 }
 0x340   :  { %965 = vmatprep.mubr.bf16.mxu0 %v5345_v26  ;;  %vm698_vm14 = vcmp.ge.f32.partialorder %v666_v46, 0.0  ;;  %v667_v36 = vadd.f32 %v635_v5, %v5797_v14  ;;  %v668_v31 = vadd.f32 %v636_v2, %v5797_v14 }
 0x341   :  { %v761_v28 = vsel %vm697_vm13, %v665_v48, %v729_v63  ;;  %v762_v45 = vsel %vm698_vm14, %v666_v46, %v730_v61 }
 0x342   :  { %v787_v41 = vpack.c.bf16 %v762_v45, %v761_v28  ;;  %v731_v62 = vmul.f32 %v667_v36, %v5839_v60  ;;  %v732_v59 = vmul.f32 %v668_v31, %v5839_v60  ;;  %vm699_vm15 = vcmp.ge.f32.partialorder %v667_v36, 0.0 }
 0x343   :  { %vm700_vm0 = vcmp.ge.f32.partialorder %v668_v31, 0.0 }
 0x344   :  { %v763_v22 = vsel %vm699_vm15, %v667_v36, %v731_v62  ;;  %v764_v25 = vsel %vm700_vm0, %v668_v31, %v732_v59 }
 0x345   :  { %v788_v43 = vpack.c.bf16 %v764_v25, %v763_v22 }
 0x347   :  { %966 = vmatmul.mubr.bf16.gmra.mxu0 %v785_v44 }
 0x348   :  { %975 = vmatprep.mubr.bf16.mxu0 %v5345_v26 }
 0x34f   :  { %976 = vmatmul.mubr.bf16.gmra.mxu0 %v786_v38 }
 0x350   :  { %985 = vmatprep.mubr.bf16.mxu0 %v5345_v26 }
 0x357   :  { %986 = vmatmul.mubr.bf16.gmra.mxu0 %v787_v41 }
 0x358   :  { %995 = vmatprep.mubr.bf16.mxu0 %v5345_v26 }
 0x35f   :  { %996 = vmatmul.mubr.bf16.gmra.mxu0 %v788_v43 }
 0x360   :  { %1005 = vmatprep.mubr.bf16.mxu0 %v5345_v26 }
 0x367   :  { %1006 = vmatmul.mubr.bf16.gmra.mxu0 %v789_v21 }
 0x368   :  { %1015 = vmatprep.mubr.bf16.mxu0 %v5345_v26 }
 0x36f   :  { %1016 = vmatmul.mubr.bf16.gmra.mxu0 %v790_v3 }
 0x370   :  { %1025 = vmatprep.mubr.bf16.mxu0 %v5345_v26 }
 0x377   :  { %1026 = vmatmul.mubr.bf16.gmra.mxu0 %v791_v8 }
 0x378   :  { %1035 = vmatprep.mubr.bf16.mxu0 %v5345_v26 }
 0x37f   :  { %1036 = vmatmul.mubr.bf16.gmra.mxu0 %v792_v30 }
 0x380   :  { %1045 = vmatprep.mubr.bf16.mxu0 %v5345_v26 }
 0x387   :  { %1046 = vmatmul.mubr.bf16.gmra.mxu0 %v793_v34 }
 0x388   :  { %1055 = vmatprep.mubr.bf16.mxu0 %v5345_v26 }
 0x38f   :  { %1056 = vmatmul.mubr.bf16.gmra.mxu0 %v794_v53 }
 0x390   :  { %1065 = vmatprep.mubr.bf16.mxu0 %v5345_v26 }
 0x397   :  { %1066 = vmatmul.mubr.bf16.gmra.mxu0 %v795_v54 }
 0x398   :  { %1075 = vmatprep.mubr.bf16.mxu0 %v5345_v26 }
 0x39f   :  { %1076 = vmatmul.mubr.bf16.gmra.mxu0 %v796_v13 }
 0x3e7   :  { %v6083_v14 = vpop.f32.mrf.mxu0 }
 0x3e8   :  { %11093 = vst [vmem:[#allocation14_spill] sm:$0xff] %v6083_v14 }
 0x3e9   :  { %v6085_v60 = vpop.f32.mrf.mxu0 }
 0x3eb   :  { %v6087_v11 = vpop.f32.mrf.mxu0 }
 0x3ed   :  { %v6089_v7 = vpop.f32.mrf.mxu0 }
 0x3ef   :  { %v6091_v21 = vpop.f32.mrf.mxu0 }
 0x3f1   :  { %v6093_v35 = vpop.f32.mrf.mxu0 }
 0x3f3   :  { %v6095_v19 = vpop.f32.mrf.mxu0 }
 0x3f5   :  { %v6097_v3 = vpop.f32.mrf.mxu0 }
 0x3f7   :  { %v6099_v4 = vpop.f32.mrf.mxu0 }
 0x3f9   :  { %v6101_v26 = vpop.f32.mrf.mxu0 }
 0x3fb   :  { %v6103_v6 = vpop.f32.mrf.mxu0 }
 0x3fd   :  { %v6105_v8 = vpop.f32.mrf.mxu0 }
 0x3ff   :  { %v6107_v20 = vpop.f32.mrf.mxu0 }
 0x401   :  { %v6109_v12 = vpop.f32.mrf.mxu0 }
 0x403   :  { %v6111_v30 = vpop.f32.mrf.mxu0 }
 0x405   :  { %v6113_v1 = vpop.f32.mrf.mxu0 }
 0x407   :  { %v6115_v56 = vpop.f32.mrf.mxu0 }
 0x409   :  { %v6117_v34 = vpop.f32.mrf.mxu0 }
 0x40b   :  { %v6119_v58 = vpop.f32.mrf.mxu0 }
 0x40d   :  { %v6121_v10 = vpop.f32.mrf.mxu0 }
 0x40f   :  { %v6123_v53 = vpop.f32.mrf.mxu0 }
 0x411   :  { %v6125_v49 = vpop.f32.mrf.mxu0 }
 0x413   :  { %v6127_v47 = vpop.f32.mrf.mxu0 }
 0x415   :  { %v6129_v39 = vpop.f32.mrf.mxu0 }
 0x417   :  { %v6131_v23 = vpop.f32.mrf.mxu0 }
 0x419   :  { %v6133_v51 = vpop.f32.mrf.mxu0 }
 0x41b   :  { %v6135_v54 = vpop.f32.mrf.mxu0 }
 0x41d   :  { %v6137_v52 = vpop.f32.mrf.mxu0 }
 0x41f   :  { %v6139_v42 = vpop.f32.mrf.mxu0 }
 0x421   :  { %v6141_v40 = vpop.f32.mrf.mxu0 }
 0x423   :  { %v6143_v50 = vpop.f32.mrf.mxu0 }
 0x425   :  { %v6145_v0 = vpop.f32.mrf.mxu0 }
 0x426   :  { %1092 = vmatprep.subr.mxu1 %v6145_v0 }
 0x427   :  { %v6148_v13 = vpop.f32.mrf.mxu0  ;;  %1093 = vmatpush1.msra.mxu1 %v6143_v50 }
 0x428   :  { %11094 = vst [vmem:[#allocation15_spill] sm:$0xff] %v6148_v13  ;;  %1094 = vmatprep.subr.mxu1 %v6141_v40 }
 0x429   :  { %v6152_v24 = vpop.f32.mrf.mxu0  ;;  %1095 = vmatpush1.msra.mxu1 %v6139_v42 }
 0x42a   :  { %11095 = vst [vmem:[#allocation16_spill] sm:$0xff] %v6152_v24  ;;  %1096 = vmatprep.subr.mxu1 %v6137_v52 }
 0x42b   :  { %v6156_v9 = vpop.f32.mrf.mxu0  ;;  %1097 = vmatpush1.msra.mxu1 %v6135_v54 }
 0x42c   :  { %11096 = vst [vmem:[#allocation17_spill] sm:$0xff] %v6156_v9  ;;  %1098 = vmatprep.subr.mxu1 %v6133_v51 }
 0x42d   :  { %v6160_v32 = vpop.f32.mrf.mxu0  ;;  %1099 = vmatpush1.msra.mxu1 %v6131_v23 }
 0x42e   :  { %11097 = vst [vmem:[#allocation18_spill] sm:$0xff] %v6160_v32  ;;  %1100 = vmatprep.subr.mxu1 %v6129_v39 }
 0x42f   :  { %v6164_v17 = vpop.f32.mrf.mxu0  ;;  %1101 = vmatpush1.msra.mxu1 %v6127_v47 }
 0x430   :  { %11098 = vst [vmem:[#allocation19_spill] sm:$0xff] %v6164_v17  ;;  %1102 = vmatprep.subr.mxu1 %v6125_v49 }
 0x431   :  { %v6168_v44 = vpop.f32.mrf.mxu0  ;;  %1103 = vmatpush1.msra.mxu1 %v6123_v53 }
 0x432   :  { %11099 = vst [vmem:[#allocation20_spill] sm:$0xff] %v6168_v44  ;;  %1104 = vmatprep.subr.mxu1 %v6121_v10 }
 0x433   :  { %v6172_v37 = vpop.f32.mrf.mxu0  ;;  %1105 = vmatpush1.msra.mxu1 %v6119_v58 }
 0x434   :  { %11100 = vst [vmem:[#allocation21_spill] sm:$0xff] %v6172_v37  ;;  %1106 = vmatprep.subr.mxu1 %v6117_v34 }
 0x435   :  { %v6176_v33 = vpop.f32.mrf.mxu0  ;;  %1107 = vmatpush1.msra.mxu1 %v6115_v56 }
 0x436   :  { %11101 = vst [vmem:[#allocation22_spill] sm:$0xff] %v6176_v33  ;;  %1108 = vmatprep.subr.mxu1 %v6113_v1 }
 0x437   :  { %v6180_v29 = vpop.f32.mrf.mxu0  ;;  %1109 = vmatpush1.msra.mxu1 %v6111_v30 }
 0x438   :  { %11102 = vst [vmem:[#allocation23_spill] sm:$0xff] %v6180_v29  ;;  %1110 = vmatprep.subr.mxu1 %v6109_v12 }
 0x439   :  { %v6184_v15 = vpop.f32.mrf.mxu0  ;;  %1111 = vmatpush1.msra.mxu1 %v6107_v20 }
 0x43a   :  { %11103 = vst [vmem:[#allocation24_spill] sm:$0xff] %v6184_v15  ;;  %1112 = vmatprep.subr.mxu1 %v6105_v8 }
 0x43b   :  { %v6188_v48 = vpop.f32.mrf.mxu0  ;;  %1113 = vmatpush1.msra.mxu1 %v6103_v6 }
 0x43c   :  { %11104 = vst [vmem:[#allocation25_spill] sm:$0xff] %v6188_v48  ;;  %1114 = vmatprep.subr.mxu1 %v6101_v26 }
 0x43d   :  { %v6192_v46 = vpop.f32.mrf.mxu0  ;;  %1115 = vmatpush1.msra.mxu1 %v6099_v4 }
 0x43e   :  { %11105 = vst [vmem:[#allocation26_spill] sm:$0xff] %v6192_v46  ;;  %1116 = vmatprep.subr.mxu1 %v6097_v3 }
 0x43f   :  { %v6196_v16 = vpop.f32.mrf.mxu0  ;;  %1117 = vmatpush1.msra.mxu1 %v6095_v19 }
 0x440   :  { %11106 = vst [vmem:[#allocation27_spill] sm:$0xff] %v6196_v16  ;;  %1118 = vmatprep.subr.mxu1 %v6093_v35 }
 0x441   :  { %v6200_v27 = vpop.f32.mrf.mxu0  ;;  %1119 = vmatpush1.msra.mxu1 %v6091_v21 }
 0x442   :  { %1120 = vmatprep.subr.mxu1 %v6089_v7 }
 0x443   :  { %v6204_v38 = vpop.f32.mrf.mxu0  ;;  %1121 = vmatpush1.msra.mxu1 %v6087_v11 }
 0x444   :  { %1122 = vmatprep.subr.mxu1 %v6085_v60 }
 0x445   :  { %v6208_v5 = vpop.f32.mrf.mxu0  ;;  %1123 = vmatpush1.msra.mxu1 %v6083_v14 }
 0x447   :  { %v6211_v2 = vpop.f32.mrf.mxu0 }
 0x449   :  { %v6213_v63 = vpop.f32.mrf.mxu0 }
 0x44b   :  { %v6215_v61 = vpop.f32.mrf.mxu0 }
 0x44d   :  { %v6217_v36 = vpop.f32.mrf.mxu0 }
 0x44f   :  { %v6219_v31 = vpop.f32.mrf.mxu0 }
 0x451   :  { %v6221_v28 = vpop.f32.mrf.mxu0 }
 0x453   :  { %v6223_v45 = vpop.f32.mrf.mxu0 }
 0x455   :  { %v6225_v41 = vpop.f32.mrf.mxu0 }
 0x457   :  { %v6227_v62 = vpop.f32.mrf.mxu0 }
 0x459   :  { %v6229_v59 = vpop.f32.mrf.mxu0 }
 0x45b   :  { %v6231_v22 = vpop.f32.mrf.mxu0 }
 0x45d   :  { %v6233_v25 = vpop.f32.mrf.mxu0 }
 0x45f   :  { %v6235_v43 = vpop.f32.mrf.mxu0 }
 0x461   :  { %v6237_v18 = vpop.f32.mrf.mxu0 }
 0x463   :  { %v6239_v55 = vpop.f32.mrf.mxu0 }
 0x465   :  { %v6241_v14 = vpop.f32.mrf.mxu0 }
 0x466   :  { %1124 = vmatprep.subr.mxu1 %v6241_v14 }
 0x467   :  { %1125 = vmatpush2.msra.mxu1 %v6239_v55 }
 0x468   :  { %1126 = vmatprep.subr.mxu1 %v6237_v18 }
 0x469   :  { %1127 = vmatpush2.msra.mxu1 %v6235_v43 }
 0x46a   :  { %1128 = vmatprep.subr.mxu1 %v6233_v25 }
 0x46b   :  { %1129 = vmatpush2.msra.mxu1 %v6231_v22 }
 0x46c   :  { %1130 = vmatprep.subr.mxu1 %v6229_v59 }
 0x46d   :  { %1131 = vmatpush2.msra.mxu1 %v6227_v62 }
 0x46e   :  { %1132 = vmatprep.subr.mxu1 %v6225_v41 }
 0x46f   :  { %1133 = vmatpush2.msra.mxu1 %v6223_v45 }
 0x470   :  { %1134 = vmatprep.subr.mxu1 %v6221_v28 }
 0x471   :  { %1135 = vmatpush2.msra.mxu1 %v6219_v31 }
 0x472   :  { %1136 = vmatprep.subr.mxu1 %v6217_v36 }
 0x473   :  { %1137 = vmatpush2.msra.mxu1 %v6215_v61 }
 0x474   :  { %1138 = vmatprep.subr.mxu1 %v6213_v63 }
 0x475   :  { %1139 = vmatpush2.msra.mxu1 %v6211_v2 }
 0x476   :  { %1140 = vmatprep.subr.mxu1 %v6208_v5 }
 0x477   :  { %1141 = vmatpush2.msra.mxu1 %v6204_v38 }
 0x478   :  { %1142 = vmatprep.subr.mxu1 %v6200_v27 }
 0x479   :  { %1143 = vmatpush2.msra.mxu1 %v6196_v16 }
 0x47a   :  { %1144 = vmatprep.subr.mxu1 %v6192_v46  ;;  %v5128_v46 = vld [vmem:[#allocation5 + $0x40] ss:$16 sps:$4 sm:$0xff]  }
 0x47b   :  { %1145 = vmatpush2.msra.mxu1 %v6188_v48  ;;  %v11107_v48 = vmov 1.0  }
 0x47c   :  { %1146 = vmatprep.subr.mxu1 %v6184_v15  ;;  %v5112_v15 = vld [vmem:[#allocation5 + $0xc4] ss:$16 sps:$4 sm:$0xff]  }
 0x47d   :  { %1147 = vmatpush2.msra.mxu1 %v6180_v29  ;;  %v5107_v29 = vld [vmem:[#allocation5 + $0xe0] ss:$16 sps:$4 sm:$0xff]  }
 0x47e   :  { %1148 = vmatprep.subr.mxu1 %v6176_v33  ;;  %v5109_v33 = vld [vmem:[#allocation5 + $0xe4] ss:$16 sps:$4 sm:$0xff]  }
 0x47f   :  { %1149 = vmatpush2.msra.mxu1 %v6172_v37  ;;  %2166 = vmatprep.subr.bf16.mxu0 %v5109_v33  ;;  %v5119_v37 = vld [vmem:[#allocation5 + $0x60] ss:$16 sps:$4 sm:$0xff]   ;;  %v5139_v33 = vld [vmem:[#allocation5 + $0x24] ss:$16 sps:$4 sm:$0xff]  }
 0x480   :  { %1150 = vmatprep.subr.mxu1 %v6168_v44  ;;  %2167 = vmatpush1.bf16.msra.mxu0 %v5107_v29  ;;  %v5110_v44 = vld [vmem:[#allocation5 + $0xc0] ss:$16 sps:$4 sm:$0xff]  }
 0x481   :  { %1151 = vmatpush2.msra.mxu1 %v6164_v17  ;;  %2168 = vmatprep.subr.bf16.mxu0 %v5112_v15  ;;  %v5115_v17 = vld [vmem:[#allocation5 + $0xa4] ss:$16 sps:$4 sm:$0xff]   ;;  %v5137_v29 = vld [vmem:[#allocation5 + $0x20] ss:$16 sps:$4 sm:$0xff]  }
 0x482   :  { %1152 = vmatprep.subr.mxu1 %v6160_v32  ;;  %v5113_v32 = vld [vmem:[#allocation5 + $0xa0] ss:$16 sps:$4 sm:$0xff]  }
 0x483   :  { %1153 = vmatpush2.msra.mxu1 %v6156_v9  ;;  %v5118_v9 = vld [vmem:[#allocation5 + $0x84] ss:$16 sps:$4 sm:$0xff]  }
 0x484   :  { %1154 = vmatprep.subr.mxu1 %v6152_v24  ;;  %2169 = vmatpush1.bf16.msra.mxu0 %v5110_v44  ;;  %v5116_v24 = vld [vmem:[#allocation5 + $0x80] ss:$16 sps:$4 sm:$0xff]  }
 0x485   :  { %1155 = vmatpush2.msra.mxu1 %v6148_v13  ;;  %2170 = vmatprep.subr.bf16.mxu0 %v5115_v17  ;;  %v5121_v13 = vld [vmem:[#allocation5 + $0x64] ss:$16 sps:$4 sm:$0xff]  }
 0x486   :  { %1157 = vmatmul.mubr.f32.vlgmr.msra.gmra.mxu1 %v11107_v48 }
 0x487   :  { %1365 = vmatprep.mubr.f32.mxu1 %v11107_v48  ;;  %v5130_v48 = vld [vmem:[#allocation5 + $0x44] ss:$16 sps:$4 sm:$0xff]  }
 0x488   :  { %2171 = vmatpush1.bf16.msra.mxu0 %v5113_v32 }
 0x489   :  { %2172 = vmatprep.subr.bf16.mxu0 %v5118_v9 }
 0x48c   :  { %2173 = vmatpush1.bf16.msra.mxu0 %v5116_v24 }
 0x48d   :  { %2174 = vmatprep.subr.bf16.mxu0 %v5121_v13 }
 0x490   :  { %2175 = vmatpush1.bf16.msra.mxu0 %v5119_v37 }
 0x491   :  { %2176 = vmatprep.subr.bf16.mxu0 %v5130_v48 }
 0x494   :  { %2177 = vmatpush1.bf16.msra.mxu0 %v5128_v46 }
 0x495   :  { %2178 = vmatprep.subr.bf16.mxu0 %v5139_v33 }
 0x498   :  { %2179 = vmatpush1.bf16.msra.mxu0 %v5137_v29 }
 0x546   :  { %v1158_v44 = vpop.f32.mrf.mxu1 }
 0x547   :  { %v1163_v16 = vmul.f32 0.00390625, %v1158_v44 }
 0x548   :  { %v1160_v15 = vpop.f32.mrf.mxu1 }
 0x549   :  { %v1164_v17 = vmul.f32 0.00390625, %v1160_v15  ;;  %v6281_v24 = vrot.slane %v1163_v16, %v5537_v57 }
 0x54b   :  { %v6278_v32 = vrot.slane %v1164_v17, %v5537_v57  ;;  %v6289_v9 = vsub.f32 %v6143_v50, %v6281_v24  ;;  %v6297_v48 = vsub.f32 %v6139_v42, %v6281_v24  ;;  %v6307_v16 = vsub.f32 %v6135_v54, %v6281_v24 }
 0x54c   :  { %v6331_v29 = vsub.f32 %v6127_v47, %v6281_v24  ;;  %v6343_v15 = vsub.f32 %v6123_v53, %v6281_v24 }
 0x54d   :  { %v6285_v13 = vsub.f32 %v6145_v0, %v6278_v32  ;;  %11109 = vst [vmem:[#allocation29_spill] sm:$0xff] %v6289_v9  ;;  %v6293_v37 = vsub.f32 %v6141_v40, %v6278_v32  ;;  %11111 = vst [vmem:[#allocation31_spill] sm:$0xff] %v6297_v48  ;;  %v6301_v46 = vsub.f32 %v6137_v52, %v6278_v32 }
 0x54e   :  { %11113 = vst [vmem:[#allocation33_spill] sm:$0xff] %v6307_v16  ;;  %v1267_v50 = vmul.f32 %v6289_v9, %v6289_v9  ;;  %v6313_v40 = vsub.f32 %v6133_v51, %v6278_v32  ;;  %v6319_v52 = vsub.f32 %v6131_v23, %v6281_v24  ;;  %v1265_v33 = vmul.f32 %v6297_v48, %v6297_v48 }
 0x54f   :  { %11108 = vst [vmem:[#allocation28_spill] sm:$0xff] %v6285_v13  ;;  %11110 = vst [vmem:[#allocation30_spill] sm:$0xff] %v6293_v37  ;;  %v1268_v0 = vmul.f32 %v6285_v13, %v6285_v13  ;;  %v1266_v42 = vmul.f32 %v6293_v37, %v6293_v37  ;;  %v6325_v54 = vsub.f32 %v6129_v39, %v6278_v32  ;;  %v11131_v13 = vld [vmem:[#allocation22_spill] sm:$0xff] }
 0x550   :  { %11112 = vst [vmem:[#allocation32_spill] sm:$0xff] %v6301_v46  ;;  %11114 = vst [vmem:[#allocation34_spill] sm:$0xff] %v6313_v40  ;;  %v1264_v51 = vmul.f32 %v6301_v46, %v6301_v46  ;;  %v1263_v23 = vmul.f32 %v6307_v16, %v6307_v16  ;;  %v6337_v44 = vsub.f32 %v6125_v49, %v6278_v32 }
 0x551   :  { %1301 = vmatprep.subr.mxu1 %v1268_v0  ;;  %11115 = vst [vmem:[#allocation35_spill] sm:$0xff] %v6319_v52  ;;  %11116 = vst [vmem:[#allocation36_spill] sm:$0xff] %v6325_v54  ;;  %v1262_v39 = vmul.f32 %v6313_v40, %v6313_v40  ;;  %v1261_v47 = vmul.f32 %v6319_v52, %v6319_v52  ;;  %v6349_v17 = vsub.f32 %v6121_v10, %v6278_v32  ;;  %v11135_v40 = vld [vmem:[#allocation18_spill] sm:$0xff] }
 0x552   :  { %1302 = vmatpush1.msra.mxu1 %v1267_v50  ;;  %11117 = vst [vmem:[#allocation37_spill] sm:$0xff] %v6331_v29  ;;  %11118 = vst [vmem:[#allocation38_spill] sm:$0xff] %v6337_v44  ;;  %v1260_v49 = vmul.f32 %v6325_v54, %v6325_v54  ;;  %v6355_v0 = vsub.f32 %v6119_v58, %v6281_v24  ;;  %v1259_v53 = vmul.f32 %v6331_v29, %v6331_v29 }
 0x553   :  { %1303 = vmatprep.subr.mxu1 %v1266_v42  ;;  %11119 = vst [vmem:[#allocation39_spill] sm:$0xff] %v6343_v15  ;;  %11120 = vst [vmem:[#allocation40_spill] sm:$0xff] %v6349_v17  ;;  %v6361_v50 = vsub.f32 %v6117_v34, %v6278_v32  ;;  %v1258_v10 = vmul.f32 %v6337_v44, %v6337_v44  ;;  %v6367_v42 = vsub.f32 %v6115_v56, %v6281_v24  ;;  %v5131_v44 = vld [vmem:[#allocation5 + $0xa8] ss:$16 sps:$4 sm:$0xff]  }
 0x554   :  { %1304 = vmatpush1.msra.mxu1 %v1265_v33  ;;  %11121 = vst [vmem:[#allocation41_spill] sm:$0xff] %v6355_v0  ;;  %v1257_v58 = vmul.f32 %v6343_v15, %v6343_v15  ;;  %v6373_v33 = vsub.f32 %v6113_v1, %v6278_v32  ;;  %v1256_v34 = vmul.f32 %v6349_v17, %v6349_v17  ;;  %v5142_v15 = vld [vmem:[#allocation5 + $0x6c] ss:$16 sps:$4 sm:$0xff]   ;;  %v5164_v17 = vld [vmem:[#allocation5 + $0x1c8] ss:$16 sps:$4 sm:$0xff]  }
 0x555   :  { %1305 = vmatprep.subr.mxu1 %v1264_v51  ;;  %11122 = vst [vmem:[#allocation42_spill] sm:$0xff] %v6361_v50  ;;  %11123 = vst [vmem:[#allocation43_spill] sm:$0xff] %v6367_v42  ;;  %v6379_v51 = vsub.f32 %v6111_v30, %v6281_v24  ;;  %v1255_v56 = vmul.f32 %v6355_v0, %v6355_v0  ;;  %v1254_v1 = vmul.f32 %v6361_v50, %v6361_v50 }
 0x556   :  { %1306 = vmatpush1.msra.mxu1 %v1263_v23  ;;  %11124 = vst [vmem:[#allocation44_spill] sm:$0xff] %v6373_v33  ;;  %v6385_v23 = vsub.f32 %v6109_v12, %v6278_v32  ;;  %v1253_v30 = vmul.f32 %v6367_v42, %v6367_v42  ;;  %v1252_v12 = vmul.f32 %v6373_v33, %v6373_v33  ;;  %v11142_v42 = vld [vmem:[#allocation12_spill] sm:$0xff] }
 0x557   :  { %1307 = vmatprep.subr.mxu1 %v1262_v39  ;;  %v6391_v39 = vsub.f32 %v6107_v20, %v6281_v24  ;;  %v1251_v20 = vmul.f32 %v6379_v51, %v6379_v51  ;;  %v6613_v37 = vsub.f32 %v11131_v13, %v6278_v32  ;;  %v6637_v52 = vsub.f32 %v11135_v40, %v6278_v32 }
 0x558   :  { %1308 = vmatpush1.msra.mxu1 %v1261_v47  ;;  %v6397_v47 = vsub.f32 %v6105_v8, %v6278_v32  ;;  %v1250_v8 = vmul.f32 %v6385_v23, %v6385_v23 }
 0x559   :  { %1309 = vmatprep.subr.mxu1 %v1260_v49  ;;  %v6403_v49 = vsub.f32 %v6103_v6, %v6281_v24  ;;  %v1249_v6 = vmul.f32 %v6391_v39, %v6391_v39 }
 0x55a   :  { %1310 = vmatpush1.msra.mxu1 %v1259_v53  ;;  %v6409_v53 = vsub.f32 %v6101_v26, %v6278_v32  ;;  %v1248_v26 = vmul.f32 %v6397_v47, %v6397_v47 }
 0x55b   :  { %1311 = vmatprep.subr.mxu1 %v1258_v10  ;;  %v6415_v10 = vsub.f32 %v6099_v4, %v6281_v24  ;;  %v1247_v4 = vmul.f32 %v6403_v49, %v6403_v49 }
 0x55c   :  { %1312 = vmatpush1.msra.mxu1 %v1257_v58  ;;  %v6421_v58 = vsub.f32 %v6097_v3, %v6278_v32  ;;  %v1246_v3 = vmul.f32 %v6409_v53, %v6409_v53 }
 0x55d   :  { %1313 = vmatprep.subr.mxu1 %v1256_v34  ;;  %v6427_v34 = vsub.f32 %v6095_v19, %v6281_v24  ;;  %v1245_v19 = vmul.f32 %v6415_v10, %v6415_v10 }
 0x55e   :  { %1314 = vmatpush1.msra.mxu1 %v1255_v56  ;;  %v6433_v56 = vsub.f32 %v6093_v35, %v6278_v32  ;;  %v1244_v35 = vmul.f32 %v6421_v58, %v6421_v58 }
 0x55f   :  { %1315 = vmatprep.subr.mxu1 %v1254_v1  ;;  %v6439_v1 = vsub.f32 %v6091_v21, %v6281_v24  ;;  %v1243_v21 = vmul.f32 %v6427_v34, %v6427_v34 }
 0x560   :  { %1316 = vmatpush1.msra.mxu1 %v1253_v30  ;;  %v6445_v30 = vsub.f32 %v6089_v7, %v6278_v32  ;;  %v1242_v7 = vmul.f32 %v6433_v56, %v6433_v56 }
 0x561   :  { %1317 = vmatprep.subr.mxu1 %v1252_v12  ;;  %v6451_v12 = vsub.f32 %v6087_v11, %v6281_v24  ;;  %v1241_v11 = vmul.f32 %v6439_v1, %v6439_v1 }
 0x562   :  { %1318 = vmatpush1.msra.mxu1 %v1251_v20  ;;  %v6457_v20 = vsub.f32 %v6085_v60, %v6278_v32  ;;  %v1240_v60 = vmul.f32 %v6445_v30, %v6445_v30 }
 0x563   :  { %1319 = vmatprep.subr.mxu1 %v1250_v8  ;;  %v11125_v8 = vld [vmem:[#allocation14_spill] sm:$0xff] }
 0x564   :  { %1320 = vmatpush1.msra.mxu1 %v1249_v6  ;;  %v6463_v6 = vsub.f32 %v11125_v8, %v6281_v24  ;;  %v6505_v8 = vsub.f32 %v6229_v59, %v6278_v32  ;;  %11136 = vst [vmem:[#allocation14_spill] sm:$0xff] %v6637_v52 }
 0x565   :  { %1321 = vmatprep.subr.mxu1 %v1248_v26  ;;  %v6469_v26 = vsub.f32 %v6241_v14, %v6278_v32  ;;  %v1238_v14 = vmul.f32 %v6457_v20, %v6457_v20 }
 0x566   :  { %1322 = vmatpush1.msra.mxu1 %v1247_v4  ;;  %v6475_v4 = vsub.f32 %v6239_v55, %v6281_v24  ;;  %v1237_v55 = vmul.f32 %v6463_v6, %v6463_v6 }
 0x567   :  { %1323 = vmatprep.subr.mxu1 %v1246_v3  ;;  %v1239_v3 = vmul.f32 %v6451_v12, %v6451_v12 }
 0x568   :  { %1324 = vmatpush1.msra.mxu1 %v1245_v19  ;;  %v6481_v19 = vsub.f32 %v6237_v18, %v6278_v32  ;;  %v1300_v18 = vmul.f32 %v6469_v26, %v6469_v26 }
 0x569   :  { %1325 = vmatprep.subr.mxu1 %v1244_v35  ;;  %v6487_v35 = vsub.f32 %v6235_v43, %v6281_v24  ;;  %v1299_v43 = vmul.f32 %v6475_v4, %v6475_v4 }
 0x56a   :  { %1326 = vmatpush1.msra.mxu1 %v1243_v21  ;;  %v6493_v21 = vsub.f32 %v6233_v25, %v6278_v32  ;;  %v1298_v25 = vmul.f32 %v6481_v19, %v6481_v19 }
 0x56b   :  { %1327 = vmatprep.subr.mxu1 %v1242_v7  ;;  %v6499_v7 = vsub.f32 %v6231_v22, %v6281_v24  ;;  %v1297_v22 = vmul.f32 %v6487_v35, %v6487_v35 }
 0x56c   :  { %1328 = vmatpush1.msra.mxu1 %v1241_v11  ;;  %v6511_v11 = vsub.f32 %v6227_v62, %v6281_v24  ;;  %v1296_v59 = vmul.f32 %v6493_v21, %v6493_v21 }
 0x56d   :  { %1329 = vmatprep.subr.mxu1 %v1240_v60  ;;  %v6517_v60 = vsub.f32 %v6225_v41, %v6278_v32  ;;  %v1295_v62 = vmul.f32 %v6499_v7, %v6499_v7  ;;  %v1294_v41 = vmul.f32 %v6505_v8, %v6505_v8 }
 0x56e   :  { %1330 = vmatpush1.msra.mxu1 %v1239_v3  ;;  %v6523_v3 = vsub.f32 %v6223_v45, %v6281_v24  ;;  %v1293_v45 = vmul.f32 %v6511_v11, %v6511_v11 }
 0x56f   :  { %1331 = vmatprep.subr.mxu1 %v1238_v14  ;;  %v6529_v14 = vsub.f32 %v6221_v28, %v6278_v32  ;;  %v1292_v28 = vmul.f32 %v6517_v60, %v6517_v60 }
 0x570   :  { %1332 = vmatpush1.msra.mxu1 %v1237_v55  ;;  %v6535_v55 = vsub.f32 %v6219_v31, %v6281_v24  ;;  %v1291_v31 = vmul.f32 %v6523_v3, %v6523_v3 }
 0x571   :  { %1333 = vmatprep.subr.mxu1 %v1300_v18  ;;  %v6541_v18 = vsub.f32 %v6217_v36, %v6278_v32  ;;  %v1290_v36 = vmul.f32 %v6529_v14, %v6529_v14 }
 0x572   :  { %1334 = vmatpush2.msra.mxu1 %v1299_v43  ;;  %v6547_v43 = vsub.f32 %v6215_v61, %v6281_v24  ;;  %v1289_v61 = vmul.f32 %v6535_v55, %v6535_v55 }
 0x573   :  { %1335 = vmatprep.subr.mxu1 %v1298_v25  ;;  %v6553_v25 = vsub.f32 %v6213_v63, %v6278_v32  ;;  %v1288_v63 = vmul.f32 %v6541_v18, %v6541_v18 }
 0x574   :  { %1336 = vmatpush2.msra.mxu1 %v1297_v22  ;;  %v6559_v22 = vsub.f32 %v6211_v2, %v6281_v24  ;;  %v1287_v2 = vmul.f32 %v6547_v43, %v6547_v43 }
 0x575   :  { %1337 = vmatprep.subr.mxu1 %v1296_v59  ;;  %v6565_v59 = vsub.f32 %v6208_v5, %v6278_v32  ;;  %v1286_v5 = vmul.f32 %v6553_v25, %v6553_v25 }
 0x576   :  { %1338 = vmatpush2.msra.mxu1 %v1295_v62  ;;  %v6571_v62 = vsub.f32 %v6204_v38, %v6281_v24  ;;  %v1285_v38 = vmul.f32 %v6559_v22, %v6559_v22 }
 0x577   :  { %1339 = vmatprep.subr.mxu1 %v1294_v41  ;;  %v6577_v41 = vsub.f32 %v6200_v27, %v6278_v32  ;;  %v1284_v27 = vmul.f32 %v6565_v59, %v6565_v59 }
 0x578   :  { %1340 = vmatpush2.msra.mxu1 %v1293_v45  ;;  %v11126_v45 = vld [vmem:[#allocation27_spill] sm:$0xff] }
 0x579   :  { %1341 = vmatprep.subr.mxu1 %v1292_v28  ;;  %v6583_v28 = vsub.f32 %v11126_v45, %v6281_v24  ;;  %v11129_v45 = vld [vmem:[#allocation24_spill] sm:$0xff] }
 0x57a   :  { %1342 = vmatpush2.msra.mxu1 %v1291_v31  ;;  %v11127_v31 = vld [vmem:[#allocation26_spill] sm:$0xff]  ;;  %v6601_v48 = vsub.f32 %v11129_v45, %v6278_v32  ;;  %v11132_v45 = vld [vmem:[#allocation21_spill] sm:$0xff] }
 0x57b   :  { %1343 = vmatprep.subr.mxu1 %v1290_v36  ;;  %v6589_v36 = vsub.f32 %v11127_v31, %v6278_v32  ;;  %v6619_v46 = vsub.f32 %v11132_v45, %v6281_v24 }
 0x57c   :  { %1344 = vmatpush2.msra.mxu1 %v1289_v61  ;;  %v11128_v61 = vld [vmem:[#allocation25_spill] sm:$0xff]  ;;  %v1278_v13 = vmul.f32 %v6601_v48, %v6601_v48 }
 0x57d   :  { %1345 = vmatprep.subr.mxu1 %v1288_v63  ;;  %v6595_v9 = vsub.f32 %v11128_v61, %v6281_v24  ;;  %v1283_v63 = vmul.f32 %v6571_v62, %v6571_v62  ;;  %v1281_v61 = vmul.f32 %v6583_v28, %v6583_v28 }
 0x57e   :  { %1346 = vmatpush2.msra.mxu1 %v1287_v2  ;;  %v1282_v2 = vmul.f32 %v6577_v41, %v6577_v41 }
 0x57f   :  { %1347 = vmatprep.subr.mxu1 %v1286_v5  ;;  %v11130_v5 = vld [vmem:[#allocation23_spill] sm:$0xff] }
 0x580   :  { %1348 = vmatpush2.msra.mxu1 %v1285_v38  ;;  %v6607_v31 = vsub.f32 %v11130_v5, %v6281_v24  ;;  %v1280_v38 = vmul.f32 %v6589_v36, %v6589_v36  ;;  %v11133_v5 = vld [vmem:[#allocation20_spill] sm:$0xff] }
 0x581   :  { %1349 = vmatprep.subr.mxu1 %v1284_v27  ;;  %v1279_v27 = vmul.f32 %v6595_v9, %v6595_v9  ;;  %v6625_v16 = vsub.f32 %v11133_v5, %v6278_v32  ;;  %v11137_v5 = vld [vmem:[#allocation17_spill] sm:$0xff] }
 0x582   :  { %1350 = vmatpush2.msra.mxu1 %v1283_v63  ;;  %v11134_v63 = vld [vmem:[#allocation19_spill] sm:$0xff]  ;;  %v1277_v45 = vmul.f32 %v6607_v31, %v6607_v31  ;;  %v6643_v54 = vsub.f32 %v11137_v5, %v6281_v24 }
 0x583   :  { %1351 = vmatprep.subr.mxu1 %v1282_v2  ;;  %v6631_v2 = vsub.f32 %v11134_v63, %v6281_v24  ;;  %v11138_v63 = vld [vmem:[#allocation16_spill] sm:$0xff]  ;;  %v1274_v40 = vmul.f32 %v6625_v16, %v6625_v16 }
 0x584   :  { %1352 = vmatpush2.msra.mxu1 %v1281_v61  ;;  %v1276_v61 = vmul.f32 %v6613_v37, %v6613_v37  ;;  %v6649_v29 = vsub.f32 %v11138_v63, %v6278_v32  ;;  %v1271_v32 = vmul.f32 %v6643_v54, %v6643_v54 }
 0x585   :  { %1353 = vmatprep.subr.mxu1 %v1280_v38  ;;  %v1275_v38 = vmul.f32 %v6619_v46, %v6619_v46  ;;  %v1273_v5 = vmul.f32 %v6631_v2, %v6631_v2 }
 0x586   :  { %1354 = vmatpush2.msra.mxu1 %v1279_v27  ;;  %11139 = vst [vmem:[#allocation27_spill] sm:$0xff] %v6649_v29  ;;  %v11140_v27 = vld [vmem:[#allocation15_spill] sm:$0xff]  ;;  %v1270_v63 = vmul.f32 %v6649_v29, %v6649_v29 }
 0x587   :  { %1355 = vmatprep.subr.mxu1 %v1278_v13  ;;  %v6655_v13 = vsub.f32 %v11140_v27, %v6281_v24  ;;  %v5122_v27 = vld [vmem:[#allocation5 + $0xe8] ss:$16 sps:$4 sm:$0xff]  }
 0x588   :  { %1356 = vmatpush2.msra.mxu1 %v1277_v45  ;;  %v1272_v45 = vmul.f32 %v6637_v52, %v6637_v52  ;;  %v5125_v52 = vld [vmem:[#allocation5 + $0xc8] ss:$16 sps:$4 sm:$0xff]  }
 0x589   :  { %1357 = vmatprep.subr.mxu1 %v1276_v61  ;;  %v5124_v61 = vld [vmem:[#allocation5 + $0xec] ss:$16 sps:$4 sm:$0xff]   ;;  %v1269_v24 = vmul.f32 %v6655_v13, %v6655_v13  ;;  %v5134_v29 = vld [vmem:[#allocation5 + $0x88] ss:$16 sps:$4 sm:$0xff]  }
 0x58a   :  { %1358 = vmatpush2.msra.mxu1 %v1275_v38  ;;  %v5127_v38 = vld [vmem:[#allocation5 + $0xcc] ss:$16 sps:$4 sm:$0xff]  }
 0x58b   :  { %1359 = vmatprep.subr.mxu1 %v1274_v40  ;;  %v11141_v40 = vmov 1.0  }
 0x58c   :  { %1360 = vmatpush2.msra.mxu1 %v1273_v5  ;;  %v5133_v5 = vld [vmem:[#allocation5 + $0xac] ss:$16 sps:$4 sm:$0xff]  }
 0x58d   :  { %1361 = vmatprep.subr.mxu1 %v1272_v45  ;;  %v5136_v45 = vld [vmem:[#allocation5 + $0x8c] ss:$16 sps:$4 sm:$0xff]  }
 0x58e   :  { %1362 = vmatpush2.msra.mxu1 %v1271_v32  ;;  %v5140_v32 = vld [vmem:[#allocation5 + $0x68] ss:$16 sps:$4 sm:$0xff]  }
 0x58f   :  { %1363 = vmatprep.subr.mxu1 %v1270_v63  ;;  %v5145_v63 = vld [vmem:[#allocation5 + $0x4c] ss:$16 sps:$4 sm:$0xff]  }
 0x590   :  { %1364 = vmatpush2.msra.mxu1 %v1269_v24  ;;  %v5143_v24 = vld [vmem:[#allocation5 + $0x48] ss:$16 sps:$4 sm:$0xff]  }
 0x591   :  { %1366 = vmatmul.mubr.f32.vlgmr.msra.gmra.mxu1 %v11141_v40  ;;  %2359 = vmatprep.subr.bf16.mxu1 %v5124_v61  ;;  %v5146_v61 = vld [vmem:[#allocation5] ss:$16 sps:$4 sm:$0xff]   ;;  %v5151_v40 = vld [vmem:[#allocation5 + $0x2c] ss:$16 sps:$4 sm:$0xff]  }
 0x592   :  { %2360 = vmatpush1.bf16.msra.mxu1 %v5122_v27  ;;  %v5148_v27 = vld [vmem:[#allocation5 + $0x4] ss:$16 sps:$4 sm:$0xff]  }
 0x593   :  { %2361 = vmatprep.subr.bf16.mxu1 %v5127_v38  ;;  %v5149_v38 = vld [vmem:[#allocation5 + $0x28] ss:$16 sps:$4 sm:$0xff]   ;;  %2180 = vmatprep.subr.bf16.mxu0 %v5148_v27  ;;  %v5167_v27 = vld [vmem:[#allocation5 + $0x1a0] ss:$16 sps:$4 sm:$0xff]  }
 0x594   :  { %2181 = vmatpush1.bf16.msra.mxu0 %v5146_v61  ;;  %v5172_v61 = vld [vmem:[#allocation5 + $0x1ac] ss:$16 sps:$4 sm:$0xff]  }
 0x596   :  { %2362 = vmatpush1.bf16.msra.mxu1 %v5125_v52  ;;  %v5154_v52 = vld [vmem:[#allocation5 + $0xc] ss:$16 sps:$4 sm:$0xff]  }
 0x597   :  { %2363 = vmatprep.subr.bf16.mxu1 %v5133_v5  ;;  %v5160_v5 = vld [vmem:[#allocation5 + $0x1ec] ss:$16 sps:$4 sm:$0xff]  }
 0x59a   :  { %2364 = vmatpush1.bf16.msra.mxu1 %v5131_v44  ;;  %v5152_v44 = vld [vmem:[#allocation5 + $0x8] ss:$16 sps:$4 sm:$0xff]  }
 0x59b   :  { %2365 = vmatprep.subr.bf16.mxu1 %v5136_v45  ;;  %v5158_v45 = vld [vmem:[#allocation5 + $0x1e8] ss:$16 sps:$4 sm:$0xff]  }
 0x59e   :  { %2366 = vmatpush1.bf16.msra.mxu1 %v5134_v29  ;;  %v5157_v29 = vld [vmem:[#allocation5 + $0x1e4] ss:$16 sps:$4 sm:$0xff]  }
 0x59f   :  { %2367 = vmatprep.subr.bf16.mxu1 %v5142_v15  ;;  %v5155_v15 = vld [vmem:[#allocation5 + $0x1e0] ss:$16 sps:$4 sm:$0xff]   ;;  %2182 = vmatprep.subr.bf16.mxu0 %v5157_v29 }
 0x5a0   :  { %2183 = vmatpush2.bf16.msra.mxu0 %v5155_v15  ;;  %v5173_v29 = vld [vmem:[#allocation5 + $0x180] ss:$16 sps:$4 sm:$0xff]   ;;  %v5181_v15 = vld [vmem:[#allocation5 + $0x164] ss:$16 sps:$4 sm:$0xff]  }
 0x5a2   :  { %2368 = vmatpush1.bf16.msra.mxu1 %v5140_v32  ;;  %v5163_v32 = vld [vmem:[#allocation5 + $0x1c4] ss:$16 sps:$4 sm:$0xff]  }
 0x5a3   :  { %2369 = vmatprep.subr.bf16.mxu1 %v5145_v63  ;;  %v5166_v63 = vld [vmem:[#allocation5 + $0x1cc] ss:$16 sps:$4 sm:$0xff]   ;;  %2184 = vmatprep.subr.bf16.mxu0 %v5163_v32  ;;  %v5179_v32 = vld [vmem:[#allocation5 + $0x160] ss:$16 sps:$4 sm:$0xff]  }
 0x5a6   :  { %2370 = vmatpush1.bf16.msra.mxu1 %v5143_v24  ;;  %v5161_v24 = vld [vmem:[#allocation5 + $0x1c0] ss:$16 sps:$4 sm:$0xff]  }
 0x5a7   :  { %2371 = vmatprep.subr.bf16.mxu1 %v5151_v40  ;;  %2185 = vmatpush2.bf16.msra.mxu0 %v5161_v24  ;;  %v5169_v40 = vld [vmem:[#allocation5 + $0x1a4] ss:$16 sps:$4 sm:$0xff]   ;;  %v5190_v24 = vld [vmem:[#allocation5 + $0x14c] ss:$16 sps:$4 sm:$0xff]  }
 0x5a8   :  { %2186 = vmatprep.subr.bf16.mxu0 %v5169_v40  ;;  %v5185_v40 = vld [vmem:[#allocation5 + $0x140] ss:$16 sps:$4 sm:$0xff]  }
 0x5aa   :  { %2372 = vmatpush1.bf16.msra.mxu1 %v5149_v38  ;;  %v5170_v38 = vld [vmem:[#allocation5 + $0x1a8] ss:$16 sps:$4 sm:$0xff]  }
 0x5ab   :  { %2373 = vmatprep.subr.bf16.mxu1 %v5154_v52  ;;  %2187 = vmatpush2.bf16.msra.mxu0 %v5167_v27  ;;  %v5175_v52 = vld [vmem:[#allocation5 + $0x184] ss:$16 sps:$4 sm:$0xff]  }
 0x5ac   :  { %2188 = vmatprep.subr.bf16.mxu0 %v5175_v52  ;;  %v5193_v27 = vld [vmem:[#allocation5 + $0x124] ss:$16 sps:$4 sm:$0xff]   ;;  %v5191_v52 = vld [vmem:[#allocation5 + $0x120] ss:$16 sps:$4 sm:$0xff]  }
 0x5ae   :  { %2374 = vmatpush1.bf16.msra.mxu1 %v5152_v44  ;;  %v5178_v44 = vld [vmem:[#allocation5 + $0x18c] ss:$16 sps:$4 sm:$0xff]  }
 0x5af   :  { %2375 = vmatprep.subr.bf16.mxu1 %v5160_v5  ;;  %v5176_v5 = vld [vmem:[#allocation5 + $0x188] ss:$16 sps:$4 sm:$0xff]   ;;  %2189 = vmatpush2.bf16.msra.mxu0 %v5173_v29  ;;  %v5199_v29 = vld [vmem:[#allocation5 + $0x104] ss:$16 sps:$4 sm:$0xff]  }
 0x5b0   :  { %2190 = vmatprep.subr.bf16.mxu0 %v5181_v15  ;;  %v5197_v15 = vld [vmem:[#allocation5 + $0x100] ss:$16 sps:$4 sm:$0xff]  }
 0x5b2   :  { %2376 = vmatpush2.bf16.msra.mxu1 %v5158_v45  ;;  %v5184_v45 = vld [vmem:[#allocation5 + $0x16c] ss:$16 sps:$4 sm:$0xff]  }
 0x5b3   :  { %2377 = vmatprep.subr.bf16.mxu1 %v5166_v63  ;;  %2191 = vmatpush2.bf16.msra.mxu0 %v5179_v32  ;;  %v5187_v63 = vld [vmem:[#allocation5 + $0x144] ss:$16 sps:$4 sm:$0xff]  }
 0x5b4   :  { %2192 = vmatprep.subr.bf16.mxu0 %v5187_v63 }
 0x5b6   :  { %2378 = vmatpush2.bf16.msra.mxu1 %v5164_v17  ;;  %v5182_v17 = vld [vmem:[#allocation5 + $0x168] ss:$16 sps:$4 sm:$0xff]  }
 0x5b7   :  { %2379 = vmatprep.subr.bf16.mxu1 %v5172_v61  ;;  %v5188_v61 = vld [vmem:[#allocation5 + $0x148] ss:$16 sps:$4 sm:$0xff]   ;;  %2193 = vmatpush2.bf16.msra.mxu0 %v5185_v40 }
 0x5b8   :  { %2194 = vmatprep.subr.bf16.mxu0 %v5193_v27  ;;  %v5346_v27 = vmov 1966171168  }
 0x5ba   :  { %2380 = vmatpush2.bf16.msra.mxu1 %v5170_v38  ;;  %v5196_v38 = vld [vmem:[#allocation5 + $0x12c] ss:$16 sps:$4 sm:$0xff]  }
 0x5bb   :  { %2381 = vmatprep.subr.bf16.mxu1 %v5178_v44  ;;  %v5194_v44 = vld [vmem:[#allocation5 + $0x128] ss:$16 sps:$4 sm:$0xff]   ;;  %2195 = vmatpush2.bf16.msra.mxu0 %v5191_v52 }
 0x5bc   :  { %2196 = vmatprep.subr.bf16.mxu0 %v5199_v29 }
 0x5be   :  { %2382 = vmatpush2.bf16.msra.mxu1 %v5176_v5  ;;  %v5202_v5 = vld [vmem:[#allocation5 + $0x10c] ss:$16 sps:$4 sm:$0xff]  }
 0x5bf   :  { %2383 = vmatprep.subr.bf16.mxu1 %v5184_v45  ;;  %v5200_v45 = vld [vmem:[#allocation5 + $0x108] ss:$16 sps:$4 sm:$0xff]   ;;  %2197 = vmatpush2.bf16.msra.mxu0 %v5197_v15 }
 0x5c0   :  { %v1087_v15 = vld [vmem:[#allocation7 + $0x3] ss:$8 sm:$0x3] }
 0x5c2   :  { %2384 = vmatpush2.bf16.msra.mxu1 %v5182_v17 }
 0x5c3   :  { %2385 = vmatprep.subr.bf16.mxu1 %v5190_v24 }
 0x5c6   :  { %2386 = vmatpush2.bf16.msra.mxu1 %v5188_v61 }
 0x5c7   :  { %2387 = vmatprep.subr.bf16.mxu1 %v5196_v38  ;;  %v1382_v38 = vunpack.c.l.s4 %v5346_v27 }
 0x5c9   :  { %v1383_v52 = vunpack.c.0.s8 %v1382_v38 }
 0x5ca   :  { %2388 = vmatpush2.bf16.msra.mxu1 %v5194_v44 }
 0x5cb   :  { %2389 = vmatprep.subr.bf16.mxu1 %v5202_v5  ;;  %v6669_v33 = vsub.s32 %v1383_v52, %v11142_v42 }
 0x5cd   :  { %11143 = vst [vmem:[#allocation26_spill] sm:$0xff] %v6669_v33 }
 0x5ce   :  { %2390 = vmatpush2.bf16.msra.mxu1 %v5200_v45  ;;  %v6674_v45 = vsub.s32 1, %v11142_v42  ;;  %v11165_v42 = vld [vmem:[#allocation41_spill] sm:$0xff] }
 0x5d0   :  { %11144 = vst [vmem:[#allocation25_spill] sm:$0xff] %v6674_v45 }
 0x651   :  { %v1367_v32 = vpop.f32.mrf.mxu1 }
 0x652   :  { %v1372_v63 = vmul.f32 0.00390625, %v1367_v32 }
 0x653   :  { %v1369_v17 = vpop.f32.mrf.mxu1 }
 0x654   :  { %v1373_v24 = vmul.f32 0.00390625, %v1369_v17  ;;  %v1374_v61 = vadd.f32 1e-05, %v1372_v63  ;;  %v1089_v17 = vld [vmem:[#allocation7 + $0x4] ss:$8 sm:$0x3] }
 0x655   :  { %v1091_v63 = vld [vmem:[#allocation7 + $0x5] ss:$8 sm:$0x3] }
 0x656   :  { %v1375_v40 = vadd.f32 1e-05, %v1373_v24  ;;  %v6700_v52 = vrot.slane %v1091_v63, %v6674_v45 }
 0x658   :  { %5237 = vrsqrt.f32 %v1375_v40 }
 0x659   :  { %5239 = vrsqrt.f32 %v1374_v61  ;;  %v6689_v61 = vrot.slane %v1089_v17, %v6674_v45 }
 0x665   :  { %v5238_v44 = vpop.eup %5237 }
 0x666   :  { %v5240_v0 = vpop.eup %5239 }
 0x667   :  { %v1380_v50 = vcombine.low %v5240_v0, %v5238_v44  ;;  %v6683_v0 = vrot.slane %v1089_v17, %v5537_v57 }
 0x669   :  { %v1387_v29 = vrot.slane %v1380_v50, %v6669_v33  ;;  %v6686_v50 = vrot.slane %v1091_v63, %v5537_v57 }
 0x66b   :  { %v1394_v5 = vrot.slane %v1387_v29, %v6669_v33  ;;  %v11166_v33 = vld [vmem:[#allocation40_spill] sm:$0xff] }
 0x66d   :  { %v1396_v32 = vmul.f32 %v1394_v5, %v1087_v15 }
 0x66f   :  { %v6677_v24 = vrot.slane %v1396_v32, %v5537_v57  ;;  %v6680_v40 = vrot.slane %v1396_v32, %v6674_v45  ;;  %v11164_v45 = vld [vmem:[#allocation42_spill] sm:$0xff] }
 0x671   :  { %11145 = vst [vmem:[#allocation24_spill] sm:$0xff] %v6677_v24  ;;  %11146 = vst [vmem:[#allocation23_spill] sm:$0xff] %v6680_v40  ;;  %v6693_v27 = vmul.f32 %v6677_v24, %v6463_v6  ;;  %v6697_v38 = vmul.f32 %v6680_v40, %v6457_v20  ;;  %v6704_v44 = vmul.f32 %v6677_v24, %v6451_v12 }
 0x672   :  { %v6708_v29 = vmul.f32 %v6680_v40, %v6445_v30  ;;  %v6712_v5 = vmul.f32 %v6677_v24, %v6439_v1  ;;  %v6716_v6 = vmul.f32 %v6680_v40, %v6433_v56  ;;  %v6720_v20 = vmul.f32 %v6677_v24, %v6427_v34 }
 0x673   :  { %v6724_v12 = vmul.f32 %v6680_v40, %v6421_v58  ;;  %v6728_v30 = vmul.f32 %v6677_v24, %v6415_v10  ;;  %v6732_v1 = vmul.f32 %v6680_v40, %v6409_v53  ;;  %v1440_v56 = vmul.f32 %v6677_v24, %v6655_v13 }
 0x674   :  { %v1442_v15 = vmul.f32 %v6677_v24, %v6643_v54  ;;  %v1444_v34 = vmul.f32 %v6677_v24, %v6631_v2  ;;  %v1445_v58 = vmul.f32 %v6680_v40, %v6625_v16  ;;  %v1446_v10 = vmul.f32 %v6677_v24, %v6619_v46 }
 0x675   :  { %v1447_v32 = vmul.f32 %v6680_v40, %v6613_v37  ;;  %v1448_v53 = vmul.f32 %v6677_v24, %v6607_v31  ;;  %v1449_v13 = vmul.f32 %v6680_v40, %v6601_v48  ;;  %v1450_v54 = vmul.f32 %v6677_v24, %v6595_v9 }
 0x676   :  { %v1451_v2 = vmul.f32 %v6680_v40, %v6589_v36  ;;  %v1452_v16 = vmul.f32 %v6677_v24, %v6583_v28  ;;  %v1453_v46 = vmul.f32 %v6680_v40, %v6577_v41  ;;  %v1454_v37 = vmul.f32 %v6677_v24, %v6571_v62 }
 0x677   :  { %v1455_v31 = vmul.f32 %v6680_v40, %v6565_v59  ;;  %v1456_v48 = vmul.f32 %v6677_v24, %v6559_v22  ;;  %v1457_v9 = vmul.f32 %v6680_v40, %v6553_v25  ;;  %v1458_v36 = vmul.f32 %v6677_v24, %v6547_v43 }
 0x678   :  { %v1459_v28 = vmul.f32 %v6680_v40, %v6541_v18  ;;  %v1460_v41 = vmul.f32 %v6677_v24, %v6535_v55  ;;  %v1461_v62 = vmul.f32 %v6680_v40, %v6529_v14  ;;  %v1462_v59 = vmul.f32 %v6677_v24, %v6523_v3 }
 0x679   :  { %v1463_v22 = vmul.f32 %v6680_v40, %v6517_v60  ;;  %v1464_v25 = vmul.f32 %v6677_v24, %v6511_v11  ;;  %v1465_v43 = vmul.f32 %v6680_v40, %v6505_v8  ;;  %v1466_v18 = vmul.f32 %v6677_v24, %v6499_v7 }
 0x67a   :  { %v1467_v55 = vmul.f32 %v6680_v40, %v6493_v21  ;;  %v1468_v14 = vmul.f32 %v6677_v24, %v6487_v35  ;;  %v1469_v3 = vmul.f32 %v6680_v40, %v6481_v19  ;;  %v1470_v60 = vmul.f32 %v6677_v24, %v6475_v4 }
 0x67b   :  { %v1471_v11 = vmul.f32 %v6680_v40, %v6469_v26  ;;  %v6795_v8 = vadd.f32 %v6683_v0, %v1440_v56  ;;  %v6798_v7 = vadd.f32 %v6683_v0, %v1442_v15  ;;  %v6801_v21 = vadd.f32 %v6683_v0, %v1444_v34 }
 0x67c   :  { %v6804_v35 = vadd.f32 %v6689_v61, %v1445_v58  ;;  %v6807_v19 = vadd.f32 %v6683_v0, %v1446_v10  ;;  %v6810_v4 = vadd.f32 %v6689_v61, %v1447_v32  ;;  %v6813_v26 = vadd.f32 %v6683_v0, %v1448_v53 }
 0x67d   :  { %v6816_v17 = vadd.f32 %v6689_v61, %v1449_v13  ;;  %v6819_v63 = vadd.f32 %v6683_v0, %v1450_v54  ;;  %v6822_v56 = vadd.f32 %v6689_v61, %v1451_v2  ;;  %v6825_v15 = vadd.f32 %v6683_v0, %v1452_v16 }
 0x67e   :  { %v6828_v34 = vadd.f32 %v6689_v61, %v1453_v46  ;;  %v6831_v58 = vadd.f32 %v6683_v0, %v1454_v37  ;;  %v6834_v10 = vadd.f32 %v6689_v61, %v1455_v31  ;;  %v6837_v32 = vadd.f32 %v6683_v0, %v1456_v48 }
 0x67f   :  { %11147 = vst [vmem:[#allocation22_spill] sm:$0xff] %v6822_v56  ;;  %v6840_v53 = vadd.f32 %v6689_v61, %v1457_v9  ;;  %v6843_v13 = vadd.f32 %v6683_v0, %v1458_v36  ;;  %v6846_v54 = vadd.f32 %v6689_v61, %v1459_v28  ;;  %v6849_v2 = vadd.f32 %v6683_v0, %v1460_v41 }
 0x680   :  { %11148 = vst [vmem:[#allocation21_spill] sm:$0xff] %v6828_v34  ;;  %11149 = vst [vmem:[#allocation20_spill] sm:$0xff] %v6834_v10  ;;  %v6852_v16 = vadd.f32 %v6689_v61, %v1461_v62  ;;  %v6855_v46 = vadd.f32 %v6683_v0, %v1462_v59  ;;  %v6858_v37 = vadd.f32 %v6689_v61, %v1463_v22  ;;  %vm1579_vm15 = vcmp.ge.f32.partialorder %v6795_v8, 0.0 }
 0x681   :  { %11150 = vst [vmem:[#allocation19_spill] sm:$0xff] %v6840_v53  ;;  %11151 = vst [vmem:[#allocation18_spill] sm:$0xff] %v6846_v54  ;;  %v6861_v31 = vadd.f32 %v6683_v0, %v1464_v25  ;;  %v6864_v48 = vadd.f32 %v6689_v61, %v1465_v43  ;;  %v6867_v9 = vadd.f32 %v6683_v0, %v1466_v18  ;;  %v11177_v54 = vld [vmem:[#allocation28_spill] sm:$0xff]  ;;  %vm1581_vm0 = vcmp.ge.f32.partialorder %v6798_v7, 0.0 }
 0x682   :  { %11152 = vst [vmem:[#allocation17_spill] sm:$0xff] %v6852_v16  ;;  %11153 = vst [vmem:[#allocation16_spill] sm:$0xff] %v6858_v37  ;;  %v6870_v36 = vadd.f32 %v6689_v61, %v1467_v55  ;;  %v6873_v28 = vadd.f32 %v6683_v0, %v1468_v14  ;;  %v6876_v41 = vadd.f32 %v6689_v61, %v1469_v3  ;;  %v11162_v14 = vld [vmem:[#allocation44_spill] sm:$0xff]  ;;  %v11175_v16 = vld [vmem:[#allocation30_spill] sm:$0xff] }
 0x683   :  { %11154 = vst [vmem:[#allocation15_spill] sm:$0xff] %v6861_v31  ;;  %11155 = vst [vmem:[#allocation45_spill] sm:$0xff] %v6864_v48  ;;  %v6879_v62 = vadd.f32 %v6683_v0, %v1470_v60  ;;  %v6882_v59 = vadd.f32 %v6689_v61, %v1471_v11  ;;  %v1418_v22 = vmul.f32 %v6677_v24, %v6403_v49  ;;  %v11163_v60 = vld [vmem:[#allocation43_spill] sm:$0xff]  ;;  %v11173_v48 = vld [vmem:[#allocation33_spill] sm:$0xff] }
 0x684   :  { %11156 = vst [vmem:[#allocation46_spill] sm:$0xff] %v6867_v9  ;;  %11157 = vst [vmem:[#allocation47_spill] sm:$0xff] %v6870_v36  ;;  %v1419_v25 = vmul.f32 %v6680_v40, %v6397_v47  ;;  %v1420_v43 = vmul.f32 %v6677_v24, %v6391_v39  ;;  %v1421_v18 = vmul.f32 %v6680_v40, %v6385_v23  ;;  %v11167_v23 = vld [vmem:[#allocation39_spill] sm:$0xff]  ;;  %v11172_v36 = vld [vmem:[#allocation34_spill] sm:$0xff] }
 0x685   :  { %11158 = vst [vmem:[#allocation48_spill] sm:$0xff] %v6873_v28  ;;  %11159 = vst [vmem:[#allocation49_spill] sm:$0xff] %v6876_v41  ;;  %v1422_v55 = vmul.f32 %v6677_v24, %v6379_v51  ;;  %v1423_v3 = vmul.f32 %v6680_v40, %v11162_v14  ;;  %v1424_v11 = vmul.f32 %v6677_v24, %v11163_v60  ;;  %v11168_v51 = vld [vmem:[#allocation38_spill] sm:$0xff]  ;;  %v11174_v37 = vld [vmem:[#allocation32_spill] sm:$0xff] }
 0x686   :  { %11160 = vst [vmem:[#allocation50_spill] sm:$0xff] %v6879_v62  ;;  %11161 = vst [vmem:[#allocation51_spill] sm:$0xff] %v6882_v59  ;;  %v1425_v49 = vmul.f32 %v6680_v40, %v11164_v45  ;;  %v1426_v47 = vmul.f32 %v6677_v24, %v11165_v42  ;;  %v6904_v39 = vmul.f32 %v6680_v40, %v11166_v33  ;;  %v11169_v59 = vld [vmem:[#allocation37_spill] sm:$0xff]  ;;  %v11170_v45 = vld [vmem:[#allocation36_spill] sm:$0xff] }
 0x687   :  { %v6908_v57 = vmul.f32 %v6677_v24, %v11167_v23  ;;  %v6912_v14 = vmul.f32 %v6680_v40, %v11168_v51  ;;  %v6916_v60 = vmul.f32 %v6677_v24, %v11169_v59  ;;  %v6920_v41 = vmul.f32 %v6680_v40, %v11170_v45  ;;  %v11171_v42 = vld [vmem:[#allocation35_spill] sm:$0xff] }
 0x688   :  { %v6924_v33 = vmul.f32 %v6677_v24, %v11171_v42  ;;  %v6928_v23 = vmul.f32 %v6680_v40, %v11172_v36  ;;  %v6932_v51 = vmul.f32 %v6677_v24, %v11173_v48  ;;  %v6936_v59 = vmul.f32 %v6680_v40, %v11174_v37 }
 0x689   :  { %v6940_v45 = vmul.f32 %v6680_v40, %v11175_v16  ;;  %v6944_v42 = vmul.f32 %v6680_v40, %v11177_v54  ;;  %v1483_v36 = vadd.f32 %v6683_v0, %v6693_v27  ;;  %v1484_v53 = vadd.f32 %v6689_v61, %v6697_v38 }
 0x68a   :  { %v1485_v48 = vadd.f32 %v6683_v0, %v6704_v44  ;;  %v1486_v37 = vadd.f32 %v6689_v61, %v6708_v29  ;;  %v6956_v16 = vadd.f32 %v6683_v0, %v6712_v5  ;;  %v1488_v54 = vadd.f32 %v6689_v61, %v6716_v6 }
 0x68b   :  { %11176 = vst [vmem:[#allocation44_spill] sm:$0xff] %v6940_v45  ;;  %11178 = vst [vmem:[#allocation43_spill] sm:$0xff] %v6944_v42  ;;  %v6962_v40 = vadd.f32 %v6683_v0, %v6720_v20  ;;  %v1490_v27 = vadd.f32 %v6689_v61, %v6724_v12  ;;  %v6968_v38 = vadd.f32 %v6683_v0, %v6728_v30  ;;  %vm1547_vm1 = vcmp.ge.f32.partialorder %v1483_v36, 0.0 }
 0x68c   :  { %v6972_v44 = vadd.f32 %v6689_v61, %v6732_v1  ;;  %v6975_v29 = vadd.f32 %v6683_v0, %v1418_v22  ;;  %v6978_v5 = vadd.f32 %v6689_v61, %v1419_v25  ;;  %v6981_v6 = vadd.f32 %v6683_v0, %v1420_v43 }
 0x68d   :  { %v6984_v20 = vadd.f32 %v6689_v61, %v1421_v18  ;;  %v6987_v12 = vadd.f32 %v6683_v0, %v1422_v55  ;;  %v6990_v30 = vadd.f32 %v6689_v61, %v1423_v3  ;;  %vm1549_vm2 = vcmp.ge.f32.partialorder %v1485_v48, 0.0 }
 0x68e   :  { %v1622_v1 = vmul.f32 %v6686_v50, %v1483_v36  ;;  %v1624_v22 = vmul.f32 %v6686_v50, %v1485_v48  ;;  %v6996_v25 = vmul.f32 %v6686_v50, %v6795_v8  ;;  %v7000_v43 = vmul.f32 %v6686_v50, %v6798_v7 }
 0x68f   :  { %v7004_v18 = vmul.f32 %v6686_v50, %v6801_v21  ;;  %v7008_v55 = vmul.f32 %v6686_v50, %v6807_v19  ;;  %v7012_v3 = vmul.f32 %v6686_v50, %v6813_v26  ;;  %v7016_v24 = vmul.f32 %v6686_v50, %v6819_v63 }
 0x690   :  { %v7020_v42 = vmul.f32 %v6686_v50, %v6825_v15  ;;  %v7024_v45 = vmul.f32 %v6686_v50, %v6831_v58  ;;  %v7028_v10 = vmul.f32 %v6686_v50, %v6837_v32  ;;  %v7032_v34 = vmul.f32 %v6686_v50, %v6843_v13 }
 0x691   :  { %11179 = vst [vmem:[#allocation42_spill] sm:$0xff] %v7008_v55  ;;  %11180 = vst [vmem:[#allocation41_spill] sm:$0xff] %v7012_v3  ;;  %v7036_v3 = vmul.f32 %v6686_v50, %v6849_v2  ;;  %vm1548_vm3 = vcmp.ge.f32.partialorder %v1484_v53, 0.0  ;;  %vm1550_vm4 = vcmp.ge.f32.partialorder %v1486_v37, 0.0  ;;  %vm1552_vm5 = vcmp.ge.f32.partialorder %v1488_v54, 0.0 }
 0x692   :  { %11181 = vst [vmem:[#allocation40_spill] sm:$0xff] %v7016_v24  ;;  %11182 = vst [vmem:[#allocation39_spill] sm:$0xff] %v7020_v42  ;;  %v7040_v24 = vmul.f32 %v6686_v50, %v6855_v46  ;;  %v7044_v42 = vmul.f32 %v6686_v50, %v6861_v31  ;;  %vm1554_vm6 = vcmp.ge.f32.partialorder %v1490_v27, 0.0  ;;  %v7083_v31 = vadd.f32 %v6689_v61, %v6912_v14 }
 0x693   :  { %11183 = vst [vmem:[#allocation38_spill] sm:$0xff] %v7024_v45  ;;  %11184 = vst [vmem:[#allocation37_spill] sm:$0xff] %v7028_v10  ;;  %v7048_v45 = vmul.f32 %v6686_v50, %v6867_v9  ;;  %v7052_v10 = vmul.f32 %v6686_v50, %v6873_v28  ;;  %v1623_v9 = vmul.f32 %v6700_v52, %v1484_v53  ;;  %vm1551_vm7 = vcmp.ge.f32.partialorder %v6956_v16, 0.0 }
 0x694   :  { %11185 = vst [vmem:[#allocation36_spill] sm:$0xff] %v7032_v34  ;;  %11186 = vst [vmem:[#allocation35_spill] sm:$0xff] %v7036_v3  ;;  %v7056_v34 = vmul.f32 %v6686_v50, %v6879_v62  ;;  %v1686_v3 = vsel %vm1547_vm1, %v1483_v36, %v1622_v1  ;;  %v1629_v36 = vmul.f32 %v6700_v52, %v1490_v27  ;;  %vm1553_vm8 = vcmp.ge.f32.partialorder %v6962_v40, 0.0 }
 0x695   :  { %11187 = vst [vmem:[#allocation34_spill] sm:$0xff] %v7040_v24  ;;  %11188 = vst [vmem:[#allocation33_spill] sm:$0xff] %v7044_v42  ;;  %v1688_v24 = vsel %vm1549_vm2, %v1485_v48, %v1624_v22  ;;  %v7061_v42 = vadd.f32 %v6683_v0, %v1424_v11  ;;  %v7071_v48 = vadd.f32 %v6683_v0, %v1426_v47  ;;  %vm1556_vm9 = vcmp.ge.f32.partialorder %v6972_v44, 0.0 }
 0x696   :  { %11189 = vst [vmem:[#allocation32_spill] sm:$0xff] %v7048_v45  ;;  %11190 = vst [vmem:[#allocation30_spill] sm:$0xff] %v7052_v10  ;;  %v1625_v45 = vmul.f32 %v6700_v52, %v1486_v37  ;;  %v7066_v10 = vadd.f32 %v6689_v61, %v1425_v49  ;;  %v1750_v1 = vpack.c.bf16 %v1688_v24, %v1686_v3  ;;  %vm1558_vm10 = vcmp.ge.f32.partialorder %v6978_v5, 0.0 }
 0x697   :  { %11191 = vst [vmem:[#allocation28_spill] sm:$0xff] %v7056_v34  ;;  %v1627_v34 = vmul.f32 %v6700_v52, %v1488_v54  ;;  %v1687_v22 = vsel %vm1548_vm3, %v1484_v53, %v1623_v9  ;;  %v7075_v62 = vadd.f32 %v6689_v61, %v6904_v39  ;;  %v1693_v55 = vsel %vm1554_vm6, %v1490_v27, %v1629_v36 }
 0x698   :  { %v1689_v11 = vsel %vm1550_vm4, %v1486_v37, %v1625_v45  ;;  %v7079_v49 = vadd.f32 %v6683_v0, %v6908_v57  ;;  %v7087_v24 = vadd.f32 %v6683_v0, %v6916_v60  ;;  %v7091_v53 = vadd.f32 %v6689_v61, %v6920_v41 }
 0x699   :  { %v1751_v28 = vpack.c.bf16 %v1689_v11, %v1687_v22  ;;  %v1691_v56 = vsel %vm1552_vm5, %v1488_v54, %v1627_v34  ;;  %v1626_v9 = vmul.f32 %v6686_v50, %v6956_v16  ;;  %v1628_v57 = vmul.f32 %v6686_v50, %v6962_v40 }
 0x69a   :  { %v1753_v34 = vpack.c.bf16 %v1693_v55, %v1691_v56  ;;  %v1631_v47 = vmul.f32 %v6700_v52, %v6972_v44  ;;  %v1633_v41 = vmul.f32 %v6700_v52, %v6978_v5  ;;  %v7105_v56 = vadd.f32 %v6683_v0, %v6924_v33 }
 0x69b   :  { %2198 = vmatprep.mubr.bf16.mxu0 %v1751_v28  ;;  %2391 = vmatprep.mubr.bf16.mxu1 %v1751_v28  ;;  %v7109_v28 = vadd.f32 %v6689_v61, %v6928_v23  ;;  %v7115_v39 = vadd.f32 %v6683_v0, %v6932_v51  ;;  %v7119_v14 = vadd.f32 %v6689_v61, %v6936_v59  ;;  %vm1559_vm11 = vcmp.ge.f32.partialorder %v6981_v6, 0.0 }
 0x69c   :  { %2199 = vmatmul.mubr.bf16.vlgmr.msra.gmra.mxu0 %v1750_v1  ;;  %2392 = vmatmul.mubr.bf16.vlgmr.msra.gmra.mxu1 %v1750_v1  ;;  %vm1561_vm12 = vcmp.ge.f32.partialorder %v6987_v12, 0.0  ;;  %vm1563_vm13 = vcmp.ge.f32.partialorder %v7061_v42, 0.0  ;;  %vm1565_vm14 = vcmp.ge.f32.partialorder %v7071_v48, 0.0  ;;  %v1690_v60 = vsel %vm1551_vm7, %v6956_v16, %v1626_v9 }
 0x69d   :  { %2208 = vmatprep.mubr.bf16.mxu0 %v1753_v34  ;;  %2401 = vmatprep.mubr.bf16.mxu1 %v1753_v34  ;;  %v1692_v33 = vsel %vm1553_vm8, %v6962_v40, %v1628_v57  ;;  %v1634_v23 = vmul.f32 %v6686_v50, %v6981_v6  ;;  %v1695_v51 = vsel %vm1556_vm9, %v6972_v44, %v1631_v47  ;;  %vm1555_vm1 = vcmp.ge.f32.partialorder %v6968_v38, 0.0 }
 0x69e   :  { %v1697_v59 = vsel %vm1558_vm10, %v6978_v5, %v1633_v41  ;;  %v1636_v45 = vmul.f32 %v6686_v50, %v6987_v12  ;;  %v1638_v37 = vmul.f32 %v6686_v50, %v7061_v42  ;;  %v1640_v40 = vmul.f32 %v6686_v50, %v7071_v48 }
 0x69f   :  { %v1630_v16 = vmul.f32 %v6686_v50, %v6968_v38  ;;  %v1752_v54 = vpack.c.bf16 %v1692_v33, %v1690_v60  ;;  %v1632_v27 = vmul.f32 %v6686_v50, %v6975_v29  ;;  %v1635_v44 = vmul.f32 %v6700_v52, %v6984_v20 }
 0x6a0   :  { %vm1583_vm2 = vcmp.ge.f32.partialorder %v6801_v21, 0.0  ;;  %v1755_v5 = vpack.c.bf16 %v1697_v59, %v1695_v51  ;;  %vm1557_vm3 = vcmp.ge.f32.partialorder %v6975_v29, 0.0  ;;  %vm1560_vm4 = vcmp.ge.f32.partialorder %v6984_v20, 0.0 }
 0x6a1   :  { %v1637_v55 = vmul.f32 %v6700_v52, %v6990_v30  ;;  %vm1585_vm5 = vcmp.ge.f32.partialorder %v6807_v19, 0.0  ;;  %vm1562_vm6 = vcmp.ge.f32.partialorder %v6990_v30, 0.0  ;;  %v1639_v3 = vmul.f32 %v6700_v52, %v7066_v10 }
 0x6a2   :  { %v1641_v36 = vmul.f32 %v6700_v52, %v7075_v62  ;;  %vm1587_vm7 = vcmp.ge.f32.partialorder %v6813_v26, 0.0  ;;  %v1694_v1 = vsel %vm1555_vm1, %v6968_v38, %v1630_v16  ;;  %vm1564_vm8 = vcmp.ge.f32.partialorder %v7066_v10, 0.0  ;;  %v11194_v16 = vld [vmem:[#allocation22_spill] sm:$0xff] }
 0x6a3   :  { %vm1566_vm9 = vcmp.ge.f32.partialorder %v7075_v62, 0.0  ;;  %vm1589_vm10 = vcmp.ge.f32.partialorder %v6819_v63, 0.0  ;;  %v1696_v22 = vsel %vm1557_vm3, %v6975_v29, %v1632_v27  ;;  %v1699_v11 = vsel %vm1560_vm4, %v6984_v20, %v1635_v44  ;;  %v11195_v44 = vld [vmem:[#allocation46_spill] sm:$0xff] }
 0x6a4   :  { %2209 = vmatmul.mubr.bf16.gmra.mxu0 %v1752_v54  ;;  %2402 = vmatmul.mubr.bf16.gmra.mxu1 %v1752_v54  ;;  %v1698_v34 = vsel %vm1559_vm11, %v6981_v6, %v1634_v23  ;;  %v1700_v38 = vsel %vm1561_vm12, %v6987_v12, %v1636_v45  ;;  %v1701_v9 = vsel %vm1562_vm6, %v6990_v30, %v1637_v55  ;;  %vm1568_vm11 = vcmp.ge.f32.partialorder %v7083_v31, 0.0  ;;  %v11192_v45 = vld [vmem:[#allocation15_spill] sm:$0xff]  ;;  %v11196_v55 = vld [vmem:[#allocation41_spill] sm:$0xff] }
 0x6a5   :  { %2218 = vmatprep.mubr.bf16.mxu0 %v1755_v5  ;;  %2411 = vmatprep.mubr.bf16.mxu1 %v1755_v5  ;;  %v1702_v57 = vsel %vm1563_vm13, %v7061_v42, %v1638_v37  ;;  %v1704_v29 = vsel %vm1565_vm14, %v7071_v48, %v1640_v40  ;;  %v1643_v20 = vmul.f32 %v6700_v52, %v7083_v31  ;;  %vm1591_vm12 = vcmp.ge.f32.partialorder %v6825_v15, 0.0  ;;  %v11193_v37 = vld [vmem:[#allocation42_spill] sm:$0xff] }
 0x6a6   :  { %v1703_v47 = vsel %vm1564_vm8, %v7066_v10, %v1639_v3  ;;  %v1705_v6 = vsel %vm1566_vm9, %v7075_v62, %v1641_v36  ;;  %v1645_v12 = vmul.f32 %v6700_v52, %v7091_v53  ;;  %vm1593_vm13 = vcmp.ge.f32.partialorder %v6831_v58, 0.0 }
 0x6a7   :  { %v7198_v42 = vmul.f32 %v6686_v50, %v7079_v49  ;;  %vm1570_vm14 = vcmp.ge.f32.partialorder %v7091_v53, 0.0  ;;  %v7203_v10 = vmul.f32 %v6686_v50, %v7087_v24  ;;  %v1754_v62 = vpack.c.bf16 %v1696_v22, %v1694_v1  ;;  %v11197_v22 = vld [vmem:[#allocation40_spill] sm:$0xff] }
 0x6a8   :  { %v1757_v30 = vpack.c.bf16 %v1701_v9, %v1699_v11  ;;  %v1756_v48 = vpack.c.bf16 %v1700_v38, %v1698_v34  ;;  %vm1595_vm1 = vcmp.ge.f32.partialorder %v6837_v32, 0.0  ;;  %v1759_v41 = vpack.c.bf16 %v1705_v6, %v1703_v47  ;;  %v11198_v34 = vld [vmem:[#allocation21_spill] sm:$0xff]  ;;  %v11199_v38 = vld [vmem:[#allocation20_spill] sm:$0xff] }
 0x6a9   :  { %v7206_v60 = vpack.c.bf16 %v1704_v29, %v1702_v57  ;;  %v7209_v33 = vsel %vm1568_vm11, %v7083_v31, %v1643_v20  ;;  %v1718_v23 = vsel %vm1579_vm15, %v6795_v8, %v6996_v25  ;;  %vm1597_vm3 = vcmp.ge.f32.partialorder %v6843_v13, 0.0  ;;  %v11202_v57 = vld [vmem:[#allocation39_spill] sm:$0xff]  ;;  %v11203_v20 = vld [vmem:[#allocation38_spill] sm:$0xff] }
 0x6aa   :  { %v7217_v51 = vsel %vm1570_vm14, %v7091_v53, %v1645_v12  ;;  %v7221_v59 = vmul.f32 %v6700_v52, %v7109_v28  ;;  %v1720_v31 = vsel %vm1581_vm0, %v6798_v7, %v7000_v43  ;;  %vm1599_vm4 = vcmp.ge.f32.partialorder %v6849_v2, 0.0  ;;  %v11204_v12 = vld [vmem:[#allocation19_spill] sm:$0xff] }
 0x6ab   :  { %vm1601_vm15 = vcmp.ge.f32.partialorder %v6855_v46, 0.0  ;;  %v7231_v8 = vmul.f32 %v6700_v52, %v7119_v14  ;;  %v7233_v25 = vpack.c.bf16 %v1720_v31, %v1718_v23  ;;  %vm1584_vm6 = vcmp.ge.f32.partialorder %v6804_v35, 0.0  ;;  %v11206_v23 = vld [vmem:[#allocation17_spill] sm:$0xff] }
 0x6ac   :  { %2219 = vmatmul.mubr.bf16.gmra.mxu0 %v1754_v62  ;;  %2412 = vmatmul.mubr.bf16.gmra.mxu1 %v1754_v62  ;;  %vm1586_vm8 = vcmp.ge.f32.partialorder %v6810_v4, 0.0  ;;  %v1659_v53 = vmul.f32 %v6700_v52, %v6804_v35  ;;  %v1661_v7 = vmul.f32 %v6700_v52, %v6810_v4  ;;  %v1722_v43 = vsel %vm1583_vm2, %v6801_v21, %v7004_v18  ;;  %v11205_v62 = vld [vmem:[#allocation18_spill] sm:$0xff] }
 0x6ad   :  { %2228 = vmatprep.mubr.bf16.mxu0 %v1757_v30  ;;  %2421 = vmatprep.mubr.bf16.mxu1 %v1757_v30  ;;  %vm1588_vm0 = vcmp.ge.f32.partialorder %v6816_v17, 0.0  ;;  %vm1603_vm9 = vcmp.ge.f32.partialorder %v11192_v45, 0.0  ;;  %v1724_v40 = vsel %vm1585_vm5, %v6807_v19, %v11193_v37  ;;  %vm1590_vm11 = vcmp.ge.f32.partialorder %v11194_v16, 0.0 }
 0x6ae   :  { %v1663_v54 = vmul.f32 %v6700_v52, %v6816_v17  ;;  %v1665_v27 = vmul.f32 %v6700_v52, %v11194_v16  ;;  %vm1605_vm14 = vcmp.ge.f32.partialorder %v11195_v44, 0.0  ;;  %v1723_v21 = vsel %vm1584_vm6, %v6804_v35, %v1659_v53 }
 0x6af   :  { %v1725_v18 = vsel %vm1586_vm8, %v6810_v4, %v1661_v7  ;;  %v7259_v5 = vpack.c.bf16 %v1724_v40, %v1722_v43  ;;  %v1726_v19 = vsel %vm1587_vm7, %v6813_v26, %v11196_v55  ;;  %v1728_v35 = vsel %vm1589_vm10, %v6819_v63, %v11197_v22  ;;  %v11200_v26 = vld [vmem:[#allocation48_spill] sm:$0xff]  ;;  %v11212_v22 = vld [vmem:[#allocation45_spill] sm:$0xff] }
 0x6b0   :  { %v7265_v3 = vpack.c.bf16 %v1725_v18, %v1723_v21  ;;  %v1727_v36 = vsel %vm1588_vm0, %v6816_v17, %v1663_v54  ;;  %v1729_v1 = vsel %vm1590_vm11, %v11194_v16, %v1665_v27  ;;  %v7275_v4 = vpack.c.bf16 %v1728_v35, %v1726_v19  ;;  %v11201_v17 = vld [vmem:[#allocation50_spill] sm:$0xff]  ;;  %v11208_v43 = vld [vmem:[#allocation36_spill] sm:$0xff]  ;;  %v11213_v35 = vld [vmem:[#allocation47_spill] sm:$0xff] }
 0x6b1   :  { %v7273_v11 = vpack.c.bf16 %v1729_v1, %v1727_v36  ;;  %vm1592_vm2 = vcmp.ge.f32.partialorder %v11198_v34, 0.0  ;;  %vm1594_vm5 = vcmp.ge.f32.partialorder %v11199_v38, 0.0  ;;  %vm1567_vm7 = vcmp.ge.f32.partialorder %v7079_v49, 0.0  ;;  %v11209_v54 = vld [vmem:[#allocation16_spill] sm:$0xff] }
 0x6b2   :  { %vm1607_vm6 = vcmp.ge.f32.partialorder %v11200_v26, 0.0  ;;  %vm1609_vm8 = vcmp.ge.f32.partialorder %v11201_v17, 0.0  ;;  %v1667_v9 = vmul.f32 %v6700_v52, %v11198_v34  ;;  %v1669_v63 = vmul.f32 %v6700_v52, %v11199_v38 }
 0x6b3   :  { %v1730_v29 = vsel %vm1591_vm12, %v6825_v15, %v11202_v57  ;;  %v1732_v47 = vsel %vm1593_vm13, %v6831_v58, %v11203_v20  ;;  %vm1569_vm10 = vcmp.ge.f32.partialorder %v7087_v24, 0.0  ;;  %vm1596_vm0 = vcmp.ge.f32.partialorder %v11204_v12, 0.0 }
 0x6b4   :  { %2229 = vmatmul.mubr.bf16.gmra.mxu0 %v1756_v48  ;;  %2422 = vmatmul.mubr.bf16.gmra.mxu1 %v1756_v48  ;;  %v7295_v6 = vpack.c.bf16 %v1732_v47, %v1730_v29  ;;  %vm1598_vm11 = vcmp.ge.f32.partialorder %v11205_v62, 0.0  ;;  %v1671_v30 = vmul.f32 %v6700_v52, %v11204_v12  ;;  %vm1572_vm12 = vcmp.ge.f32.partialorder %v7109_v28, 0.0  ;;  %v11215_v29 = vld [vmem:[#allocation32_spill] sm:$0xff]  ;;  %v11216_v47 = vld [vmem:[#allocation49_spill] sm:$0xff] }
 0x6b5   :  { %2238 = vmatprep.mubr.bf16.mxu0 %v1759_v41  ;;  %2431 = vmatprep.mubr.bf16.mxu1 %v1759_v41  ;;  %v1731_v15 = vsel %vm1592_vm2, %v11198_v34, %v1667_v9  ;;  %v1733_v58 = vsel %vm1594_vm5, %v11199_v38, %v1669_v63  ;;  %v1673_v48 = vmul.f32 %v6700_v52, %v11205_v62  ;;  %vm1600_vm13 = vcmp.ge.f32.partialorder %v11206_v23, 0.0  ;;  %v11207_v41 = vld [vmem:[#allocation37_spill] sm:$0xff] }
 0x6b6   :  { %v7311_v31 = vpack.c.bf16 %v1733_v58, %v1731_v15  ;;  %v1735_v53 = vsel %vm1596_vm0, %v11204_v12, %v1671_v30  ;;  %v1734_v7 = vsel %vm1595_vm1, %v6837_v32, %v11207_v41  ;;  %v1736_v37 = vsel %vm1597_vm3, %v6843_v13, %v11208_v43  ;;  %v11210_v32 = vld [vmem:[#allocation35_spill] sm:$0xff]  ;;  %v11211_v13 = vld [vmem:[#allocation34_spill] sm:$0xff]  ;;  %v11214_v9 = vld [vmem:[#allocation33_spill] sm:$0xff] }
 0x6b7   :  { %v1737_v40 = vsel %vm1598_vm11, %v11205_v62, %v1673_v48  ;;  %v7323_v16 = vpack.c.bf16 %v1736_v37, %v1734_v7  ;;  %vm1602_vm2 = vcmp.ge.f32.partialorder %v11209_v54, 0.0  ;;  %v1675_v27 = vmul.f32 %v6700_v52, %v11206_v23  ;;  %v11218_v30 = vld [vmem:[#allocation44_spill] sm:$0xff]  ;;  %v11219_v48 = vld [vmem:[#allocation30_spill] sm:$0xff]  ;;  %v11221_v37 = vld [vmem:[#allocation43_spill] sm:$0xff] }
 0x6b8   :  { %v7328_v21 = vpack.c.bf16 %v1737_v40, %v1735_v53  ;;  %v1677_v18 = vmul.f32 %v6700_v52, %v11209_v54  ;;  %v1738_v55 = vsel %vm1599_vm4, %v6849_v2, %v11210_v32  ;;  %v1740_v19 = vsel %vm1601_vm15, %v6855_v46, %v11211_v13  ;;  %v11220_v53 = vld [vmem:[#allocation28_spill] sm:$0xff]  ;;  %v11226_v13 = vld [vmem:[#allocation23_spill] sm:$0xff] }
 0x6b9   :  { %v1739_v36 = vsel %vm1600_vm13, %v11206_v23, %v1675_v27  ;;  %v7341_v1 = vpack.c.bf16 %v1740_v19, %v1738_v55  ;;  %vm1604_vm1 = vcmp.ge.f32.partialorder %v11212_v22, 0.0  ;;  %vm1606_vm3 = vcmp.ge.f32.partialorder %v11213_v35, 0.0  ;;  %v11225_v55 = vld [vmem:[#allocation27_spill] sm:$0xff] }
 0x6ba   :  { %v1741_v34 = vsel %vm1602_vm2, %v11209_v54, %v1677_v18  ;;  %v1679_v38 = vmul.f32 %v6700_v52, %v11212_v22  ;;  %v1681_v2 = vmul.f32 %v6700_v52, %v11213_v35  ;;  %v1742_v46 = vsel %vm1603_vm9, %v11192_v45, %v11214_v9  ;;  %v11223_v54 = vld [vmem:[#allocation24_spill] sm:$0xff]  ;;  %v11224_v18 = vld [vmem:[#allocation29_spill] sm:$0xff] }
 0x6bb   :  { %v1761_v63 = vpack.c.bf16 %v7217_v51, %v7209_v33  ;;  %v7356_v57 = vpack.c.bf16 %v1741_v34, %v1739_v36  ;;  %v1744_v20 = vsel %vm1605_vm14, %v11195_v44, %v11215_v29  ;;  %vm1608_vm4 = vcmp.ge.f32.partialorder %v11216_v47, 0.0  ;;  %v11217_v33 = vld [vmem:[#allocation51_spill] sm:$0xff] }
 0x6bc   :  { %2239 = vmatmul.mubr.bf16.gmra.mxu0 %v7206_v60  ;;  %2432 = vmatmul.mubr.bf16.gmra.mxu1 %v7206_v60  ;;  %v1743_v12 = vsel %vm1604_vm1, %v11212_v22, %v1679_v38  ;;  %v1745_v45 = vsel %vm1606_vm3, %v11213_v35, %v1681_v2  ;;  %v7367_v62 = vpack.c.bf16 %v1744_v20, %v1742_v46  ;;  %vm1610_vm15 = vcmp.ge.f32.partialorder %v11217_v33, 0.0  ;;  %v11227_v22 = vld [vmem:[#allocation14_spill] sm:$0xff] }
 0x6bd   :  { %2248 = vmatprep.mubr.bf16.mxu0 %v1761_v63  ;;  %2441 = vmatprep.mubr.bf16.mxu1 %v1761_v63  ;;  %vm1574_vm9 = vcmp.ge.f32.partialorder %v7119_v14, 0.0  ;;  %v7371_v51 = vpack.c.bf16 %v1745_v45, %v1743_v12  ;;  %v1683_v44 = vmul.f32 %v6700_v52, %v11216_v47  ;;  %v1685_v60 = vmul.f32 %v6700_v52, %v11217_v33 }
 0x6be   :  { %v1512_v15 = vadd.f32 %v6689_v61, %v11218_v30  ;;  %v1706_v58 = vsel %vm1567_vm7, %v7079_v49, %v7198_v42  ;;  %v1746_v23 = vsel %vm1607_vm6, %v11200_v26, %v11219_v48  ;;  %v1748_v41 = vsel %vm1609_vm8, %v11201_v17, %v11220_v53 }
 0x6bf   :  { %v1708_v7 = vsel %vm1569_vm10, %v7087_v24, %v7203_v10  ;;  %v1747_v43 = vsel %vm1608_vm4, %v11216_v47, %v1683_v44  ;;  %v1749_v49 = vsel %vm1610_vm15, %v11217_v33, %v1685_v60  ;;  %v7399_v42 = vpack.c.bf16 %v1748_v41, %v1746_v23  ;;  %v11222_v10 = vld [vmem:[#allocation31_spill] sm:$0xff] }
 0x6c0   :  { %v1514_v26 = vadd.f32 %v6689_v61, %v11221_v37  ;;  %v1711_v17 = vsel %vm1572_vm12, %v7109_v28, %v7221_v59  ;;  %v1713_v40 = vsel %vm1574_vm9, %v7119_v14, %v7231_v8  ;;  %v7409_v24 = vpack.c.bf16 %v1749_v49, %v1747_v43 }
 0x6c1   :  { %v1436_v27 = vmul.f32 %v11223_v54, %v11222_v10  ;;  %v1438_v32 = vmul.f32 %v11223_v54, %v11224_v18  ;;  %v1441_v19 = vmul.f32 %v11226_v13, %v11225_v55  ;;  %v1760_v36 = vpack.c.bf16 %v1708_v7, %v1706_v58 }
 0x6c2   :  { %v1443_v35 = vmul.f32 %v11226_v13, %v11227_v22  ;;  %v1646_v28 = vmul.f32 %v6686_v50, %v7105_v56  ;;  %v1648_v14 = vmul.f32 %v6686_v50, %v7115_v39  ;;  %v1763_v59 = vpack.c.bf16 %v1713_v40, %v1711_v17 }
 0x6c3   :  { %vm1571_vm14 = vcmp.ge.f32.partialorder %v7105_v56, 0.0  ;;  %vm1573_vm5 = vcmp.ge.f32.partialorder %v7115_v39, 0.0  ;;  %v1651_v8 = vmul.f32 %v6700_v52, %v1512_v15  ;;  %v1653_v34 = vmul.f32 %v6700_v52, %v1514_v26 }
 0x6c4   :  { %2249 = vmatmul.mubr.bf16.gmra.mxu0 %v1760_v36  ;;  %2442 = vmatmul.mubr.bf16.gmra.mxu1 %v1760_v36  ;;  %vm1576_vm7 = vcmp.ge.f32.partialorder %v1512_v15, 0.0  ;;  %vm1578_vm6 = vcmp.ge.f32.partialorder %v1514_v26, 0.0  ;;  %v1511_v38 = vadd.f32 %v6683_v0, %v1436_v27  ;;  %v1513_v2 = vadd.f32 %v6683_v0, %v1438_v32 }
 0x6c5   :  { %2258 = vmatprep.mubr.bf16.mxu0 %v1763_v59  ;;  %2451 = vmatprep.mubr.bf16.mxu1 %v1763_v59  ;;  %v1710_v9 = vsel %vm1571_vm14, %v7105_v56, %v1646_v28  ;;  %v1712_v46 = vsel %vm1573_vm5, %v7115_v39, %v1648_v14  ;;  %v1516_v63 = vadd.f32 %v6689_v61, %v1441_v19 }
 0x6c6   :  { %v1518_v29 = vadd.f32 %v6689_v61, %v1443_v35  ;;  %v1715_v20 = vsel %vm1576_vm7, %v1512_v15, %v1651_v8  ;;  %v1717_v47 = vsel %vm1578_vm6, %v1514_v26, %v1653_v34  ;;  %v1762_v12 = vpack.c.bf16 %v1712_v46, %v1710_v9 }
 0x6c7   :  { %v1650_v45 = vmul.f32 %v6686_v50, %v1511_v38  ;;  %v1652_v33 = vmul.f32 %v6686_v50, %v1513_v2  ;;  %v1765_v44 = vpack.c.bf16 %v1717_v47, %v1715_v20  ;;  %vm1575_vm8 = vcmp.ge.f32.partialorder %v1511_v38, 0.0 }
 0x6c8   :  { %vm1577_vm10 = vcmp.ge.f32.partialorder %v1513_v2, 0.0  ;;  %v1655_v0 = vmul.f32 %v6700_v52, %v1516_v63  ;;  %v1657_v56 = vmul.f32 %v6700_v52, %v1518_v29  ;;  %vm1580_vm0 = vcmp.ge.f32.partialorder %v1516_v63, 0.0 }
 0x6c9   :  { %vm1582_vm11 = vcmp.ge.f32.partialorder %v1518_v29, 0.0  ;;  %v1714_v61 = vsel %vm1575_vm8, %v1511_v38, %v1650_v45  ;;  %v1716_v39 = vsel %vm1577_vm10, %v1513_v2, %v1652_v33  ;;  %v11228_v50 = vmov 1.0  }
 0x6ca   :  { %v1719_v60 = vsel %vm1580_vm0, %v1516_v63, %v1655_v0  ;;  %v1721_v30 = vsel %vm1582_vm11, %v1518_v29, %v1657_v56  ;;  %v1764_v15 = vpack.c.bf16 %v1716_v39, %v1714_v61 }
 0x6cb   :  { %v1767_v58 = vpack.c.bf16 %v1721_v30, %v1719_v60 }
 0x6cc   :  { %2259 = vmatmul.mubr.bf16.gmra.mxu0 %v1762_v12  ;;  %2452 = vmatmul.mubr.bf16.gmra.mxu1 %v1762_v12 }
 0x6cd   :  { %2268 = vmatprep.mubr.bf16.mxu0 %v1765_v44  ;;  %2461 = vmatprep.mubr.bf16.mxu1 %v1765_v44 }
 0x6d4   :  { %2269 = vmatmul.mubr.bf16.gmra.mxu0 %v1764_v15  ;;  %2462 = vmatmul.mubr.bf16.gmra.mxu1 %v1764_v15 }
 0x6d5   :  { %2278 = vmatprep.mubr.bf16.mxu0 %v1767_v58  ;;  %2471 = vmatprep.mubr.bf16.mxu1 %v1767_v58 }
 0x6dc   :  { %2279 = vmatmul.mubr.bf16.gmra.mxu0 %v7233_v25  ;;  %2472 = vmatmul.mubr.bf16.gmra.mxu1 %v7233_v25 }
 0x6dd   :  { %2288 = vmatprep.mubr.bf16.mxu0 %v7265_v3  ;;  %2481 = vmatprep.mubr.bf16.mxu1 %v7265_v3 }
 0x6e4   :  { %2289 = vmatmul.mubr.bf16.gmra.mxu0 %v7259_v5  ;;  %2482 = vmatmul.mubr.bf16.gmra.mxu1 %v7259_v5 }
 0x6e5   :  { %2298 = vmatprep.mubr.bf16.mxu0 %v7273_v11  ;;  %2491 = vmatprep.mubr.bf16.mxu1 %v7273_v11 }
 0x6ec   :  { %2299 = vmatmul.mubr.bf16.gmra.mxu0 %v7275_v4  ;;  %2492 = vmatmul.mubr.bf16.gmra.mxu1 %v7275_v4 }
 0x6ed   :  { %2308 = vmatprep.mubr.bf16.mxu0 %v7311_v31  ;;  %2501 = vmatprep.mubr.bf16.mxu1 %v7311_v31 }
 0x6f4   :  { %2309 = vmatmul.mubr.bf16.gmra.mxu0 %v7295_v6  ;;  %2502 = vmatmul.mubr.bf16.gmra.mxu1 %v7295_v6 }
 0x6f5   :  { %2318 = vmatprep.mubr.bf16.mxu0 %v7328_v21  ;;  %2511 = vmatprep.mubr.bf16.mxu1 %v7328_v21 }
 0x6fc   :  { %2319 = vmatmul.mubr.bf16.gmra.mxu0 %v7323_v16  ;;  %2512 = vmatmul.mubr.bf16.gmra.mxu1 %v7323_v16 }
 0x6fd   :  { %2328 = vmatprep.mubr.bf16.mxu0 %v7356_v57  ;;  %2521 = vmatprep.mubr.bf16.mxu1 %v7356_v57 }
 0x704   :  { %2329 = vmatmul.mubr.bf16.gmra.mxu0 %v7341_v1  ;;  %2522 = vmatmul.mubr.bf16.gmra.mxu1 %v7341_v1 }
 0x705   :  { %2338 = vmatprep.mubr.bf16.mxu0 %v7371_v51  ;;  %2531 = vmatprep.mubr.bf16.mxu1 %v7371_v51 }
 0x70c   :  { %2339 = vmatmul.mubr.bf16.gmra.mxu0 %v7367_v62  ;;  %2532 = vmatmul.mubr.bf16.gmra.mxu1 %v7367_v62 }
 0x70d   :  { %2348 = vmatprep.mubr.bf16.mxu0 %v7409_v24  ;;  %2541 = vmatprep.mubr.bf16.mxu1 %v7409_v24 }
 0x714   :  { %2349 = vmatmul.mubr.bf16.gmra.mxu0 %v7399_v42  ;;  %2542 = vmatmul.mubr.bf16.gmra.mxu1 %v7399_v42 }
 0x715   :  { %2622 = vmatprep.mubr.f32.mxu0 %v11228_v50  ;;  %2693 = vmatprep.mubr.f32.mxu1 %v11228_v50 }
 0x75c   :  { %v7469_v52 = vpop.f32.mrf.mxu0  ;;  %v7471_v25 = vpop.f32.mrf.mxu1 }
 0x75d   :  { %11229 = vst [vmem:[#allocation15_spill] sm:$0xff] %v7469_v52  ;;  %11230 = vst [vmem:[#allocation42_spill] sm:$0xff] %v7471_v25 }
 0x75e   :  { %v7473_v5 = vpop.f32.mrf.mxu0  ;;  %v7475_v3 = vpop.f32.mrf.mxu1 }
 0x75f   :  { %11231 = vst [vmem:[#allocation22_spill] sm:$0xff] %v7473_v5  ;;  %11232 = vst [vmem:[#allocation46_spill] sm:$0xff] %v7475_v3 }
 0x760   :  { %v7477_v11 = vpop.f32.mrf.mxu0  ;;  %v7479_v4 = vpop.f32.mrf.mxu1 }
 0x761   :  { %11233 = vst [vmem:[#allocation41_spill] sm:$0xff] %v7477_v11  ;;  %11234 = vst [vmem:[#allocation40_spill] sm:$0xff] %v7479_v4 }
 0x762   :  { %v7481_v6 = vpop.f32.mrf.mxu0  ;;  %v7483_v31 = vpop.f32.mrf.mxu1 }
 0x763   :  { %11235 = vst [vmem:[#allocation21_spill] sm:$0xff] %v7481_v6  ;;  %11236 = vst [vmem:[#allocation20_spill] sm:$0xff] %v7483_v31 }
 0x764   :  { %v7485_v16 = vpop.f32.mrf.mxu0  ;;  %v7487_v21 = vpop.f32.mrf.mxu1 }
 0x765   :  { %11237 = vst [vmem:[#allocation48_spill] sm:$0xff] %v7485_v16  ;;  %11238 = vst [vmem:[#allocation50_spill] sm:$0xff] %v7487_v21 }
 0x766   :  { %v7489_v1 = vpop.f32.mrf.mxu0  ;;  %v7491_v57 = vpop.f32.mrf.mxu1 }
 0x767   :  { %11239 = vst [vmem:[#allocation39_spill] sm:$0xff] %v7489_v1  ;;  %11240 = vst [vmem:[#allocation38_spill] sm:$0xff] %v7491_v57 }
 0x768   :  { %v7493_v62 = vpop.f32.mrf.mxu0  ;;  %v7495_v51 = vpop.f32.mrf.mxu1 }
 0x769   :  { %11241 = vst [vmem:[#allocation19_spill] sm:$0xff] %v7493_v62  ;;  %11242 = vst [vmem:[#allocation18_spill] sm:$0xff] %v7495_v51 }
 0x76a   :  { %v7497_v48 = vpop.f32.mrf.mxu0  ;;  %v7499_v23 = vpop.f32.mrf.mxu1 }
 0x76b   :  { %11243 = vst [vmem:[#allocation17_spill] sm:$0xff] %v7497_v48  ;;  %11244 = vst [vmem:[#allocation37_spill] sm:$0xff] %v7499_v23 }
 0x76c   :  { %v7501_v53 = vpop.f32.mrf.mxu0  ;;  %v7503_v41 = vpop.f32.mrf.mxu1 }
 0x76d   :  { %11245 = vst [vmem:[#allocation36_spill] sm:$0xff] %v7501_v53  ;;  %11246 = vst [vmem:[#allocation16_spill] sm:$0xff] %v7503_v41 }
 0x76e   :  { %v7505_v7 = vpop.f32.mrf.mxu0  ;;  %v7507_v43 = vpop.f32.mrf.mxu1 }
 0x76f   :  { %11247 = vst [vmem:[#allocation35_spill] sm:$0xff] %v7505_v7  ;;  %11248 = vst [vmem:[#allocation34_spill] sm:$0xff] %v7507_v43 }
 0x770   :  { %v7509_v49 = vpop.f32.mrf.mxu0  ;;  %v7511_v42 = vpop.f32.mrf.mxu1 }
 0x771   :  { %11249 = vst [vmem:[#allocation45_spill] sm:$0xff] %v7509_v49  ;;  %11250 = vst [vmem:[#allocation47_spill] sm:$0xff] %v7511_v42 }
 0x772   :  { %v7513_v37 = vpop.f32.mrf.mxu0  ;;  %v7515_v26 = vpop.f32.mrf.mxu1 }
 0x773   :  { %11251 = vst [vmem:[#allocation33_spill] sm:$0xff] %v7513_v37  ;;  %11252 = vst [vmem:[#allocation32_spill] sm:$0xff] %v7515_v26 }
 0x774   :  { %v7517_v17 = vpop.f32.mrf.mxu0  ;;  %v7519_v40 = vpop.f32.mrf.mxu1 }
 0x775   :  { %11253 = vst [vmem:[#allocation49_spill] sm:$0xff] %v7517_v17  ;;  %11254 = vst [vmem:[#allocation51_spill] sm:$0xff] %v7519_v40 }
 0x776   :  { %v7521_v24 = vpop.f32.mrf.mxu0  ;;  %v7523_v10 = vpop.f32.mrf.mxu1 }
 0x777   :  { %11255 = vst [vmem:[#allocation44_spill] sm:$0xff] %v7521_v24  ;;  %11256 = vst [vmem:[#allocation30_spill] sm:$0xff] %v7523_v10 }
 0x778   :  { %v7525_v54 = vpop.f32.mrf.mxu0  ;;  %v7527_v27 = vpop.f32.mrf.mxu1 }
 0x779   :  { %11257 = vst [vmem:[#allocation28_spill] sm:$0xff] %v7525_v54  ;;  %11258 = vst [vmem:[#allocation43_spill] sm:$0xff] %v7527_v27 }
 0x77a   :  { %v7529_v18 = vpop.f32.mrf.mxu0  ;;  %v7531_v32 = vpop.f32.mrf.mxu1 }
 0x77b   :  { %11259 = vst [vmem:[#allocation31_spill] sm:$0xff] %v7529_v18  ;;  %11260 = vst [vmem:[#allocation24_spill] sm:$0xff] %v7531_v32 }
 0x77c   :  { %v7533_v55 = vpop.f32.mrf.mxu0  ;;  %v7535_v13 = vpop.f32.mrf.mxu1 }
 0x77d   :  { %11261 = vst [vmem:[#allocation29_spill] sm:$0xff] %v7533_v55  ;;  %11262 = vst [vmem:[#allocation27_spill] sm:$0xff] %v7535_v13 }
 0x77e   :  { %v7537_v19 = vpop.f32.mrf.mxu0  ;;  %v7539_v36 = vpop.f32.mrf.mxu1 }
 0x77f   :  { %11263 = vst [vmem:[#allocation23_spill] sm:$0xff] %v7537_v19  ;;  %11264 = vst [vmem:[#allocation14_spill] sm:$0xff] %v7539_v36 }
 0x780   :  { %v7541_v22 = vpop.f32.mrf.mxu0  ;;  %v7543_v35 = vpop.f32.mrf.mxu1 }
 0x781   :  { %11265 = vst [vmem:[#allocation52_spill] sm:$0xff] %v7541_v22  ;;  %11266 = vst [vmem:[#allocation53_spill] sm:$0xff] %v7543_v35 }
 0x782   :  { %v7545_v28 = vpop.f32.mrf.mxu0  ;;  %v7547_v14 = vpop.f32.mrf.mxu1 }
 0x783   :  { %11267 = vst [vmem:[#allocation54_spill] sm:$0xff] %v7545_v28  ;;  %11268 = vst [vmem:[#allocation55_spill] sm:$0xff] %v7547_v14 }
 0x784   :  { %v7549_v59 = vpop.f32.mrf.mxu0  ;;  %v7551_v8 = vpop.f32.mrf.mxu1 }
 0x785   :  { %11269 = vst [vmem:[#allocation56_spill] sm:$0xff] %v7549_v59  ;;  %11270 = vst [vmem:[#allocation57_spill] sm:$0xff] %v7551_v8 }
 0x786   :  { %v7553_v34 = vpop.f32.mrf.mxu0  ;;  %v7555_v38 = vpop.f32.mrf.mxu1 }
 0x787   :  { %11271 = vst [vmem:[#allocation58_spill] sm:$0xff] %v7553_v34  ;;  %11272 = vst [vmem:[#allocation59_spill] sm:$0xff] %v7555_v38 }
 0x788   :  { %v7557_v2 = vpop.f32.mrf.mxu0  ;;  %v7559_v9 = vpop.f32.mrf.mxu1 }
 0x789   :  { %11273 = vst [vmem:[#allocation60_spill] sm:$0xff] %v7557_v2  ;;  %11274 = vst [vmem:[#allocation61_spill] sm:$0xff] %v7559_v9 }
 0x78a   :  { %v7561_v46 = vpop.f32.mrf.mxu0  ;;  %v7563_v63 = vpop.f32.mrf.mxu1 }
 0x78b   :  { %11275 = vst [vmem:[#allocation62_spill] sm:$0xff] %v7561_v46  ;;  %11276 = vst [vmem:[#allocation63_spill] sm:$0xff] %v7563_v63 }
 0x78c   :  { %v7565_v29 = vpop.f32.mrf.mxu0  ;;  %v7567_v20 = vpop.f32.mrf.mxu1 }
 0x78d   :  { %11277 = vst [vmem:[#allocation64_spill] sm:$0xff] %v7565_v29  ;;  %11278 = vst [vmem:[#allocation65_spill] sm:$0xff] %v7567_v20 }
 0x78e   :  { %v7569_v47 = vpop.f32.mrf.mxu0  ;;  %v7571_v12 = vpop.f32.mrf.mxu1 }
 0x78f   :  { %11279 = vst [vmem:[#allocation66_spill] sm:$0xff] %v7569_v47  ;;  %11280 = vst [vmem:[#allocation67_spill] sm:$0xff] %v7571_v12 }
 0x790   :  { %v7573_v45 = vpop.f32.mrf.mxu0  ;;  %v7575_v33 = vpop.f32.mrf.mxu1 }
 0x791   :  { %11281 = vst [vmem:[#allocation68_spill] sm:$0xff] %v7573_v45  ;;  %11282 = vst [vmem:[#allocation69_spill] sm:$0xff] %v7575_v33 }
 0x792   :  { %v7577_v44 = vpop.f32.mrf.mxu0  ;;  %v7579_v0 = vpop.f32.mrf.mxu1 }
 0x793   :  { %11283 = vst [vmem:[#allocation70_spill] sm:$0xff] %v7577_v44  ;;  %11284 = vst [vmem:[#allocation71_spill] sm:$0xff] %v7579_v0 }
 0x794   :  { %v7581_v56 = vpop.f32.mrf.mxu0  ;;  %v7583_v61 = vpop.f32.mrf.mxu1 }
 0x795   :  { %11285 = vst [vmem:[#allocation72_spill] sm:$0xff] %v7581_v56  ;;  %11286 = vst [vmem:[#allocation73_spill] sm:$0xff] %v7583_v61 }
 0x796   :  { %v7585_v39 = vpop.f32.mrf.mxu0  ;;  %v7587_v60 = vpop.f32.mrf.mxu1 }
 0x797   :  { %11287 = vst [vmem:[#allocation74_spill] sm:$0xff] %v7585_v39  ;;  %11288 = vst [vmem:[#allocation75_spill] sm:$0xff] %v7587_v60 }
 0x798   :  { %v7589_v30 = vpop.f32.mrf.mxu0  ;;  %v7591_v15 = vpop.f32.mrf.mxu1 }
 0x799   :  { %11289 = vst [vmem:[#allocation76_spill] sm:$0xff] %v7589_v30  ;;  %11290 = vst [vmem:[#allocation77_spill] sm:$0xff] %v7591_v15 }
 0x79a   :  { %v7593_v58 = vpop.f32.mrf.mxu0  ;;  %v7595_v50 = vpop.f32.mrf.mxu1 }
 0x79b   :  { %11291 = vst [vmem:[#allocation78_spill] sm:$0xff] %v7593_v58  ;;  %11292 = vst [vmem:[#allocation79_spill] sm:$0xff] %v7595_v50  ;;  %2558 = vmatprep.subr.mxu0 %v7593_v58  ;;  %2629 = vmatprep.subr.mxu1 %v7595_v50 }
 0x79c   :  { %v7599_v25 = vpop.f32.mrf.mxu0  ;;  %v7601_v52 = vpop.f32.mrf.mxu1  ;;  %2559 = vmatpush1.msra.mxu0 %v7589_v30  ;;  %2630 = vmatpush1.msra.mxu1 %v7591_v15 }
 0x79d   :  { %11293 = vst [vmem:[#allocation80_spill] sm:$0xff] %v7601_v52  ;;  %2560 = vmatprep.subr.mxu0 %v7585_v39  ;;  %2631 = vmatprep.subr.mxu1 %v7587_v60 }
 0x79e   :  { %v7607_v3 = vpop.f32.mrf.mxu0  ;;  %v7609_v5 = vpop.f32.mrf.mxu1  ;;  %2561 = vmatpush1.msra.mxu0 %v7581_v56  ;;  %2632 = vmatpush1.msra.mxu1 %v7583_v61 }
 0x79f   :  { %11294 = vst [vmem:[#allocation81_spill] sm:$0xff] %v7607_v3  ;;  %11295 = vst [vmem:[#allocation82_spill] sm:$0xff] %v7609_v5  ;;  %2562 = vmatprep.subr.mxu0 %v7577_v44  ;;  %2633 = vmatprep.subr.mxu1 %v7579_v0 }
 0x7a0   :  { %v7615_v50 = vpop.f32.mrf.mxu0  ;;  %v7617_v58 = vpop.f32.mrf.mxu1  ;;  %2563 = vmatpush1.msra.mxu0 %v7573_v45  ;;  %2634 = vmatpush1.msra.mxu1 %v7575_v33 }
 0x7a1   :  { %11296 = vst [vmem:[#allocation83_spill] sm:$0xff] %v7617_v58  ;;  %2564 = vmatprep.subr.mxu0 %v7569_v47  ;;  %2635 = vmatprep.subr.mxu1 %v7571_v12 }
 0x7a2   :  { %v7623_v60 = vpop.f32.mrf.mxu0  ;;  %v7625_v15 = vpop.f32.mrf.mxu1  ;;  %2565 = vmatpush1.msra.mxu0 %v7565_v29  ;;  %2636 = vmatpush1.msra.mxu1 %v7567_v20 }
 0x7a3   :  { %11297 = vst [vmem:[#allocation84_spill] sm:$0xff] %v7623_v60  ;;  %11298 = vst [vmem:[#allocation85_spill] sm:$0xff] %v7625_v15  ;;  %2566 = vmatprep.subr.mxu0 %v7561_v46  ;;  %2637 = vmatprep.subr.mxu1 %v7563_v63 }
 0x7a4   :  { %v7631_v0 = vpop.f32.mrf.mxu0  ;;  %v7633_v61 = vpop.f32.mrf.mxu1  ;;  %2567 = vmatpush1.msra.mxu0 %v7557_v2  ;;  %2638 = vmatpush1.msra.mxu1 %v7559_v9  ;;  %v11313_v9 = vld [vmem:[#allocation15_spill] sm:$0xff] }
 0x7a5   :  { %2568 = vmatprep.subr.mxu0 %v7553_v34  ;;  %2639 = vmatprep.subr.mxu1 %v7555_v38 }
 0x7a6   :  { %v7639_v12 = vpop.f32.mrf.mxu0  ;;  %v7641_v47 = vpop.f32.mrf.mxu1  ;;  %2569 = vmatpush1.msra.mxu0 %v7549_v59  ;;  %2640 = vmatpush1.msra.mxu1 %v7551_v8 }
 0x7a7   :  { %11299 = vst [vmem:[#allocation86_spill] sm:$0xff] %v7639_v12  ;;  %11300 = vst [vmem:[#allocation87_spill] sm:$0xff] %v7641_v47  ;;  %2570 = vmatprep.subr.mxu0 %v7545_v28  ;;  %2641 = vmatprep.subr.mxu1 %v7547_v14 }
 0x7a8   :  { %v7647_v63 = vpop.f32.mrf.mxu0  ;;  %v7649_v46 = vpop.f32.mrf.mxu1  ;;  %2571 = vmatpush1.msra.mxu0 %v7541_v22  ;;  %2642 = vmatpush1.msra.mxu1 %v7543_v35 }
 0x7a9   :  { %2572 = vmatprep.subr.mxu0 %v7537_v19  ;;  %2643 = vmatprep.subr.mxu1 %v7539_v36 }
 0x7aa   :  { %v7655_v38 = vpop.f32.mrf.mxu0  ;;  %v7657_v34 = vpop.f32.mrf.mxu1  ;;  %2573 = vmatpush1.msra.mxu0 %v7533_v55  ;;  %2644 = vmatpush1.msra.mxu1 %v7535_v13 }
 0x7ab   :  { %11301 = vst [vmem:[#allocation88_spill] sm:$0xff] %v7655_v38  ;;  %11302 = vst [vmem:[#allocation89_spill] sm:$0xff] %v7657_v34  ;;  %2574 = vmatprep.subr.mxu0 %v7529_v18  ;;  %2645 = vmatprep.subr.mxu1 %v7531_v32 }
 0x7ac   :  { %v7663_v14 = vpop.f32.mrf.mxu0  ;;  %v7665_v28 = vpop.f32.mrf.mxu1  ;;  %2575 = vmatpush1.msra.mxu0 %v7525_v54  ;;  %2646 = vmatpush1.msra.mxu1 %v7527_v27 }
 0x7ad   :  { %2576 = vmatprep.subr.mxu0 %v7521_v24  ;;  %2647 = vmatprep.subr.mxu1 %v7523_v10 }
 0x7ae   :  { %v7671_v36 = vpop.f32.mrf.mxu0  ;;  %v7673_v19 = vpop.f32.mrf.mxu1  ;;  %2577 = vmatpush1.msra.mxu0 %v7517_v17  ;;  %2648 = vmatpush1.msra.mxu1 %v7519_v40 }
 0x7af   :  { %11303 = vst [vmem:[#allocation90_spill] sm:$0xff] %v7671_v36  ;;  %11304 = vst [vmem:[#allocation91_spill] sm:$0xff] %v7673_v19  ;;  %2578 = vmatprep.subr.mxu0 %v7513_v37  ;;  %2649 = vmatprep.subr.mxu1 %v7515_v26 }
 0x7b0   :  { %v7679_v32 = vpop.f32.mrf.mxu0  ;;  %v7681_v18 = vpop.f32.mrf.mxu1  ;;  %2579 = vmatpush1.msra.mxu0 %v7509_v49  ;;  %2650 = vmatpush1.msra.mxu1 %v7511_v42 }
 0x7b1   :  { %2580 = vmatprep.subr.mxu0 %v7505_v7  ;;  %2651 = vmatprep.subr.mxu1 %v7507_v43 }
 0x7b2   :  { %v7687_v10 = vpop.f32.mrf.mxu0  ;;  %v7689_v24 = vpop.f32.mrf.mxu1  ;;  %2581 = vmatpush1.msra.mxu0 %v7501_v53  ;;  %2652 = vmatpush1.msra.mxu1 %v7503_v41 }
 0x7b3   :  { %11305 = vst [vmem:[#allocation92_spill] sm:$0xff] %v7687_v10  ;;  %11306 = vst [vmem:[#allocation93_spill] sm:$0xff] %v7689_v24  ;;  %2582 = vmatprep.subr.mxu0 %v7497_v48  ;;  %2653 = vmatprep.subr.mxu1 %v7499_v23 }
 0x7b4   :  { %v7695_v26 = vpop.f32.mrf.mxu0  ;;  %v7697_v37 = vpop.f32.mrf.mxu1  ;;  %2583 = vmatpush1.msra.mxu0 %v7493_v62  ;;  %2654 = vmatpush1.msra.mxu1 %v7495_v51 }
 0x7b5   :  { %2584 = vmatprep.subr.mxu0 %v7489_v1  ;;  %2655 = vmatprep.subr.mxu1 %v7491_v57  ;;  %v11309_v57 = vld [vmem:[#allocation22_spill] sm:$0xff] }
 0x7b6   :  { %v7703_v43 = vpop.f32.mrf.mxu0  ;;  %v7705_v7 = vpop.f32.mrf.mxu1  ;;  %2585 = vmatpush1.msra.mxu0 %v7485_v16  ;;  %2656 = vmatpush1.msra.mxu1 %v7487_v21  ;;  %v11310_v1 = vld [vmem:[#allocation46_spill] sm:$0xff] }
 0x7b7   :  { %11307 = vst [vmem:[#allocation94_spill] sm:$0xff] %v7703_v43  ;;  %11308 = vst [vmem:[#allocation95_spill] sm:$0xff] %v7705_v7  ;;  %2586 = vmatprep.subr.mxu0 %v7481_v6  ;;  %2657 = vmatprep.subr.mxu1 %v7483_v31  ;;  %v11314_v6 = vld [vmem:[#allocation42_spill] sm:$0xff] }
 0x7b8   :  { %v7711_v23 = vpop.f32.mrf.mxu0  ;;  %v7713_v48 = vpop.f32.mrf.mxu1  ;;  %2587 = vmatpush1.msra.mxu0 %v7477_v11  ;;  %2658 = vmatpush1.msra.mxu1 %v7479_v4 }
 0x7b9   :  { %2588 = vmatprep.subr.mxu0 %v11309_v57  ;;  %2659 = vmatprep.subr.mxu1 %v11310_v1 }
 0x7ba   :  { %v7719_v33 = vpop.f32.mrf.mxu0  ;;  %v7721_v20 = vpop.f32.mrf.mxu1  ;;  %2589 = vmatpush1.msra.mxu0 %v11313_v9  ;;  %2660 = vmatpush1.msra.mxu1 %v11314_v6 }
 0x7bb   :  { %11311 = vst [vmem:[#allocation96_spill] sm:$0xff] %v7719_v33  ;;  %11312 = vst [vmem:[#allocation97_spill] sm:$0xff] %v7721_v20 }
 0x7bc   :  { %v7725_v31 = vpop.f32.mrf.mxu0  ;;  %v7727_v8 = vpop.f32.mrf.mxu1 }
 0x7be   :  { %v7729_v44 = vpop.f32.mrf.mxu0  ;;  %v7731_v35 = vpop.f32.mrf.mxu1 }
 0x7bf   :  { %11315 = vst [vmem:[#allocation98_spill] sm:$0xff] %v7729_v44  ;;  %11316 = vst [vmem:[#allocation99_spill] sm:$0xff] %v7731_v35 }
 0x7c0   :  { %v7733_v13 = vpop.f32.mrf.mxu0  ;;  %v7735_v57 = vpop.f32.mrf.mxu1 }
 0x7c2   :  { %v7737_v1 = vpop.f32.mrf.mxu0  ;;  %v7739_v27 = vpop.f32.mrf.mxu1 }
 0x7c3   :  { %11317 = vst [vmem:[#allocation100_spill] sm:$0xff] %v7737_v1  ;;  %11318 = vst [vmem:[#allocation101_spill] sm:$0xff] %v7739_v27 }
 0x7c4   :  { %v7741_v40 = vpop.f32.mrf.mxu0  ;;  %v7743_v42 = vpop.f32.mrf.mxu1 }
 0x7c6   :  { %v7745_v41 = vpop.f32.mrf.mxu0  ;;  %v7747_v39 = vpop.f32.mrf.mxu1 }
 0x7c7   :  { %11319 = vst [vmem:[#allocation102_spill] sm:$0xff] %v7745_v41  ;;  %11320 = vst [vmem:[#allocation103_spill] sm:$0xff] %v7747_v39 }
 0x7c8   :  { %v7749_v51 = vpop.f32.mrf.mxu0  ;;  %v7751_v21 = vpop.f32.mrf.mxu1 }
 0x7ca   :  { %v7753_v4 = vpop.f32.mrf.mxu0  ;;  %v7755_v6 = vpop.f32.mrf.mxu1 }
 0x7cb   :  { %11321 = vst [vmem:[#allocation104_spill] sm:$0xff] %v7753_v4  ;;  %11322 = vst [vmem:[#allocation105_spill] sm:$0xff] %v7755_v6 }
 0x7cc   :  { %v7757_v30 = vpop.f32.mrf.mxu0  ;;  %v7759_v56 = vpop.f32.mrf.mxu1 }
 0x7ce   :  { %v7761_v45 = vpop.f32.mrf.mxu0  ;;  %v7763_v29 = vpop.f32.mrf.mxu1 }
 0x7cf   :  { %11323 = vst [vmem:[#allocation106_spill] sm:$0xff] %v7761_v45  ;;  %11324 = vst [vmem:[#allocation107_spill] sm:$0xff] %v7763_v29 }
 0x7d0   :  { %v7765_v2 = vpop.f32.mrf.mxu0  ;;  %v7767_v59 = vpop.f32.mrf.mxu1 }
 0x7d2   :  { %v7769_v22 = vpop.f32.mrf.mxu0  ;;  %v7771_v55 = vpop.f32.mrf.mxu1 }
 0x7d3   :  { %11325 = vst [vmem:[#allocation108_spill] sm:$0xff] %v7771_v55 }
 0x7d4   :  { %v7773_v54 = vpop.f32.mrf.mxu0  ;;  %v7775_v17 = vpop.f32.mrf.mxu1 }
 0x7d6   :  { %v7777_v49 = vpop.f32.mrf.mxu0  ;;  %v7779_v53 = vpop.f32.mrf.mxu1 }
 0x7d8   :  { %v7781_v62 = vpop.f32.mrf.mxu0  ;;  %v7783_v16 = vpop.f32.mrf.mxu1 }
 0x7da   :  { %v7785_v11 = vpop.f32.mrf.mxu0  ;;  %v7787_v9 = vpop.f32.mrf.mxu1 }
 0x7db   :  { %2590 = vmatprep.subr.mxu0 %v7785_v11  ;;  %2661 = vmatprep.subr.mxu1 %v7787_v9 }
 0x7dc   :  { %2591 = vmatpush2.msra.mxu0 %v7781_v62  ;;  %2662 = vmatpush2.msra.mxu1 %v7783_v16 }
 0x7dd   :  { %2592 = vmatprep.subr.mxu0 %v7777_v49  ;;  %2663 = vmatprep.subr.mxu1 %v7779_v53 }
 0x7de   :  { %2593 = vmatpush2.msra.mxu0 %v7773_v54  ;;  %2664 = vmatpush2.msra.mxu1 %v7775_v17 }
 0x7df   :  { %2594 = vmatprep.subr.mxu0 %v7769_v22  ;;  %2665 = vmatprep.subr.mxu1 %v7771_v55 }
 0x7e0   :  { %2595 = vmatpush2.msra.mxu0 %v7765_v2  ;;  %2666 = vmatpush2.msra.mxu1 %v7767_v59 }
 0x7e1   :  { %2596 = vmatprep.subr.mxu0 %v7761_v45  ;;  %2667 = vmatprep.subr.mxu1 %v7763_v29 }
 0x7e2   :  { %2597 = vmatpush2.msra.mxu0 %v7757_v30  ;;  %2668 = vmatpush2.msra.mxu1 %v7759_v56 }
 0x7e3   :  { %2598 = vmatprep.subr.mxu0 %v7753_v4  ;;  %2669 = vmatprep.subr.mxu1 %v7755_v6 }
 0x7e4   :  { %2599 = vmatpush2.msra.mxu0 %v7749_v51  ;;  %2670 = vmatpush2.msra.mxu1 %v7751_v21 }
 0x7e5   :  { %2600 = vmatprep.subr.mxu0 %v7745_v41  ;;  %2671 = vmatprep.subr.mxu1 %v7747_v39 }
 0x7e6   :  { %2601 = vmatpush2.msra.mxu0 %v7741_v40  ;;  %2672 = vmatpush2.msra.mxu1 %v7743_v42 }
 0x7e7   :  { %2602 = vmatprep.subr.mxu0 %v7737_v1  ;;  %2673 = vmatprep.subr.mxu1 %v7739_v27 }
 0x7e8   :  { %2603 = vmatpush2.msra.mxu0 %v7733_v13  ;;  %2674 = vmatpush2.msra.mxu1 %v7735_v57 }
 0x7e9   :  { %2604 = vmatprep.subr.mxu0 %v7729_v44  ;;  %2675 = vmatprep.subr.mxu1 %v7731_v35 }
 0x7ea   :  { %2605 = vmatpush2.msra.mxu0 %v7725_v31  ;;  %2676 = vmatpush2.msra.mxu1 %v7727_v8 }
 0x7eb   :  { %2606 = vmatprep.subr.mxu0 %v7719_v33  ;;  %2677 = vmatprep.subr.mxu1 %v7721_v20  ;;  %v11333_v33 = vld [vmem:[#allocation45_spill] sm:$0xff] }
 0x7ec   :  { %2607 = vmatpush2.msra.mxu0 %v7711_v23  ;;  %2678 = vmatpush2.msra.mxu1 %v7713_v48 }
 0x7ed   :  { %2608 = vmatprep.subr.mxu0 %v7703_v43  ;;  %2679 = vmatprep.subr.mxu1 %v7705_v7 }
 0x7ee   :  { %2609 = vmatpush2.msra.mxu0 %v7695_v26  ;;  %2680 = vmatpush2.msra.mxu1 %v7697_v37 }
 0x7ef   :  { %2610 = vmatprep.subr.mxu0 %v7687_v10  ;;  %2681 = vmatprep.subr.mxu1 %v7689_v24  ;;  %v11329_v10 = vld [vmem:[#allocation41_spill] sm:$0xff] }
 0x7f0   :  { %2611 = vmatpush2.msra.mxu0 %v7679_v32  ;;  %2682 = vmatpush2.msra.mxu1 %v7681_v18 }
 0x7f1   :  { %2612 = vmatprep.subr.mxu0 %v7671_v36  ;;  %2683 = vmatprep.subr.mxu1 %v7673_v19  ;;  %v11328_v36 = vld [vmem:[#allocation15_spill] sm:$0xff] }
 0x7f2   :  { %2613 = vmatpush2.msra.mxu0 %v7663_v14  ;;  %2684 = vmatpush2.msra.mxu1 %v7665_v28 }
 0x7f3   :  { %2614 = vmatprep.subr.mxu0 %v7655_v38  ;;  %2685 = vmatprep.subr.mxu1 %v7657_v34 }
 0x7f4   :  { %2615 = vmatpush2.msra.mxu0 %v7647_v63  ;;  %2686 = vmatpush2.msra.mxu1 %v7649_v46 }
 0x7f5   :  { %2616 = vmatprep.subr.mxu0 %v7639_v12  ;;  %2687 = vmatprep.subr.mxu1 %v7641_v47  ;;  %v11326_v47 = vmov 1.0   ;;  %v11327_v12 = vld [vmem:[#allocation13_spill] sm:$0xff] }
 0x7f6   :  { %2617 = vmatpush2.msra.mxu0 %v7631_v0  ;;  %2688 = vmatpush2.msra.mxu1 %v7633_v61 }
 0x7f7   :  { %2618 = vmatprep.subr.mxu0 %v7623_v60  ;;  %2689 = vmatprep.subr.mxu1 %v7625_v15 }
 0x7f8   :  { %2619 = vmatpush2.msra.mxu0 %v7615_v50  ;;  %2690 = vmatpush2.msra.mxu1 %v7617_v58 }
 0x7f9   :  { %2620 = vmatprep.subr.mxu0 %v7607_v3  ;;  %2691 = vmatprep.subr.mxu1 %v7609_v5 }
 0x7fa   :  { %2621 = vmatpush2.msra.mxu0 %v7599_v25  ;;  %2692 = vmatpush2.msra.mxu1 %v7601_v52 }
 0x7fb   :  { %2623 = vmatmul.mubr.f32.vlgmr.msra.gmra.mxu0 %v11326_v47  ;;  %2694 = vmatmul.mubr.f32.vlgmr.msra.gmra.mxu1 %v11326_v47 }
 0x7fc   :  { %3040 = vmatprep.mubr.f32.mxu0 %v11326_v47  ;;  %3111 = vmatprep.mubr.f32.mxu1 %v11326_v47  ;;  %v11330_v47 = vld [vmem:[#allocation48_spill] sm:$0xff] }
 0x8bb   :  { %v2624_v15 = vpop.f32.mrf.mxu0  ;;  %v2695_v34 = vpop.f32.mrf.mxu1 }
 0x8bc   :  { %v2700_v60 = vmul.f32 0.00390625, %v2624_v15  ;;  %v2702_v58 = vmul.f32 0.00390625, %v2695_v34  ;;  %v11331_v15 = vld [vmem:[#allocation19_spill] sm:$0xff] }
 0x8bd   :  { %v2626_v19 = vpop.f32.mrf.mxu0  ;;  %v2697_v5 = vpop.f32.mrf.mxu1 }
 0x8be   :  { %v2707_v3 = vrot.slane %v2700_v60, %v11327_v12  ;;  %v7859_v38 = vrot.slane %v2702_v58, %v11327_v12  ;;  %v2701_v52 = vmul.f32 0.00390625, %v2626_v19  ;;  %v2703_v24 = vmul.f32 0.00390625, %v2697_v5  ;;  %v11332_v60 = vld [vmem:[#allocation36_spill] sm:$0xff]  ;;  %v11334_v19 = vld [vmem:[#allocation49_spill] sm:$0xff] }
 0x8c0   :  { %v7862_v7 = vsub.f32 %v11328_v36, %v2707_v3  ;;  %v7865_v20 = vsub.f32 %v11329_v10, %v2707_v3  ;;  %v7868_v43 = vsub.f32 %v11330_v47, %v2707_v3  ;;  %v7871_v34 = vsub.f32 %v11331_v15, %v2707_v3  ;;  %v11335_v36 = vld [vmem:[#allocation28_spill] sm:$0xff]  ;;  %v11336_v10 = vld [vmem:[#allocation29_spill] sm:$0xff] }
 0x8c1   :  { %v7874_v35 = vsub.f32 %v11332_v60, %v2707_v3  ;;  %v7877_v58 = vsub.f32 %v11333_v33, %v2707_v3  ;;  %v7880_v5 = vsub.f32 %v11334_v19, %v2707_v3  ;;  %v7883_v27 = vsub.f32 %v11335_v36, %v2707_v3  ;;  %v11338_v47 = vld [vmem:[#allocation52_spill] sm:$0xff] }
 0x8c2   :  { %v7886_v44 = vsub.f32 %v11336_v10, %v2707_v3  ;;  %v7889_v39 = vsub.f32 %v11338_v47, %v2707_v3  ;;  %v11340_v15 = vld [vmem:[#allocation56_spill] sm:$0xff]  ;;  %v7907_v10 = vrot.slane %v2701_v52, %v11327_v12  ;;  %v7928_v52 = vsub.f32 %v7679_v32, %v2707_v3 }
 0x8c3   :  { %v7892_v1 = vsub.f32 %v11340_v15, %v2707_v3  ;;  %v11342_v60 = vld [vmem:[#allocation60_spill] sm:$0xff]  ;;  %v7913_v15 = vsub.f32 %v7599_v25, %v2707_v3  ;;  %v7934_v25 = vsub.f32 %v7711_v23, %v2707_v3  ;;  %v7949_v32 = vsub.f32 %v7757_v30, %v2707_v3  ;;  %v11366_v23 = vld [vmem:[#allocation78_spill] sm:$0xff] }
 0x8c4   :  { %11337 = vst [vmem:[#allocation15_spill] sm:$0xff] %v7886_v44  ;;  %11339 = vst [vmem:[#allocation41_spill] sm:$0xff] %v7889_v39  ;;  %v7895_v6 = vsub.f32 %v11342_v60, %v2707_v3  ;;  %v11344_v33 = vld [vmem:[#allocation64_spill] sm:$0xff]  ;;  %v7916_v60 = vsub.f32 %v7615_v50, %v2707_v3  ;;  %v7937_v50 = vsub.f32 %v7725_v31, %v2707_v3 }
 0x8c5   :  { %11341 = vst [vmem:[#allocation48_spill] sm:$0xff] %v7892_v1  ;;  %v7898_v41 = vsub.f32 %v11344_v33, %v2707_v3  ;;  %v11346_v19 = vld [vmem:[#allocation68_spill] sm:$0xff]  ;;  %11352 = vst [vmem:[#allocation29_spill] sm:$0xff] %v7913_v15  ;;  %v7919_v33 = vsub.f32 %v7631_v0, %v2707_v3  ;;  %v7940_v0 = vsub.f32 %v7733_v13, %v2707_v3 }
 0x8c6   :  { %11343 = vst [vmem:[#allocation19_spill] sm:$0xff] %v7895_v6  ;;  %v7901_v29 = vsub.f32 %v11346_v19, %v2707_v3  ;;  %v11348_v36 = vld [vmem:[#allocation72_spill] sm:$0xff]  ;;  %11353 = vst [vmem:[#allocation52_spill] sm:$0xff] %v7916_v60  ;;  %v7922_v19 = vsub.f32 %v7647_v63, %v2707_v3  ;;  %v7943_v63 = vsub.f32 %v7741_v40, %v2707_v3  ;;  %v11370_v40 = vld [vmem:[#allocation42_spill] sm:$0xff] }
 0x8c7   :  { %11345 = vst [vmem:[#allocation36_spill] sm:$0xff] %v7898_v41  ;;  %v7904_v4 = vsub.f32 %v11348_v36, %v2707_v3  ;;  %v11350_v47 = vld [vmem:[#allocation76_spill] sm:$0xff]  ;;  %11354 = vst [vmem:[#allocation56_spill] sm:$0xff] %v7919_v33  ;;  %v7925_v36 = vsub.f32 %v7663_v14, %v2707_v3  ;;  %v7946_v14 = vsub.f32 %v7749_v51, %v2707_v3 }
 0x8c8   :  { %11347 = vst [vmem:[#allocation45_spill] sm:$0xff] %v7901_v29  ;;  %v7910_v55 = vsub.f32 %v11350_v47, %v2707_v3  ;;  %11355 = vst [vmem:[#allocation60_spill] sm:$0xff] %v7922_v19  ;;  %v7931_v47 = vsub.f32 %v7695_v26, %v2707_v3  ;;  %v7952_v26 = vsub.f32 %v7765_v2, %v2707_v3  ;;  %v11372_v30 = vld [vmem:[#allocation40_spill] sm:$0xff]  ;;  %v11373_v2 = vld [vmem:[#allocation50_spill] sm:$0xff] }
 0x8c9   :  { %11349 = vst [vmem:[#allocation49_spill] sm:$0xff] %v7904_v4  ;;  %11356 = vst [vmem:[#allocation64_spill] sm:$0xff] %v7925_v36  ;;  %v7956_v15 = vsub.f32 %v11366_v23, %v7907_v10  ;;  %v7959_v31 = vsub.f32 %v7773_v54, %v2707_v3  ;;  %v7962_v13 = vsub.f32 %v7781_v62, %v2707_v3  ;;  %v11374_v23 = vld [vmem:[#allocation18_spill] sm:$0xff] }
 0x8ca   :  { %11351 = vst [vmem:[#allocation28_spill] sm:$0xff] %v7910_v55  ;;  %11357 = vst [vmem:[#allocation68_spill] sm:$0xff] %v7928_v52  ;;  %v7966_v51 = vsub.f32 %v11370_v40, %v7859_v38  ;;  %v7970_v60 = vsub.f32 %v11372_v30, %v7859_v38  ;;  %v7974_v33 = vsub.f32 %v11373_v2, %v7859_v38  ;;  %v11375_v54 = vld [vmem:[#allocation74_spill] sm:$0xff]  ;;  %v11377_v40 = vld [vmem:[#allocation16_spill] sm:$0xff] }
 0x8cb   :  { %11358 = vst [vmem:[#allocation72_spill] sm:$0xff] %v7931_v47  ;;  %11359 = vst [vmem:[#allocation76_spill] sm:$0xff] %v7934_v25  ;;  %v7978_v19 = vsub.f32 %v11374_v23, %v7859_v38  ;;  %v7982_v3 = vsub.f32 %v11375_v54, %v7907_v10  ;;  %v7985_v62 = vrot.slane %v2703_v24, %v11327_v12  ;;  %v11378_v30 = vld [vmem:[#allocation47_spill] sm:$0xff]  ;;  %v11384_v12 = vld [vmem:[#allocation53_spill] sm:$0xff] }
 0x8cc   :  { %11360 = vst [vmem:[#allocation109_spill] sm:$0xff] %v7937_v50  ;;  %11361 = vst [vmem:[#allocation110_spill] sm:$0xff] %v7940_v0  ;;  %v7989_v36 = vsub.f32 %v11377_v40, %v7859_v38  ;;  %v7993_v52 = vsub.f32 %v11378_v30, %v7859_v38  ;;  %v11379_v2 = vld [vmem:[#allocation51_spill] sm:$0xff]  ;;  %v8009_v40 = vsub.f32 %v11384_v12, %v7859_v38  ;;  %v11386_v50 = vld [vmem:[#allocation70_spill] sm:$0xff] }
 0x8cd   :  { %11362 = vst [vmem:[#allocation111_spill] sm:$0xff] %v7943_v63  ;;  %11363 = vst [vmem:[#allocation112_spill] sm:$0xff] %v7946_v14  ;;  %v7997_v47 = vsub.f32 %v11379_v2, %v7859_v38  ;;  %v11380_v23 = vld [vmem:[#allocation43_spill] sm:$0xff]  ;;  %v8013_v30 = vsub.f32 %v11386_v50, %v7907_v10  ;;  %v2909_v2 = vmul.f32 %v7956_v15, %v7956_v15  ;;  %v11388_v0 = vld [vmem:[#allocation57_spill] sm:$0xff] }
 0x8ce   :  { %11364 = vst [vmem:[#allocation113_spill] sm:$0xff] %v7949_v32  ;;  %11365 = vst [vmem:[#allocation114_spill] sm:$0xff] %v7952_v26  ;;  %v8001_v25 = vsub.f32 %v11380_v23, %v7859_v38  ;;  %v11382_v54 = vld [vmem:[#allocation27_spill] sm:$0xff]  ;;  %v8019_v63 = vsub.f32 %v11388_v0, %v7859_v38  ;;  %v11390_v23 = vld [vmem:[#allocation61_spill] sm:$0xff]  ;;  %v2908_v12 = vmul.f32 %v7910_v55, %v7910_v55 }
 0x8cf   :  { %11367 = vst [vmem:[#allocation78_spill] sm:$0xff] %v7956_v15  ;;  %11368 = vst [vmem:[#allocation115_spill] sm:$0xff] %v7959_v31  ;;  %v8005_v24 = vsub.f32 %v11382_v54, %v7859_v38  ;;  %v8023_v14 = vsub.f32 %v11390_v23, %v7859_v38  ;;  %v11392_v54 = vld [vmem:[#allocation65_spill] sm:$0xff]  ;;  %v11398_v0 = vld [vmem:[#allocation79_spill] sm:$0xff]  ;;  %v2905_v23 = vmul.f32 %v7982_v3, %v7982_v3  ;;  %2976 = vmatprep.subr.mxu0 %v2909_v2 }
 0x8d0   :  { %11369 = vst [vmem:[#allocation116_spill] sm:$0xff] %v7962_v13  ;;  %11371 = vst [vmem:[#allocation42_spill] sm:$0xff] %v7966_v51  ;;  %v8027_v32 = vsub.f32 %v11392_v54, %v7859_v38  ;;  %v11394_v50 = vld [vmem:[#allocation69_spill] sm:$0xff]  ;;  %v8041_v51 = vsub.f32 %v11398_v0, %v7985_v62  ;;  %v2904_v0 = vmul.f32 %v7904_v4, %v7904_v4  ;;  %2977 = vmatpush1.msra.mxu0 %v2908_v12  ;;  %v11410_v12 = vld [vmem:[#allocation66_spill] sm:$0xff] }
 0x8d1   :  { %11376 = vst [vmem:[#allocation40_spill] sm:$0xff] %v7982_v3  ;;  %11381 = vst [vmem:[#allocation50_spill] sm:$0xff] %v8001_v25  ;;  %v8033_v26 = vsub.f32 %v11394_v50, %v7859_v38  ;;  %v11396_v15 = vld [vmem:[#allocation73_spill] sm:$0xff]  ;;  %v8051_v50 = vsub.f32 %v7633_v61, %v7859_v38  ;;  %v8061_v55 = vsub.f32 %v7665_v28, %v7859_v38  ;;  %2978 = vmatprep.subr.mxu0 %v2905_v23  ;;  %v11414_v23 = vld [vmem:[#allocation71_spill] sm:$0xff] }
 0x8d2   :  { %11383 = vst [vmem:[#allocation18_spill] sm:$0xff] %v8005_v24  ;;  %11385 = vst [vmem:[#allocation74_spill] sm:$0xff] %v8009_v40  ;;  %v8037_v31 = vsub.f32 %v11396_v15, %v7859_v38  ;;  %v11400_v54 = vld [vmem:[#allocation77_spill] sm:$0xff]  ;;  %v8055_v15 = vsub.f32 %v7649_v46, %v7859_v38  ;;  %v8065_v2 = vsub.f32 %v7681_v18, %v7859_v38  ;;  %2979 = vmatpush1.msra.mxu0 %v2904_v0  ;;  %v11418_v0 = vld [vmem:[#allocation62_spill] sm:$0xff] }
 0x8d3   :  { %11387 = vst [vmem:[#allocation16_spill] sm:$0xff] %v8013_v30  ;;  %11389 = vst [vmem:[#allocation47_spill] sm:$0xff] %v8019_v63  ;;  %v8047_v45 = vsub.f32 %v11400_v54, %v7859_v38  ;;  %v11406_v54 = vld [vmem:[#allocation75_spill] sm:$0xff]  ;;  %v2901_v46 = vmul.f32 %v8013_v30, %v8013_v30  ;;  %v8075_v3 = vsub.f32 %v7697_v37, %v7859_v38 }
 0x8d4   :  { %11391 = vst [vmem:[#allocation51_spill] sm:$0xff] %v8023_v14  ;;  %11393 = vst [vmem:[#allocation43_spill] sm:$0xff] %v8027_v32  ;;  %v8069_v61 = vsub.f32 %v11406_v54, %v7985_v62  ;;  %v8079_v28 = vsub.f32 %v7713_v48, %v7859_v38  ;;  %v2900_v18 = vmul.f32 %v7901_v29, %v7901_v29 }
 0x8d5   :  { %11395 = vst [vmem:[#allocation27_spill] sm:$0xff] %v8033_v26  ;;  %11397 = vst [vmem:[#allocation53_spill] sm:$0xff] %v8037_v31  ;;  %v8085_v4 = vsub.f32 %v11410_v12, %v7907_v10  ;;  %v8089_v54 = vsub.f32 %v7727_v8, %v7859_v38  ;;  %v8093_v37 = vsub.f32 %v7735_v57, %v7859_v38  ;;  %2980 = vmatprep.subr.mxu0 %v2901_v46  ;;  %v11422_v46 = vld [vmem:[#allocation67_spill] sm:$0xff] }
 0x8d6   :  { %11399 = vst [vmem:[#allocation70_spill] sm:$0xff] %v8041_v51  ;;  %11401 = vst [vmem:[#allocation57_spill] sm:$0xff] %v8047_v45  ;;  %v8097_v48 = vsub.f32 %v11414_v23, %v7985_v62  ;;  %v2911_v30 = vmul.f32 %v8041_v51, %v8041_v51  ;;  %v8103_v12 = vsub.f32 %v7743_v42, %v7859_v38  ;;  %2981 = vmatpush1.msra.mxu0 %v2900_v18  ;;  %v11425_v18 = vld [vmem:[#allocation58_spill] sm:$0xff] }
 0x8d7   :  { %11402 = vst [vmem:[#allocation61_spill] sm:$0xff] %v8051_v50  ;;  %11403 = vst [vmem:[#allocation65_spill] sm:$0xff] %v8055_v15  ;;  %v8107_v8 = vsub.f32 %v7751_v21, %v7859_v38  ;;  %v8111_v57 = vsub.f32 %v11418_v0, %v7907_v10  ;;  %v2910_v23 = vmul.f32 %v8047_v45, %v8047_v45 }
 0x8d8   :  { %11404 = vst [vmem:[#allocation69_spill] sm:$0xff] %v8061_v55  ;;  %11405 = vst [vmem:[#allocation73_spill] sm:$0xff] %v8065_v2  ;;  %v8117_v51 = vsub.f32 %v7759_v56, %v7859_v38  ;;  %v8121_v42 = vsub.f32 %v7767_v59, %v7859_v38  ;;  %v8125_v21 = vsub.f32 %v11422_v46, %v7985_v62  ;;  %3047 = vmatprep.subr.mxu1 %v2911_v30 }
 0x8d9   :  { %11407 = vst [vmem:[#allocation79_spill] sm:$0xff] %v8069_v61  ;;  %11408 = vst [vmem:[#allocation77_spill] sm:$0xff] %v8075_v3  ;;  %v2907_v0 = vmul.f32 %v8069_v61, %v8069_v61  ;;  %v8131_v45 = vsub.f32 %v7775_v17, %v7859_v38  ;;  %v8135_v56 = vsub.f32 %v11425_v18, %v7907_v10  ;;  %3048 = vmatpush1.msra.mxu1 %v2910_v23  ;;  %v11428_v17 = vld [vmem:[#allocation63_spill] sm:$0xff] }
 0x8da   :  { %11409 = vst [vmem:[#allocation75_spill] sm:$0xff] %v8079_v28  ;;  %11411 = vst [vmem:[#allocation66_spill] sm:$0xff] %v8085_v4  ;;  %v2906_v59 = vmul.f32 %v8037_v31, %v8037_v31  ;;  %v2897_v29 = vmul.f32 %v8085_v4, %v8085_v4  ;;  %v8143_v46 = vsub.f32 %v7783_v16, %v7859_v38  ;;  %v11430_v31 = vld [vmem:[#allocation54_spill] sm:$0xff]  ;;  %v11432_v4 = vld [vmem:[#allocation59_spill] sm:$0xff] }
 0x8db   :  { %11412 = vst [vmem:[#allocation117_spill] sm:$0xff] %v8089_v54  ;;  %11413 = vst [vmem:[#allocation118_spill] sm:$0xff] %v8093_v37  ;;  %v2896_v30 = vmul.f32 %v7898_v41, %v7898_v41  ;;  %v8149_v61 = vsub.f32 %v11428_v17, %v7985_v62  ;;  %v2903_v18 = vmul.f32 %v8097_v48, %v8097_v48  ;;  %3049 = vmatprep.subr.mxu1 %v2907_v0 }
 0x8dc   :  { %11415 = vst [vmem:[#allocation71_spill] sm:$0xff] %v8097_v48  ;;  %11416 = vst [vmem:[#allocation119_spill] sm:$0xff] %v8103_v12  ;;  %v8155_v50 = vsub.f32 %v11430_v31, %v7907_v10  ;;  %v2902_v23 = vmul.f32 %v8033_v26, %v8033_v26  ;;  %v2893_v16 = vmul.f32 %v8111_v57, %v8111_v57  ;;  %3050 = vmatpush1.msra.mxu1 %v2906_v59  ;;  %v11434_v31 = vld [vmem:[#allocation23_spill] sm:$0xff] }
 0x8dd   :  { %11417 = vst [vmem:[#allocation120_spill] sm:$0xff] %v8107_v8  ;;  %11419 = vst [vmem:[#allocation62_spill] sm:$0xff] %v8111_v57  ;;  %2982 = vmatprep.subr.mxu0 %v2897_v29  ;;  %v2892_v17 = vmul.f32 %v7895_v6, %v7895_v6  ;;  %v8165_v41 = vsub.f32 %v11432_v4, %v7985_v62  ;;  %v2899_v0 = vmul.f32 %v8125_v21, %v8125_v21  ;;  %v11436_v26 = vld [vmem:[#allocation55_spill] sm:$0xff] }
 0x8de   :  { %11420 = vst [vmem:[#allocation121_spill] sm:$0xff] %v8117_v51  ;;  %11421 = vst [vmem:[#allocation122_spill] sm:$0xff] %v8121_v42  ;;  %3051 = vmatprep.subr.mxu1 %v2903_v18  ;;  %2983 = vmatpush1.msra.mxu0 %v2896_v30  ;;  %v8171_v48 = vsub.f32 %v11434_v31, %v7907_v10  ;;  %v2898_v59 = vmul.f32 %v8027_v32, %v8027_v32  ;;  %v11438_v18 = vld [vmem:[#allocation31_spill] sm:$0xff]  ;;  %v11439_v32 = vld [vmem:[#allocation14_spill] sm:$0xff] }
 0x8df   :  { %11423 = vst [vmem:[#allocation67_spill] sm:$0xff] %v8125_v21  ;;  %11424 = vst [vmem:[#allocation123_spill] sm:$0xff] %v8131_v45  ;;  %v2889_v29 = vmul.f32 %v8135_v56, %v8135_v56  ;;  %3052 = vmatpush1.msra.mxu1 %v2902_v23  ;;  %2984 = vmatprep.subr.mxu0 %v2893_v16  ;;  %v2888_v4 = vmul.f32 %v7892_v1, %v7892_v1 }
 0x8e0   :  { %11426 = vst [vmem:[#allocation58_spill] sm:$0xff] %v8135_v56  ;;  %11427 = vst [vmem:[#allocation124_spill] sm:$0xff] %v8143_v46  ;;  %v8181_v21 = vsub.f32 %v11436_v26, %v7985_v62  ;;  %v2895_v30 = vmul.f32 %v8149_v61, %v8149_v61  ;;  %3053 = vmatprep.subr.mxu1 %v2899_v0  ;;  %2985 = vmatpush1.msra.mxu0 %v2892_v17  ;;  %v11441_v0 = vld [vmem:[#allocation44_spill] sm:$0xff] }
 0x8e1   :  { %11429 = vst [vmem:[#allocation63_spill] sm:$0xff] %v8149_v61  ;;  %11431 = vst [vmem:[#allocation54_spill] sm:$0xff] %v8155_v50  ;;  %v8187_v31 = vsub.f32 %v11438_v18, %v7907_v10  ;;  %v2894_v23 = vmul.f32 %v8023_v14, %v8023_v14  ;;  %3054 = vmatpush1.msra.mxu1 %v2898_v59  ;;  %2986 = vmatprep.subr.mxu0 %v2889_v29  ;;  %v11442_v14 = vld [vmem:[#allocation24_spill] sm:$0xff] }
 0x8e2   :  { %11433 = vst [vmem:[#allocation59_spill] sm:$0xff] %v8165_v41  ;;  %11435 = vst [vmem:[#allocation23_spill] sm:$0xff] %v8171_v48  ;;  %v2885_v16 = vmul.f32 %v8155_v50, %v8155_v50  ;;  %v2884_v26 = vmul.f32 %v7889_v39, %v7889_v39  ;;  %v8197_v61 = vsub.f32 %v11439_v32, %v7985_v62  ;;  %3055 = vmatprep.subr.mxu1 %v2895_v30  ;;  %v11444_v30 = vld [vmem:[#allocation33_spill] sm:$0xff] }
 0x8e3   :  { %11437 = vst [vmem:[#allocation55_spill] sm:$0xff] %v8181_v21  ;;  %v2891_v17 = vmul.f32 %v8165_v41, %v8165_v41  ;;  %2987 = vmatpush1.msra.mxu0 %v2888_v4  ;;  %v8203_v18 = vsub.f32 %v11441_v0, %v7907_v10  ;;  %v2890_v59 = vmul.f32 %v8019_v63, %v8019_v63  ;;  %v11447_v63 = vld [vmem:[#allocation32_spill] sm:$0xff] }
 0x8e4   :  { %11440 = vst [vmem:[#allocation31_spill] sm:$0xff] %v8197_v61  ;;  %v2881_v29 = vmul.f32 %v8171_v48, %v8171_v48  ;;  %3056 = vmatpush1.msra.mxu1 %v2894_v23  ;;  %2988 = vmatprep.subr.mxu0 %v2885_v16  ;;  %v2880_v32 = vmul.f32 %v7886_v44, %v7886_v44 }
 0x8e5   :  { %v8213_v57 = vsub.f32 %v11442_v14, %v7985_v62  ;;  %3057 = vmatprep.subr.mxu1 %v2891_v17  ;;  %v2887_v4 = vmul.f32 %v8181_v21, %v8181_v21  ;;  %2989 = vmatpush1.msra.mxu0 %v2884_v26  ;;  %v8219_v0 = vsub.f32 %v11444_v30, %v7907_v10  ;;  %v11445_v17 = vld [vmem:[#allocation30_spill] sm:$0xff]  ;;  %v11446_v30 = vld [vmem:[#allocation35_spill] sm:$0xff] }
 0x8e6   :  { %v2886_v23 = vmul.f32 %v8009_v40, %v8009_v40  ;;  %3058 = vmatpush1.msra.mxu1 %v2890_v59  ;;  %2990 = vmatprep.subr.mxu0 %v2881_v29  ;;  %v2877_v16 = vmul.f32 %v8187_v31, %v8187_v31  ;;  %v2876_v14 = vmul.f32 %v7883_v27, %v7883_v27  ;;  %v11451_v40 = vld [vmem:[#allocation37_spill] sm:$0xff] }
 0x8e7   :  { %11443 = vst [vmem:[#allocation14_spill] sm:$0xff] %v8213_v57  ;;  %v8229_v6 = vsub.f32 %v11445_v17, %v7985_v62  ;;  %v2883_v26 = vmul.f32 %v8197_v61, %v8197_v61  ;;  %3059 = vmatprep.subr.mxu1 %v2887_v4  ;;  %2991 = vmatpush1.msra.mxu0 %v2880_v32  ;;  %v11448_v4 = vld [vmem:[#allocation17_spill] sm:$0xff] }
 0x8e8   :  { %v8235_v41 = vsub.f32 %v11446_v30, %v7907_v10  ;;  %v2882_v59 = vmul.f32 %v8005_v24, %v8005_v24  ;;  %v2873_v29 = vmul.f32 %v8203_v18, %v8203_v18  ;;  %3060 = vmatpush1.msra.mxu1 %v2886_v23  ;;  %2992 = vmatprep.subr.mxu0 %v2877_v16  ;;  %v11455_v24 = vld [vmem:[#allocation20_spill] sm:$0xff] }
 0x8e9   :  { %v2872_v17 = vmul.f32 %v7880_v5, %v7880_v5  ;;  %v8245_v56 = vsub.f32 %v11447_v63, %v7985_v62  ;;  %3061 = vmatprep.subr.mxu1 %v2883_v26  ;;  %v2879_v32 = vmul.f32 %v8213_v57, %v8213_v57  ;;  %2993 = vmatpush1.msra.mxu0 %v2876_v14  ;;  %v11449_v26 = vld [vmem:[#allocation34_spill] sm:$0xff] }
 0x8ea   :  { %v8251_v30 = vsub.f32 %v11448_v4, %v7907_v10  ;;  %v2878_v23 = vmul.f32 %v8001_v25, %v8001_v25  ;;  %3062 = vmatpush1.msra.mxu1 %v2882_v59  ;;  %2994 = vmatprep.subr.mxu0 %v2873_v29  ;;  %v2869_v16 = vmul.f32 %v8219_v0, %v8219_v0  ;;  %v11450_v4 = vld [vmem:[#allocation39_spill] sm:$0xff]  ;;  %v11464_v57 = vld [vmem:[#allocation42_spill] sm:$0xff] }
 0x8eb   :  { %v2868_v63 = vmul.f32 %v7877_v58, %v7877_v58  ;;  %v8261_v1 = vsub.f32 %v11449_v26, %v7985_v62  ;;  %v2875_v14 = vmul.f32 %v8229_v6, %v8229_v6  ;;  %3063 = vmatprep.subr.mxu1 %v2879_v32  ;;  %2995 = vmatpush1.msra.mxu0 %v2872_v17  ;;  %v11452_v32 = vld [vmem:[#allocation21_spill] sm:$0xff] }
 0x8ec   :  { %v8267_v21 = vsub.f32 %v11450_v4, %v7907_v10  ;;  %v2874_v59 = vmul.f32 %v7997_v47, %v7997_v47  ;;  %v2865_v29 = vmul.f32 %v8235_v41, %v8235_v41  ;;  %3064 = vmatpush1.msra.mxu1 %v2878_v23  ;;  %2996 = vmatprep.subr.mxu0 %v2869_v16 }
 0x8ed   :  { %v2864_v26 = vmul.f32 %v7874_v35, %v7874_v35  ;;  %v8277_v50 = vsub.f32 %v11451_v40, %v7985_v62  ;;  %3065 = vmatprep.subr.mxu1 %v2875_v14  ;;  %v2871_v17 = vmul.f32 %v8245_v56, %v8245_v56  ;;  %2997 = vmatpush1.msra.mxu0 %v2868_v63  ;;  %v11453_v14 = vld [vmem:[#allocation38_spill] sm:$0xff] }
 0x8ee   :  { %v8283_v4 = vsub.f32 %v11452_v32, %v7907_v10  ;;  %v2870_v23 = vmul.f32 %v7993_v52, %v7993_v52  ;;  %3066 = vmatpush1.msra.mxu1 %v2874_v59  ;;  %2998 = vmatprep.subr.mxu0 %v2865_v29  ;;  %v2861_v16 = vmul.f32 %v8251_v30, %v8251_v30  ;;  %v11454_v32 = vld [vmem:[#allocation22_spill] sm:$0xff] }
 0x8ef   :  { %v2860_v40 = vmul.f32 %v7871_v34, %v7871_v34  ;;  %v8293_v39 = vsub.f32 %v11453_v14, %v7985_v62  ;;  %v2867_v63 = vmul.f32 %v8261_v1, %v8261_v1  ;;  %3067 = vmatprep.subr.mxu1 %v2871_v17  ;;  %2999 = vmatpush1.msra.mxu0 %v2864_v26 }
 0x8f0   :  { %v8299_v61 = vsub.f32 %v11454_v32, %v7907_v10  ;;  %v2866_v59 = vmul.f32 %v7989_v36, %v7989_v36  ;;  %v2857_v29 = vmul.f32 %v8267_v21, %v8267_v21  ;;  %3068 = vmatpush1.msra.mxu1 %v2870_v23  ;;  %3000 = vmatprep.subr.mxu0 %v2861_v16 }
 0x8f1   :  { %v2856_v14 = vmul.f32 %v7868_v43, %v7868_v43  ;;  %v8309_v48 = vsub.f32 %v11455_v24, %v7985_v62  ;;  %3069 = vmatprep.subr.mxu1 %v2867_v63  ;;  %v2863_v26 = vmul.f32 %v8277_v50, %v8277_v50  ;;  %3001 = vmatpush1.msra.mxu0 %v2860_v40  ;;  %v11457_v63 = vld [vmem:[#allocation46_spill] sm:$0xff] }
 0x8f2   :  { %v8315_v17 = vsub.f32 %v7785_v11, %v7907_v10  ;;  %v2862_v23 = vmul.f32 %v7978_v19, %v7978_v19  ;;  %3070 = vmatpush1.msra.mxu1 %v2866_v59  ;;  %3002 = vmatprep.subr.mxu0 %v2857_v29  ;;  %v2853_v16 = vmul.f32 %v8283_v4, %v8283_v4 }
 0x8f3   :  { %v2852_v24 = vmul.f32 %v7865_v20, %v7865_v20  ;;  %v8325_v32 = vsub.f32 %v11457_v63, %v7985_v62  ;;  %v2859_v40 = vmul.f32 %v8293_v39, %v8293_v39  ;;  %3071 = vmatprep.subr.mxu1 %v2863_v26  ;;  %3003 = vmatpush1.msra.mxu0 %v2856_v14 }
 0x8f4   :  { %11456 = vst [vmem:[#allocation44_spill] sm:$0xff] %v8315_v17  ;;  %v8331_v11 = vsub.f32 %v7777_v49, %v7907_v10  ;;  %v2858_v59 = vmul.f32 %v7974_v33, %v7974_v33  ;;  %v2849_v29 = vmul.f32 %v8299_v61, %v8299_v61  ;;  %3072 = vmatpush1.msra.mxu1 %v2862_v23 }
 0x8f5   :  { %3004 = vmatprep.subr.mxu0 %v2853_v16  ;;  %v2848_v63 = vmul.f32 %v7862_v7, %v7862_v7  ;;  %v8341_v44 = vsub.f32 %v7787_v9, %v7985_v62  ;;  %3073 = vmatprep.subr.mxu1 %v2859_v40  ;;  %v2855_v49 = vmul.f32 %v8309_v48, %v8309_v48 }
 0x8f6   :  { %11458 = vst [vmem:[#allocation24_spill] sm:$0xff] %v8331_v11  ;;  %3005 = vmatpush1.msra.mxu0 %v2852_v24  ;;  %v8347_v14 = vsub.f32 %v7769_v22, %v7907_v10  ;;  %v2854_v26 = vmul.f32 %v7970_v60, %v7970_v60  ;;  %v2973_v23 = vmul.f32 %v8315_v17, %v8315_v17  ;;  %v11462_v22 = vld [vmem:[#allocation106_spill] sm:$0xff]  ;;  %v11465_v17 = vld [vmem:[#allocation115_spill] sm:$0xff] }
 0x8f7   :  { %11459 = vst [vmem:[#allocation33_spill] sm:$0xff] %v8341_v44  ;;  %3074 = vmatpush1.msra.mxu1 %v2858_v59  ;;  %3006 = vmatprep.subr.mxu0 %v2849_v29  ;;  %v2972_v9 = vmul.f32 %v7962_v13, %v7962_v13  ;;  %v8357_v16 = vsub.f32 %v7779_v53, %v7985_v62  ;;  %v11466_v13 = vld [vmem:[#allocation108_spill] sm:$0xff] }
 0x8f8   :  { %11460 = vst [vmem:[#allocation30_spill] sm:$0xff] %v8347_v14  ;;  %v2851_v24 = vmul.f32 %v8325_v32, %v8325_v32  ;;  %3075 = vmatprep.subr.mxu1 %v2855_v49  ;;  %3007 = vmatpush1.msra.mxu0 %v2848_v63  ;;  %v8363_v40 = vsub.f32 %v11462_v22, %v7907_v10  ;;  %v11468_v49 = vld [vmem:[#allocation104_spill] sm:$0xff] }
 0x8f9   :  { %11461 = vst [vmem:[#allocation35_spill] sm:$0xff] %v8357_v16  ;;  %v2850_v59 = vmul.f32 %v11464_v57, %v11464_v57  ;;  %v2969_v29 = vmul.f32 %v8331_v11, %v8331_v11  ;;  %3076 = vmatpush1.msra.mxu1 %v2854_v26  ;;  %3008 = vmatprep.subr.mxu0 %v2973_v23  ;;  %v11470_v11 = vld [vmem:[#allocation114_spill] sm:$0xff] }
 0x8fa   :  { %11463 = vst [vmem:[#allocation32_spill] sm:$0xff] %v8363_v40  ;;  %v2968_v53 = vmul.f32 %v11465_v17, %v11465_v17  ;;  %v8373_v25 = vsub.f32 %v11466_v13, %v7985_v62  ;;  %v2975_v63 = vmul.f32 %v8341_v44, %v8341_v44  ;;  %3077 = vmatprep.subr.mxu1 %v2851_v24  ;;  %v11471_v17 = vld [vmem:[#allocation107_spill] sm:$0xff]  ;;  %v11473_v24 = vld [vmem:[#allocation102_spill] sm:$0xff] }
 0x8fb   :  { %3009 = vmatpush2.msra.mxu0 %v2972_v9  ;;  %v8379_v22 = vsub.f32 %v11468_v49, %v7907_v10  ;;  %v2974_v26 = vmul.f32 %v8143_v46, %v8143_v46  ;;  %v2965_v23 = vmul.f32 %v8347_v14, %v8347_v14  ;;  %3078 = vmatpush1.msra.mxu1 %v2850_v59  ;;  %v11475_v46 = vld [vmem:[#allocation113_spill] sm:$0xff] }
 0x8fc   :  { %11467 = vst [vmem:[#allocation17_spill] sm:$0xff] %v8373_v25  ;;  %3010 = vmatprep.subr.mxu0 %v2969_v29  ;;  %v2964_v13 = vmul.f32 %v11470_v11, %v11470_v11  ;;  %v8389_v44 = vsub.f32 %v11471_v17, %v7985_v62  ;;  %v2971_v9 = vmul.f32 %v8357_v16, %v8357_v16  ;;  %v11476_v14 = vld [vmem:[#allocation105_spill] sm:$0xff]  ;;  %v11481_v11 = vld [vmem:[#allocation103_spill] sm:$0xff] }
 0x8fd   :  { %11469 = vst [vmem:[#allocation34_spill] sm:$0xff] %v8379_v22  ;;  %3079 = vmatprep.subr.mxu1 %v2975_v63  ;;  %3011 = vmatpush2.msra.mxu0 %v2968_v53  ;;  %v8395_v49 = vsub.f32 %v11473_v24, %v7907_v10  ;;  %v2970_v59 = vmul.f32 %v8131_v45, %v8131_v45  ;;  %v11478_v63 = vld [vmem:[#allocation100_spill] sm:$0xff] }
 0x8fe   :  { %11472 = vst [vmem:[#allocation39_spill] sm:$0xff] %v8389_v44  ;;  %v2961_v29 = vmul.f32 %v8363_v40, %v8363_v40  ;;  %3080 = vmatpush2.msra.mxu1 %v2974_v26  ;;  %3012 = vmatprep.subr.mxu0 %v2965_v23  ;;  %v2960_v17 = vmul.f32 %v11475_v46, %v11475_v46  ;;  %v11480_v45 = vld [vmem:[#allocation112_spill] sm:$0xff]  ;;  %v11486_v40 = vld [vmem:[#allocation101_spill] sm:$0xff]  ;;  %v11491_v46 = vld [vmem:[#allocation99_spill] sm:$0xff] }
 0x8ff   :  { %11474 = vst [vmem:[#allocation37_spill] sm:$0xff] %v8395_v49  ;;  %v8405_v16 = vsub.f32 %v11476_v14, %v7985_v62  ;;  %v2967_v53 = vmul.f32 %v8373_v25, %v8373_v25  ;;  %3081 = vmatprep.subr.mxu1 %v2971_v9  ;;  %3013 = vmatpush2.msra.mxu0 %v2964_v13  ;;  %v11483_v9 = vld [vmem:[#allocation98_spill] sm:$0xff] }
 0x900   :  { %v8411_v24 = vsub.f32 %v11478_v63, %v7907_v10  ;;  %v2966_v26 = vmul.f32 %v8121_v42, %v8121_v42  ;;  %v2957_v23 = vmul.f32 %v8379_v22, %v8379_v22  ;;  %3082 = vmatpush2.msra.mxu1 %v2970_v59  ;;  %3014 = vmatprep.subr.mxu0 %v2961_v29  ;;  %v11485_v42 = vld [vmem:[#allocation111_spill] sm:$0xff]  ;;  %v11496_v22 = vld [vmem:[#allocation97_spill] sm:$0xff] }
 0x901   :  { %11477 = vst [vmem:[#allocation21_spill] sm:$0xff] %v8405_v16  ;;  %v2956_v14 = vmul.f32 %v11480_v45, %v11480_v45  ;;  %v8421_v25 = vsub.f32 %v11481_v11, %v7985_v62  ;;  %v2963_v13 = vmul.f32 %v8389_v44, %v8389_v44  ;;  %3083 = vmatprep.subr.mxu1 %v2967_v53  ;;  %v11488_v53 = vld [vmem:[#allocation96_spill] sm:$0xff] }
 0x902   :  { %11479 = vst [vmem:[#allocation38_spill] sm:$0xff] %v8411_v24  ;;  %3015 = vmatpush2.msra.mxu0 %v2960_v17  ;;  %v8427_v63 = vsub.f32 %v11483_v9, %v7907_v10  ;;  %v2962_v59 = vmul.f32 %v8117_v51, %v8117_v51  ;;  %v2953_v29 = vmul.f32 %v8395_v49, %v8395_v49  ;;  %v11490_v51 = vld [vmem:[#allocation110_spill] sm:$0xff] }
 0x903   :  { %11482 = vst [vmem:[#allocation22_spill] sm:$0xff] %v8421_v25  ;;  %3084 = vmatpush2.msra.mxu1 %v2966_v26  ;;  %3016 = vmatprep.subr.mxu0 %v2957_v23  ;;  %v2952_v11 = vmul.f32 %v11485_v42, %v11485_v42  ;;  %v8437_v44 = vsub.f32 %v11486_v40, %v7985_v62  ;;  %v11505_v42 = vld [vmem:[#allocation72_spill] sm:$0xff] }
 0x904   :  { %11484 = vst [vmem:[#allocation20_spill] sm:$0xff] %v8427_v63  ;;  %v2959_v17 = vmul.f32 %v8405_v16, %v8405_v16  ;;  %3085 = vmatprep.subr.mxu1 %v2963_v13  ;;  %3017 = vmatpush2.msra.mxu0 %v2956_v14  ;;  %v8443_v9 = vsub.f32 %v11488_v53, %v7907_v10  ;;  %v11493_v13 = vld [vmem:[#allocation94_spill] sm:$0xff] }
 0x905   :  { %11487 = vst [vmem:[#allocation46_spill] sm:$0xff] %v8437_v44  ;;  %v2958_v26 = vmul.f32 %v8107_v8, %v8107_v8  ;;  %v2949_v23 = vmul.f32 %v8411_v24, %v8411_v24  ;;  %3086 = vmatpush2.msra.mxu1 %v2962_v59  ;;  %3018 = vmatprep.subr.mxu0 %v2953_v29  ;;  %v11495_v8 = vld [vmem:[#allocation109_spill] sm:$0xff]  ;;  %v11509_v24 = vld [vmem:[#allocation68_spill] sm:$0xff] }
 0x906   :  { %11489 = vst [vmem:[#allocation106_spill] sm:$0xff] %v8443_v9  ;;  %v2948_v40 = vmul.f32 %v11490_v51, %v11490_v51  ;;  %v8453_v16 = vsub.f32 %v11491_v46, %v7985_v62  ;;  %v2955_v14 = vmul.f32 %v8421_v25, %v8421_v25  ;;  %3087 = vmatprep.subr.mxu1 %v2959_v17  ;;  %v11498_v17 = vld [vmem:[#allocation92_spill] sm:$0xff]  ;;  %v11510_v51 = vld [vmem:[#allocation91_spill] sm:$0xff] }
 0x907   :  { %3019 = vmatpush2.msra.mxu0 %v2952_v11  ;;  %v8459_v53 = vsub.f32 %v11493_v13, %v7907_v10  ;;  %v2954_v59 = vmul.f32 %v8103_v12, %v8103_v12  ;;  %v2945_v29 = vmul.f32 %v8427_v63, %v8427_v63  ;;  %3088 = vmatpush2.msra.mxu1 %v2958_v26  ;;  %v11500_v25 = vld [vmem:[#allocation76_spill] sm:$0xff]  ;;  %v11501_v12 = vld [vmem:[#allocation95_spill] sm:$0xff]  ;;  %v11514_v63 = vld [vmem:[#allocation89_spill] sm:$0xff] }
 0x908   :  { %11492 = vst [vmem:[#allocation42_spill] sm:$0xff] %v8453_v16  ;;  %3020 = vmatprep.subr.mxu0 %v2949_v23  ;;  %v2944_v46 = vmul.f32 %v11495_v8, %v11495_v8  ;;  %v8469_v45 = vsub.f32 %v11496_v22, %v7985_v62  ;;  %v2951_v11 = vmul.f32 %v8437_v44, %v8437_v44  ;;  %v11506_v44 = vld [vmem:[#allocation93_spill] sm:$0xff] }
 0x909   :  { %11494 = vst [vmem:[#allocation108_spill] sm:$0xff] %v8459_v53  ;;  %3089 = vmatprep.subr.mxu1 %v2955_v14  ;;  %3021 = vmatpush2.msra.mxu0 %v2948_v40  ;;  %v8475_v13 = vsub.f32 %v11498_v17, %v7907_v10  ;;  %v2950_v26 = vmul.f32 %v8093_v37, %v8093_v37  ;;  %v11503_v14 = vld [vmem:[#allocation90_spill] sm:$0xff] }
 0x90a   :  { %11497 = vst [vmem:[#allocation104_spill] sm:$0xff] %v8469_v45  ;;  %v2941_v23 = vmul.f32 %v8443_v9, %v8443_v9  ;;  %3090 = vmatpush2.msra.mxu1 %v2954_v59  ;;  %3022 = vmatprep.subr.mxu0 %v2945_v29  ;;  %v2940_v22 = vmul.f32 %v11500_v25, %v11500_v25  ;;  %v11520_v25 = vld [vmem:[#allocation56_spill] sm:$0xff] }
 0x90b   :  { %11499 = vst [vmem:[#allocation107_spill] sm:$0xff] %v8475_v13  ;;  %v8485_v49 = vsub.f32 %v11501_v12, %v7985_v62  ;;  %v2947_v40 = vmul.f32 %v8453_v16, %v8453_v16  ;;  %3091 = vmatprep.subr.mxu1 %v2951_v11  ;;  %3023 = vmatpush2.msra.mxu0 %v2944_v46  ;;  %v11508_v11 = vld [vmem:[#allocation88_spill] sm:$0xff] }
 0x90c   :  { %v8491_v17 = vsub.f32 %v11503_v14, %v7907_v10  ;;  %v2946_v59 = vmul.f32 %v8089_v54, %v8089_v54  ;;  %v2937_v29 = vmul.f32 %v8459_v53, %v8459_v53  ;;  %3092 = vmatpush2.msra.mxu1 %v2950_v26  ;;  %3024 = vmatprep.subr.mxu0 %v2941_v23  ;;  %v11513_v54 = vld [vmem:[#allocation64_spill] sm:$0xff]  ;;  %v11524_v53 = vld [vmem:[#allocation82_spill] sm:$0xff] }
 0x90d   :  { %11502 = vst [vmem:[#allocation102_spill] sm:$0xff] %v8485_v49  ;;  %v2936_v12 = vmul.f32 %v11505_v42, %v11505_v42  ;;  %v8501_v37 = vsub.f32 %v11506_v44, %v7985_v62  ;;  %v2943_v46 = vmul.f32 %v8469_v45, %v8469_v45  ;;  %3093 = vmatprep.subr.mxu1 %v2947_v40  ;;  %v11512_v40 = vld [vmem:[#allocation86_spill] sm:$0xff]  ;;  %v11517_v45 = vld [vmem:[#allocation60_spill] sm:$0xff] }
 0x90e   :  { %11504 = vst [vmem:[#allocation105_spill] sm:$0xff] %v8491_v17  ;;  %3025 = vmatpush2.msra.mxu0 %v2940_v22  ;;  %v8507_v14 = vsub.f32 %v11508_v11, %v7907_v10  ;;  %v2942_v26 = vmul.f32 %v8079_v28, %v8079_v28  ;;  %v2933_v23 = vmul.f32 %v8475_v13, %v8475_v13  ;;  %v11518_v28 = vld [vmem:[#allocation87_spill] sm:$0xff] }
 0x90f   :  { %11507 = vst [vmem:[#allocation100_spill] sm:$0xff] %v8501_v37  ;;  %3094 = vmatpush2.msra.mxu1 %v2946_v59  ;;  %3026 = vmatprep.subr.mxu0 %v2937_v29  ;;  %v2932_v44 = vmul.f32 %v11509_v24, %v11509_v24  ;;  %v8517_v16 = vsub.f32 %v11510_v51, %v7985_v62 }
 0x910   :  { %v2939_v22 = vmul.f32 %v8485_v49, %v8485_v49  ;;  %3095 = vmatprep.subr.mxu1 %v2943_v46  ;;  %3027 = vmatpush2.msra.mxu0 %v2936_v12  ;;  %v8523_v11 = vsub.f32 %v11512_v40, %v7907_v10  ;;  %v2938_v59 = vmul.f32 %v8075_v3, %v8075_v3  ;;  %v11516_v46 = vld [vmem:[#allocation84_spill] sm:$0xff]  ;;  %v11521_v49 = vld [vmem:[#allocation85_spill] sm:$0xff] }
 0x911   :  { %11511 = vst [vmem:[#allocation103_spill] sm:$0xff] %v8517_v16  ;;  %v2929_v29 = vmul.f32 %v8491_v17, %v8491_v17  ;;  %3096 = vmatpush2.msra.mxu1 %v2942_v26  ;;  %3028 = vmatprep.subr.mxu0 %v2933_v23  ;;  %v2928_v51 = vmul.f32 %v11513_v54, %v11513_v54  ;;  %v11529_v54 = vld [vmem:[#allocation26_spill] sm:$0xff] }
 0x912   :  { %v8533_v8 = vsub.f32 %v11514_v63, %v7985_v62  ;;  %v2935_v12 = vmul.f32 %v8501_v37, %v8501_v37  ;;  %3097 = vmatprep.subr.mxu1 %v2939_v22  ;;  %3029 = vmatpush2.msra.mxu0 %v2932_v44  ;;  %v8539_v40 = vsub.f32 %v11516_v46, %v7907_v10  ;;  %v11519_v22 = vld [vmem:[#allocation81_spill] sm:$0xff] }
 0x913   :  { %v2934_v26 = vmul.f32 %v8065_v2, %v8065_v2  ;;  %v2925_v23 = vmul.f32 %v8507_v14, %v8507_v14  ;;  %3098 = vmatpush2.msra.mxu1 %v2938_v59  ;;  %3030 = vmatprep.subr.mxu0 %v2929_v29  ;;  %v2924_v63 = vmul.f32 %v11517_v45, %v11517_v45  ;;  %v11526_v37 = vld [vmem:[#allocation61_spill] sm:$0xff] }
 0x914   :  { %11515 = vst [vmem:[#allocation98_spill] sm:$0xff] %v8533_v8  ;;  %v8549_v9 = vsub.f32 %v11518_v28, %v7985_v62  ;;  %v2931_v44 = vmul.f32 %v8517_v16, %v8517_v16  ;;  %3099 = vmatprep.subr.mxu1 %v2935_v12  ;;  %3031 = vmatpush2.msra.mxu0 %v2928_v51  ;;  %v11527_v2 = vld [vmem:[#allocation29_spill] sm:$0xff] }
 0x915   :  { %v8555_v46 = vsub.f32 %v11519_v22, %v7907_v10  ;;  %v2930_v59 = vmul.f32 %v8061_v55, %v8061_v55  ;;  %v2921_v29 = vmul.f32 %v8523_v11, %v8523_v11  ;;  %3100 = vmatpush2.msra.mxu1 %v2934_v26  ;;  %3032 = vmatprep.subr.mxu0 %v2925_v23  ;;  %v11522_v10 = vld [vmem:[#allocation83_spill] sm:$0xff]  ;;  %v11523_v22 = vld [vmem:[#allocation52_spill] sm:$0xff] }
 0x916   :  { %v2920_v28 = vmul.f32 %v11520_v25, %v11520_v25  ;;  %v8565_v3 = vsub.f32 %v11521_v49, %v7985_v62  ;;  %v2927_v51 = vmul.f32 %v8533_v8, %v8533_v8  ;;  %3101 = vmatprep.subr.mxu1 %v2931_v44  ;;  %3033 = vmatpush2.msra.mxu0 %v2924_v63  ;;  %v11525_v44 = vld [vmem:[#allocation80_spill] sm:$0xff]  ;;  %v11531_v8 = vld [vmem:[#allocation13_spill] sm:$0xff] }
 0x917   :  { %v8571_v12 = vsub.f32 %v11522_v10, %v7859_v38  ;;  %v2926_v26 = vmul.f32 %v8055_v15, %v8055_v15  ;;  %v2917_v23 = vmul.f32 %v8539_v40, %v8539_v40  ;;  %3102 = vmatpush2.msra.mxu1 %v2930_v59  ;;  %3034 = vmatprep.subr.mxu0 %v2921_v29 }
 0x918   :  { %v2916_v49 = vmul.f32 %v11523_v22, %v11523_v22  ;;  %v8581_v42 = vsub.f32 %v11524_v53, %v7985_v62  ;;  %v2923_v63 = vmul.f32 %v8549_v9, %v8549_v9  ;;  %3103 = vmatprep.subr.mxu1 %v2927_v51  ;;  %3035 = vmatpush2.msra.mxu0 %v2920_v28 }
 0x919   :  { %v8587_v10 = vsub.f32 %v11525_v44, %v7859_v38  ;;  %v2922_v59 = vmul.f32 %v11526_v37, %v11526_v37  ;;  %v2913_v29 = vmul.f32 %v8555_v46, %v8555_v46  ;;  %3104 = vmatpush2.msra.mxu1 %v2926_v26  ;;  %3036 = vmatprep.subr.mxu0 %v2917_v23  ;;  %v11528_v26 = vmov 1.0   ;;  %v5203_v23 = vld [vmem:[#allocation2 + $0x88] sm:$0xff]  }
 0x91a   :  { %v2912_v62 = vmul.f32 %v11527_v2, %v11527_v2  ;;  %v2919_v53 = vmul.f32 %v8565_v3, %v8565_v3  ;;  %3105 = vmatprep.subr.mxu1 %v2923_v63  ;;  %3037 = vmatpush2.msra.mxu0 %v2916_v49  ;;  %v2918_v38 = vmul.f32 %v8571_v12, %v8571_v12  ;;  %v5204_v49 = vld [vmem:[#allocation2 + $0x108] sm:$0xff]  }
 0x91b   :  { %3106 = vmatpush2.msra.mxu1 %v2922_v59  ;;  %3038 = vmatprep.subr.mxu0 %v2913_v29  ;;  %v2915_v28 = vmul.f32 %v8581_v42, %v8581_v42  ;;  %v2914_v51 = vmul.f32 %v8587_v10, %v8587_v10  ;;  %v5205_v63 = vld [vmem:[#allocation2 + $0x48] sm:$0xff]   ;;  %v5207_v59 = vld [vmem:[#allocation2 + $0x80] sm:$0xff]  }
 0x91c   :  { %3107 = vmatprep.subr.mxu1 %v2919_v53  ;;  %3039 = vmatpush2.msra.mxu0 %v2912_v62  ;;  %v5206_v44 = vld [vmem:[#allocation2 + $0xc8] sm:$0xff]   ;;  %v5208_v29 = vld [vmem:[#allocation2 + $0x100] sm:$0xff]  }
 0x91d   :  { %3108 = vmatpush2.msra.mxu1 %v2918_v38  ;;  %3041 = vmatmul.mubr.f32.vlgmr.msra.gmra.mxu0 %v11528_v26  ;;  %v5209_v62 = vld [vmem:[#allocation2 + $0x40] sm:$0xff]   ;;  %v5211_v38 = vld [vmem:[#allocation2 + $0x78] sm:$0xff]  }
 0x91e   :  { %3109 = vmatprep.subr.mxu1 %v2915_v28  ;;  %4790 = vmatprep.subr.bf16.mxu0 %v5203_v23  ;;  %v5210_v53 = vld [vmem:[#allocation2 + $0xc0] sm:$0xff]   ;;  %v5212_v28 = vld [vmem:[#allocation2 + $0xf8] sm:$0xff]   ;;  %v5215_v23 = vld [vmem:[#allocation2 + $0x70] sm:$0xff]  }
 0x91f   :  { %3110 = vmatpush2.msra.mxu1 %v2914_v51  ;;  %4791 = vmatpush3.bf16.msra.mxu0 %v5205_v63  ;;  %v5213_v51 = vld [vmem:[#allocation2 + $0x38] sm:$0xff]   ;;  %v5217_v63 = vld [vmem:[#allocation2 + $0x30] sm:$0xff]  }
 0x920   :  { %3112 = vmatmul.mubr.f32.vlgmr.msra.gmra.mxu1 %v11528_v26  ;;  %4902 = vmatprep.subr.bf16.mxu1 %v5204_v49  ;;  %v5214_v26 = vld [vmem:[#allocation2 + $0xb8] sm:$0xff]   ;;  %v5216_v49 = vld [vmem:[#allocation2 + $0xf0] sm:$0xff]  }
 0x921   :  { %4903 = vmatpush3.bf16.msra.mxu1 %v5206_v44  ;;  %4792 = vmatprep.subr.bf16.mxu0 %v5207_v59  ;;  %v5218_v44 = vld [vmem:[#allocation2 + $0xb0] sm:$0xff]   ;;  %v5219_v59 = vld [vmem:[#allocation2 + $0x68] sm:$0xff]  }
 0x922   :  { %4904 = vmatprep.subr.bf16.mxu1 %v5208_v29  ;;  %v5220_v29 = vld [vmem:[#allocation2 + $0xe8] sm:$0xff]  }
 0x923   :  { %4793 = vmatpush3.bf16.msra.mxu0 %v5209_v62  ;;  %v5221_v62 = vld [vmem:[#allocation2 + $0x28] sm:$0xff]  }
 0x924   :  { %4794 = vmatprep.subr.bf16.mxu0 %v5211_v38  ;;  %v5223_v38 = vld [vmem:[#allocation2 + $0x60] sm:$0xff]  }
 0x925   :  { %4905 = vmatpush3.bf16.msra.mxu1 %v5210_v53  ;;  %v5222_v53 = vld [vmem:[#allocation2 + $0xa8] sm:$0xff]  }
 0x926   :  { %4906 = vmatprep.subr.bf16.mxu1 %v5212_v28  ;;  %v5224_v28 = vld [vmem:[#allocation2 + $0xe0] sm:$0xff]  }
 0x927   :  { %4795 = vmatpush3.bf16.msra.mxu0 %v5213_v51  ;;  %v5225_v51 = vld [vmem:[#allocation2 + $0x20] sm:$0xff]  }
 0x928   :  { %4796 = vmatprep.subr.bf16.mxu0 %v5215_v23  ;;  %v5227_v23 = vld [vmem:[#allocation2 + $0x58] sm:$0xff]  }
 0x929   :  { %4907 = vmatpush3.bf16.msra.mxu1 %v5214_v26  ;;  %v5226_v26 = vld [vmem:[#allocation2 + $0xa0] sm:$0xff]  }
 0x92a   :  { %4908 = vmatprep.subr.bf16.mxu1 %v5216_v49  ;;  %v5228_v49 = vld [vmem:[#allocation2 + $0xd8] sm:$0xff]  }
 0x92b   :  { %4797 = vmatpush3.bf16.msra.mxu0 %v5217_v63  ;;  %v5229_v63 = vld [vmem:[#allocation2 + $0x18] sm:$0xff]  }
 0x92c   :  { %4798 = vmatprep.subr.bf16.mxu0 %v5219_v59  ;;  %v5231_v59 = vld [vmem:[#allocation2 + $0x50] sm:$0xff]  }
 0x92d   :  { %4909 = vmatpush3.bf16.msra.mxu1 %v5218_v44  ;;  %v5230_v44 = vld [vmem:[#allocation2 + $0x98] sm:$0xff]  }
 0x92e   :  { %4910 = vmatprep.subr.bf16.mxu1 %v5220_v29  ;;  %v5232_v29 = vld [vmem:[#allocation2 + $0xd0] sm:$0xff]  }
 0x92f   :  { %4799 = vmatpush3.bf16.msra.mxu0 %v5221_v62  ;;  %v5233_v62 = vld [vmem:[#allocation2 + $0x10] sm:$0xff]  }
 0x930   :  { %4800 = vmatprep.subr.bf16.mxu0 %v5223_v38 }
 0x931   :  { %4911 = vmatpush3.bf16.msra.mxu1 %v5222_v53  ;;  %v5234_v53 = vld [vmem:[#allocation2 + $0x90] sm:$0xff]  }
 0x932   :  { %4912 = vmatprep.subr.bf16.mxu1 %v5224_v28 }
 0x933   :  { %4801 = vmatpush3.bf16.msra.mxu0 %v5225_v51 }
 0x934   :  { %4802 = vmatprep.subr.bf16.mxu0 %v5227_v23 }
 0x935   :  { %4913 = vmatpush3.bf16.msra.mxu1 %v5226_v26 }
 0x936   :  { %4914 = vmatprep.subr.bf16.mxu1 %v5228_v49 }
 0x937   :  { %4803 = vmatpush3.bf16.msra.mxu0 %v5229_v63 }
 0x938   :  { %4804 = vmatprep.subr.bf16.mxu0 %v5231_v59 }
 0x939   :  { %4915 = vmatpush3.bf16.msra.mxu1 %v5230_v44 }
 0x93a   :  { %4916 = vmatprep.subr.bf16.mxu1 %v5232_v29 }
 0x93b   :  { %4805 = vmatpush3.bf16.msra.mxu0 %v5233_v62 }
 0x93d   :  { %4917 = vmatpush3.bf16.msra.mxu1 %v5234_v53 }
 0x9dd   :  { %v3042_v38 = vpop.f32.mrf.mxu0 }
 0x9de   :  { %v3118_v28 = vmul.f32 0.00390625, %v3042_v38 }
 0x9df   :  { %v3044_v51 = vpop.f32.mrf.mxu0 }
 0x9e0   :  { %v3122_v26 = vadd.f32 1e-05, %v3118_v28  ;;  %v3113_v13 = vpop.f32.mrf.mxu1  ;;  %v3119_v24 = vmul.f32 0.00390625, %v3044_v51 }
 0x9e1   :  { %v3120_v16 = vmul.f32 0.00390625, %v3113_v13 }
 0x9e2   :  { %v3123_v55 = vadd.f32 1e-05, %v3119_v24  ;;  %v3115_v23 = vpop.f32.mrf.mxu1  ;;  %5241 = vrsqrt.f32 %v3122_v26 }
 0x9e3   :  { %v3124_v49 = vadd.f32 1e-05, %v3120_v16  ;;  %v3121_v63 = vmul.f32 0.00390625, %v3115_v23  ;;  %v2553_v16 = vld [vmem:[#allocation7 + $0x6] ss:$8 sm:$0xf] }
 0x9e4   :  { %5243 = vrsqrt.f32 %v3123_v55  ;;  %v11530_v23 = vld [vmem:[#allocation12_spill] sm:$0xff] }
 0x9e5   :  { %v3125_v44 = vadd.f32 1e-05, %v3121_v63  ;;  %5245 = vrsqrt.f32 %v3124_v49  ;;  %v3171_v26 = vsub.s32 2, %v11530_v23  ;;  %v3175_v55 = vsub.s32 3, %v11530_v23 }
 0x9e6   :  { %v2555_v63 = vld [vmem:[#allocation7 + $0x7] ss:$8 sm:$0xf] }
 0x9e7   :  { %5247 = vrsqrt.f32 %v3125_v44  ;;  %v2557_v44 = vld [vmem:[#allocation7 + $0x20] ss:$8 sm:$0xf] }
 0x9ef   :  { %v5242_v59 = vpop.eup %5241 }
 0x9f1   :  { %v5244_v29 = vpop.eup %5243 }
 0x9f2   :  { %v5246_v62 = vpop.eup %5245  ;;  %v3134_v17 = vcombine.low %v5242_v59, %v5244_v29  ;;  %v11532_v59 = vld [vmem:[#allocation25_spill] sm:$0xff] }
 0x9f4   :  { %v5248_v53 = vpop.eup %5247  ;;  %v3142_v28 = vrot.slane %v3134_v17, %v11529_v54 }
 0x9f5   :  { %v3135_v38 = vcombine.low %v5246_v62, %v5248_v53  ;;  %v8624_v53 = vrot.slane %v2557_v44, %v11531_v8 }
 0x9f7   :  { %v3149_v51 = vrot.slane %v3135_v38, %v11529_v54  ;;  %11533 = vst [vmem:[#allocation101_spill] sm:$0xff] %v8624_v53  ;;  %v8626_v38 = vrot.slane %v2555_v63, %v3171_v26  ;;  %v11559_v53 = vld [vmem:[#allocation41_spill] sm:$0xff] }
 0x9f9   :  { %v3150_v13 = vcombine.low %v3142_v28, %v3149_v51  ;;  %v8629_v28 = vrot.slane %v2555_v63, %v11532_v59  ;;  %v8631_v51 = vrot.slane %v2557_v44, %v3171_v26 }
 0x9fb   :  { %v3157_v24 = vrot.slane %v3150_v13, %v11529_v54  ;;  %v8621_v54 = vrot.slane %v2555_v63, %v11531_v8  ;;  %11534 = vst [vmem:[#allocation96_spill] sm:$0xff] %v8631_v51  ;;  %v8633_v13 = vrot.slane %v2555_v63, %v3175_v55  ;;  %v11547_v63 = vld [vmem:[#allocation50_spill] sm:$0xff]  ;;  %v11557_v51 = vld [vmem:[#allocation31_spill] sm:$0xff] }
 0x9fd   :  { %v3159_v49 = vmul.f32 %v3157_v24, %v2553_v16  ;;  %v8636_v24 = vrot.slane %v2557_v44, %v11532_v59  ;;  %v8638_v16 = vrot.slane %v2557_v44, %v3175_v55  ;;  %v11549_v44 = vld [vmem:[#allocation14_spill] sm:$0xff] }
 0x9ff   :  { %v8611_v15 = vrot.slane %v3159_v49, %v11531_v8  ;;  %v8614_v29 = vrot.slane %v3159_v49, %v11532_v59  ;;  %v8616_v17 = vrot.slane %v3159_v49, %v3171_v26  ;;  %v8618_v62 = vrot.slane %v3159_v49, %v3175_v55  ;;  %11535 = vst [vmem:[#allocation99_spill] sm:$0xff] %v8636_v24  ;;  %v11551_v59 = vld [vmem:[#allocation15_spill] sm:$0xff]  ;;  %v11555_v24 = vld [vmem:[#allocation18_spill] sm:$0xff] }
 0xa00   :  { %11536 = vst [vmem:[#allocation94_spill] sm:$0xff] %v8638_v16  ;;  %v11553_v16 = vld [vmem:[#allocation23_spill] sm:$0xff] }
 0xa01   :  { %v8642_v23 = vmul.f32 %v8611_v15, %v7862_v7  ;;  %v8646_v8 = vmul.f32 %v8614_v29, %v8299_v61  ;;  %v8650_v49 = vmul.f32 %v8616_v17, %v11464_v57  ;;  %v8654_v26 = vmul.f32 %v8618_v62, %v8325_v32 }
 0xa02   :  { %v8658_v55 = vmul.f32 %v8611_v15, %v7865_v20  ;;  %v8662_v7 = vmul.f32 %v8614_v29, %v8283_v4  ;;  %v8666_v61 = vmul.f32 %v8616_v17, %v7970_v60  ;;  %v8670_v57 = vmul.f32 %v8618_v62, %v8309_v48 }
 0xa03   :  { %v8674_v32 = vmul.f32 %v8611_v15, %v7868_v43  ;;  %v8678_v20 = vmul.f32 %v8614_v29, %v8267_v21  ;;  %v8682_v4 = vmul.f32 %v8616_v17, %v7974_v33  ;;  %v8686_v60 = vmul.f32 %v8618_v62, %v8293_v39 }
 0xa04   :  { %v8690_v48 = vmul.f32 %v8611_v15, %v7871_v34  ;;  %v8694_v43 = vmul.f32 %v8614_v29, %v8251_v30  ;;  %v8698_v21 = vmul.f32 %v8616_v17, %v7978_v19  ;;  %v8702_v33 = vmul.f32 %v8618_v62, %v8277_v50 }
 0xa05   :  { %v8706_v39 = vmul.f32 %v8611_v15, %v7874_v35  ;;  %v8710_v34 = vmul.f32 %v8614_v29, %v8235_v41  ;;  %v8714_v30 = vmul.f32 %v8616_v17, %v7989_v36  ;;  %v8718_v19 = vmul.f32 %v8618_v62, %v8261_v1 }
 0xa06   :  { %v8722_v50 = vmul.f32 %v8611_v15, %v7877_v58  ;;  %v8726_v35 = vmul.f32 %v8614_v29, %v8219_v0  ;;  %v8730_v41 = vmul.f32 %v8616_v17, %v7993_v52  ;;  %v8734_v36 = vmul.f32 %v8618_v62, %v8245_v56 }
 0xa07   :  { %v8738_v1 = vmul.f32 %v8611_v15, %v7880_v5  ;;  %v8742_v58 = vmul.f32 %v8614_v29, %v8203_v18  ;;  %v8746_v0 = vmul.f32 %v8616_v17, %v7997_v47  ;;  %v8750_v52 = vmul.f32 %v8618_v62, %v8229_v6 }
 0xa08   :  { %11537 = vst [vmem:[#allocation97_spill] sm:$0xff] %v8722_v50  ;;  %11538 = vst [vmem:[#allocation92_spill] sm:$0xff] %v8726_v35  ;;  %v8754_v56 = vmul.f32 %v8611_v15, %v7883_v27  ;;  %v8758_v5 = vmul.f32 %v8614_v29, %v8187_v31  ;;  %v8762_v18 = vmul.f32 %v8616_v17, %v11547_v63  ;;  %v11642_v35 = vld [vmem:[#allocation20_spill] sm:$0xff]  ;;  %v11644_v50 = vld [vmem:[#allocation117_spill] sm:$0xff] }
 0xa09   :  { %11539 = vst [vmem:[#allocation95_spill] sm:$0xff] %v8730_v41  ;;  %11540 = vst [vmem:[#allocation90_spill] sm:$0xff] %v8734_v36  ;;  %v8766_v47 = vmul.f32 %v8618_v62, %v11549_v44  ;;  %v8770_v6 = vmul.f32 %v8611_v15, %v11551_v59  ;;  %v8774_v27 = vmul.f32 %v8614_v29, %v11553_v16  ;;  %v11638_v36 = vld [vmem:[#allocation104_spill] sm:$0xff]  ;;  %v11640_v41 = vld [vmem:[#allocation109_spill] sm:$0xff] }
 0xa0a   :  { %11541 = vst [vmem:[#allocation93_spill] sm:$0xff] %v8738_v1  ;;  %11542 = vst [vmem:[#allocation88_spill] sm:$0xff] %v8742_v58  ;;  %v8778_v31 = vmul.f32 %v8616_v17, %v11555_v24  ;;  %v8782_v63 = vmul.f32 %v8618_v62, %v11557_v51  ;;  %v8786_v44 = vmul.f32 %v8611_v15, %v11559_v53  ;;  %v11634_v58 = vld [vmem:[#allocation106_spill] sm:$0xff]  ;;  %v11636_v1 = vld [vmem:[#allocation75_spill] sm:$0xff] }
 0xa0b   :  { %11543 = vst [vmem:[#allocation91_spill] sm:$0xff] %v8746_v0  ;;  %11544 = vst [vmem:[#allocation86_spill] sm:$0xff] %v8750_v52  ;;  %v11632_v52 = vld [vmem:[#allocation102_spill] sm:$0xff]  ;;  %v11633_v0 = vld [vmem:[#allocation76_spill] sm:$0xff] }
 0xa0c   :  { %11545 = vst [vmem:[#allocation89_spill] sm:$0xff] %v8754_v56  ;;  %11546 = vst [vmem:[#allocation84_spill] sm:$0xff] %v8758_v5  ;;  %v11630_v5 = vld [vmem:[#allocation108_spill] sm:$0xff]  ;;  %v11631_v56 = vld [vmem:[#allocation77_spill] sm:$0xff] }
 0xa0d   :  { %11548 = vst [vmem:[#allocation60_spill] sm:$0xff] %v8762_v18  ;;  %11550 = vst [vmem:[#allocation87_spill] sm:$0xff] %v8766_v47  ;;  %v11561_v47 = vld [vmem:[#allocation54_spill] sm:$0xff]  ;;  %v11629_v18 = vld [vmem:[#allocation72_spill] sm:$0xff] }
 0xa0e   :  { %11552 = vst [vmem:[#allocation81_spill] sm:$0xff] %v8770_v6  ;;  %11554 = vst [vmem:[#allocation56_spill] sm:$0xff] %v8774_v27  ;;  %v8790_v59 = vmul.f32 %v8614_v29, %v11561_v47  ;;  %v11563_v6 = vld [vmem:[#allocation74_spill] sm:$0xff]  ;;  %v11565_v27 = vld [vmem:[#allocation55_spill] sm:$0xff] }
 0xa0f   :  { %11556 = vst [vmem:[#allocation85_spill] sm:$0xff] %v8778_v31  ;;  %11558 = vst [vmem:[#allocation83_spill] sm:$0xff] %v8782_v63  ;;  %v8794_v16 = vmul.f32 %v8616_v17, %v11563_v6  ;;  %v8798_v24 = vmul.f32 %v8618_v62, %v11565_v27  ;;  %v11567_v31 = vld [vmem:[#allocation48_spill] sm:$0xff]  ;;  %v11569_v63 = vld [vmem:[#allocation58_spill] sm:$0xff] }
 0xa10   :  { %11560 = vst [vmem:[#allocation52_spill] sm:$0xff] %v8786_v44  ;;  %11562 = vst [vmem:[#allocation82_spill] sm:$0xff] %v8790_v59  ;;  %v8802_v51 = vmul.f32 %v8611_v15, %v11567_v31  ;;  %v8806_v53 = vmul.f32 %v8614_v29, %v11569_v63  ;;  %v11571_v44 = vld [vmem:[#allocation47_spill] sm:$0xff] }
 0xa11   :  { %11564 = vst [vmem:[#allocation80_spill] sm:$0xff] %v8794_v16  ;;  %11566 = vst [vmem:[#allocation61_spill] sm:$0xff] %v8798_v24  ;;  %v8810_v47 = vmul.f32 %v8616_v17, %v11571_v44  ;;  %v11573_v59 = vld [vmem:[#allocation59_spill] sm:$0xff]  ;;  %v11577_v24 = vld [vmem:[#allocation62_spill] sm:$0xff] }
 0xa12   :  { %11568 = vst [vmem:[#allocation29_spill] sm:$0xff] %v8802_v51  ;;  %11570 = vst [vmem:[#allocation26_spill] sm:$0xff] %v8806_v53  ;;  %v8814_v6 = vmul.f32 %v8618_v62, %v11573_v59  ;;  %v11575_v16 = vld [vmem:[#allocation19_spill] sm:$0xff]  ;;  %v8822_v31 = vmul.f32 %v8614_v29, %v11577_v24 }
 0xa13   :  { %11572 = vst [vmem:[#allocation12_spill] sm:$0xff] %v8810_v47  ;;  %v8818_v27 = vmul.f32 %v8611_v15, %v11575_v16  ;;  %v11579_v51 = vld [vmem:[#allocation51_spill] sm:$0xff]  ;;  %v11583_v47 = vld [vmem:[#allocation36_spill] sm:$0xff] }
 0xa14   :  { %11574 = vst [vmem:[#allocation13_spill] sm:$0xff] %v8814_v6  ;;  %11578 = vst [vmem:[#allocation50_spill] sm:$0xff] %v8822_v31  ;;  %v8826_v63 = vmul.f32 %v8616_v17, %v11579_v51  ;;  %v11581_v53 = vld [vmem:[#allocation63_spill] sm:$0xff]  ;;  %v8834_v59 = vmul.f32 %v8611_v15, %v11583_v47  ;;  %v11585_v6 = vld [vmem:[#allocation66_spill] sm:$0xff] }
 0xa15   :  { %11576 = vst [vmem:[#allocation25_spill] sm:$0xff] %v8818_v27  ;;  %v8830_v44 = vmul.f32 %v8618_v62, %v11581_v53  ;;  %v8838_v16 = vmul.f32 %v8614_v29, %v11585_v6  ;;  %v11587_v27 = vld [vmem:[#allocation43_spill] sm:$0xff] }
 0xa16   :  { %11580 = vst [vmem:[#allocation14_spill] sm:$0xff] %v8826_v63  ;;  %11584 = vst [vmem:[#allocation23_spill] sm:$0xff] %v8834_v59  ;;  %v8842_v24 = vmul.f32 %v8616_v17, %v11587_v27  ;;  %v11589_v31 = vld [vmem:[#allocation67_spill] sm:$0xff]  ;;  %v11591_v63 = vld [vmem:[#allocation45_spill] sm:$0xff] }
 0xa17   :  { %11582 = vst [vmem:[#allocation15_spill] sm:$0xff] %v8830_v44  ;;  %11586 = vst [vmem:[#allocation18_spill] sm:$0xff] %v8838_v16  ;;  %v8846_v51 = vmul.f32 %v8618_v62, %v11589_v31  ;;  %v8850_v53 = vmul.f32 %v8611_v15, %v11591_v63  ;;  %v11593_v44 = vld [vmem:[#allocation16_spill] sm:$0xff]  ;;  %v11595_v59 = vld [vmem:[#allocation27_spill] sm:$0xff] }
 0xa18   :  { %11588 = vst [vmem:[#allocation31_spill] sm:$0xff] %v8842_v24  ;;  %v8854_v47 = vmul.f32 %v8614_v29, %v11593_v44  ;;  %v8858_v6 = vmul.f32 %v8616_v17, %v11595_v59  ;;  %v11597_v16 = vld [vmem:[#allocation71_spill] sm:$0xff]  ;;  %v11599_v24 = vld [vmem:[#allocation49_spill] sm:$0xff] }
 0xa19   :  { %11590 = vst [vmem:[#allocation41_spill] sm:$0xff] %v8846_v51  ;;  %11592 = vst [vmem:[#allocation54_spill] sm:$0xff] %v8850_v53  ;;  %v8862_v27 = vmul.f32 %v8618_v62, %v11597_v16  ;;  %v8866_v31 = vmul.f32 %v8611_v15, %v11599_v24  ;;  %v11601_v51 = vld [vmem:[#allocation40_spill] sm:$0xff]  ;;  %v11603_v53 = vld [vmem:[#allocation53_spill] sm:$0xff] }
 0xa1a   :  { %11594 = vst [vmem:[#allocation74_spill] sm:$0xff] %v8854_v47  ;;  %11596 = vst [vmem:[#allocation55_spill] sm:$0xff] %v8858_v6  ;;  %v8870_v63 = vmul.f32 %v8614_v29, %v11601_v51  ;;  %v8874_v44 = vmul.f32 %v8616_v17, %v11603_v53  ;;  %v11605_v47 = vld [vmem:[#allocation79_spill] sm:$0xff]  ;;  %v11607_v6 = vld [vmem:[#allocation28_spill] sm:$0xff] }
 0xa1b   :  { %11598 = vst [vmem:[#allocation48_spill] sm:$0xff] %v8862_v27  ;;  %11600 = vst [vmem:[#allocation58_spill] sm:$0xff] %v8866_v31  ;;  %v8878_v59 = vmul.f32 %v8618_v62, %v11605_v47  ;;  %v8882_v16 = vmul.f32 %v8611_v15, %v11607_v6  ;;  %v11609_v27 = vld [vmem:[#allocation78_spill] sm:$0xff]  ;;  %v11611_v31 = vld [vmem:[#allocation57_spill] sm:$0xff]  ;;  %v8898_v47 = vmul.f32 %v8611_v15, %v11527_v2 }
 0xa1c   :  { %11602 = vst [vmem:[#allocation47_spill] sm:$0xff] %v8870_v63  ;;  %11604 = vst [vmem:[#allocation59_spill] sm:$0xff] %v8874_v44  ;;  %v8886_v24 = vmul.f32 %v8614_v29, %v11609_v27  ;;  %v8890_v51 = vmul.f32 %v8616_v17, %v11611_v31  ;;  %v11613_v63 = vld [vmem:[#allocation70_spill] sm:$0xff]  ;;  %v8902_v6 = vmul.f32 %v8614_v29, %v8555_v46  ;;  %v11628_v44 = vld [vmem:[#allocation100_spill] sm:$0xff] }
 0xa1d   :  { %11606 = vst [vmem:[#allocation19_spill] sm:$0xff] %v8878_v59  ;;  %11608 = vst [vmem:[#allocation62_spill] sm:$0xff] %v8882_v16  ;;  %v8894_v53 = vmul.f32 %v8618_v62, %v11613_v63  ;;  %v8906_v27 = vmul.f32 %v8616_v17, %v8587_v10  ;;  %v8910_v31 = vmul.f32 %v8618_v62, %v8581_v42  ;;  %v11626_v16 = vld [vmem:[#allocation107_spill] sm:$0xff]  ;;  %v11627_v59 = vld [vmem:[#allocation73_spill] sm:$0xff] }
 0xa1e   :  { %11610 = vst [vmem:[#allocation51_spill] sm:$0xff] %v8886_v24  ;;  %11612 = vst [vmem:[#allocation63_spill] sm:$0xff] %v8890_v51  ;;  %v8914_v63 = vmul.f32 %v8611_v15, %v11523_v22  ;;  %v8918_v2 = vmul.f32 %v8614_v29, %v8539_v40  ;;  %v8922_v46 = vmul.f32 %v8616_v17, %v8571_v12  ;;  %v11624_v51 = vld [vmem:[#allocation103_spill] sm:$0xff]  ;;  %v11625_v24 = vld [vmem:[#allocation68_spill] sm:$0xff] }
 0xa1f   :  { %11614 = vst [vmem:[#allocation36_spill] sm:$0xff] %v8894_v53  ;;  %11615 = vst [vmem:[#allocation66_spill] sm:$0xff] %v8902_v6  ;;  %v8926_v10 = vmul.f32 %v8618_v62, %v8565_v3  ;;  %v8930_v42 = vmul.f32 %v8611_v15, %v11520_v25  ;;  %v8934_v22 = vmul.f32 %v8614_v29, %v8523_v11  ;;  %v11622_v6 = vld [vmem:[#allocation105_spill] sm:$0xff] }
 0xa20   :  { %11616 = vst [vmem:[#allocation43_spill] sm:$0xff] %v8910_v31  ;;  %11617 = vst [vmem:[#allocation67_spill] sm:$0xff] %v8918_v2  ;;  %v8938_v40 = vmul.f32 %v8616_v17, %v11526_v37  ;;  %v8942_v12 = vmul.f32 %v8618_v62, %v8549_v9  ;;  %v8946_v3 = vmul.f32 %v8611_v15, %v11517_v45  ;;  %v11620_v2 = vld [vmem:[#allocation98_spill] sm:$0xff]  ;;  %v11621_v31 = vld [vmem:[#allocation64_spill] sm:$0xff] }
 0xa21   :  { %11618 = vst [vmem:[#allocation45_spill] sm:$0xff] %v8926_v10  ;;  %v8950_v25 = vmul.f32 %v8614_v29, %v8507_v14  ;;  %v11619_v10 = vld [vmem:[#allocation65_spill] sm:$0xff]  ;;  %v8958_v37 = vmul.f32 %v8618_v62, %v11620_v2  ;;  %v8962_v9 = vmul.f32 %v8611_v15, %v11621_v31  ;;  %v8966_v45 = vmul.f32 %v8614_v29, %v11622_v6 }
 0xa22   :  { %v8954_v11 = vmul.f32 %v8616_v17, %v11619_v10  ;;  %v11623_v53 = vld [vmem:[#allocation69_spill] sm:$0xff]  ;;  %v8974_v10 = vmul.f32 %v8618_v62, %v11624_v51  ;;  %v8978_v2 = vmul.f32 %v8611_v15, %v11625_v24  ;;  %v8982_v31 = vmul.f32 %v8614_v29, %v11626_v16 }
 0xa23   :  { %v8970_v14 = vmul.f32 %v8616_v17, %v11623_v53  ;;  %v8986_v6 = vmul.f32 %v8616_v17, %v11627_v59  ;;  %v8990_v53 = vmul.f32 %v8618_v62, %v11628_v44  ;;  %v8994_v51 = vmul.f32 %v8611_v15, %v11629_v18 }
 0xa24   :  { %v8998_v24 = vmul.f32 %v8614_v29, %v11630_v5  ;;  %v9002_v16 = vmul.f32 %v8616_v17, %v11631_v56  ;;  %v9006_v59 = vmul.f32 %v8618_v62, %v11632_v52  ;;  %v9010_v44 = vmul.f32 %v8611_v15, %v11633_v0 }
 0xa25   :  { %v9014_v18 = vmul.f32 %v8614_v29, %v11634_v58  ;;  %v9018_v5 = vmul.f32 %v8616_v17, %v11636_v1  ;;  %v9022_v56 = vmul.f32 %v8618_v62, %v11638_v36  ;;  %v9026_v52 = vmul.f32 %v8611_v15, %v11640_v41 }
 0xa26   :  { %v9030_v0 = vmul.f32 %v8614_v29, %v11642_v35  ;;  %v9034_v58 = vmul.f32 %v8616_v17, %v11644_v50 }
 0xa27   :  { %11635 = vst [vmem:[#allocation16_spill] sm:$0xff] %v9014_v18  ;;  %11637 = vst [vmem:[#allocation27_spill] sm:$0xff] %v9018_v5  ;;  %v11646_v18 = vld [vmem:[#allocation42_spill] sm:$0xff] }
 0xa28   :  { %11639 = vst [vmem:[#allocation71_spill] sm:$0xff] %v9022_v56  ;;  %11641 = vst [vmem:[#allocation49_spill] sm:$0xff] %v9026_v52  ;;  %v9038_v1 = vmul.f32 %v8618_v62, %v11646_v18  ;;  %v11648_v5 = vld [vmem:[#allocation110_spill] sm:$0xff] }
 0xa29   :  { %11643 = vst [vmem:[#allocation40_spill] sm:$0xff] %v9030_v0  ;;  %11645 = vst [vmem:[#allocation53_spill] sm:$0xff] %v9034_v58  ;;  %v9042_v36 = vmul.f32 %v8611_v15, %v11648_v5  ;;  %v11650_v56 = vld [vmem:[#allocation38_spill] sm:$0xff]  ;;  %v11656_v58 = vld [vmem:[#allocation111_spill] sm:$0xff] }
 0xa2a   :  { %11647 = vst [vmem:[#allocation79_spill] sm:$0xff] %v9038_v1  ;;  %v9046_v41 = vmul.f32 %v8614_v29, %v11650_v56  ;;  %v11652_v52 = vld [vmem:[#allocation118_spill] sm:$0xff]  ;;  %v9058_v18 = vmul.f32 %v8611_v15, %v11656_v58  ;;  %v11658_v1 = vld [vmem:[#allocation37_spill] sm:$0xff] }
 0xa2b   :  { %11649 = vst [vmem:[#allocation28_spill] sm:$0xff] %v9042_v36  ;;  %v9050_v35 = vmul.f32 %v8616_v17, %v11652_v52  ;;  %v11654_v0 = vld [vmem:[#allocation46_spill] sm:$0xff]  ;;  %v9062_v5 = vmul.f32 %v8614_v29, %v11658_v1  ;;  %v11660_v36 = vld [vmem:[#allocation119_spill] sm:$0xff] }
 0xa2c   :  { %11651 = vst [vmem:[#allocation78_spill] sm:$0xff] %v9046_v41  ;;  %v9054_v50 = vmul.f32 %v8618_v62, %v11654_v0  ;;  %11657 = vst [vmem:[#allocation65_spill] sm:$0xff] %v9058_v18  ;;  %v9066_v56 = vmul.f32 %v8616_v17, %v11660_v36  ;;  %v11662_v41 = vld [vmem:[#allocation22_spill] sm:$0xff]  ;;  %v11668_v18 = vld [vmem:[#allocation120_spill] sm:$0xff] }
 0xa2d   :  { %11653 = vst [vmem:[#allocation57_spill] sm:$0xff] %v9050_v35  ;;  %11659 = vst [vmem:[#allocation98_spill] sm:$0xff] %v9062_v5  ;;  %v9070_v52 = vmul.f32 %v8618_v62, %v11662_v41  ;;  %v11664_v35 = vld [vmem:[#allocation112_spill] sm:$0xff]  ;;  %v9082_v1 = vmul.f32 %v8616_v17, %v11668_v18  ;;  %v11670_v5 = vld [vmem:[#allocation21_spill] sm:$0xff] }
 0xa2e   :  { %11655 = vst [vmem:[#allocation70_spill] sm:$0xff] %v9054_v50  ;;  %11661 = vst [vmem:[#allocation64_spill] sm:$0xff] %v9066_v56  ;;  %v9074_v0 = vmul.f32 %v8611_v15, %v11664_v35  ;;  %v11666_v50 = vld [vmem:[#allocation34_spill] sm:$0xff]  ;;  %v9086_v36 = vmul.f32 %v8618_v62, %v11670_v5  ;;  %v11672_v56 = vld [vmem:[#allocation113_spill] sm:$0xff] }
 0xa2f   :  { %11663 = vst [vmem:[#allocation105_spill] sm:$0xff] %v9070_v52  ;;  %v9078_v58 = vmul.f32 %v8614_v29, %v11666_v50  ;;  %11669 = vst [vmem:[#allocation68_spill] sm:$0xff] %v9082_v1  ;;  %v9090_v41 = vmul.f32 %v8611_v15, %v11672_v56  ;;  %v11674_v52 = vld [vmem:[#allocation32_spill] sm:$0xff]  ;;  %v11680_v1 = vld [vmem:[#allocation114_spill] sm:$0xff] }
 0xa30   :  { %11665 = vst [vmem:[#allocation69_spill] sm:$0xff] %v9074_v0  ;;  %11671 = vst [vmem:[#allocation107_spill] sm:$0xff] %v9086_v36  ;;  %v9094_v35 = vmul.f32 %v8614_v29, %v11674_v52  ;;  %v11676_v0 = vld [vmem:[#allocation121_spill] sm:$0xff]  ;;  %v9106_v5 = vmul.f32 %v8611_v15, %v11680_v1  ;;  %v11682_v36 = vld [vmem:[#allocation30_spill] sm:$0xff] }
 0xa31   :  { %11667 = vst [vmem:[#allocation103_spill] sm:$0xff] %v9078_v58  ;;  %11673 = vst [vmem:[#allocation73_spill] sm:$0xff] %v9090_v41  ;;  %v9098_v50 = vmul.f32 %v8616_v17, %v11676_v0  ;;  %v11678_v58 = vld [vmem:[#allocation39_spill] sm:$0xff]  ;;  %v9110_v56 = vmul.f32 %v8614_v29, %v11682_v36  ;;  %v11684_v41 = vld [vmem:[#allocation122_spill] sm:$0xff] }
 0xa32   :  { %11675 = vst [vmem:[#allocation100_spill] sm:$0xff] %v9094_v35  ;;  %v9102_v18 = vmul.f32 %v8618_v62, %v11678_v58  ;;  %11681 = vst [vmem:[#allocation77_spill] sm:$0xff] %v9106_v5  ;;  %v9114_v52 = vmul.f32 %v8616_v17, %v11684_v41  ;;  %v11686_v35 = vld [vmem:[#allocation17_spill] sm:$0xff]  ;;  %v11692_v5 = vld [vmem:[#allocation123_spill] sm:$0xff] }
 0xa33   :  { %11677 = vst [vmem:[#allocation72_spill] sm:$0xff] %v9098_v50  ;;  %11683 = vst [vmem:[#allocation102_spill] sm:$0xff] %v9110_v56  ;;  %v9118_v0 = vmul.f32 %v8618_v62, %v11686_v35  ;;  %v11688_v50 = vld [vmem:[#allocation115_spill] sm:$0xff]  ;;  %v9130_v36 = vmul.f32 %v8616_v17, %v11692_v5 }
 0xa34   :  { %11679 = vst [vmem:[#allocation108_spill] sm:$0xff] %v9102_v18  ;;  %11685 = vst [vmem:[#allocation76_spill] sm:$0xff] %v9114_v52  ;;  %v9122_v58 = vmul.f32 %v8611_v15, %v11688_v50  ;;  %v11690_v18 = vld [vmem:[#allocation24_spill] sm:$0xff]  ;;  %v11693_v56 = vld [vmem:[#allocation35_spill] sm:$0xff] }
 0xa35   :  { %11687 = vst [vmem:[#allocation106_spill] sm:$0xff] %v9118_v0  ;;  %v9126_v1 = vmul.f32 %v8614_v29, %v11690_v18  ;;  %v9134_v41 = vmul.f32 %v8618_v62, %v11693_v56  ;;  %v11694_v52 = vld [vmem:[#allocation116_spill] sm:$0xff]  ;;  %v9154_v56 = vadd.f32 %v8621_v54, %v8642_v23  ;;  %v9174_v23 = vadd.f32 %v8629_v28, %v8662_v7 }
 0xa36   :  { %11689 = vst [vmem:[#allocation75_spill] sm:$0xff] %v9122_v58  ;;  %v9138_v35 = vmul.f32 %v8611_v15, %v11694_v52  ;;  %v11695_v0 = vld [vmem:[#allocation44_spill] sm:$0xff]  ;;  %v9158_v15 = vadd.f32 %v8629_v28, %v8646_v8  ;;  %v9178_v8 = vadd.f32 %v8626_v38, %v8666_v61  ;;  %v9194_v7 = vadd.f32 %v8626_v38, %v8682_v4 }
 0xa37   :  { %11691 = vst [vmem:[#allocation104_spill] sm:$0xff] %v9126_v1  ;;  %v9142_v50 = vmul.f32 %v8614_v29, %v11695_v0  ;;  %v11696_v58 = vld [vmem:[#allocation124_spill] sm:$0xff]  ;;  %v11697_v1 = vld [vmem:[#allocation33_spill] sm:$0xff]  ;;  %v9162_v29 = vadd.f32 %v8626_v38, %v8650_v49  ;;  %v9182_v49 = vadd.f32 %v8633_v13, %v8670_v57  ;;  %v9198_v61 = vadd.f32 %v8633_v13, %v8686_v60  ;;  %v11723_v0 = vld [vmem:[#allocation27_spill] sm:$0xff] }
 0xa38   :  { %v9146_v18 = vmul.f32 %v8616_v17, %v11696_v58  ;;  %v9150_v5 = vmul.f32 %v8618_v62, %v11697_v1  ;;  %v9166_v17 = vadd.f32 %v8633_v13, %v8654_v26  ;;  %v9170_v62 = vadd.f32 %v8621_v54, %v8658_v55  ;;  %11701 = vst [vmem:[#allocation42_spill] sm:$0xff] %v9194_v7  ;;  %v11721_v52 = vld [vmem:[#allocation16_spill] sm:$0xff]  ;;  %v11724_v58 = vld [vmem:[#allocation71_spill] sm:$0xff]  ;;  %v11726_v1 = vld [vmem:[#allocation49_spill] sm:$0xff] }
 0xa39   :  { %11699 = vst [vmem:[#allocation20_spill] sm:$0xff] %v9182_v49  ;;  %v9186_v26 = vadd.f32 %v8621_v54, %v8674_v32  ;;  %v9190_v55 = vadd.f32 %v8629_v28, %v8678_v20  ;;  %11702 = vst [vmem:[#allocation110_spill] sm:$0xff] %v9198_v61  ;;  %v9202_v57 = vadd.f32 %v8621_v54, %v8690_v48  ;;  %v11809_v7 = vld [vmem:[#allocation80_spill] sm:$0xff]  ;;  %v11823_v61 = vld [vmem:[#allocation14_spill] sm:$0xff]  ;;  %vm3458_vm12 = vcmp.ge.f32.partialorder %v9154_v56, 0.0 }
 0xa3a   :  { %11698 = vst [vmem:[#allocation109_spill] sm:$0xff] %v9166_v17  ;;  %v9206_v32 = vadd.f32 %v8629_v28, %v8694_v43  ;;  %v9210_v20 = vadd.f32 %v8626_v38, %v8698_v21  ;;  %v9214_v4 = vadd.f32 %v8633_v13, %v8702_v33  ;;  %v9218_v60 = vadd.f32 %v8621_v54, %v8706_v39  ;;  %v11845_v49 = vld [vmem:[#allocation59_spill] sm:$0xff] }
 0xa3b   :  { %11700 = vst [vmem:[#allocation117_spill] sm:$0xff] %v9190_v55  ;;  %v9222_v48 = vadd.f32 %v8629_v28, %v8710_v34  ;;  %v9226_v43 = vadd.f32 %v8621_v54, %v8898_v47  ;;  %v9230_v21 = vadd.f32 %v8626_v38, %v8906_v27  ;;  %v9234_v33 = vadd.f32 %v8626_v38, %v8714_v30  ;;  %v11837_v55 = vld [vmem:[#allocation55_spill] sm:$0xff] }
 0xa3c   :  { %11703 = vst [vmem:[#allocation38_spill] sm:$0xff] %v9206_v32  ;;  %11704 = vst [vmem:[#allocation118_spill] sm:$0xff] %v9210_v20  ;;  %v9238_v39 = vadd.f32 %v8633_v13, %v8718_v19  ;;  %v9242_v34 = vadd.f32 %v8621_v54, %v8914_v63  ;;  %v9246_v47 = vadd.f32 %v8626_v38, %v8922_v46  ;;  %v11802_v20 = vld [vmem:[#allocation85_spill] sm:$0xff]  ;;  %v11830_v32 = vld [vmem:[#allocation31_spill] sm:$0xff]  ;;  %vm3462_vm13 = vcmp.ge.f32.partialorder %v9170_v62, 0.0 }
 0xa3d   :  { %11705 = vst [vmem:[#allocation46_spill] sm:$0xff] %v9214_v4  ;;  %11706 = vst [vmem:[#allocation111_spill] sm:$0xff] %v9222_v48  ;;  %v9250_v27 = vadd.f32 %v8621_v54, %v8930_v42  ;;  %v9254_v30 = vadd.f32 %v8629_v28, %v8934_v22  ;;  %v9258_v19 = vadd.f32 %v8626_v38, %v8938_v40  ;;  %v11795_v48 = vld [vmem:[#allocation60_spill] sm:$0xff]  ;;  %v11852_v17 = vld [vmem:[#allocation63_spill] sm:$0xff]  ;;  %vm3460_vm2 = vcmp.ge.f32.partialorder %v9162_v29, 0.0 }
 0xa3e   :  { %11707 = vst [vmem:[#allocation37_spill] sm:$0xff] %v9230_v21  ;;  %11708 = vst [vmem:[#allocation119_spill] sm:$0xff] %v9234_v33  ;;  %v9262_v63 = vadd.f32 %v8633_v13, %v8942_v12  ;;  %v9266_v46 = vadd.f32 %v8621_v54, %v8946_v3  ;;  %v9270_v42 = vadd.f32 %v8629_v28, %v8950_v25  ;;  %v11764_v21 = vld [vmem:[#allocation76_spill] sm:$0xff]  ;;  %v11768_v33 = vld [vmem:[#allocation75_spill] sm:$0xff]  ;;  %vm3464_vm1 = vcmp.ge.f32.partialorder %v9178_v8, 0.0 }
 0xa3f   :  { %11709 = vst [vmem:[#allocation22_spill] sm:$0xff] %v9238_v39  ;;  %11710 = vst [vmem:[#allocation112_spill] sm:$0xff] %v9246_v47  ;;  %v9274_v22 = vadd.f32 %v8626_v38, %v8954_v11  ;;  %v9278_v40 = vadd.f32 %v8633_v13, %v8958_v37  ;;  %v9282_v12 = vadd.f32 %v8621_v54, %v8962_v9  ;;  %v11760_v47 = vld [vmem:[#allocation77_spill] sm:$0xff]  ;;  %v11788_v39 = vld [vmem:[#allocation91_spill] sm:$0xff]  ;;  %vm3466_vm3 = vcmp.ge.f32.partialorder %v9186_v26, 0.0 }
 0xa40   :  { %11711 = vst [vmem:[#allocation34_spill] sm:$0xff] %v9254_v30  ;;  %11712 = vst [vmem:[#allocation120_spill] sm:$0xff] %v9262_v63  ;;  %v9286_v3 = vadd.f32 %v8629_v28, %v8966_v45  ;;  %v9290_v25 = vadd.f32 %v8626_v38, %v8970_v14  ;;  %v9294_v11 = vadd.f32 %v8633_v13, %v8974_v10  ;;  %v11748_v63 = vld [vmem:[#allocation68_spill] sm:$0xff]  ;;  %vm3470_vm4 = vcmp.ge.f32.partialorder %v9202_v57, 0.0 }
 0xa41   :  { %11713 = vst [vmem:[#allocation21_spill] sm:$0xff] %v9270_v42  ;;  %11714 = vst [vmem:[#allocation113_spill] sm:$0xff] %v9278_v40  ;;  %v9298_v37 = vadd.f32 %v8621_v54, %v8978_v2  ;;  %v9302_v9 = vadd.f32 %v8629_v28, %v8982_v31  ;;  %v9306_v45 = vadd.f32 %v8626_v38, %v8986_v6  ;;  %v11745_v40 = vld [vmem:[#allocation69_spill] sm:$0xff]  ;;  %v11756_v30 = vld [vmem:[#allocation72_spill] sm:$0xff]  ;;  %vm3459_vm15 = vcmp.ge.f32.partialorder %v9158_v15, 0.0 }
 0xa42   :  { %11715 = vst [vmem:[#allocation32_spill] sm:$0xff] %v9286_v3  ;;  %11716 = vst [vmem:[#allocation121_spill] sm:$0xff] %v9294_v11  ;;  %v9310_v14 = vadd.f32 %v8633_v13, %v8990_v53  ;;  %v9314_v10 = vadd.f32 %v8621_v54, %v8994_v51  ;;  %v9318_v2 = vadd.f32 %v8629_v28, %v8998_v24  ;;  %v11735_v11 = vld [vmem:[#allocation57_spill] sm:$0xff]  ;;  %v11742_v3 = vld [vmem:[#allocation64_spill] sm:$0xff]  ;;  %vm3463_vm9 = vcmp.ge.f32.partialorder %v9174_v23, 0.0 }
 0xa43   :  { %11717 = vst [vmem:[#allocation39_spill] sm:$0xff] %v9302_v9  ;;  %v9322_v31 = vadd.f32 %v8626_v38, %v9002_v16  ;;  %v9326_v6 = vadd.f32 %v8633_v13, %v9006_v59  ;;  %v9330_v53 = vadd.f32 %v8621_v54, %v9010_v44  ;;  %v9334_v51 = vadd.f32 %v8629_v28, %v11721_v52  ;;  %v11738_v9 = vld [vmem:[#allocation65_spill] sm:$0xff]  ;;  %v11816_v4 = vld [vmem:[#allocation12_spill] sm:$0xff] }
 0xa44   :  { %11718 = vst [vmem:[#allocation114_spill] sm:$0xff] %v9310_v14  ;;  %11719 = vst [vmem:[#allocation30_spill] sm:$0xff] %v9318_v2  ;;  %v9338_v24 = vadd.f32 %v8626_v38, %v11723_v0  ;;  %v9342_v16 = vadd.f32 %v8633_v13, %v11724_v58  ;;  %v9346_v59 = vadd.f32 %v8621_v54, %v11726_v1  ;;  %v11729_v2 = vld [vmem:[#allocation53_spill] sm:$0xff]  ;;  %v11732_v14 = vld [vmem:[#allocation28_spill] sm:$0xff]  ;;  %vm3474_vm5 = vcmp.ge.f32.partialorder %v9218_v60, 0.0 }
 0xa45   :  { %11720 = vst [vmem:[#allocation122_spill] sm:$0xff] %v9326_v6  ;;  %11722 = vst [vmem:[#allocation17_spill] sm:$0xff] %v9334_v51  ;;  %v11727_v6 = vld [vmem:[#allocation40_spill] sm:$0xff]  ;;  %v9354_v52 = vadd.f32 %v8626_v38, %v11729_v2  ;;  %v11730_v51 = vld [vmem:[#allocation79_spill] sm:$0xff]  ;;  %v9362_v58 = vadd.f32 %v8621_v54, %v11732_v14 }
 0xa46   :  { %11725 = vst [vmem:[#allocation115_spill] sm:$0xff] %v9342_v16  ;;  %v9350_v44 = vadd.f32 %v8629_v28, %v11727_v6  ;;  %v9358_v0 = vadd.f32 %v8633_v13, %v11730_v51  ;;  %v11733_v16 = vld [vmem:[#allocation78_spill] sm:$0xff]  ;;  %v9370_v6 = vadd.f32 %v8626_v38, %v11735_v11  ;;  %v9378_v51 = vadd.f32 %v8621_v54, %v11738_v9  ;;  %v11752_v42 = vld [vmem:[#allocation73_spill] sm:$0xff] }
 0xa47   :  { %v9366_v1 = vadd.f32 %v8629_v28, %v11733_v16  ;;  %v9386_v16 = vadd.f32 %v8626_v38, %v11742_v3 }
 0xa48   :  { %11728 = vst [vmem:[#allocation24_spill] sm:$0xff] %v9350_v44  ;;  %11731 = vst [vmem:[#allocation123_spill] sm:$0xff] %v9358_v0  ;;  %v11736_v44 = vld [vmem:[#allocation70_spill] sm:$0xff] }
 0xa49   :  { %11734 = vst [vmem:[#allocation35_spill] sm:$0xff] %v9366_v1  ;;  %v9374_v2 = vadd.f32 %v8633_v13, %v11736_v44  ;;  %11739 = vst [vmem:[#allocation44_spill] sm:$0xff] %v9378_v51  ;;  %v11740_v0 = vld [vmem:[#allocation98_spill] sm:$0xff]  ;;  %v11743_v1 = vld [vmem:[#allocation105_spill] sm:$0xff]  ;;  %v9394_v44 = vadd.f32 %v8621_v54, %v11745_v40 }
 0xa4a   :  { %v9382_v14 = vadd.f32 %v8629_v28, %v11740_v0  ;;  %v9390_v11 = vadd.f32 %v8633_v13, %v11743_v1  ;;  %v9402_v0 = vadd.f32 %v8626_v38, %v11748_v63  ;;  %v9410_v1 = vadd.f32 %v8621_v54, %v11752_v42 }
 0xa4b   :  { %11737 = vst [vmem:[#allocation116_spill] sm:$0xff] %v9374_v2  ;;  %v11746_v2 = vld [vmem:[#allocation103_spill] sm:$0xff] }
 0xa4c   :  { %11741 = vst [vmem:[#allocation124_spill] sm:$0xff] %v9382_v14  ;;  %11744 = vst [vmem:[#allocation33_spill] sm:$0xff] %v9390_v11  ;;  %v9398_v9 = vadd.f32 %v8629_v28, %v11746_v2  ;;  %v11750_v14 = vld [vmem:[#allocation107_spill] sm:$0xff]  ;;  %v11754_v11 = vld [vmem:[#allocation100_spill] sm:$0xff]  ;;  %v9418_v2 = vadd.f32 %v8626_v38, %v11756_v30 }
 0xa4d   :  { %11749 = vst [vmem:[#allocation27_spill] sm:$0xff] %v9402_v0  ;;  %v9406_v3 = vadd.f32 %v8633_v13, %v11750_v14  ;;  %11753 = vst [vmem:[#allocation49_spill] sm:$0xff] %v9410_v1  ;;  %v9414_v40 = vadd.f32 %v8629_v28, %v11754_v11  ;;  %v9426_v14 = vadd.f32 %v8621_v54, %v11760_v47 }
 0xa4e   :  { %11747 = vst [vmem:[#allocation16_spill] sm:$0xff] %v9398_v9  ;;  %11757 = vst [vmem:[#allocation53_spill] sm:$0xff] %v9418_v2  ;;  %v11758_v9 = vld [vmem:[#allocation108_spill] sm:$0xff]  ;;  %v9434_v11 = vadd.f32 %v8626_v38, %v11764_v21  ;;  %v9454_v21 = vadd.f32 %v8633_v13, %v9134_v41 }
 0xa4f   :  { %11751 = vst [vmem:[#allocation71_spill] sm:$0xff] %v9406_v3  ;;  %11755 = vst [vmem:[#allocation40_spill] sm:$0xff] %v9414_v40  ;;  %v9422_v63 = vadd.f32 %v8633_v13, %v11758_v9  ;;  %v11762_v3 = vld [vmem:[#allocation102_spill] sm:$0xff]  ;;  %v9442_v9 = vadd.f32 %v8621_v54, %v11768_v33  ;;  %v9462_v33 = vadd.f32 %v8629_v28, %v9142_v50 }
 0xa50   :  { %11761 = vst [vmem:[#allocation28_spill] sm:$0xff] %v9426_v14  ;;  %v9430_v42 = vadd.f32 %v8629_v28, %v11762_v3  ;;  %11765 = vst [vmem:[#allocation57_spill] sm:$0xff] %v9434_v11  ;;  %v11766_v40 = vld [vmem:[#allocation106_spill] sm:$0xff]  ;;  %v9450_v3 = vadd.f32 %v8626_v38, %v9130_v36  ;;  %v9470_v36 = vadd.f32 %v8633_v13, %v9150_v5 }
 0xa51   :  { %11759 = vst [vmem:[#allocation79_spill] sm:$0xff] %v9422_v63  ;;  %v9438_v30 = vadd.f32 %v8633_v13, %v11766_v40  ;;  %11769 = vst [vmem:[#allocation65_spill] sm:$0xff] %v9442_v9  ;;  %v11770_v63 = vld [vmem:[#allocation104_spill] sm:$0xff]  ;;  %v9458_v40 = vadd.f32 %v8621_v54, %v9138_v35 }
 0xa52   :  { %11763 = vst [vmem:[#allocation78_spill] sm:$0xff] %v9430_v42  ;;  %v9446_v47 = vadd.f32 %v8629_v28, %v11770_v63  ;;  %11772 = vst [vmem:[#allocation64_spill] sm:$0xff] %v9450_v3  ;;  %v9466_v63 = vadd.f32 %v8626_v38, %v9146_v18  ;;  %v11785_v42 = vld [vmem:[#allocation93_spill] sm:$0xff] }
 0xa53   :  { %11767 = vst [vmem:[#allocation70_spill] sm:$0xff] %v9438_v30  ;;  %11773 = vst [vmem:[#allocation105_spill] sm:$0xff] %v9454_v21  ;;  %v11779_v21 = vld [vmem:[#allocation92_spill] sm:$0xff]  ;;  %v11781_v30 = vld [vmem:[#allocation95_spill] sm:$0xff]  ;;  %v9490_v5 = vadd.f32 %v8621_v54, %v11785_v42 }
 0xa54   :  { %11771 = vst [vmem:[#allocation98_spill] sm:$0xff] %v9446_v47  ;;  %11774 = vst [vmem:[#allocation69_spill] sm:$0xff] %v9458_v40  ;;  %v11778_v47 = vld [vmem:[#allocation97_spill] sm:$0xff]  ;;  %v9478_v35 = vadd.f32 %v8629_v28, %v11779_v21  ;;  %v9482_v50 = vadd.f32 %v8626_v38, %v11781_v30  ;;  %v9498_v21 = vadd.f32 %v8626_v38, %v11788_v39 }
 0xa55   :  { %11775 = vst [vmem:[#allocation103_spill] sm:$0xff] %v9462_v33  ;;  %11776 = vst [vmem:[#allocation68_spill] sm:$0xff] %v9466_v63  ;;  %v9474_v41 = vadd.f32 %v8621_v54, %v11778_v47  ;;  %v11783_v33 = vld [vmem:[#allocation90_spill] sm:$0xff] }
 0xa56   :  { %11777 = vst [vmem:[#allocation107_spill] sm:$0xff] %v9470_v36  ;;  %11780 = vst [vmem:[#allocation73_spill] sm:$0xff] %v9478_v35  ;;  %v9486_v18 = vadd.f32 %v8633_v13, %v11783_v33  ;;  %v11786_v36 = vld [vmem:[#allocation88_spill] sm:$0xff]  ;;  %v11790_v35 = vld [vmem:[#allocation86_spill] sm:$0xff] }
 0xa57   :  { %11782 = vst [vmem:[#allocation100_spill] sm:$0xff] %v9482_v50  ;;  %v9494_v47 = vadd.f32 %v8629_v28, %v11786_v36  ;;  %11789 = vst [vmem:[#allocation77_spill] sm:$0xff] %v9498_v21  ;;  %v9502_v30 = vadd.f32 %v8633_v13, %v11790_v35  ;;  %v11792_v50 = vld [vmem:[#allocation89_spill] sm:$0xff]  ;;  %v9514_v36 = vadd.f32 %v8626_v38, %v11795_v48  ;;  %vm3478_vm7 = vcmp.ge.f32.partialorder %v9474_v41, 0.0 }
 0xa58   :  { %11784 = vst [vmem:[#allocation72_spill] sm:$0xff] %v9486_v18  ;;  %v9506_v33 = vadd.f32 %v8621_v54, %v11792_v50  ;;  %v11793_v18 = vld [vmem:[#allocation84_spill] sm:$0xff]  ;;  %v11799_v21 = vld [vmem:[#allocation81_spill] sm:$0xff] }
 0xa59   :  { %11787 = vst [vmem:[#allocation108_spill] sm:$0xff] %v9494_v47  ;;  %11791 = vst [vmem:[#allocation102_spill] sm:$0xff] %v9502_v30  ;;  %v9510_v42 = vadd.f32 %v8629_v28, %v11793_v18  ;;  %v11797_v47 = vld [vmem:[#allocation87_spill] sm:$0xff]  ;;  %v9522_v35 = vadd.f32 %v8621_v54, %v11799_v21  ;;  %v11800_v30 = vld [vmem:[#allocation56_spill] sm:$0xff]  ;;  %v9530_v18 = vadd.f32 %v8626_v38, %v11802_v20 }
 0xa5a   :  { %11796 = vst [vmem:[#allocation106_spill] sm:$0xff] %v9514_v36  ;;  %v9518_v39 = vadd.f32 %v8633_v13, %v11797_v47  ;;  %v9526_v50 = vadd.f32 %v8629_v28, %v11800_v30  ;;  %v11806_v36 = vld [vmem:[#allocation52_spill] sm:$0xff]  ;;  %v9546_v30 = vadd.f32 %v8626_v38, %v11809_v7 }
 0xa5b   :  { %11794 = vst [vmem:[#allocation76_spill] sm:$0xff] %v9510_v42  ;;  %11803 = vst [vmem:[#allocation97_spill] sm:$0xff] %v9530_v18  ;;  %v11804_v42 = vld [vmem:[#allocation83_spill] sm:$0xff]  ;;  %v9538_v47 = vadd.f32 %v8621_v54, %v11806_v36  ;;  %v11813_v18 = vld [vmem:[#allocation29_spill] sm:$0xff] }
 0xa5c   :  { %11798 = vst [vmem:[#allocation75_spill] sm:$0xff] %v9518_v39  ;;  %11801 = vst [vmem:[#allocation104_spill] sm:$0xff] %v9526_v50  ;;  %v9534_v48 = vadd.f32 %v8633_v13, %v11804_v42  ;;  %v11807_v39 = vld [vmem:[#allocation82_spill] sm:$0xff]  ;;  %v11811_v50 = vld [vmem:[#allocation61_spill] sm:$0xff]  ;;  %v9554_v42 = vadd.f32 %v8621_v54, %v11813_v18 }
 0xa5d   :  { %v9542_v21 = vadd.f32 %v8629_v28, %v11807_v39  ;;  %11810 = vst [vmem:[#allocation90_spill] sm:$0xff] %v9546_v30  ;;  %v9550_v20 = vadd.f32 %v8633_v13, %v11811_v50  ;;  %v9562_v39 = vadd.f32 %v8626_v38, %v11816_v4  ;;  %v11820_v30 = vld [vmem:[#allocation25_spill] sm:$0xff] }
 0xa5e   :  { %11805 = vst [vmem:[#allocation92_spill] sm:$0xff] %v9534_v48  ;;  %v11814_v48 = vld [vmem:[#allocation26_spill] sm:$0xff]  ;;  %v9570_v50 = vadd.f32 %v8621_v54, %v11820_v30 }
 0xa5f   :  { %11808 = vst [vmem:[#allocation95_spill] sm:$0xff] %v9542_v21  ;;  %11812 = vst [vmem:[#allocation93_spill] sm:$0xff] %v9550_v20  ;;  %v9558_v36 = vadd.f32 %v8629_v28, %v11814_v48  ;;  %v11818_v21 = vld [vmem:[#allocation13_spill] sm:$0xff]  ;;  %v11821_v20 = vld [vmem:[#allocation50_spill] sm:$0xff]  ;;  %v9578_v48 = vadd.f32 %v8626_v38, %v11823_v61 }
 0xa60   :  { %11817 = vst [vmem:[#allocation91_spill] sm:$0xff] %v9562_v39  ;;  %v9566_v7 = vadd.f32 %v8633_v13, %v11818_v21  ;;  %v9574_v18 = vadd.f32 %v8629_v28, %v11821_v20  ;;  %v11827_v39 = vld [vmem:[#allocation23_spill] sm:$0xff]  ;;  %v9594_v20 = vadd.f32 %v8626_v38, %v11830_v32 }
 0xa61   :  { %11815 = vst [vmem:[#allocation88_spill] sm:$0xff] %v9558_v36  ;;  %11824 = vst [vmem:[#allocation84_spill] sm:$0xff] %v9578_v48  ;;  %v11825_v36 = vld [vmem:[#allocation15_spill] sm:$0xff]  ;;  %v9586_v21 = vadd.f32 %v8621_v54, %v11827_v39  ;;  %v11834_v48 = vld [vmem:[#allocation54_spill] sm:$0xff] }
 0xa62   :  { %11819 = vst [vmem:[#allocation86_spill] sm:$0xff] %v9566_v7  ;;  %11822 = vst [vmem:[#allocation89_spill] sm:$0xff] %v9574_v18  ;;  %v9582_v4 = vadd.f32 %v8633_v13, %v11825_v36  ;;  %v11828_v7 = vld [vmem:[#allocation18_spill] sm:$0xff]  ;;  %v11832_v18 = vld [vmem:[#allocation41_spill] sm:$0xff]  ;;  %v9602_v36 = vadd.f32 %v8621_v54, %v11834_v48 }
 0xa63   :  { %v9590_v30 = vadd.f32 %v8629_v28, %v11828_v7  ;;  %11831 = vst [vmem:[#allocation81_spill] sm:$0xff] %v9594_v20  ;;  %v9598_v61 = vadd.f32 %v8633_v13, %v11832_v18  ;;  %v9610_v7 = vadd.f32 %v8626_v38, %v11837_v55  ;;  %v11841_v20 = vld [vmem:[#allocation58_spill] sm:$0xff] }
 0xa64   :  { %11826 = vst [vmem:[#allocation60_spill] sm:$0xff] %v9582_v4  ;;  %v11835_v4 = vld [vmem:[#allocation74_spill] sm:$0xff]  ;;  %v9618_v18 = vadd.f32 %v8621_v54, %v11841_v20 }
 0xa65   :  { %11829 = vst [vmem:[#allocation87_spill] sm:$0xff] %v9590_v30  ;;  %11833 = vst [vmem:[#allocation56_spill] sm:$0xff] %v9598_v61  ;;  %v9606_v39 = vadd.f32 %v8629_v28, %v11835_v4  ;;  %v11839_v30 = vld [vmem:[#allocation48_spill] sm:$0xff]  ;;  %v11843_v61 = vld [vmem:[#allocation47_spill] sm:$0xff]  ;;  %v9626_v4 = vadd.f32 %v8626_v38, %v11845_v49 }
 0xa66   :  { %11838 = vst [vmem:[#allocation83_spill] sm:$0xff] %v9610_v7  ;;  %v9614_v32 = vadd.f32 %v8633_v13, %v11839_v30  ;;  %11842 = vst [vmem:[#allocation82_spill] sm:$0xff] %v9618_v18  ;;  %v9622_v48 = vadd.f32 %v8629_v28, %v11843_v61  ;;  %v11849_v7 = vld [vmem:[#allocation62_spill] sm:$0xff]  ;;  %v9642_v61 = vadd.f32 %v8626_v38, %v11852_v17  ;;  %v11864_v17 = vld [vmem:[#allocation101_spill] sm:$0xff] }
 0xa67   :  { %11836 = vst [vmem:[#allocation85_spill] sm:$0xff] %v9606_v39  ;;  %11846 = vst [vmem:[#allocation61_spill] sm:$0xff] %v9626_v4  ;;  %v11847_v39 = vld [vmem:[#allocation19_spill] sm:$0xff]  ;;  %v9634_v30 = vadd.f32 %v8621_v54, %v11849_v7  ;;  %v11856_v4 = vld [vmem:[#allocation66_spill] sm:$0xff] }
 0xa68   :  { %11840 = vst [vmem:[#allocation52_spill] sm:$0xff] %v9614_v32  ;;  %11844 = vst [vmem:[#allocation80_spill] sm:$0xff] %v9622_v48  ;;  %v9630_v55 = vadd.f32 %v8633_v13, %v11847_v39  ;;  %v11850_v32 = vld [vmem:[#allocation51_spill] sm:$0xff]  ;;  %v11854_v48 = vld [vmem:[#allocation36_spill] sm:$0xff]  ;;  %v9650_v39 = vadd.f32 %v8629_v28, %v11856_v4  ;;  %v3611_v4 = vmul.f32 %v11864_v17, %v9170_v62 }
 0xa69   :  { %v9638_v20 = vadd.f32 %v8629_v28, %v11850_v32  ;;  %11853 = vst [vmem:[#allocation12_spill] sm:$0xff] %v9642_v61  ;;  %v9646_v49 = vadd.f32 %v8633_v13, %v11854_v48  ;;  %v11860_v7 = vld [vmem:[#allocation67_spill] sm:$0xff]  ;;  %v3607_v48 = vmul.f32 %v11864_v17, %v9154_v56  ;;  %v11865_v61 = vld [vmem:[#allocation96_spill] sm:$0xff] }
 0xa6a   :  { %11848 = vst [vmem:[#allocation29_spill] sm:$0xff] %v9630_v55  ;;  %11857 = vst [vmem:[#allocation25_spill] sm:$0xff] %v9650_v39  ;;  %v11858_v55 = vld [vmem:[#allocation43_spill] sm:$0xff]  ;;  %v9658_v32 = vadd.f32 %v8629_v28, %v11860_v7  ;;  %v9680_v28 = vmul.f32 %v11864_v17, %v9186_v26  ;;  %v9692_v7 = vmul.f32 %v11864_v17, %v9474_v41 }
 0xa6b   :  { %11851 = vst [vmem:[#allocation26_spill] sm:$0xff] %v9638_v20  ;;  %11855 = vst [vmem:[#allocation13_spill] sm:$0xff] %v9646_v49  ;;  %v9654_v54 = vadd.f32 %v8633_v13, %v11858_v55  ;;  %v11862_v20 = vld [vmem:[#allocation45_spill] sm:$0xff]  ;;  %v9668_v49 = vmul.f32 %v11865_v61, %v9162_v29  ;;  %v9674_v55 = vmul.f32 %v11865_v61, %v9178_v8 }
 0xa6c   :  { %11861 = vst [vmem:[#allocation14_spill] sm:$0xff] %v9658_v32  ;;  %v9662_v38 = vadd.f32 %v8633_v13, %v11862_v20  ;;  %v9684_v13 = vmul.f32 %v11864_v17, %v9202_v57  ;;  %v9688_v20 = vmul.f32 %v11864_v17, %v9218_v60  ;;  %11866 = vst [vmem:[#allocation23_spill] sm:$0xff] %v9692_v7 }
 0xa6d   :  { %11859 = vst [vmem:[#allocation50_spill] sm:$0xff] %v9654_v54  ;;  %v9700_v54 = vmul.f32 %v11864_v17, %v9506_v33  ;;  %v9704_v32 = vmul.f32 %v11864_v17, %v9522_v35  ;;  %v9708_v39 = vmul.f32 %v11864_v17, %v9538_v47  ;;  %v9713_v7 = vmul.f32 %v11864_v17, %v9554_v42 }
 0xa6e   :  { %11863 = vst [vmem:[#allocation15_spill] sm:$0xff] %v9662_v38  ;;  %v9696_v38 = vmul.f32 %v11864_v17, %v9490_v5 }
 0xa6f   :  { %11868 = vst [vmem:[#allocation31_spill] sm:$0xff] %v9700_v54  ;;  %11869 = vst [vmem:[#allocation41_spill] sm:$0xff] %v9704_v32  ;;  %v9721_v54 = vmul.f32 %v11864_v17, %v9586_v21  ;;  %v9725_v32 = vmul.f32 %v11864_v17, %v9602_v36 }
 0xa70   :  { %11867 = vst [vmem:[#allocation18_spill] sm:$0xff] %v9696_v38  ;;  %11870 = vst [vmem:[#allocation54_spill] sm:$0xff] %v9708_v39  ;;  %v9717_v38 = vmul.f32 %v11864_v17, %v9570_v50  ;;  %v9730_v39 = vmul.f32 %v11864_v17, %v9618_v18  ;;  %v9750_v18 = vmul.f32 %v11865_v61, %v9258_v19 }
 0xa71   :  { %11871 = vst [vmem:[#allocation74_spill] sm:$0xff] %v9713_v7  ;;  %11873 = vst [vmem:[#allocation48_spill] sm:$0xff] %v9721_v54  ;;  %v9734_v7 = vmul.f32 %v11864_v17, %v9634_v30  ;;  %v9742_v54 = vmul.f32 %v11864_v17, %v9242_v34 }
 0xa72   :  { %11872 = vst [vmem:[#allocation55_spill] sm:$0xff] %v9717_v38  ;;  %11874 = vst [vmem:[#allocation58_spill] sm:$0xff] %v9725_v32  ;;  %v9738_v38 = vmul.f32 %v11864_v17, %v9226_v43  ;;  %v9746_v32 = vmul.f32 %v11864_v17, %v9250_v27 }
 0xa73   :  { %11875 = vst [vmem:[#allocation47_spill] sm:$0xff] %v9730_v39  ;;  %11876 = vst [vmem:[#allocation59_spill] sm:$0xff] %v9734_v7  ;;  %v9754_v39 = vmul.f32 %v11864_v17, %v9266_v46  ;;  %v9758_v7 = vmul.f32 %v11865_v61, %v9274_v22 }
 0xa74   :  { %11877 = vst [vmem:[#allocation19_spill] sm:$0xff] %v9738_v38  ;;  %11878 = vst [vmem:[#allocation62_spill] sm:$0xff] %v9742_v54  ;;  %v9762_v38 = vmul.f32 %v11864_v17, %v9282_v12  ;;  %v9766_v54 = vmul.f32 %v11865_v61, %v9290_v25 }
 0xa75   :  { %11879 = vst [vmem:[#allocation51_spill] sm:$0xff] %v9746_v32  ;;  %11880 = vst [vmem:[#allocation63_spill] sm:$0xff] %v9750_v18  ;;  %v9770_v32 = vmul.f32 %v11864_v17, %v9298_v37  ;;  %v9774_v18 = vmul.f32 %v11865_v61, %v9306_v45 }
 0xa76   :  { %11881 = vst [vmem:[#allocation36_spill] sm:$0xff] %v9754_v39  ;;  %11882 = vst [vmem:[#allocation66_spill] sm:$0xff] %v9758_v7  ;;  %v9778_v39 = vmul.f32 %v11864_v17, %v9314_v10  ;;  %v9782_v7 = vmul.f32 %v11865_v61, %v9322_v31 }
 0xa77   :  { %11883 = vst [vmem:[#allocation43_spill] sm:$0xff] %v9762_v38  ;;  %11884 = vst [vmem:[#allocation67_spill] sm:$0xff] %v9766_v54  ;;  %v9786_v38 = vmul.f32 %v11864_v17, %v9330_v53  ;;  %v9790_v54 = vmul.f32 %v11865_v61, %v9338_v24 }
 0xa78   :  { %11885 = vst [vmem:[#allocation45_spill] sm:$0xff] %v9774_v18  ;;  %11886 = vst [vmem:[#allocation101_spill] sm:$0xff] %v9778_v39  ;;  %v9795_v18 = vmul.f32 %v11864_v17, %v9346_v59  ;;  %v9799_v39 = vmul.f32 %v11865_v61, %v9354_v52 }
 0xa79   :  { %11887 = vst [vmem:[#allocation96_spill] sm:$0xff] %v9782_v7  ;;  %11888 = vst [vmem:[#allocation125_spill] sm:$0xff] %v9786_v38  ;;  %v9803_v7 = vmul.f32 %v11864_v17, %v9362_v58  ;;  %v9807_v38 = vmul.f32 %v11865_v61, %v9370_v6 }
 0xa7a   :  { %11889 = vst [vmem:[#allocation126_spill] sm:$0xff] %v9790_v54  ;;  %11890 = vst [vmem:[#allocation127_spill] sm:$0xff] %v9795_v18  ;;  %v9812_v54 = vmul.f32 %v11864_v17, %v9378_v51  ;;  %v9816_v18 = vmul.f32 %v11865_v61, %v9386_v16  ;;  %v9832_v51 = vmul.f32 %v11865_v61, %v9418_v2 }
 0xa7b   :  { %11891 = vst [vmem:[#allocation128_spill] sm:$0xff] %v9799_v39  ;;  %11892 = vst [vmem:[#allocation129_spill] sm:$0xff] %v9803_v7  ;;  %v9820_v39 = vmul.f32 %v11864_v17, %v9394_v44  ;;  %v9824_v7 = vmul.f32 %v11865_v61, %v9402_v0  ;;  %v11911_v0 = vld [vmem:[#allocation38_spill] sm:$0xff] }
 0xa7c   :  { %11893 = vst [vmem:[#allocation130_spill] sm:$0xff] %v9807_v38  ;;  %11894 = vst [vmem:[#allocation131_spill] sm:$0xff] %v9812_v54  ;;  %v9828_v38 = vmul.f32 %v11864_v17, %v9410_v1  ;;  %v9836_v54 = vmul.f32 %v11864_v17, %v9426_v14  ;;  %vm3471_vm10 = vcmp.ge.f32.partialorder %v11911_v0, 0.0 }
 0xa7d   :  { %11895 = vst [vmem:[#allocation132_spill] sm:$0xff] %v9816_v18  ;;  %11896 = vst [vmem:[#allocation133_spill] sm:$0xff] %v9820_v39  ;;  %v9840_v18 = vmul.f32 %v11865_v61, %v9434_v11  ;;  %v9844_v39 = vmul.f32 %v11864_v17, %v9442_v9 }
 0xa7e   :  { %11897 = vst [vmem:[#allocation134_spill] sm:$0xff] %v9824_v7  ;;  %11898 = vst [vmem:[#allocation135_spill] sm:$0xff] %v9828_v38  ;;  %v9848_v7 = vmul.f32 %v11865_v61, %v9450_v3  ;;  %v9852_v38 = vmul.f32 %v11864_v17, %v9458_v40  ;;  %v11906_v17 = vld [vmem:[#allocation99_spill] sm:$0xff]  ;;  %v3741_v3 = vsel %vm3464_vm1, %v9178_v8, %v9674_v55  ;;  %v11910_v40 = vld [vmem:[#allocation117_spill] sm:$0xff] }
 0xa7f   :  { %11899 = vst [vmem:[#allocation136_spill] sm:$0xff] %v9832_v51  ;;  %11900 = vst [vmem:[#allocation137_spill] sm:$0xff] %v9836_v54  ;;  %v9856_v51 = vmul.f32 %v11865_v61, %v9466_v63  ;;  %v3612_v54 = vmul.f32 %v11906_v17, %v9174_v23  ;;  %vm3467_vm8 = vcmp.ge.f32.partialorder %v11910_v40, 0.0  ;;  %v11913_v8 = vld [vmem:[#allocation46_spill] sm:$0xff] }
 0xa80   :  { %11901 = vst [vmem:[#allocation138_spill] sm:$0xff] %v9840_v18  ;;  %11902 = vst [vmem:[#allocation139_spill] sm:$0xff] %v9844_v39  ;;  %v3735_v18 = vsel %vm3458_vm12, %v9154_v56, %v3607_v48  ;;  %v3739_v39 = vsel %vm3462_vm13, %v9170_v62, %v3611_v4  ;;  %v11908_v56 = vld [vmem:[#allocation20_spill] sm:$0xff]  ;;  %v11909_v62 = vld [vmem:[#allocation94_spill] sm:$0xff]  ;;  %vm3473_vm11 = vcmp.ge.f32.partialorder %v11913_v8, 0.0  ;;  %vm3482_vm13 = vcmp.ge.f32.partialorder %v9490_v5, 0.0 }
 0xa81   :  { %11903 = vst [vmem:[#allocation140_spill] sm:$0xff] %v9848_v7  ;;  %11904 = vst [vmem:[#allocation141_spill] sm:$0xff] %v9852_v38  ;;  %v3863_v7 = vpack.c.bf16 %v3739_v39, %v3735_v18  ;;  %v3608_v38 = vmul.f32 %v11906_v17, %v9158_v15  ;;  %vm3465_vm6 = vcmp.ge.f32.partialorder %v11908_v56, 0.0  ;;  %v3614_v18 = vmul.f32 %v11909_v62, %v11908_v56 }
 0xa82   :  { %11905 = vst [vmem:[#allocation142_spill] sm:$0xff] %v9856_v51  ;;  %v11907_v51 = vld [vmem:[#allocation109_spill] sm:$0xff]  ;;  %v3737_v39 = vsel %vm3460_vm2, %v9162_v29, %v9668_v49  ;;  %v3740_v63 = vsel %vm3463_vm9, %v9174_v23, %v3612_v54  ;;  %v3620_v29 = vmul.f32 %v11906_v17, %v11911_v0  ;;  %v11912_v23 = vld [vmem:[#allocation110_spill] sm:$0xff]  ;;  %vm3486_vm2 = vcmp.ge.f32.partialorder %v9506_v33, 0.0 }
 0xa83   :  { %vm3461_vm14 = vcmp.ge.f32.partialorder %v11907_v51, 0.0  ;;  %v3610_v48 = vmul.f32 %v11909_v62, %v11907_v51  ;;  %v3736_v4 = vsel %vm3459_vm15, %v9158_v15, %v3608_v38  ;;  %v3742_v2 = vsel %vm3465_vm6, %v11908_v56, %v3614_v18  ;;  %v11919_v18 = vld [vmem:[#allocation72_spill] sm:$0xff] }
 0xa84   :  { %v3864_v9 = vpack.c.bf16 %v3740_v63, %v3736_v4  ;;  %v3865_v14 = vpack.c.bf16 %v3741_v3, %v3737_v39  ;;  %v3616_v15 = vmul.f32 %v11906_v17, %v11910_v40  ;;  %vm3469_vm0 = vcmp.ge.f32.partialorder %v11912_v23, 0.0  ;;  %v11914_v63 = vld [vmem:[#allocation42_spill] sm:$0xff] }
 0xa85   :  { %v3738_v11 = vsel %vm3461_vm14, %v11907_v51, %v3610_v48  ;;  %v3618_v51 = vmul.f32 %v11909_v62, %v11912_v23  ;;  %v3622_v3 = vmul.f32 %v11909_v62, %v11913_v8  ;;  %vm3468_vm12 = vcmp.ge.f32.partialorder %v11914_v63, 0.0  ;;  %v11918_v48 = vld [vmem:[#allocation22_spill] sm:$0xff] }
 0xa86   :  { %v3866_v1 = vpack.c.bf16 %v3742_v2, %v3738_v11  ;;  %4216 = vmatprep.mubr.bf16.mxu0 %v3864_v9  ;;  %v3744_v2 = vsel %vm3467_vm8, %v11910_v40, %v3616_v15  ;;  %v3748_v11 = vsel %vm3471_vm10, %v11911_v0, %v3620_v29  ;;  %v3743_v9 = vsel %vm3466_vm3, %v9186_v26, %v9680_v28  ;;  %v11915_v26 = vld [vmem:[#allocation118_spill] sm:$0xff]  ;;  %v11916_v28 = vld [vmem:[#allocation111_spill] sm:$0xff] }
 0xa87   :  { %4217 = vmatmul.mubr.bf16.vlgmr.msra.gmra.mxu0 %v3863_v7  ;;  %v3746_v49 = vsel %vm3469_vm0, %v11912_v23, %v3618_v51  ;;  %v3750_v54 = vsel %vm3473_vm11, %v11913_v8, %v3622_v3  ;;  %v3747_v0 = vsel %vm3470_vm4, %v9202_v57, %v9684_v13  ;;  %vm3472_vm1 = vcmp.ge.f32.partialorder %v11915_v26, 0.0  ;;  %v11917_v7 = vld [vmem:[#allocation73_spill] sm:$0xff]  ;;  %v11920_v3 = vld [vmem:[#allocation23_spill] sm:$0xff] }
 0xa88   :  { %4377 = vmatprep.mubr.bf16.mxu1 %v3866_v1  ;;  %v3868_v1 = vpack.c.bf16 %v3748_v11, %v3744_v2  ;;  %v3870_v40 = vpack.c.bf16 %v3750_v54, %v3746_v49  ;;  %v3867_v38 = vpack.c.bf16 %v3747_v0, %v3743_v9  ;;  %v3617_v55 = vmul.f32 %v11865_v61, %v11914_v63  ;;  %v11921_v54 = vld [vmem:[#allocation119_spill] sm:$0xff]  ;;  %v11923_v0 = vld [vmem:[#allocation108_spill] sm:$0xff] }
 0xa89   :  { %4378 = vmatmul.mubr.bf16.vlgmr.msra.gmra.mxu1 %v3865_v14  ;;  %v3621_v14 = vmul.f32 %v11865_v61, %v11915_v26  ;;  %vm3475_vm3 = vcmp.ge.f32.partialorder %v11916_v28, 0.0  ;;  %vm3479_vm15 = vcmp.ge.f32.partialorder %v11917_v7, 0.0  ;;  %v3624_v56 = vmul.f32 %v11906_v17, %v11916_v28 }
 0xa8a   :  { %4224 = vmatprep.mubr.bf16.mxu0 %v3868_v1  ;;  %4385 = vmatprep.mubr.bf16.mxu1 %v3870_v40  ;;  %v3745_v57 = vsel %vm3468_vm12, %v11914_v63, %v3617_v55  ;;  %v3628_v13 = vmul.f32 %v11906_v17, %v11917_v7  ;;  %vm3477_vm4 = vcmp.ge.f32.partialorder %v11918_v48, 0.0  ;;  %vm3481_vm9 = vcmp.ge.f32.partialorder %v11919_v18, 0.0  ;;  %v11924_v40 = vld [vmem:[#allocation76_spill] sm:$0xff] }
 0xa8b   :  { %v3749_v39 = vsel %vm3472_vm1, %v11915_v26, %v3621_v14  ;;  %v3752_v4 = vsel %vm3475_vm3, %v11916_v28, %v3624_v56  ;;  %v3626_v15 = vmul.f32 %v11909_v62, %v11918_v48  ;;  %v3630_v29 = vmul.f32 %v11909_v62, %v11919_v18  ;;  %v11925_v14 = vld [vmem:[#allocation102_spill] sm:$0xff]  ;;  %v11926_v28 = vld [vmem:[#allocation75_spill] sm:$0xff] }
 0xa8c   :  { %v3869_v23 = vpack.c.bf16 %v3749_v39, %v3745_v57  ;;  %v3756_v8 = vsel %vm3479_vm15, %v11917_v7, %v3628_v13  ;;  %v3751_v51 = vsel %vm3474_vm5, %v9218_v60, %v9688_v20  ;;  %v3755_v2 = vsel %vm3478_vm7, %v9474_v41, %v11920_v3  ;;  %v11922_v60 = vld [vmem:[#allocation100_spill] sm:$0xff]  ;;  %v11927_v39 = vld [vmem:[#allocation18_spill] sm:$0xff] }
 0xa8d   :  { %vm3490_vm14 = vcmp.ge.f32.partialorder %v9522_v35, 0.0  ;;  %v3872_v11 = vpack.c.bf16 %v3756_v8, %v3752_v4  ;;  %v3754_v9 = vsel %vm3477_vm4, %v11918_v48, %v3626_v15  ;;  %v3758_v63 = vsel %vm3481_vm9, %v11919_v18, %v3630_v29  ;;  %v11928_v15 = vld [vmem:[#allocation31_spill] sm:$0xff] }
 0xa8e   :  { %v3871_v1 = vpack.c.bf16 %v3755_v2, %v3751_v51  ;;  %vm3494_vm6 = vcmp.ge.f32.partialorder %v9538_v47, 0.0  ;;  %v3874_v49 = vpack.c.bf16 %v3758_v63, %v3754_v9  ;;  %vm3476_vm8 = vcmp.ge.f32.partialorder %v11921_v54, 0.0  ;;  %v11930_v9 = vld [vmem:[#allocation106_spill] sm:$0xff]  ;;  %v11931_v63 = vld [vmem:[#allocation104_spill] sm:$0xff] }
 0xa8f   :  { %4225 = vmatmul.mubr.bf16.gmra.mxu0 %v3867_v38  ;;  %vm3480_vm5 = vcmp.ge.f32.partialorder %v11922_v60, 0.0  ;;  %v3625_v20 = vmul.f32 %v11865_v61, %v11921_v54  ;;  %v3629_v41 = vmul.f32 %v11865_v61, %v11922_v60  ;;  %vm3483_vm7 = vcmp.ge.f32.partialorder %v11923_v0, 0.0 }
 0xa90   :  { %4232 = vmatprep.mubr.bf16.mxu0 %v3872_v11  ;;  %vm3487_vm10 = vcmp.ge.f32.partialorder %v11924_v40, 0.0  ;;  %v3632_v38 = vmul.f32 %v11906_v17, %v11923_v0  ;;  %v3636_v55 = vmul.f32 %v11906_v17, %v11924_v40  ;;  %vm3485_vm0 = vcmp.ge.f32.partialorder %v11925_v14, 0.0  ;;  %v11929_v11 = vld [vmem:[#allocation77_spill] sm:$0xff] }
 0xa91   :  { %4386 = vmatmul.mubr.bf16.gmra.mxu1 %v3869_v23  ;;  %v3753_v26 = vsel %vm3476_vm8, %v11921_v54, %v3625_v20  ;;  %vm3489_vm11 = vcmp.ge.f32.partialorder %v11926_v28, 0.0  ;;  %v3757_v7 = vsel %vm3480_vm5, %v11922_v60, %v3629_v41  ;;  %v3634_v57 = vmul.f32 %v11909_v62, %v11925_v14  ;;  %v11933_v41 = vld [vmem:[#allocation92_spill] sm:$0xff] }
 0xa92   :  { %4393 = vmatprep.mubr.bf16.mxu1 %v3874_v49  ;;  %v3760_v56 = vsel %vm3483_vm7, %v11923_v0, %v3632_v38  ;;  %v3638_v13 = vmul.f32 %v11909_v62, %v11926_v28  ;;  %v3873_v48 = vpack.c.bf16 %v3757_v7, %v3753_v26  ;;  %v3764_v18 = vsel %vm3487_vm10, %v11924_v40, %v3636_v55  ;;  %v11932_v49 = vld [vmem:[#allocation95_spill] sm:$0xff]  ;;  %v11934_v0 = vld [vmem:[#allocation93_spill] sm:$0xff] }
 0xa93   :  { %v3759_v4 = vsel %vm3482_vm13, %v9490_v5, %v11927_v39  ;;  %v3763_v29 = vsel %vm3486_vm2, %v9506_v33, %v11928_v15  ;;  %vm3498_vm12 = vcmp.ge.f32.partialorder %v9554_v42, 0.0  ;;  %vm3502_vm1 = vcmp.ge.f32.partialorder %v9570_v50, 0.0  ;;  %v11935_v55 = vld [vmem:[#allocation97_spill] sm:$0xff]  ;;  %v11938_v39 = vld [vmem:[#allocation90_spill] sm:$0xff] }
 0xa94   :  { %v3876_v23 = vpack.c.bf16 %v3764_v18, %v3760_v56  ;;  %v3762_v8 = vsel %vm3485_vm0, %v11925_v14, %v3634_v57  ;;  %v3766_v51 = vsel %vm3489_vm11, %v11926_v28, %v3638_v13  ;;  %v3875_v3 = vpack.c.bf16 %v3763_v29, %v3759_v4  ;;  %v11936_v7 = vld [vmem:[#allocation41_spill] sm:$0xff] }
 0xa95   :  { %v3878_v2 = vpack.c.bf16 %v3766_v51, %v3762_v8  ;;  %vm3484_vm3 = vcmp.ge.f32.partialorder %v11929_v11, 0.0  ;;  %vm3488_vm13 = vcmp.ge.f32.partialorder %v11930_v9, 0.0  ;;  %v3633_v5 = vmul.f32 %v11865_v61, %v11929_v11  ;;  %v11939_v8 = vld [vmem:[#allocation88_spill] sm:$0xff]  ;;  %v11940_v51 = vld [vmem:[#allocation89_spill] sm:$0xff] }
 0xa96   :  { %v3637_v33 = vmul.f32 %v11865_v61, %v11930_v9  ;;  %vm3491_vm2 = vcmp.ge.f32.partialorder %v11931_v63, 0.0  ;;  %vm3495_vm15 = vcmp.ge.f32.partialorder %v11932_v49, 0.0  ;;  %v3640_v54 = vmul.f32 %v11906_v17, %v11931_v63 }
 0xa97   :  { %4233 = vmatmul.mubr.bf16.gmra.mxu0 %v3871_v1  ;;  %v3761_v60 = vsel %vm3484_vm3, %v11929_v11, %v3633_v5  ;;  %v3644_v20 = vmul.f32 %v11906_v17, %v11932_v49  ;;  %vm3493_vm4 = vcmp.ge.f32.partialorder %v11933_v41, 0.0  ;;  %vm3497_vm9 = vcmp.ge.f32.partialorder %v11934_v0, 0.0  ;;  %v11941_v5 = vld [vmem:[#allocation86_spill] sm:$0xff] }
 0xa98   :  { %4240 = vmatprep.mubr.bf16.mxu0 %v3876_v23  ;;  %v3765_v40 = vsel %vm3488_vm13, %v11930_v9, %v3637_v33  ;;  %v3768_v38 = vsel %vm3491_vm2, %v11931_v63, %v3640_v54  ;;  %v3642_v26 = vmul.f32 %v11909_v62, %v11933_v41  ;;  %vm3492_vm8 = vcmp.ge.f32.partialorder %v11935_v55, 0.0 }
 0xa99   :  { %4394 = vmatmul.mubr.bf16.gmra.mxu1 %v3873_v48  ;;  %v3877_v1 = vpack.c.bf16 %v3765_v40, %v3761_v60  ;;  %v3772_v14 = vsel %vm3495_vm15, %v11932_v49, %v3644_v20  ;;  %v3646_v28 = vmul.f32 %v11909_v62, %v11934_v0  ;;  %v10015_v56 = vsel %vm3490_vm14, %v9522_v35, %v11936_v7  ;;  %v11937_v48 = vld [vmem:[#allocation54_spill] sm:$0xff]  ;;  %v11942_v49 = vld [vmem:[#allocation60_spill] sm:$0xff]  ;;  %v11944_v40 = vld [vmem:[#allocation55_spill] sm:$0xff] }
 0xa9a   :  { %4401 = vmatprep.mubr.bf16.mxu1 %v3878_v2  ;;  %vm3506_vm5 = vcmp.ge.f32.partialorder %v9586_v21, 0.0  ;;  %vm3510_vm7 = vcmp.ge.f32.partialorder %v9602_v36, 0.0  ;;  %v3880_v57 = vpack.c.bf16 %v3772_v14, %v3768_v38  ;;  %v3770_v13 = vsel %vm3493_vm4, %v11933_v41, %v3642_v26  ;;  %v11943_v41 = vld [vmem:[#allocation74_spill] sm:$0xff] }
 0xa9b   :  { %v3771_v18 = vsel %vm3494_vm6, %v9538_v47, %v11937_v48  ;;  %vm3496_vm10 = vcmp.ge.f32.partialorder %v11938_v39, 0.0  ;;  %v3774_v35 = vsel %vm3497_vm9, %v11934_v0, %v3646_v28  ;;  %v3641_v15 = vmul.f32 %v11865_v61, %v11935_v55  ;;  %v11945_v26 = vld [vmem:[#allocation82_spill] sm:$0xff]  ;;  %v11947_v28 = vld [vmem:[#allocation84_spill] sm:$0xff] }
 0xa9c   :  { %v3879_v4 = vpack.c.bf16 %v3771_v18, %v10015_v56  ;;  %v3645_v29 = vmul.f32 %v11865_v61, %v11938_v39  ;;  %v3882_v23 = vpack.c.bf16 %v3774_v35, %v3770_v13  ;;  %vm3499_vm14 = vcmp.ge.f32.partialorder %v11939_v8, 0.0  ;;  %v11949_v13 = vld [vmem:[#allocation85_spill] sm:$0xff] }
 0xa9d   :  { %vm3503_vm0 = vcmp.ge.f32.partialorder %v11940_v51, 0.0  ;;  %v3648_v47 = vmul.f32 %v11906_v17, %v11939_v8  ;;  %v3769_v2 = vsel %vm3492_vm8, %v11935_v55, %v3641_v15  ;;  %v3652_v9 = vmul.f32 %v11906_v17, %v11940_v51  ;;  %v11950_v15 = vld [vmem:[#allocation56_spill] sm:$0xff] }
 0xa9e   :  { %v3773_v11 = vsel %vm3496_vm10, %v11938_v39, %v3645_v29  ;;  %vm3501_vm6 = vcmp.ge.f32.partialorder %v11941_v5, 0.0  ;;  %vm3505_vm11 = vcmp.ge.f32.partialorder %v11942_v49, 0.0  ;;  %v3650_v54 = vmul.f32 %v11909_v62, %v11941_v5 }
 0xa9f   :  { %v3881_v33 = vpack.c.bf16 %v3773_v11, %v3769_v2  ;;  %v3776_v63 = vsel %vm3499_vm14, %v11939_v8, %v3648_v47  ;;  %4241 = vmatmul.mubr.bf16.gmra.mxu0 %v3875_v3  ;;  %v3780_v60 = vsel %vm3503_vm0, %v11940_v51, %v3652_v9  ;;  %v3654_v20 = vmul.f32 %v11909_v62, %v11942_v49  ;;  %v11951_v8 = vld [vmem:[#allocation52_spill] sm:$0xff] }
 0xaa0   :  { %v10057_v0 = vsel %vm3498_vm12, %v9554_v42, %v11943_v41  ;;  %v10063_v38 = vsel %vm3502_vm1, %v9570_v50, %v11944_v40  ;;  %vm3514_vm3 = vcmp.ge.f32.partialorder %v11945_v26, 0.0  ;;  %vm3518_vm13 = vcmp.ge.f32.partialorder %v9634_v30, 0.0  ;;  %4248 = vmatprep.mubr.bf16.mxu0 %v3880_v57  ;;  %v11946_v42 = vld [vmem:[#allocation91_spill] sm:$0xff]  ;;  %v11952_v11 = vld [vmem:[#allocation48_spill] sm:$0xff] }
 0xaa1   :  { %4402 = vmatmul.mubr.bf16.gmra.mxu1 %v3877_v1  ;;  %v3884_v3 = vpack.c.bf16 %v3780_v60, %v3776_v63  ;;  %v3778_v55 = vsel %vm3501_vm6, %v11941_v5, %v3650_v54  ;;  %v3883_v14 = vpack.c.bf16 %v10063_v38, %v10057_v0  ;;  %vm3500_vm12 = vcmp.ge.f32.partialorder %v11946_v42, 0.0  ;;  %v11948_v57 = vld [vmem:[#allocation87_spill] sm:$0xff]  ;;  %v11953_v5 = vld [vmem:[#allocation58_spill] sm:$0xff] }
 0xaa2   :  { %4409 = vmatprep.mubr.bf16.mxu1 %v3882_v23  ;;  %v3782_v50 = vsel %vm3505_vm11, %v11942_v49, %v3654_v20  ;;  %vm3504_vm1 = vcmp.ge.f32.partialorder %v11947_v28, 0.0  ;;  %v3649_v7 = vmul.f32 %v11865_v61, %v11946_v42  ;;  %v3653_v1 = vmul.f32 %v11865_v61, %v11947_v28  ;;  %v11954_v20 = vld [vmem:[#allocation81_spill] sm:$0xff]  ;;  %v11955_v41 = vld [vmem:[#allocation83_spill] sm:$0xff] }
 0xaa3   :  { %v3886_v56 = vpack.c.bf16 %v3782_v50, %v3778_v55  ;;  %vm3507_vm2 = vcmp.ge.f32.partialorder %v11948_v57, 0.0  ;;  %vm3511_vm15 = vcmp.ge.f32.partialorder %v11949_v13, 0.0  ;;  %v3656_v48 = vmul.f32 %v11906_v17, %v11948_v57  ;;  %v11957_v50 = vld [vmem:[#allocation26_spill] sm:$0xff]  ;;  %v11967_v0 = vld [vmem:[#allocation15_spill] sm:$0xff] }
 0xaa4   :  { %v10084_v18 = vsel %vm3500_vm12, %v11946_v42, %v3649_v7  ;;  %v3781_v39 = vsel %vm3504_vm1, %v11947_v28, %v3653_v1  ;;  %v3660_v35 = vmul.f32 %v11906_v17, %v11949_v13  ;;  %vm3509_vm4 = vcmp.ge.f32.partialorder %v11950_v15, 0.0  ;;  %v11956_v42 = vld [vmem:[#allocation80_spill] sm:$0xff] }
 0xaa5   :  { %v3885_v29 = vpack.c.bf16 %v3781_v39, %v10084_v18  ;;  %v3784_v23 = vsel %vm3507_vm2, %v11948_v57, %v3656_v48  ;;  %vm3513_vm9 = vcmp.ge.f32.partialorder %v11951_v8, 0.0  ;;  %v3658_v51 = vmul.f32 %v11909_v62, %v11950_v15  ;;  %v11960_v39 = vld [vmem:[#allocation47_spill] sm:$0xff] }
 0xaa6   :  { %v3788_v47 = vsel %vm3511_vm15, %v11949_v13, %v3660_v35  ;;  %v3662_v2 = vmul.f32 %v11909_v62, %v11951_v8  ;;  %v10102_v9 = vsel %vm3506_vm5, %v9586_v21, %v11952_v11  ;;  %v10108_v63 = vsel %vm3510_vm7, %v9602_v36, %v11953_v5  ;;  %v11959_v13 = vld [vmem:[#allocation13_spill] sm:$0xff] }
 0xaa7   :  { %vm3522_vm8 = vcmp.ge.f32.partialorder %v9226_v43, 0.0  ;;  %vm3526_vm10 = vcmp.ge.f32.partialorder %v9242_v34, 0.0  ;;  %v3888_v49 = vpack.c.bf16 %v3788_v47, %v3784_v23  ;;  %v3786_v54 = vsel %vm3509_vm4, %v11950_v15, %v3658_v51  ;;  %4249 = vmatmul.mubr.bf16.gmra.mxu0 %v3879_v4  ;;  %v11961_v15 = vld [vmem:[#allocation59_spill] sm:$0xff]  ;;  %v11962_v47 = vld [vmem:[#allocation61_spill] sm:$0xff] }
 0xaa8   :  { %v3887_v60 = vpack.c.bf16 %v10108_v63, %v10102_v9  ;;  %vm3508_vm14 = vcmp.ge.f32.partialorder %v11954_v20, 0.0  ;;  %v3790_v21 = vsel %vm3513_vm9, %v11951_v8, %v3662_v2  ;;  %vm3512_vm5 = vcmp.ge.f32.partialorder %v11955_v41, 0.0  ;;  %4256 = vmatprep.mubr.bf16.mxu0 %v3884_v3  ;;  %v11978_v63 = vld [vmem:[#allocation32_spill] sm:$0xff] }
 0xaa9   :  { %v3657_v36 = vmul.f32 %v11865_v61, %v11954_v20  ;;  %v3661_v40 = vmul.f32 %v11865_v61, %v11955_v41  ;;  %4410 = vmatmul.mubr.bf16.gmra.mxu1 %v3881_v33  ;;  %v3890_v55 = vpack.c.bf16 %v3790_v21, %v3786_v54  ;;  %vm3515_vm7 = vcmp.ge.f32.partialorder %v11956_v42, 0.0  ;;  %v11958_v33 = vld [vmem:[#allocation29_spill] sm:$0xff]  ;;  %v11965_v21 = vld [vmem:[#allocation14_spill] sm:$0xff] }
 0xaaa   :  { %vm3519_vm0 = vcmp.ge.f32.partialorder %v11957_v50, 0.0  ;;  %v3664_v4 = vmul.f32 %v11906_v17, %v11956_v42  ;;  %4417 = vmatprep.mubr.bf16.mxu1 %v3886_v56  ;;  %v3668_v1 = vmul.f32 %v11906_v17, %v11957_v50  ;;  %vm3517_vm6 = vcmp.ge.f32.partialorder %v11958_v33, 0.0 }
 0xaab   :  { %v10127_v28 = vsel %vm3508_vm14, %v11954_v20, %v3657_v36  ;;  %v10130_v7 = vsel %vm3512_vm5, %v11955_v41, %v3661_v40  ;;  %vm3521_vm11 = vcmp.ge.f32.partialorder %v11959_v13, 0.0  ;;  %v3666_v56 = vmul.f32 %v11909_v62, %v11958_v33  ;;  %v11964_v20 = vld [vmem:[#allocation25_spill] sm:$0xff] }
 0xaac   :  { %v3889_v3 = vpack.c.bf16 %v10130_v7, %v10127_v28  ;;  %v10138_v57 = vsel %vm3515_vm7, %v11956_v42, %v3664_v4  ;;  %v10144_v48 = vsel %vm3519_vm0, %v11957_v50, %v3668_v1  ;;  %v3670_v18 = vmul.f32 %v11909_v62, %v11959_v13  ;;  %v11966_v50 = vld [vmem:[#allocation50_spill] sm:$0xff]  ;;  %v11979_v28 = vld [vmem:[#allocation63_spill] sm:$0xff] }
 0xaad   :  { %v10152_v35 = vsel %vm3514_vm3, %v11945_v26, %v11960_v39  ;;  %v10158_v23 = vsel %vm3518_vm13, %v9634_v30, %v11961_v15  ;;  %vm3530_vm12 = vcmp.ge.f32.partialorder %v9250_v27, 0.0  ;;  %vm3534_vm1 = vcmp.ge.f32.partialorder %v9266_v46, 0.0  ;;  %v11963_v30 = vld [vmem:[#allocation12_spill] sm:$0xff]  ;;  %v11970_v15 = vld [vmem:[#allocation37_spill] sm:$0xff] }
 0xaae   :  { %v3892_v8 = vpack.c.bf16 %v10144_v48, %v10138_v57  ;;  %v10165_v51 = vsel %vm3517_vm6, %v11958_v33, %v3666_v56  ;;  %v3891_v26 = vpack.c.bf16 %v10158_v23, %v10152_v35  ;;  %vm3516_vm3 = vcmp.ge.f32.partialorder %v11962_v47, 0.0  ;;  %v11981_v48 = vld [vmem:[#allocation39_spill] sm:$0xff] }
 0xaaf   :  { %v10171_v2 = vsel %vm3521_vm11, %v11959_v13, %v3670_v18  ;;  %vm3520_vm13 = vcmp.ge.f32.partialorder %v11963_v30, 0.0  ;;  %v3665_v11 = vmul.f32 %v11865_v61, %v11962_v47  ;;  %v3669_v5 = vmul.f32 %v11865_v61, %v11963_v30  ;;  %4257 = vmatmul.mubr.bf16.gmra.mxu0 %v3883_v14  ;;  %v11969_v13 = vld [vmem:[#allocation62_spill] sm:$0xff]  ;;  %v11991_v35 = vld [vmem:[#allocation115_spill] sm:$0xff] }
 0xab0   :  { %vm3532_vm2 = vcmp.ge.f32.partialorder %v9258_v19, 0.0  ;;  %vm3536_vm15 = vcmp.ge.f32.partialorder %v9274_v22, 0.0  ;;  %v3894_v54 = vpack.c.bf16 %v10171_v2, %v10165_v51  ;;  %vm3523_vm4 = vcmp.ge.f32.partialorder %v11964_v20, 0.0  ;;  %4264 = vmatprep.mubr.bf16.mxu0 %v3888_v49  ;;  %v11968_v49 = vld [vmem:[#allocation19_spill] sm:$0xff] }
 0xab1   :  { %vm3527_vm9 = vcmp.ge.f32.partialorder %v11965_v21, 0.0  ;;  %v3672_v41 = vmul.f32 %v11906_v17, %v11964_v20  ;;  %v10190_v36 = vsel %vm3516_vm3, %v11962_v47, %v3665_v11  ;;  %v10193_v40 = vsel %vm3520_vm13, %v11963_v30, %v3669_v5  ;;  %4418 = vmatmul.mubr.bf16.gmra.mxu1 %v3885_v29  ;;  %v11972_v30 = vld [vmem:[#allocation34_spill] sm:$0xff]  ;;  %v11973_v11 = vld [vmem:[#allocation21_spill] sm:$0xff] }
 0xab2   :  { %v3676_v42 = vmul.f32 %v11906_v17, %v11965_v21  ;;  %vm3525_vm14 = vcmp.ge.f32.partialorder %v11966_v50, 0.0  ;;  %v3893_v4 = vpack.c.bf16 %v10193_v40, %v10190_v36  ;;  %vm3529_vm5 = vcmp.ge.f32.partialorder %v11967_v0, 0.0  ;;  %4425 = vmatprep.mubr.bf16.mxu1 %v3890_v55 }
 0xab3   :  { %v10201_v1 = vsel %vm3523_vm4, %v11964_v20, %v3672_v41  ;;  %v3674_v38 = vmul.f32 %v11909_v62, %v11966_v50  ;;  %vm3538_vm7 = vcmp.ge.f32.partialorder %v9282_v12, 0.0  ;;  %vm3542_vm0 = vcmp.ge.f32.partialorder %v9298_v37, 0.0 }
 0xab4   :  { %v10211_v14 = vsel %vm3527_vm9, %v11965_v21, %v3676_v42  ;;  %v3678_v29 = vmul.f32 %v11909_v62, %v11967_v0  ;;  %v10219_v33 = vsel %vm3522_vm8, %v9226_v43, %v11968_v49  ;;  %v10225_v56 = vsel %vm3526_vm10, %v9242_v34, %v11969_v13  ;;  %v11971_v34 = vld [vmem:[#allocation112_spill] sm:$0xff]  ;;  %v11976_v13 = vld [vmem:[#allocation51_spill] sm:$0xff] }
 0xab5   :  { %v3896_v55 = vpack.c.bf16 %v10211_v14, %v10201_v1  ;;  %v10230_v18 = vsel %vm3525_vm14, %v11966_v50, %v3674_v38  ;;  %v3895_v39 = vpack.c.bf16 %v10225_v56, %v10219_v33  ;;  %vm3524_vm6 = vcmp.ge.f32.partialorder %v11970_v15, 0.0  ;;  %v11993_v14 = vld [vmem:[#allocation125_spill] sm:$0xff]  ;;  %v12007_v56 = vld [vmem:[#allocation128_spill] sm:$0xff] }
 0xab6   :  { %vm3540_vm8 = vcmp.ge.f32.partialorder %v9290_v25, 0.0  ;;  %vm3544_vm11 = vcmp.ge.f32.partialorder %v9306_v45, 0.0  ;;  %v10238_v43 = vsel %vm3529_vm5, %v11967_v0, %v3678_v29  ;;  %vm3528_vm10 = vcmp.ge.f32.partialorder %v11971_v34, 0.0  ;;  %v11975_v0 = vld [vmem:[#allocation113_spill] sm:$0xff] }
 0xab7   :  { %v3673_v51 = vmul.f32 %v11865_v61, %v11970_v15  ;;  %v3677_v47 = vmul.f32 %v11865_v61, %v11971_v34  ;;  %v3898_v2 = vpack.c.bf16 %v10238_v43, %v10230_v18  ;;  %vm3531_vm3 = vcmp.ge.f32.partialorder %v11972_v30, 0.0  ;;  %v11974_v61 = vld [vmem:[#allocation120_spill] sm:$0xff]  ;;  %4265 = vmatmul.mubr.bf16.gmra.mxu0 %v3887_v60  ;;  %v11994_v18 = vld [vmem:[#allocation27_spill] sm:$0xff] }
 0xab8   :  { %vm3535_vm13 = vcmp.ge.f32.partialorder %v11973_v11, 0.0  ;;  %v3680_v5 = vmul.f32 %v11906_v17, %v11972_v30  ;;  %v3684_v41 = vmul.f32 %v11906_v17, %v11973_v11  ;;  %vm3533_vm4 = vcmp.ge.f32.partialorder %v11974_v61, 0.0  ;;  %4272 = vmatprep.mubr.bf16.mxu0 %v3892_v8 }
 0xab9   :  { %v10252_v20 = vsel %vm3524_vm6, %v11970_v15, %v3673_v51  ;;  %v10255_v21 = vsel %vm3528_vm10, %v11971_v34, %v3677_v47  ;;  %vm3546_vm9 = vcmp.ge.f32.partialorder %v9314_v10, 0.0  ;;  %vm3550_vm14 = vcmp.ge.f32.partialorder %v9330_v53, 0.0  ;;  %v11977_v34 = vld [vmem:[#allocation36_spill] sm:$0xff]  ;;  %4426 = vmatmul.mubr.bf16.gmra.mxu1 %v3889_v3  ;;  %v11980_v3 = vld [vmem:[#allocation66_spill] sm:$0xff] }
 0xaba   :  { %v3897_v42 = vpack.c.bf16 %v10255_v21, %v10252_v20  ;;  %v10265_v50 = vsel %vm3531_vm3, %v11972_v30, %v3680_v5  ;;  %vm3537_vm5 = vcmp.ge.f32.partialorder %v11975_v0, 0.0  ;;  %v3682_v38 = vmul.f32 %v11909_v62, %v11974_v61  ;;  %4433 = vmatprep.mubr.bf16.mxu1 %v3894_v54  ;;  %v11983_v30 = vld [vmem:[#allocation114_spill] sm:$0xff]  ;;  %v12009_v20 = vld [vmem:[#allocation124_spill] sm:$0xff] }
 0xabb   :  { %v10274_v29 = vsel %vm3535_vm13, %v11973_v11, %v3684_v41  ;;  %v3686_v49 = vmul.f32 %v11909_v62, %v11975_v0  ;;  %v10282_v15 = vsel %vm3530_vm12, %v9250_v27, %v11976_v13  ;;  %v10288_v51 = vsel %vm3534_vm1, %v9266_v46, %v11977_v34 }
 0xabc   :  { %vm3548_vm6 = vcmp.ge.f32.partialorder %v9322_v31, 0.0  ;;  %vm3552_vm10 = vcmp.ge.f32.partialorder %v9338_v24, 0.0  ;;  %v3900_v27 = vpack.c.bf16 %v10274_v29, %v10265_v50  ;;  %v10303_v46 = vsel %vm3533_vm4, %v11974_v61, %v3682_v38  ;;  %v12011_v29 = vld [vmem:[#allocation65_spill] sm:$0xff] }
 0xabd   :  { %v3899_v9 = vpack.c.bf16 %v10288_v51, %v10282_v15  ;;  %vm3539_vm12 = vcmp.ge.f32.partialorder %v11978_v63, 0.0  ;;  %v10311_v60 = vsel %vm3537_vm5, %v11975_v0, %v3686_v49  ;;  %v10317_v7 = vsel %vm3532_vm2, %v9258_v19, %v11979_v28  ;;  %v11984_v0 = vld [vmem:[#allocation43_spill] sm:$0xff] }
 0xabe   :  { %v10323_v57 = vsel %vm3536_vm15, %v9274_v22, %v11980_v3  ;;  %vm3543_vm1 = vcmp.ge.f32.partialorder %v11981_v48, 0.0  ;;  %v3902_v8 = vpack.c.bf16 %v10311_v60, %v10303_v46  ;;  %v3688_v47 = vmul.f32 %v11906_v17, %v11978_v63  ;;  %v11982_v22 = vld [vmem:[#allocation121_spill] sm:$0xff] }
 0xabf   :  { %v3901_v54 = vpack.c.bf16 %v10323_v57, %v10317_v7  ;;  %v3692_v19 = vmul.f32 %v11906_v17, %v11981_v48  ;;  %vm3554_vm2 = vcmp.ge.f32.partialorder %v9346_v59, 0.0  ;;  %vm3558_vm3 = vcmp.ge.f32.partialorder %v9362_v58, 0.0  ;;  %v11986_v3 = vld [vmem:[#allocation45_spill] sm:$0xff]  ;;  %4273 = vmatmul.mubr.bf16.gmra.mxu0 %v3891_v26 }
 0xac0   :  { %vm3541_vm15 = vcmp.ge.f32.partialorder %v11982_v22, 0.0  ;;  %vm3545_vm13 = vcmp.ge.f32.partialorder %v11983_v30, 0.0  ;;  %v3690_v11 = vmul.f32 %v11909_v62, %v11982_v22  ;;  %v3694_v5 = vmul.f32 %v11909_v62, %v11983_v30  ;;  %4280 = vmatprep.mubr.bf16.mxu0 %v3896_v55 }
 0xac1   :  { %v10345_v41 = vsel %vm3539_vm12, %v11978_v63, %v3688_v47  ;;  %v10348_v61 = vsel %vm3543_vm1, %v11981_v48, %v3692_v19  ;;  %v10354_v38 = vsel %vm3538_vm7, %v9282_v12, %v11984_v0  ;;  %v10360_v49 = vsel %vm3542_vm0, %v9298_v37, %v9770_v32  ;;  %v11985_v32 = vld [vmem:[#allocation67_spill] sm:$0xff]  ;;  %v11987_v47 = vld [vmem:[#allocation30_spill] sm:$0xff]  ;;  %4434 = vmatmul.mubr.bf16.gmra.mxu1 %v3893_v4  ;;  %v11992_v4 = vld [vmem:[#allocation101_spill] sm:$0xff] }
 0xac2   :  { %vm3556_vm4 = vcmp.ge.f32.partialorder %v9354_v52, 0.0  ;;  %vm3560_vm5 = vcmp.ge.f32.partialorder %v9370_v6, 0.0  ;;  %v3904_v13 = vpack.c.bf16 %v10348_v61, %v10345_v41  ;;  %v10367_v34 = vsel %vm3541_vm15, %v11982_v22, %v3690_v11  ;;  %v11988_v22 = vld [vmem:[#allocation17_spill] sm:$0xff]  ;;  %v11989_v11 = vld [vmem:[#allocation44_spill] sm:$0xff]  ;;  %4441 = vmatprep.mubr.bf16.mxu1 %v3898_v2 }
 0xac3   :  { %v10370_v63 = vsel %vm3545_vm13, %v11983_v30, %v3694_v5  ;;  %v10380_v28 = vsel %vm3540_vm8, %v9290_v25, %v11985_v32  ;;  %v10386_v48 = vsel %vm3544_vm11, %v9306_v45, %v11986_v3  ;;  %vm3547_vm7 = vcmp.ge.f32.partialorder %v11987_v47, 0.0  ;;  %v11990_v45 = vld [vmem:[#allocation122_spill] sm:$0xff]  ;;  %v11995_v0 = vld [vmem:[#allocation96_spill] sm:$0xff]  ;;  %v12005_v19 = vld [vmem:[#allocation53_spill] sm:$0xff] }
 0xac4   :  { %v3906_v37 = vpack.c.bf16 %v10370_v63, %v10367_v34  ;;  %vm3551_vm0 = vcmp.ge.f32.partialorder %v11988_v22, 0.0  ;;  %v3696_v25 = vmul.f32 %v11906_v17, %v11987_v47  ;;  %v3700_v30 = vmul.f32 %v11906_v17, %v11988_v22  ;;  %v11996_v3 = vld [vmem:[#allocation126_spill] sm:$0xff]  ;;  %v12006_v12 = vld [vmem:[#allocation57_spill] sm:$0xff] }
 0xac5   :  { %vm3562_vm8 = vcmp.ge.f32.partialorder %v11989_v11, 0.0  ;;  %vm3566_vm11 = vcmp.ge.f32.partialorder %v9394_v44, 0.0  ;;  %vm3549_vm12 = vcmp.ge.f32.partialorder %v11990_v45, 0.0  ;;  %vm3553_vm1 = vcmp.ge.f32.partialorder %v11991_v35, 0.0  ;;  %v12027_v41 = vld [vmem:[#allocation137_spill] sm:$0xff] }
 0xac6   :  { %v3698_v23 = vmul.f32 %v11909_v62, %v11990_v45  ;;  %v3702_v26 = vmul.f32 %v11909_v62, %v11991_v35  ;;  %v10417_v36 = vsel %vm3547_vm7, %v11987_v47, %v3696_v25  ;;  %v10420_v40 = vsel %vm3551_vm0, %v11988_v22, %v3700_v30  ;;  %v11997_v22 = vld [vmem:[#allocation24_spill] sm:$0xff]  ;;  %v11998_v30 = vld [vmem:[#allocation35_spill] sm:$0xff] }
 0xac7   :  { %v10426_v1 = vsel %vm3546_vm9, %v9314_v10, %v11992_v4  ;;  %v10432_v55 = vsel %vm3550_vm14, %v9330_v53, %v11993_v14  ;;  %vm3564_vm15 = vcmp.ge.f32.partialorder %v9386_v16, 0.0  ;;  %vm3568_vm13 = vcmp.ge.f32.partialorder %v11994_v18, 0.0  ;;  %v12002_v14 = vld [vmem:[#allocation28_spill] sm:$0xff]  ;;  %v12003_v25 = vld [vmem:[#allocation127_spill] sm:$0xff]  ;;  %v12004_v53 = vld [vmem:[#allocation129_spill] sm:$0xff]  ;;  %4281 = vmatmul.mubr.bf16.gmra.mxu0 %v3895_v39 }
 0xac8   :  { %v10439_v2 = vsel %vm3549_vm12, %v11990_v45, %v3698_v23  ;;  %v10442_v5 = vsel %vm3553_vm1, %v11991_v35, %v3702_v26  ;;  %v10452_v32 = vsel %vm3548_vm6, %v9322_v31, %v11995_v0  ;;  %v10458_v47 = vsel %vm3552_vm10, %v9338_v24, %v11996_v3  ;;  %v11999_v35 = vld [vmem:[#allocation49_spill] sm:$0xff]  ;;  %v12000_v23 = vld [vmem:[#allocation123_spill] sm:$0xff]  ;;  %v12001_v26 = vld [vmem:[#allocation116_spill] sm:$0xff]  ;;  %4288 = vmatprep.mubr.bf16.mxu0 %v3900_v27 }
 0xac9   :  { %vm3555_vm9 = vcmp.ge.f32.partialorder %v11997_v22, 0.0  ;;  %vm3559_vm14 = vcmp.ge.f32.partialorder %v11998_v30, 0.0  ;;  %v3704_v45 = vmul.f32 %v11906_v17, %v11997_v22  ;;  %v3708_v31 = vmul.f32 %v11906_v17, %v11998_v30  ;;  %4442 = vmatmul.mubr.bf16.gmra.mxu1 %v3897_v42  ;;  %v12010_v42 = vld [vmem:[#allocation16_spill] sm:$0xff]  ;;  %v12013_v27 = vld [vmem:[#allocation33_spill] sm:$0xff] }
 0xaca   :  { %vm3570_vm6 = vcmp.ge.f32.partialorder %v11999_v35, 0.0  ;;  %vm3557_vm7 = vcmp.ge.f32.partialorder %v12000_v23, 0.0  ;;  %vm3561_vm10 = vcmp.ge.f32.partialorder %v12001_v26, 0.0  ;;  %v3706_v24 = vmul.f32 %v11909_v62, %v12000_v23  ;;  %4449 = vmatprep.mubr.bf16.mxu1 %v3902_v8 }
 0xacb   :  { %v3710_v4 = vmul.f32 %v11909_v62, %v12001_v26  ;;  %vm3574_vm0 = vcmp.ge.f32.partialorder %v12002_v14, 0.0  ;;  %v10477_v0 = vsel %vm3555_vm9, %v11997_v22, %v3704_v45  ;;  %v10480_v3 = vsel %vm3559_vm14, %v11998_v30, %v3708_v31  ;;  %v12014_v45 = vld [vmem:[#allocation71_spill] sm:$0xff] }
 0xacc   :  { %v10486_v10 = vsel %vm3554_vm2, %v9346_v59, %v12003_v25  ;;  %v10492_v43 = vsel %vm3558_vm3, %v9362_v58, %v12004_v53  ;;  %vm3572_vm12 = vcmp.ge.f32.partialorder %v12005_v19, 0.0  ;;  %vm3576_vm1 = vcmp.ge.f32.partialorder %v12006_v12, 0.0  ;;  %v12008_v53 = vld [vmem:[#allocation130_spill] sm:$0xff]  ;;  %v12021_v58 = vld [vmem:[#allocation40_spill] sm:$0xff] }
 0xacd   :  { %v3912_v22 = vpack.c.bf16 %v10480_v3, %v10477_v0  ;;  %v10502_v59 = vsel %vm3557_vm7, %v12000_v23, %v3706_v24  ;;  %v10505_v25 = vsel %vm3561_vm10, %v12001_v26, %v3710_v4  ;;  %v10521_v39 = vsel %vm3556_vm4, %v9354_v52, %v12007_v56  ;;  %v12015_v23 = vld [vmem:[#allocation131_spill] sm:$0xff]  ;;  %v12016_v24 = vld [vmem:[#allocation133_spill] sm:$0xff]  ;;  %v12017_v56 = vld [vmem:[#allocation64_spill] sm:$0xff] }
 0xace   :  { %v3914_v33 = vpack.c.bf16 %v10505_v25, %v10502_v59  ;;  %v10527_v30 = vsel %vm3560_vm5, %v9370_v6, %v12008_v53  ;;  %vm3563_vm2 = vcmp.ge.f32.partialorder %v12009_v20, 0.0  ;;  %vm3567_vm3 = vcmp.ge.f32.partialorder %v12010_v42, 0.0  ;;  %v12012_v6 = vld [vmem:[#allocation69_spill] sm:$0xff]  ;;  %v12018_v53 = vld [vmem:[#allocation68_spill] sm:$0xff] }
 0xacf   :  { %v3712_v52 = vmul.f32 %v11906_v17, %v12009_v20  ;;  %v3716_v50 = vmul.f32 %v11906_v17, %v12010_v42  ;;  %vm3578_vm4 = vcmp.ge.f32.partialorder %v12011_v29, 0.0  ;;  %vm3582_vm5 = vcmp.ge.f32.partialorder %v12012_v6, 0.0  ;;  %4289 = vmatmul.mubr.bf16.gmra.mxu0 %v3899_v9  ;;  %v12025_v9 = vld [vmem:[#allocation135_spill] sm:$0xff] }
 0xad0   :  { %vm3565_vm9 = vcmp.ge.f32.partialorder %v12013_v27, 0.0  ;;  %vm3569_vm14 = vcmp.ge.f32.partialorder %v12014_v45, 0.0  ;;  %v3714_v46 = vmul.f32 %v11909_v62, %v12013_v27  ;;  %v3718_v60 = vmul.f32 %v11909_v62, %v12014_v45  ;;  %4296 = vmatprep.mubr.bf16.mxu0 %v3904_v13 }
 0xad1   :  { %v10549_v8 = vsel %vm3563_vm2, %v12009_v20, %v3712_v52  ;;  %v10552_v31 = vsel %vm3567_vm3, %v12010_v42, %v3716_v50  ;;  %v10558_v26 = vsel %vm3562_vm8, %v11989_v11, %v12015_v23  ;;  %v10564_v4 = vsel %vm3566_vm11, %v9394_v44, %v12016_v24  ;;  %v12019_v23 = vld [vmem:[#allocation132_spill] sm:$0xff]  ;;  %v12020_v24 = vld [vmem:[#allocation134_spill] sm:$0xff]  ;;  %4450 = vmatmul.mubr.bf16.gmra.mxu1 %v3901_v54 }
 0xad2   :  { %vm3580_vm7 = vcmp.ge.f32.partialorder %v12017_v56, 0.0  ;;  %vm3584_vm10 = vcmp.ge.f32.partialorder %v12018_v53, 0.0  ;;  %v3916_v20 = vpack.c.bf16 %v10552_v31, %v10549_v8  ;;  %v3842_v42 = vsel %vm3565_vm9, %v12013_v27, %v3714_v46  ;;  %v12022_v27 = vld [vmem:[#allocation78_spill] sm:$0xff]  ;;  %4457 = vmatprep.mubr.bf16.mxu1 %v3906_v37  ;;  %v12030_v37 = vld [vmem:[#allocation103_spill] sm:$0xff] }
 0xad3   :  { %v3846_v52 = vsel %vm3569_vm14, %v12014_v45, %v3718_v60  ;;  %v3915_v11 = vpack.c.bf16 %v10564_v4, %v10558_v26  ;;  %v3841_v44 = vsel %vm3564_vm15, %v9386_v16, %v12019_v23  ;;  %v3845_v21 = vsel %vm3568_vm13, %v11994_v18, %v12020_v24  ;;  %v12023_v16 = vld [vmem:[#allocation79_spill] sm:$0xff]  ;;  %v12024_v60 = vld [vmem:[#allocation70_spill] sm:$0xff]  ;;  %v12028_v4 = vld [vmem:[#allocation136_spill] sm:$0xff] }
 0xad4   :  { %v3918_v50 = vpack.c.bf16 %v3846_v52, %v3842_v42  ;;  %vm3571_vm8 = vcmp.ge.f32.partialorder %v12021_v58, 0.0  ;;  %v3917_v8 = vpack.c.bf16 %v3845_v21, %v3841_v44  ;;  %vm3575_vm11 = vcmp.ge.f32.partialorder %v12022_v27, 0.0  ;;  %v12026_v26 = vld [vmem:[#allocation98_spill] sm:$0xff]  ;;  %v12031_v23 = vld [vmem:[#allocation105_spill] sm:$0xff]  ;;  %v12032_v44 = vld [vmem:[#allocation107_spill] sm:$0xff] }
 0xad5   :  { %v3720_v45 = vmul.f32 %v11906_v17, %v12021_v58  ;;  %v3724_v46 = vmul.f32 %v11906_v17, %v12022_v27  ;;  %vm3573_vm15 = vcmp.ge.f32.partialorder %v12023_v16, 0.0  ;;  %vm3577_vm2 = vcmp.ge.f32.partialorder %v12024_v60, 0.0  ;;  %v12029_v42 = vld [vmem:[#allocation138_spill] sm:$0xff] }
 0xad6   :  { %v3722_v18 = vmul.f32 %v11909_v62, %v12023_v16  ;;  %v3726_v21 = vmul.f32 %v11909_v62, %v12024_v60  ;;  %v3847_v31 = vsel %vm3570_vm6, %v11999_v35, %v12025_v9  ;;  %vm3579_vm13 = vcmp.ge.f32.partialorder %v12026_v26, 0.0  ;;  %v12036_v9 = vld [vmem:[#allocation140_spill] sm:$0xff] }
 0xad7   :  { %v3848_v15 = vsel %vm3571_vm8, %v12021_v58, %v3720_v45  ;;  %v3852_v51 = vsel %vm3575_vm11, %v12022_v27, %v3724_v46  ;;  %v3851_v61 = vsel %vm3574_vm0, %v12002_v14, %v12027_v41  ;;  %v3849_v35 = vsel %vm3572_vm12, %v12005_v19, %v12028_v4  ;;  %v12033_v45 = vld [vmem:[#allocation139_spill] sm:$0xff]  ;;  %v12034_v46 = vld [vmem:[#allocation141_spill] sm:$0xff] }
 0xad8   :  { %v3920_v7 = vpack.c.bf16 %v3852_v51, %v3848_v15  ;;  %v3850_v57 = vsel %vm3573_vm15, %v12023_v16, %v3722_v18  ;;  %v3854_v54 = vsel %vm3577_vm2, %v12024_v60, %v3726_v21  ;;  %v3919_v58 = vpack.c.bf16 %v3851_v61, %v3847_v31  ;;  %v12037_v31 = vld [vmem:[#allocation142_spill] sm:$0xff] }
 0xad9   :  { %v3922_v13 = vpack.c.bf16 %v3854_v54, %v3850_v57  ;;  %v3853_v34 = vsel %vm3576_vm1, %v12006_v12, %v12029_v42  ;;  %vm3583_vm6 = vcmp.ge.f32.partialorder %v12030_v37, 0.0  ;;  %v3728_v52 = vmul.f32 %v11906_v17, %v12026_v26 }
 0xada   :  { %v3921_v63 = vpack.c.bf16 %v3853_v34, %v3849_v35  ;;  %v3732_v14 = vmul.f32 %v11906_v17, %v12030_v37  ;;  %vm3581_vm0 = vcmp.ge.f32.partialorder %v12031_v23, 0.0  ;;  %vm3585_vm3 = vcmp.ge.f32.partialorder %v12032_v44, 0.0 }
 0xadb   :  { %v3730_v19 = vmul.f32 %v11909_v62, %v12031_v23  ;;  %v3734_v24 = vmul.f32 %v11909_v62, %v12032_v44  ;;  %v3856_v12 = vsel %vm3579_vm13, %v12026_v26, %v3728_v52  ;;  %v3855_v17 = vsel %vm3578_vm4, %v12011_v29, %v12033_v45 }
 0xadc   :  { %v3860_v27 = vsel %vm3583_vm6, %v12030_v37, %v3732_v14  ;;  %v3859_v16 = vsel %vm3582_vm5, %v12012_v6, %v12034_v46  ;;  %v12035_v15 = vpack.c.bf16 %v10360_v49, %v10354_v38  ;;  %v3857_v29 = vsel %vm3580_vm7, %v12017_v56, %v12036_v9 }
 0xadd   :  { %v3924_v60 = vpack.c.bf16 %v3860_v27, %v3856_v12  ;;  %v3858_v18 = vsel %vm3581_vm0, %v12031_v23, %v3730_v19  ;;  %v3862_v62 = vsel %vm3585_vm3, %v12032_v44, %v3734_v24  ;;  %v3923_v21 = vpack.c.bf16 %v3859_v16, %v3855_v17 }
 0xade   :  { %4297 = vmatmul.mubr.bf16.gmra.mxu0 %v12035_v15  ;;  %v3926_v51 = vpack.c.bf16 %v3862_v62, %v3858_v18  ;;  %v3861_v6 = vsel %vm3584_vm10, %v12018_v53, %v12037_v31  ;;  %v12038_v26 = vpack.c.bf16 %v10386_v48, %v10380_v28  ;;  %v12039_v57 = vpack.c.bf16 %v10420_v40, %v10417_v36 }
 0xadf   :  { %v3925_v38 = vpack.c.bf16 %v3861_v6, %v3857_v29  ;;  %v12040_v49 = vpack.c.bf16 %v10442_v5, %v10439_v2  ;;  %v12041_v56 = vpack.c.bf16 %v10432_v55, %v10426_v1  ;;  %v12042_v53 = vpack.c.bf16 %v10458_v47, %v10452_v32  ;;  %v10690_v1 = vld [vmem:[#allocation7 + $0x21] ss:$0 sm:$0xff] }
 0xae0   :  { %4458 = vmatmul.mubr.bf16.gmra.mxu1 %v12038_v26  ;;  %4304 = vmatprep.mubr.bf16.mxu0 %v12039_v57  ;;  %v12043_v28 = vpack.c.bf16 %v10492_v43, %v10486_v10  ;;  %v12044_v48 = vpack.c.bf16 %v10527_v30, %v10521_v39 }
 0xae1   :  { %4465 = vmatprep.mubr.bf16.mxu1 %v12040_v49 }
 0xae6   :  { %4305 = vmatmul.mubr.bf16.gmra.mxu0 %v12041_v56 }
 0xae7   :  { %4312 = vmatprep.mubr.bf16.mxu0 %v3912_v22 }
 0xae8   :  { %4466 = vmatmul.mubr.bf16.gmra.mxu1 %v12042_v53 }
 0xae9   :  { %4473 = vmatprep.mubr.bf16.mxu1 %v3914_v33 }
 0xaee   :  { %4313 = vmatmul.mubr.bf16.gmra.mxu0 %v12043_v28 }
 0xaef   :  { %4320 = vmatprep.mubr.bf16.mxu0 %v3916_v20 }
 0xaf0   :  { %4474 = vmatmul.mubr.bf16.gmra.mxu1 %v12044_v48 }
 0xaf1   :  { %4481 = vmatprep.mubr.bf16.mxu1 %v3918_v50 }
 0xaf6   :  { %4321 = vmatmul.mubr.bf16.gmra.mxu0 %v3915_v11 }
 0xaf7   :  { %4328 = vmatprep.mubr.bf16.mxu0 %v3920_v7 }
 0xaf8   :  { %4482 = vmatmul.mubr.bf16.gmra.mxu1 %v3917_v8 }
 0xaf9   :  { %4489 = vmatprep.mubr.bf16.mxu1 %v3922_v13 }
 0xafe   :  { %4329 = vmatmul.mubr.bf16.gmra.mxu0 %v3919_v58 }
 0xaff   :  { %4336 = vmatprep.mubr.bf16.mxu0 %v3924_v60 }
 0xb00   :  { %4490 = vmatmul.mubr.bf16.gmra.mxu1 %v3921_v63 }
 0xb01   :  { %4497 = vmatprep.mubr.bf16.mxu1 %v3926_v51 }
 0xb06   :  { %4337 = vmatmul.mubr.bf16.gmra.mxu0 %v3923_v21 }
 0xb08   :  { %4498 = vmatmul.mubr.bf16.gmra.mxu1 %v3925_v38 }
 0xb47   :  { %v4806_v36 = vpop.f32.mrf.mxu0 }
 0xb49   :  { %v4918_v40 = vpop.f32.mrf.mxu1  ;;  %v4807_v55 = vpop.f32.mrf.mxu0 }
 0xb4a   :  { %v4808_v43 = vadd.f32 %v4807_v55, %v4806_v36 }
 0xb4b   :  { %v4919_v2 = vpop.f32.mrf.mxu1  ;;  %v4809_v5 = vpop.f32.mrf.mxu0 }
 0xb4c   :  { %v4219_v10 = vadd.f32 %v4808_v43, %v10690_v1  ;;  %v4920_v32 = vadd.f32 %v4919_v2, %v4918_v40 }
 0xb4d   :  { %v4921_v47 = vpop.f32.mrf.mxu1  ;;  %v4810_v0 = vpop.f32.mrf.mxu0 }
 0xb4e   :  { %v4380_v3 = vadd.f32 %v4920_v32, %v4219_v10  ;;  %v4811_v22 = vadd.f32 %v4810_v0, %v4809_v5 }
 0xb4f   :  { %v4922_v59 = vpop.f32.mrf.mxu1  ;;  %v4812_v25 = vpop.f32.mrf.mxu0 }
 0xb50   :  { %4506 = vst [vmem:[#allocation8] sm:$0xff] %v4380_v3  ;;  %v4222_v33 = vadd.f32 %v4811_v22, %v10690_v1  ;;  %v4923_v39 = vadd.f32 %v4922_v59, %v4921_v47 }
 0xb51   :  { %v4924_v30 = vpop.f32.mrf.mxu1  ;;  %v4813_v20 = vpop.f32.mrf.mxu0 }
 0xb52   :  { %v4383_v11 = vadd.f32 %v4923_v39, %v4222_v33  ;;  %v4814_v50 = vadd.f32 %v4813_v20, %v4812_v25 }
 0xb53   :  { %v4925_v8 = vpop.f32.mrf.mxu1  ;;  %v4815_v7 = vpop.f32.mrf.mxu0 }
 0xb54   :  { %4507 = vst [vmem:[#allocation8 + $0x8] sm:$0xff] %v4383_v11  ;;  %v4227_v54 = vadd.f32 %v4814_v50, %v10690_v1  ;;  %v4926_v41 = vadd.f32 %v4925_v8, %v4924_v30 }
 0xb55   :  { %v4927_v61 = vpop.f32.mrf.mxu1  ;;  %v4816_v13 = vpop.f32.mrf.mxu0 }
 0xb56   :  { %v4388_v58 = vadd.f32 %v4926_v41, %v4227_v54  ;;  %v4817_v4 = vadd.f32 %v4816_v13, %v4815_v7 }
 0xb57   :  { %v4928_v35 = vpop.f32.mrf.mxu1  ;;  %v4818_v42 = vpop.f32.mrf.mxu0 }
 0xb58   :  { %4508 = vst [vmem:[#allocation8 + $0x10] sm:$0xff] %v4388_v58  ;;  %v4230_v34 = vadd.f32 %v4817_v4, %v10690_v1  ;;  %v4929_v63 = vadd.f32 %v4928_v35, %v4927_v61 }
 0xb59   :  { %v4930_v37 = vpop.f32.mrf.mxu1  ;;  %v4819_v52 = vpop.f32.mrf.mxu0 }
 0xb5a   :  { %v4391_v14 = vadd.f32 %v4929_v63, %v4230_v34  ;;  %v4820_v23 = vadd.f32 %v4819_v52, %v4818_v42 }
 0xb5b   :  { %v4931_v44 = vpop.f32.mrf.mxu1  ;;  %v4821_v19 = vpop.f32.mrf.mxu0 }
 0xb5c   :  { %4509 = vst [vmem:[#allocation8 + $0x18] sm:$0xff] %v4391_v14  ;;  %v4235_v24 = vadd.f32 %v4820_v23, %v10690_v1  ;;  %v4932_v12 = vadd.f32 %v4931_v44, %v4930_v37 }
 0xb5d   :  { %v4933_v27 = vpop.f32.mrf.mxu1  ;;  %v4822_v45 = vpop.f32.mrf.mxu0 }
 0xb5e   :  { %v4396_v17 = vadd.f32 %v4932_v12, %v4235_v24  ;;  %v4823_v46 = vadd.f32 %v4822_v45, %v4821_v19 }
 0xb5f   :  { %v4934_v16 = vpop.f32.mrf.mxu1  ;;  %v4824_v60 = vpop.f32.mrf.mxu0 }
 0xb60   :  { %4510 = vst [vmem:[#allocation8 + $0x20] sm:$0xff] %v4396_v17  ;;  %v4238_v18 = vadd.f32 %v4823_v46, %v10690_v1  ;;  %v4935_v62 = vadd.f32 %v4934_v16, %v4933_v27 }
 0xb61   :  { %v4936_v21 = vpop.f32.mrf.mxu1  ;;  %v4825_v15 = vpop.f32.mrf.mxu0 }
 0xb62   :  { %v4399_v51 = vadd.f32 %v4935_v62, %v4238_v18  ;;  %v4826_v9 = vadd.f32 %v4825_v15, %v4824_v60 }
 0xb63   :  { %v4937_v29 = vpop.f32.mrf.mxu1  ;;  %v4827_v31 = vpop.f32.mrf.mxu0 }
 0xb64   :  { %4511 = vst [vmem:[#allocation8 + $0x28] sm:$0xff] %v4399_v51  ;;  %v4243_v6 = vadd.f32 %v4826_v9, %v10690_v1  ;;  %v4938_v26 = vadd.f32 %v4937_v29, %v4936_v21 }
 0xb65   :  { %v4939_v57 = vpop.f32.mrf.mxu1  ;;  %v4828_v38 = vpop.f32.mrf.mxu0 }
 0xb66   :  { %v4404_v49 = vadd.f32 %v4938_v26, %v4243_v6  ;;  %v4829_v56 = vadd.f32 %v4828_v38, %v4827_v31 }
 0xb67   :  { %v4940_v53 = vpop.f32.mrf.mxu1  ;;  %v4830_v28 = vpop.f32.mrf.mxu0 }
 0xb68   :  { %4512 = vst [vmem:[#allocation8 + $0x30] sm:$0xff] %v4404_v49  ;;  %v4246_v48 = vadd.f32 %v4829_v56, %v10690_v1  ;;  %v4941_v36 = vadd.f32 %v4940_v53, %v4939_v57 }
 0xb69   :  { %v4942_v40 = vpop.f32.mrf.mxu1  ;;  %v4831_v55 = vpop.f32.mrf.mxu0 }
 0xb6a   :  { %v4407_v43 = vadd.f32 %v4941_v36, %v4246_v48  ;;  %v4832_v2 = vadd.f32 %v4831_v55, %v4830_v28 }
 0xb6b   :  { %v4943_v5 = vpop.f32.mrf.mxu1  ;;  %v4833_v10 = vpop.f32.mrf.mxu0 }
 0xb6c   :  { %4513 = vst [vmem:[#allocation8 + $0x38] sm:$0xff] %v4407_v43  ;;  %v4251_v32 = vadd.f32 %v4832_v2, %v10690_v1  ;;  %v4944_v47 = vadd.f32 %v4943_v5, %v4942_v40 }
 0xb6d   :  { %v4945_v0 = vpop.f32.mrf.mxu1  ;;  %v4834_v3 = vpop.f32.mrf.mxu0 }
 0xb6e   :  { %v4412_v22 = vadd.f32 %v4944_v47, %v4251_v32  ;;  %v4835_v59 = vadd.f32 %v4834_v3, %v4833_v10 }
 0xb6f   :  { %v4946_v25 = vpop.f32.mrf.mxu1  ;;  %v4836_v33 = vpop.f32.mrf.mxu0 }
 0xb70   :  { %4514 = vst [vmem:[#allocation8 + $0x40] sm:$0xff] %v4412_v22  ;;  %v4254_v39 = vadd.f32 %v4835_v59, %v10690_v1  ;;  %v4947_v30 = vadd.f32 %v4946_v25, %v4945_v0 }
 0xb71   :  { %v4948_v20 = vpop.f32.mrf.mxu1  ;;  %v4837_v11 = vpop.f32.mrf.mxu0 }
 0xb72   :  { %v4415_v50 = vadd.f32 %v4947_v30, %v4254_v39  ;;  %v4838_v8 = vadd.f32 %v4837_v11, %v4836_v33 }
 0xb73   :  { %v4949_v7 = vpop.f32.mrf.mxu1  ;;  %v4839_v54 = vpop.f32.mrf.mxu0 }
 0xb74   :  { %4515 = vst [vmem:[#allocation8 + $0x48] sm:$0xff] %v4415_v50  ;;  %v4259_v41 = vadd.f32 %v4838_v8, %v10690_v1  ;;  %v4950_v61 = vadd.f32 %v4949_v7, %v4948_v20 }
 0xb75   :  { %v4951_v13 = vpop.f32.mrf.mxu1  ;;  %v4840_v58 = vpop.f32.mrf.mxu0 }
 0xb76   :  { %v4420_v4 = vadd.f32 %v4950_v61, %v4259_v41  ;;  %v4841_v35 = vadd.f32 %v4840_v58, %v4839_v54 }
 0xb77   :  { %v4952_v42 = vpop.f32.mrf.mxu1  ;;  %v4842_v34 = vpop.f32.mrf.mxu0 }
 0xb78   :  { %4516 = vst [vmem:[#allocation8 + $0x50] sm:$0xff] %v4420_v4  ;;  %v4262_v63 = vadd.f32 %v4841_v35, %v10690_v1  ;;  %v4953_v37 = vadd.f32 %v4952_v42, %v4951_v13 }
 0xb79   :  { %v4954_v52 = vpop.f32.mrf.mxu1  ;;  %v4843_v14 = vpop.f32.mrf.mxu0 }
 0xb7a   :  { %v4423_v23 = vadd.f32 %v4953_v37, %v4262_v63  ;;  %v4844_v44 = vadd.f32 %v4843_v14, %v4842_v34 }
 0xb7b   :  { %v4955_v19 = vpop.f32.mrf.mxu1  ;;  %v4845_v24 = vpop.f32.mrf.mxu0 }
 0xb7c   :  { %4517 = vst [vmem:[#allocation8 + $0x58] sm:$0xff] %v4423_v23  ;;  %v4267_v12 = vadd.f32 %v4844_v44, %v10690_v1  ;;  %v4956_v27 = vadd.f32 %v4955_v19, %v4954_v52 }
 0xb7d   :  { %v4957_v45 = vpop.f32.mrf.mxu1  ;;  %v4846_v17 = vpop.f32.mrf.mxu0 }
 0xb7e   :  { %v4428_v46 = vadd.f32 %v4956_v27, %v4267_v12  ;;  %v4847_v16 = vadd.f32 %v4846_v17, %v4845_v24 }
 0xb7f   :  { %v4958_v60 = vpop.f32.mrf.mxu1  ;;  %v4848_v18 = vpop.f32.mrf.mxu0 }
 0xb80   :  { %4518 = vst [vmem:[#allocation8 + $0x60] sm:$0xff] %v4428_v46  ;;  %v4270_v62 = vadd.f32 %v4847_v16, %v10690_v1  ;;  %v4959_v21 = vadd.f32 %v4958_v60, %v4957_v45 }
 0xb81   :  { %v4960_v15 = vpop.f32.mrf.mxu1  ;;  %v4849_v51 = vpop.f32.mrf.mxu0 }
 0xb82   :  { %v4431_v9 = vadd.f32 %v4959_v21, %v4270_v62  ;;  %v4850_v29 = vadd.f32 %v4849_v51, %v4848_v18 }
 0xb83   :  { %v4961_v31 = vpop.f32.mrf.mxu1  ;;  %v4851_v6 = vpop.f32.mrf.mxu0 }
 0xb84   :  { %4519 = vst [vmem:[#allocation8 + $0x68] sm:$0xff] %v4431_v9  ;;  %v4275_v26 = vadd.f32 %v4850_v29, %v10690_v1  ;;  %v4962_v57 = vadd.f32 %v4961_v31, %v4960_v15 }
 0xb85   :  { %v4963_v38 = vpop.f32.mrf.mxu1  ;;  %v4852_v49 = vpop.f32.mrf.mxu0 }
 0xb86   :  { %v4436_v56 = vadd.f32 %v4962_v57, %v4275_v26  ;;  %v4853_v53 = vadd.f32 %v4852_v49, %v4851_v6 }
 0xb87   :  { %v4964_v28 = vpop.f32.mrf.mxu1  ;;  %v4854_v48 = vpop.f32.mrf.mxu0 }
 0xb88   :  { %4520 = vst [vmem:[#allocation8 + $0x70] sm:$0xff] %v4436_v56  ;;  %v4278_v36 = vadd.f32 %v4853_v53, %v10690_v1  ;;  %v4965_v40 = vadd.f32 %v4964_v28, %v4963_v38 }
 0xb89   :  { %v4966_v55 = vpop.f32.mrf.mxu1  ;;  %v4855_v43 = vpop.f32.mrf.mxu0 }
 0xb8a   :  { %v4439_v2 = vadd.f32 %v4965_v40, %v4278_v36  ;;  %v4856_v5 = vadd.f32 %v4855_v43, %v4854_v48 }
 0xb8b   :  { %v4967_v10 = vpop.f32.mrf.mxu1  ;;  %v4857_v32 = vpop.f32.mrf.mxu0 }
 0xb8c   :  { %4521 = vst [vmem:[#allocation8 + $0x78] sm:$0xff] %v4439_v2  ;;  %v4283_v47 = vadd.f32 %v4856_v5, %v10690_v1  ;;  %v4968_v0 = vadd.f32 %v4967_v10, %v4966_v55 }
 0xb8d   :  { %v4969_v3 = vpop.f32.mrf.mxu1  ;;  %v4858_v22 = vpop.f32.mrf.mxu0 }
 0xb8e   :  { %v4444_v59 = vadd.f32 %v4968_v0, %v4283_v47  ;;  %v4859_v25 = vadd.f32 %v4858_v22, %v4857_v32 }
 0xb8f   :  { %v4970_v33 = vpop.f32.mrf.mxu1  ;;  %v4860_v39 = vpop.f32.mrf.mxu0 }
 0xb90   :  { %4522 = vst [vmem:[#allocation8 + $0x80] sm:$0xff] %v4444_v59  ;;  %v4286_v30 = vadd.f32 %v4859_v25, %v10690_v1  ;;  %v4971_v20 = vadd.f32 %v4970_v33, %v4969_v3 }
 0xb91   :  { %v4972_v11 = vpop.f32.mrf.mxu1  ;;  %v4861_v50 = vpop.f32.mrf.mxu0 }
 0xb92   :  { %v4447_v8 = vadd.f32 %v4971_v20, %v4286_v30  ;;  %v4862_v7 = vadd.f32 %v4861_v50, %v4860_v39 }
 0xb93   :  { %v4973_v54 = vpop.f32.mrf.mxu1  ;;  %v4863_v41 = vpop.f32.mrf.mxu0 }
 0xb94   :  { %4523 = vst [vmem:[#allocation8 + $0x88] sm:$0xff] %v4447_v8  ;;  %v4291_v61 = vadd.f32 %v4862_v7, %v10690_v1  ;;  %v4974_v13 = vadd.f32 %v4973_v54, %v4972_v11 }
 0xb95   :  { %v4975_v58 = vpop.f32.mrf.mxu1  ;;  %v4864_v4 = vpop.f32.mrf.mxu0 }
 0xb96   :  { %v4452_v35 = vadd.f32 %v4974_v13, %v4291_v61  ;;  %v4865_v42 = vadd.f32 %v4864_v4, %v4863_v41 }
 0xb97   :  { %v4976_v34 = vpop.f32.mrf.mxu1 }
 0xb98   :  { %4524 = vst [vmem:[#allocation8 + $0x90] sm:$0xff] %v4452_v35  ;;  %v4294_v37 = vadd.f32 %v4865_v42, %v10690_v1  ;;  %v4977_v52 = vadd.f32 %v4976_v34, %v4975_v58 }
 0xb9a   :  { %v4455_v44 = vadd.f32 %v4977_v52, %v4294_v37 }
 0xb9c   :  { %4525 = vst [vmem:[#allocation8 + $0x98] sm:$0xff] %v4455_v44 }
 0xb9e   :  { %v4866_v63 = vpop.f32.mrf.mxu0 }
 0xba0   :  { %v4978_v14 = vpop.f32.mrf.mxu1  ;;  %v4867_v23 = vpop.f32.mrf.mxu0 }
 0xba1   :  { %v4868_v19 = vadd.f32 %v4867_v23, %v4866_v63 }
 0xba2   :  { %v4979_v24 = vpop.f32.mrf.mxu1  ;;  %v4869_v12 = vpop.f32.mrf.mxu0 }
 0xba3   :  { %v4299_v27 = vadd.f32 %v4868_v19, %v10690_v1  ;;  %v4980_v45 = vadd.f32 %v4979_v24, %v4978_v14 }
 0xba4   :  { %v4981_v17 = vpop.f32.mrf.mxu1  ;;  %v4870_v46 = vpop.f32.mrf.mxu0 }
 0xba5   :  { %v4460_v16 = vadd.f32 %v4980_v45, %v4299_v27  ;;  %v4871_v60 = vadd.f32 %v4870_v46, %v4869_v12 }
 0xba6   :  { %v4982_v18 = vpop.f32.mrf.mxu1  ;;  %v4872_v62 = vpop.f32.mrf.mxu0 }
 0xba7   :  { %4526 = vst [vmem:[#allocation8 + $0xa0] sm:$0xff] %v4460_v16  ;;  %v4302_v21 = vadd.f32 %v4871_v60, %v10690_v1  ;;  %v4983_v15 = vadd.f32 %v4982_v18, %v4981_v17 }
 0xba8   :  { %v4984_v51 = vpop.f32.mrf.mxu1  ;;  %v4873_v9 = vpop.f32.mrf.mxu0 }
 0xba9   :  { %v4463_v29 = vadd.f32 %v4983_v15, %v4302_v21  ;;  %v4874_v31 = vadd.f32 %v4873_v9, %v4872_v62 }
 0xbaa   :  { %v4985_v6 = vpop.f32.mrf.mxu1  ;;  %v4875_v26 = vpop.f32.mrf.mxu0 }
 0xbab   :  { %4527 = vst [vmem:[#allocation8 + $0xa8] sm:$0xff] %v4463_v29  ;;  %v4307_v57 = vadd.f32 %v4874_v31, %v10690_v1  ;;  %v4986_v38 = vadd.f32 %v4985_v6, %v4984_v51 }
 0xbac   :  { %v4987_v49 = vpop.f32.mrf.mxu1  ;;  %v4876_v56 = vpop.f32.mrf.mxu0 }
 0xbad   :  { %v4468_v53 = vadd.f32 %v4986_v38, %v4307_v57  ;;  %v4877_v28 = vadd.f32 %v4876_v56, %v4875_v26 }
 0xbae   :  { %v4988_v48 = vpop.f32.mrf.mxu1  ;;  %v4878_v36 = vpop.f32.mrf.mxu0 }
 0xbaf   :  { %4528 = vst [vmem:[#allocation8 + $0xb0] sm:$0xff] %v4468_v53  ;;  %v4310_v40 = vadd.f32 %v4877_v28, %v10690_v1  ;;  %v4989_v55 = vadd.f32 %v4988_v48, %v4987_v49 }
 0xbb0   :  { %v4990_v43 = vpop.f32.mrf.mxu1  ;;  %v4879_v2 = vpop.f32.mrf.mxu0 }
 0xbb1   :  { %v4471_v5 = vadd.f32 %v4989_v55, %v4310_v40  ;;  %v4880_v10 = vadd.f32 %v4879_v2, %v4878_v36 }
 0xbb2   :  { %v4991_v32 = vpop.f32.mrf.mxu1  ;;  %v4881_v47 = vpop.f32.mrf.mxu0 }
 0xbb3   :  { %4529 = vst [vmem:[#allocation8 + $0xb8] sm:$0xff] %v4471_v5  ;;  %v4315_v0 = vadd.f32 %v4880_v10, %v10690_v1  ;;  %v4992_v3 = vadd.f32 %v4991_v32, %v4990_v43 }
 0xbb4   :  { %v4993_v22 = vpop.f32.mrf.mxu1  ;;  %v4882_v59 = vpop.f32.mrf.mxu0 }
 0xbb5   :  { %v4476_v25 = vadd.f32 %v4992_v3, %v4315_v0  ;;  %v4883_v33 = vadd.f32 %v4882_v59, %v4881_v47 }
 0xbb6   :  { %v4994_v39 = vpop.f32.mrf.mxu1  ;;  %v4884_v30 = vpop.f32.mrf.mxu0 }
 0xbb7   :  { %4530 = vst [vmem:[#allocation8 + $0xc0] sm:$0xff] %v4476_v25  ;;  %v4318_v20 = vadd.f32 %v4883_v33, %v10690_v1  ;;  %v4995_v11 = vadd.f32 %v4994_v39, %v4993_v22 }
 0xbb8   :  { %v4996_v50 = vpop.f32.mrf.mxu1  ;;  %v4885_v8 = vpop.f32.mrf.mxu0 }
 0xbb9   :  { %v4479_v7 = vadd.f32 %v4995_v11, %v4318_v20  ;;  %v4886_v54 = vadd.f32 %v4885_v8, %v4884_v30 }
 0xbba   :  { %v4997_v41 = vpop.f32.mrf.mxu1  ;;  %v4887_v61 = vpop.f32.mrf.mxu0 }
 0xbbb   :  { %4531 = vst [vmem:[#allocation8 + $0xc8] sm:$0xff] %v4479_v7  ;;  %v4323_v13 = vadd.f32 %v4886_v54, %v10690_v1  ;;  %v4998_v58 = vadd.f32 %v4997_v41, %v4996_v50 }
 0xbbc   :  { %v4999_v4 = vpop.f32.mrf.mxu1  ;;  %v4888_v35 = vpop.f32.mrf.mxu0 }
 0xbbd   :  { %v4484_v42 = vadd.f32 %v4998_v58, %v4323_v13  ;;  %v4889_v34 = vadd.f32 %v4888_v35, %v4887_v61 }
 0xbbe   :  { %v5000_v63 = vpop.f32.mrf.mxu1  ;;  %v4890_v37 = vpop.f32.mrf.mxu0 }
 0xbbf   :  { %4532 = vst [vmem:[#allocation8 + $0xd0] sm:$0xff] %v4484_v42  ;;  %v4326_v52 = vadd.f32 %v4889_v34, %v10690_v1  ;;  %v5001_v14 = vadd.f32 %v5000_v63, %v4999_v4 }
 0xbc0   :  { %v5002_v23 = vpop.f32.mrf.mxu1  ;;  %v4891_v44 = vpop.f32.mrf.mxu0 }
 0xbc1   :  { %v4487_v19 = vadd.f32 %v5001_v14, %v4326_v52  ;;  %v4892_v24 = vadd.f32 %v4891_v44, %v4890_v37 }
 0xbc2   :  { %v5003_v12 = vpop.f32.mrf.mxu1  ;;  %v4893_v27 = vpop.f32.mrf.mxu0 }
 0xbc3   :  { %4533 = vst [vmem:[#allocation8 + $0xd8] sm:$0xff] %v4487_v19  ;;  %v4331_v45 = vadd.f32 %v4892_v24, %v10690_v1  ;;  %v5004_v17 = vadd.f32 %v5003_v12, %v5002_v23 }
 0xbc4   :  { %v5005_v46 = vpop.f32.mrf.mxu1  ;;  %v4894_v16 = vpop.f32.mrf.mxu0 }
 0xbc5   :  { %v4492_v60 = vadd.f32 %v5004_v17, %v4331_v45  ;;  %v4895_v18 = vadd.f32 %v4894_v16, %v4893_v27 }
 0xbc6   :  { %v5006_v62 = vpop.f32.mrf.mxu1  ;;  %v4896_v21 = vpop.f32.mrf.mxu0 }
 0xbc7   :  { %4534 = vst [vmem:[#allocation8 + $0xe0] sm:$0xff] %v4492_v60  ;;  %v4334_v15 = vadd.f32 %v4895_v18, %v10690_v1  ;;  %v5007_v51 = vadd.f32 %v5006_v62, %v5005_v46 }
 0xbc8   :  { %v5008_v9 = vpop.f32.mrf.mxu1  ;;  %v4897_v29 = vpop.f32.mrf.mxu0 }
 0xbc9   :  { %v4495_v31 = vadd.f32 %v5007_v51, %v4334_v15  ;;  %v4898_v6 = vadd.f32 %v4897_v29, %v4896_v21 }
 0xbca   :  { %v5009_v26 = vpop.f32.mrf.mxu1  ;;  %v4899_v57 = vpop.f32.mrf.mxu0 }
 0xbcb   :  { %4535 = vst [vmem:[#allocation8 + $0xe8] sm:$0xff] %v4495_v31  ;;  %v4339_v38 = vadd.f32 %v4898_v6, %v10690_v1  ;;  %v5010_v49 = vadd.f32 %v5009_v26, %v5008_v9 }
 0xbcc   :  { %v5011_v56 = vpop.f32.mrf.mxu1  ;;  %v4900_v53 = vpop.f32.mrf.mxu0 }
 0xbcd   :  { %v4500_v28 = vadd.f32 %v5010_v49, %v4339_v38  ;;  %v4901_v48 = vadd.f32 %v4900_v53, %v4899_v57 }
 0xbce   :  { %v5012_v36 = vpop.f32.mrf.mxu1 }
 0xbcf   :  { %4536 = vst [vmem:[#allocation8 + $0xf0] sm:$0xff] %v4500_v28  ;;  %v4342_v40 = vadd.f32 %v4901_v48, %v10690_v1  ;;  %v5013_v55 = vadd.f32 %v5012_v36, %v5011_v56 }
 0xbd1   :  { %v4503_v43 = vadd.f32 %v5013_v55, %v4342_v40 }
 0xbd3   :  { %4537 = vst [vmem:[#allocation8 + $0xf8] sm:$0xff] %v4503_v43 }
 0xbd4   :  { %5320 = shalt.err (!%p5317_p5)
}
 0xbd5   :  { %s5348_s19 = smov 128   ;;  %s5349_s20 = smov 8  }
 0xbd6   :  { %4549 = dma.vmem_to_hbm [thread:$0]  %s4544_s17, 4096, %s10732_s5, [#allocation4], %s5348_s19, %s5348_s19, %s5349_s20  }
 0xbd7   :  { %5333 = dma.done.wait [#allocation4], 4096  }
 0xbd8   :  { %5334 = vsyncadd [#allocation4], 4294963200 }
 0xbd9   :  { %4553 = vsyncpa [#allocation3], 1 }
 0xbda   :  { %4554 = vsyncpa [#allocation6], 1 }
 0xbdb   :  { %4555 = vsyncpa [#allocation4], 1 }

</bundles_post_ra>
